<compile_context>
chip_gen: v5e
topology: v5e:2x2
jax: 0.10.0
libtpu: 0.0.40
codegen_flags: <defaults>
</compile_context>

<pallas_src>
import jax
import jax.numpy as jnp
from jax import lax
from jax.experimental import pallas as pl
from jax.experimental.pallas import tpu as pltpu

EPS = 1e-5  # nn.InstanceNorm2d default eps


# ----------------------------- Pallas kernel ------------------------------- #

def _make_resnet_block_kernel(H, W, C, compute_dtype):
    HW = H * W
    Hp, Wp = H + 2, W + 2

    def kernel(xp_ref, w1_ref, b1_ref, w2_ref, b2_ref, o_ref, y1p_ref):
        # xp_ref : (1, Hp, Wp, C) f32   reflection-padded input image
        # w*_ref : (9, C, C)      bf16  per-tap (Cin, Cout) conv weights
        # b*_ref : (1, C)         f32   conv biases
        # o_ref  : (1, HW, C)     f32   output (x + conv_block(x))
        # y1p_ref: (Hp, Wp, C)    bf16  scratch: re-padded intermediate activation
        xp = xp_ref[0]                                        # (Hp, Wp, C) f32
        x_res = xp[1:H + 1, 1:W + 1, :].reshape(HW, C)        # exact f32 residual
        xp_c = xp.astype(compute_dtype)

        def conv3x3(ap, w_ref):
            # 3x3 conv as 9 shifted (HW, C) @ (C, C) matmuls, f32 accumulation.
            acc = jnp.zeros((HW, C), jnp.float32)
            for kh in range(3):
                for kw in range(3):
                    tap = ap[kh:kh + H, kw:kw + W, :].reshape(HW, C)
                    acc = acc + jnp.dot(tap, w_ref[kh * 3 + kw],
                                        preferred_element_type=jnp.float32)
            return acc

        def instance_norm(y):
            # One-pass stats over the spatial (sublane) axis, per channel, in f32.
            inv_n = 1.0 / HW
            mean = jnp.sum(y, axis=0, keepdims=True) * inv_n
            ex2 = jnp.sum(y * y, axis=0, keepdims=True) * inv_n
            var = jnp.maximum(ex2 - mean * mean, 0.0)
            return (y - mean) * lax.rsqrt(var + EPS)

        # ---- stage 1: Conv2d + bias + InstanceNorm + ReLU -------------------
        y1 = conv3x3(xp_c, w1_ref) + b1_ref[...]
        y1 = jnp.maximum(instance_norm(y1), 0.0)              # (HW, C) f32

        # ---- in-kernel ReflectionPad2d(1) of y1 into VMEM scratch -----------
        y1h = y1.reshape(H, W, C).astype(compute_dtype)
        y1p_ref[1:H + 1, 1:W + 1, :] = y1h                    # interior
        y1p_ref[1:H + 1, 0:1, :] = y1h[:, 1:2, :]             # left  (reflect col 1)
        y1p_ref[1:H + 1, W + 1:W + 2, :] = y1h[:, W - 2:W - 1, :]  # right (col W-2)
        y1p_ref[0:1, :, :] = y1p_ref[2:3, :, :]               # top    (incl. corners)
        y1p_ref[Hp - 1:Hp, :, :] = y1p_ref[Hp - 3:Hp - 2, :, :]  # bottom (incl. corners)

        # ---- stage 2: Conv2d + bias + InstanceNorm + residual add -----------
        y2 = conv3x3(y1p_ref[...], w2_ref) + b2_ref[...]
        y2 = instance_norm(y2)
        o_ref[0] = x_res + y2

    return kernel


# ------------------------------- JAX wrapper -------------------------------- #

def resnet_block_forward(x_nchw, w1, b1, w2, b2, *, compute_dtype=jnp.bfloat16):
    """Pallas implementation of ResnetBlock.forward. x_nchw: (B, C, H, W) f32."""
    B, C, H, W = x_nchw.shape
    HW = H * W
    Hp, Wp = H + 2, W + 2

    x_nhwc = jnp.transpose(x_nchw, (0, 2, 3, 1)).astype(jnp.float32)
    xp = jnp.pad(x_nhwc, ((0, 0), (1, 1), (1, 1), (0, 0)), mode="reflect")

    def to_taps(w):
        # PyTorch (Cout, Cin, kh, kw) -> (kh, kw, Cin, Cout) -> (9, Cin, Cout)
        return jnp.transpose(w, (2, 3, 1, 0)).reshape(9, C, C).astype(compute_dtype)

    w1t, w2t = to_taps(w1), to_taps(w2)
    b1m = b1.reshape(1, C).astype(jnp.float32)
    b2m = b2.reshape(1, C).astype(jnp.float32)

    kernel = _make_resnet_block_kernel(H, W, C, compute_dtype)

    # VMEM budget: double-buffered input/output blocks + weights + padded
    # intermediate scratch + headroom for in-kernel f32 temporaries.
    f32b = 4
    cdb = jnp.dtype(compute_dtype).itemsize
    est = (4 * (Hp * Wp * C + HW * C) * f32b
           + 2 * 9 * C * C * cdb
           + Hp * Wp * C * cdb
           + 8 * HW * C * f32b)
    vmem_limit = int(min(max(est, 32 * 2**20), 64 * 2**20))

    out = pl.pallas_call(
        kernel,
        out_shape=jax.ShapeDtypeStruct((B, HW, C), jnp.float32),
        grid=(B,),
        in_specs=[
            pl.BlockSpec((1, Hp, Wp, C), lambda b: (b, 0, 0, 0)),  # padded image
            pl.BlockSpec((9, C, C), lambda b: (0, 0, 0)),          # conv1 weights
            pl.BlockSpec((1, C), lambda b: (0, 0)),                # conv1 bias
            pl.BlockSpec((9, C, C), lambda b: (0, 0, 0)),          # conv2 weights
            pl.BlockSpec((1, C), lambda b: (0, 0)),                # conv2 bias
        ],
        out_specs=pl.BlockSpec((1, HW, C), lambda b: (b, 0, 0)),
        scratch_shapes=[pltpu.VMEM((Hp, Wp, C), compute_dtype)],
        compiler_params=pltpu.CompilerParams(
            dimension_semantics=("parallel",),
            vmem_limit_bytes=vmem_limit,
        ),
    )(xp, w1t, b1m, w2t, b2m)

    return jnp.transpose(out.reshape(B, H, W, C), (0, 3, 1, 2))   # back to NCHW


# ------------------------- pure-JAX reference check ------------------------ #

def _reference(x, w1, b1, w2, b2):
    def conv(z, w, b):
        zp = jnp.pad(z, ((0, 0), (0, 0), (1, 1), (1, 1)), mode="reflect")
        y = lax.conv_general_dilated(zp, w, (1, 1), "VALID",
                                     dimension_numbers=("NCHW", "OIHW", "NCHW"))
        return y + b[None, :, None, None]

    def inorm(y):
        mean = jnp.mean(y, axis=(2, 3), keepdims=True)
        var = jnp.mean((y - mean) ** 2, axis=(2, 3), keepdims=True)
        return (y - mean) * lax.rsqrt(var + EPS)

    h = jnp.maximum(inorm(conv(x, w1, b1)), 0.0)
    return x + inorm(conv(h, w2, b2))


# ---------------------------------- main ----------------------------------- #

if __name__ == "__main__":
    B, C, H, W = 2, 4, 16, 16          # dim = 4
    key = jax.random.PRNGKey(0)
    kx, k1, k2, k3, k4 = jax.random.split(key, 5)

    x = jax.random.normal(kx, (B, C, H, W), jnp.float32)
    fan_in = C * 3 * 3
    w1 = jax.random.normal(k1, (C, C, 3, 3), jnp.float32) / jnp.sqrt(fan_in)
    b1 = 0.1 * jax.random.normal(k2, (C,), jnp.float32)
    w2 = jax.random.normal(k3, (C, C, 3, 3), jnp.float32) / jnp.sqrt(fan_in)
    b2 = 0.1 * jax.random.normal(k4, (C,), jnp.float32)

    out = jax.block_until_ready(resnet_block_forward(x, w1, b1, w2, b2))
    ref = jax.block_until_ready(_reference(x, w1, b1, w2, b2))

    assert out.shape == x.shape and out.dtype == jnp.float32
    # bf16 MXU inputs (f32 accumulation / normalization) -> relaxed tolerance.
    if not jnp.allclose(out, ref, atol=5e-2, rtol=5e-2):
        raise AssertionError("Pallas ResnetBlock does not match JAX reference")
    print("KERNEL_OK")
</pallas_src>

<mosaic_0001>
module attributes {stable_mosaic.version = 11 : i64} {
  func.func @kernel(%arg0: i32, %arg1: memref<1x18x18x4xf32, #tpu.memory_space<vmem>>, %arg2: memref<9x4x4xbf16, #tpu.memory_space<vmem>>, %arg3: memref<1x4xf32, #tpu.memory_space<vmem>>, %arg4: memref<9x4x4xbf16, #tpu.memory_space<vmem>>, %arg5: memref<1x4xf32, #tpu.memory_space<vmem>>, %arg6: memref<1x256x4xf32, #tpu.memory_space<vmem>>, %arg7: memref<18x18x4xbf16, #tpu.memory_space<vmem>>) attributes {dimension_semantics = [#tpu.dimension_semantics<parallel>], iteration_bounds = array<i64: 2>, scalar_prefetch = 0 : i64, scratch_operands = 1 : i64, tpu.core_type = #tpu.core_type<tc>, window_params = [{transform_indices = @transform_0, window_bounds = array<i64: 1, 18, 18, 4>}, {pipeline_mode = #tpu.pipeline_mode<synchronous>, transform_indices = @transform_1, window_bounds = array<i64: 9, 4, 4>}, {pipeline_mode = #tpu.pipeline_mode<synchronous>, transform_indices = @transform_2, window_bounds = array<i64: 1, 4>}, {pipeline_mode = #tpu.pipeline_mode<synchronous>, transform_indices = @transform_3, window_bounds = array<i64: 9, 4, 4>}, {pipeline_mode = #tpu.pipeline_mode<synchronous>, transform_indices = @transform_4, window_bounds = array<i64: 1, 4>}, {transform_indices = @transform_5, window_bounds = array<i64: 1, 256, 4>}]} {
    %c0 = arith.constant 0 : index
    %c0_0 = arith.constant 0 : index
    %c0_1 = arith.constant 0 : index
    %c0_2 = arith.constant 0 : index
    %0 = vector.load %arg1[%c0, %c0_0, %c0_1, %c0_2] : memref<1x18x18x4xf32, #tpu.memory_space<vmem>>, vector<1x18x18x4xf32>
    %1 = vector.shape_cast %0 : vector<1x18x18x4xf32> to vector<18x18x4xf32>
    %2 = vector.extract_strided_slice %1 {offsets = [1, 1, 0], sizes = [16, 16, 4], strides = [1, 1, 1]} : vector<18x18x4xf32> to vector<16x16x4xf32>
    %3 = vector.shape_cast %2 : vector<16x16x4xf32> to vector<256x4xf32>
    %4 = arith.truncf %1 : vector<18x18x4xf32> to vector<18x18x4xbf16>
    %cst = arith.constant 0.000000e+00 : f32
    %5 = vector.broadcast %cst : f32 to vector<256x4xf32>
    %6 = vector.extract_strided_slice %4 {offsets = [0, 0, 0], sizes = [16, 16, 4], strides = [1, 1, 1]} : vector<18x18x4xbf16> to vector<16x16x4xbf16>
    %7 = vector.shape_cast %6 : vector<16x16x4xbf16> to vector<256x4xbf16>
    %c0_3 = arith.constant 0 : index
    %c0_4 = arith.constant 0 : index
    %c0_5 = arith.constant 0 : index
    %8 = vector.load %arg2[%c0_3, %c0_4, %c0_5] : memref<9x4x4xbf16, #tpu.memory_space<vmem>>, vector<1x4x4xbf16>
    %9 = vector.shape_cast %8 : vector<1x4x4xbf16> to vector<4x4xbf16>
    %cst_6 = arith.constant dense<0.000000e+00> : vector<256x4xf32>
    %10 = tpu.matmul %7, %9, %cst_6 {dimension_numbers = #tpu.dot_dimension_numbers<[1], [0], [0], [1], [0, 0, 1, 1], [], []>} : vector<256x4xbf16>, vector<4x4xbf16>, vector<256x4xf32> -> vector<256x4xf32>
    %11 = arith.addf %5, %10 : vector<256x4xf32>
    %12 = vector.extract_strided_slice %4 {offsets = [0, 1, 0], sizes = [16, 16, 4], strides = [1, 1, 1]} : vector<18x18x4xbf16> to vector<16x16x4xbf16>
    %13 = vector.shape_cast %12 : vector<16x16x4xbf16> to vector<256x4xbf16>
    %c1 = arith.constant 1 : index
    %c0_7 = arith.constant 0 : index
    %c0_8 = arith.constant 0 : index
    %14 = vector.load %arg2[%c1, %c0_7, %c0_8] : memref<9x4x4xbf16, #tpu.memory_space<vmem>>, vector<1x4x4xbf16>
    %15 = vector.shape_cast %14 : vector<1x4x4xbf16> to vector<4x4xbf16>
    %cst_9 = arith.constant dense<0.000000e+00> : vector<256x4xf32>
    %16 = tpu.matmul %13, %15, %cst_9 {dimension_numbers = #tpu.dot_dimension_numbers<[1], [0], [0], [1], [0, 0, 1, 1], [], []>} : vector<256x4xbf16>, vector<4x4xbf16>, vector<256x4xf32> -> vector<256x4xf32>
    %17 = arith.addf %11, %16 : vector<256x4xf32>
    %18 = vector.extract_strided_slice %4 {offsets = [0, 2, 0], sizes = [16, 16, 4], strides = [1, 1, 1]} : vector<18x18x4xbf16> to vector<16x16x4xbf16>
    %19 = vector.shape_cast %18 : vector<16x16x4xbf16> to vector<256x4xbf16>
    %c2 = arith.constant 2 : index
    %c0_10 = arith.constant 0 : index
    %c0_11 = arith.constant 0 : index
    %20 = vector.load %arg2[%c2, %c0_10, %c0_11] : memref<9x4x4xbf16, #tpu.memory_space<vmem>>, vector<1x4x4xbf16>
    %21 = vector.shape_cast %20 : vector<1x4x4xbf16> to vector<4x4xbf16>
    %cst_12 = arith.constant dense<0.000000e+00> : vector<256x4xf32>
    %22 = tpu.matmul %19, %21, %cst_12 {dimension_numbers = #tpu.dot_dimension_numbers<[1], [0], [0], [1], [0, 0, 1, 1], [], []>} : vector<256x4xbf16>, vector<4x4xbf16>, vector<256x4xf32> -> vector<256x4xf32>
    %23 = arith.addf %17, %22 : vector<256x4xf32>
    %24 = vector.extract_strided_slice %4 {offsets = [1, 0, 0], sizes = [16, 16, 4], strides = [1, 1, 1]} : vector<18x18x4xbf16> to vector<16x16x4xbf16>
    %25 = vector.shape_cast %24 : vector<16x16x4xbf16> to vector<256x4xbf16>
    %c3 = arith.constant 3 : index
    %c0_13 = arith.constant 0 : index
    %c0_14 = arith.constant 0 : index
    %26 = vector.load %arg2[%c3, %c0_13, %c0_14] : memref<9x4x4xbf16, #tpu.memory_space<vmem>>, vector<1x4x4xbf16>
    %27 = vector.shape_cast %26 : vector<1x4x4xbf16> to vector<4x4xbf16>
    %cst_15 = arith.constant dense<0.000000e+00> : vector<256x4xf32>
    %28 = tpu.matmul %25, %27, %cst_15 {dimension_numbers = #tpu.dot_dimension_numbers<[1], [0], [0], [1], [0, 0, 1, 1], [], []>} : vector<256x4xbf16>, vector<4x4xbf16>, vector<256x4xf32> -> vector<256x4xf32>
    %29 = arith.addf %23, %28 : vector<256x4xf32>
    %30 = vector.extract_strided_slice %4 {offsets = [1, 1, 0], sizes = [16, 16, 4], strides = [1, 1, 1]} : vector<18x18x4xbf16> to vector<16x16x4xbf16>
    %31 = vector.shape_cast %30 : vector<16x16x4xbf16> to vector<256x4xbf16>
    %c4 = arith.constant 4 : index
    %c0_16 = arith.constant 0 : index
    %c0_17 = arith.constant 0 : index
    %32 = vector.load %arg2[%c4, %c0_16, %c0_17] : memref<9x4x4xbf16, #tpu.memory_space<vmem>>, vector<1x4x4xbf16>
    %33 = vector.shape_cast %32 : vector<1x4x4xbf16> to vector<4x4xbf16>
    %cst_18 = arith.constant dense<0.000000e+00> : vector<256x4xf32>
    %34 = tpu.matmul %31, %33, %cst_18 {dimension_numbers = #tpu.dot_dimension_numbers<[1], [0], [0], [1], [0, 0, 1, 1], [], []>} : vector<256x4xbf16>, vector<4x4xbf16>, vector<256x4xf32> -> vector<256x4xf32>
    %35 = arith.addf %29, %34 : vector<256x4xf32>
    %36 = vector.extract_strided_slice %4 {offsets = [1, 2, 0], sizes = [16, 16, 4], strides = [1, 1, 1]} : vector<18x18x4xbf16> to vector<16x16x4xbf16>
    %37 = vector.shape_cast %36 : vector<16x16x4xbf16> to vector<256x4xbf16>
    %c5 = arith.constant 5 : index
    %c0_19 = arith.constant 0 : index
    %c0_20 = arith.constant 0 : index
    %38 = vector.load %arg2[%c5, %c0_19, %c0_20] : memref<9x4x4xbf16, #tpu.memory_space<vmem>>, vector<1x4x4xbf16>
    %39 = vector.shape_cast %38 : vector<1x4x4xbf16> to vector<4x4xbf16>
    %cst_21 = arith.constant dense<0.000000e+00> : vector<256x4xf32>
    %40 = tpu.matmul %37, %39, %cst_21 {dimension_numbers = #tpu.dot_dimension_numbers<[1], [0], [0], [1], [0, 0, 1, 1], [], []>} : vector<256x4xbf16>, vector<4x4xbf16>, vector<256x4xf32> -> vector<256x4xf32>
    %41 = arith.addf %35, %40 : vector<256x4xf32>
    %42 = vector.extract_strided_slice %4 {offsets = [2, 0, 0], sizes = [16, 16, 4], strides = [1, 1, 1]} : vector<18x18x4xbf16> to vector<16x16x4xbf16>
    %43 = vector.shape_cast %42 : vector<16x16x4xbf16> to vector<256x4xbf16>
    %c6 = arith.constant 6 : index
    %c0_22 = arith.constant 0 : index
    %c0_23 = arith.constant 0 : index
    %44 = vector.load %arg2[%c6, %c0_22, %c0_23] : memref<9x4x4xbf16, #tpu.memory_space<vmem>>, vector<1x4x4xbf16>
    %45 = vector.shape_cast %44 : vector<1x4x4xbf16> to vector<4x4xbf16>
    %cst_24 = arith.constant dense<0.000000e+00> : vector<256x4xf32>
    %46 = tpu.matmul %43, %45, %cst_24 {dimension_numbers = #tpu.dot_dimension_numbers<[1], [0], [0], [1], [0, 0, 1, 1], [], []>} : vector<256x4xbf16>, vector<4x4xbf16>, vector<256x4xf32> -> vector<256x4xf32>
    %47 = arith.addf %41, %46 : vector<256x4xf32>
    %48 = vector.extract_strided_slice %4 {offsets = [2, 1, 0], sizes = [16, 16, 4], strides = [1, 1, 1]} : vector<18x18x4xbf16> to vector<16x16x4xbf16>
    %49 = vector.shape_cast %48 : vector<16x16x4xbf16> to vector<256x4xbf16>
    %c7 = arith.constant 7 : index
    %c0_25 = arith.constant 0 : index
    %c0_26 = arith.constant 0 : index
    %50 = vector.load %arg2[%c7, %c0_25, %c0_26] : memref<9x4x4xbf16, #tpu.memory_space<vmem>>, vector<1x4x4xbf16>
    %51 = vector.shape_cast %50 : vector<1x4x4xbf16> to vector<4x4xbf16>
    %cst_27 = arith.constant dense<0.000000e+00> : vector<256x4xf32>
    %52 = tpu.matmul %49, %51, %cst_27 {dimension_numbers = #tpu.dot_dimension_numbers<[1], [0], [0], [1], [0, 0, 1, 1], [], []>} : vector<256x4xbf16>, vector<4x4xbf16>, vector<256x4xf32> -> vector<256x4xf32>
    %53 = arith.addf %47, %52 : vector<256x4xf32>
    %54 = vector.extract_strided_slice %4 {offsets = [2, 2, 0], sizes = [16, 16, 4], strides = [1, 1, 1]} : vector<18x18x4xbf16> to vector<16x16x4xbf16>
    %55 = vector.shape_cast %54 : vector<16x16x4xbf16> to vector<256x4xbf16>
    %c8 = arith.constant 8 : index
    %c0_28 = arith.constant 0 : index
    %c0_29 = arith.constant 0 : index
    %56 = vector.load %arg2[%c8, %c0_28, %c0_29] : memref<9x4x4xbf16, #tpu.memory_space<vmem>>, vector<1x4x4xbf16>
    %57 = vector.shape_cast %56 : vector<1x4x4xbf16> to vector<4x4xbf16>
    %cst_30 = arith.constant dense<0.000000e+00> : vector<256x4xf32>
    %58 = tpu.matmul %55, %57, %cst_30 {dimension_numbers = #tpu.dot_dimension_numbers<[1], [0], [0], [1], [0, 0, 1, 1], [], []>} : vector<256x4xbf16>, vector<4x4xbf16>, vector<256x4xf32> -> vector<256x4xf32>
    %59 = arith.addf %53, %58 : vector<256x4xf32>
    %c0_31 = arith.constant 0 : index
    %c0_32 = arith.constant 0 : index
    %60 = vector.load %arg3[%c0_31, %c0_32] : memref<1x4xf32, #tpu.memory_space<vmem>>, vector<1x4xf32>
    %61 = vector.broadcast %60 : vector<1x4xf32> to vector<256x4xf32>
    %62 = arith.addf %59, %61 : vector<256x4xf32>
    %cst_33 = arith.constant dense<0.000000e+00> : vector<4xf32>
    %63 = vector.multi_reduction <add>, %62, %cst_33 [0] : vector<256x4xf32> to vector<4xf32>
    %64 = vector.shape_cast %63 : vector<4xf32> to vector<1x4xf32>
    %cst_34 = arith.constant 3.906250e-03 : f32
    %65 = vector.broadcast %cst_34 : f32 to vector<1x4xf32>
    %66 = arith.mulf %64, %65 : vector<1x4xf32>
    %67 = arith.mulf %62, %62 : vector<256x4xf32>
    %cst_35 = arith.constant dense<0.000000e+00> : vector<4xf32>
    %68 = vector.multi_reduction <add>, %67, %cst_35 [0] : vector<256x4xf32> to vector<4xf32>
    %69 = vector.shape_cast %68 : vector<4xf32> to vector<1x4xf32>
    %cst_36 = arith.constant 3.906250e-03 : f32
    %70 = vector.broadcast %cst_36 : f32 to vector<1x4xf32>
    %71 = arith.mulf %69, %70 : vector<1x4xf32>
    %72 = arith.mulf %66, %66 : vector<1x4xf32>
    %73 = arith.subf %71, %72 : vector<1x4xf32>
    %cst_37 = arith.constant 0.000000e+00 : f32
    %74 = vector.broadcast %cst_37 : f32 to vector<1x4xf32>
    %75 = arith.maximumf %73, %74 : vector<1x4xf32>
    %76 = vector.broadcast %66 : vector<1x4xf32> to vector<256x4xf32>
    %77 = arith.subf %62, %76 : vector<256x4xf32>
    %cst_38 = arith.constant 9.99999974E-6 : f32
    %78 = vector.broadcast %cst_38 : f32 to vector<1x4xf32>
    %79 = arith.addf %75, %78 : vector<1x4xf32>
    %80 = math.rsqrt %79 : vector<1x4xf32>
    %81 = vector.broadcast %80 : vector<1x4xf32> to vector<256x4xf32>
    %82 = arith.mulf %77, %81 : vector<256x4xf32>
    %cst_39 = arith.constant 0.000000e+00 : f32
    %83 = vector.broadcast %cst_39 : f32 to vector<256x4xf32>
    %84 = arith.maximumf %82, %83 : vector<256x4xf32>
    %85 = vector.shape_cast %84 : vector<256x4xf32> to vector<16x16x4xf32>
    %86 = arith.truncf %85 : vector<16x16x4xf32> to vector<16x16x4xbf16>
    %c1_40 = arith.constant 1 : index
    %c1_41 = arith.constant 1 : index
    %c0_42 = arith.constant 0 : index
    %87 = vector.load %arg7[%c1_40, %c1_41, %c0_42] : memref<18x18x4xbf16, #tpu.memory_space<vmem>>, vector<16x16x4xbf16>
    tpu.vector_store %arg7[%c1_40, %c1_41, %c0_42], %86 {strides = array<i32>} : memref<18x18x4xbf16, #tpu.memory_space<vmem>>, vector<16x16x4xbf16>,
    %88 = vector.extract_strided_slice %86 {offsets = [0, 1, 0], sizes = [16, 1, 4], strides = [1, 1, 1]} : vector<16x16x4xbf16> to vector<16x1x4xbf16>
    %c1_43 = arith.constant 1 : index
    %c0_44 = arith.constant 0 : index
    %c0_45 = arith.constant 0 : index
    %89 = vector.load %arg7[%c1_43, %c0_44, %c0_45] : memref<18x18x4xbf16, #tpu.memory_space<vmem>>, vector<16x1x4xbf16>
    tpu.vector_store %arg7[%c1_43, %c0_44, %c0_45], %88 {strides = array<i32>} : memref<18x18x4xbf16, #tpu.memory_space<vmem>>, vector<16x1x4xbf16>,
    %90 = vector.extract_strided_slice %86 {offsets = [0, 14, 0], sizes = [16, 1, 4], strides = [1, 1, 1]} : vector<16x16x4xbf16> to vector<16x1x4xbf16>
    %c1_46 = arith.constant 1 : index
    %c17 = arith.constant 17 : index
    %c0_47 = arith.constant 0 : index
    %91 = vector.load %arg7[%c1_46, %c17, %c0_47] : memref<18x18x4xbf16, #tpu.memory_space<vmem>>, vector<16x1x4xbf16>
    tpu.vector_store %arg7[%c1_46, %c17, %c0_47], %90 {strides = array<i32>} : memref<18x18x4xbf16, #tpu.memory_space<vmem>>, vector<16x1x4xbf16>,
    %c2_48 = arith.constant 2 : index
    %c0_49 = arith.constant 0 : index
    %c0_50 = arith.constant 0 : index
    %92 = vector.load %arg7[%c2_48, %c0_49, %c0_50] : memref<18x18x4xbf16, #tpu.memory_space<vmem>>, vector<1x18x4xbf16>
    %c0_51 = arith.constant 0 : index
    %c0_52 = arith.constant 0 : index
    %c0_53 = arith.constant 0 : index
    %93 = vector.load %arg7[%c0_51, %c0_52, %c0_53] : memref<18x18x4xbf16, #tpu.memory_space<vmem>>, vector<1x18x4xbf16>
    tpu.vector_store %arg7[%c0_51, %c0_52, %c0_53], %92 {strides = array<i32>} : memref<18x18x4xbf16, #tpu.memory_space<vmem>>, vector<1x18x4xbf16>,
    %c15 = arith.constant 15 : index
    %c0_54 = arith.constant 0 : index
    %c0_55 = arith.constant 0 : index
    %94 = vector.load %arg7[%c15, %c0_54, %c0_55] : memref<18x18x4xbf16, #tpu.memory_space<vmem>>, vector<1x18x4xbf16>
    %c17_56 = arith.constant 17 : index
    %c0_57 = arith.constant 0 : index
    %c0_58 = arith.constant 0 : index
    %95 = vector.load %arg7[%c17_56, %c0_57, %c0_58] : memref<18x18x4xbf16, #tpu.memory_space<vmem>>, vector<1x18x4xbf16>
    tpu.vector_store %arg7[%c17_56, %c0_57, %c0_58], %94 {strides = array<i32>} : memref<18x18x4xbf16, #tpu.memory_space<vmem>>, vector<1x18x4xbf16>,
    %c0_59 = arith.constant 0 : index
    %c0_60 = arith.constant 0 : index
    %c0_61 = arith.constant 0 : index
    %96 = vector.load %arg7[%c0_59, %c0_60, %c0_61] : memref<18x18x4xbf16, #tpu.memory_space<vmem>>, vector<18x18x4xbf16>
    %cst_62 = arith.constant 0.000000e+00 : f32
    %97 = vector.broadcast %cst_62 : f32 to vector<256x4xf32>
    %98 = vector.extract_strided_slice %96 {offsets = [0, 0, 0], sizes = [16, 16, 4], strides = [1, 1, 1]} : vector<18x18x4xbf16> to vector<16x16x4xbf16>
    %99 = vector.shape_cast %98 : vector<16x16x4xbf16> to vector<256x4xbf16>
    %c0_63 = arith.constant 0 : index
    %c0_64 = arith.constant 0 : index
    %c0_65 = arith.constant 0 : index
    %100 = vector.load %arg4[%c0_63, %c0_64, %c0_65] : memref<9x4x4xbf16, #tpu.memory_space<vmem>>, vector<1x4x4xbf16>
    %101 = vector.shape_cast %100 : vector<1x4x4xbf16> to vector<4x4xbf16>
    %cst_66 = arith.constant dense<0.000000e+00> : vector<256x4xf32>
    %102 = tpu.matmul %99, %101, %cst_66 {dimension_numbers = #tpu.dot_dimension_numbers<[1], [0], [0], [1], [0, 0, 1, 1], [], []>} : vector<256x4xbf16>, vector<4x4xbf16>, vector<256x4xf32> -> vector<256x4xf32>
    %103 = arith.addf %97, %102 : vector<256x4xf32>
    %104 = vector.extract_strided_slice %96 {offsets = [0, 1, 0], sizes = [16, 16, 4], strides = [1, 1, 1]} : vector<18x18x4xbf16> to vector<16x16x4xbf16>
    %105 = vector.shape_cast %104 : vector<16x16x4xbf16> to vector<256x4xbf16>
    %c1_67 = arith.constant 1 : index
    %c0_68 = arith.constant 0 : index
    %c0_69 = arith.constant 0 : index
    %106 = vector.load %arg4[%c1_67, %c0_68, %c0_69] : memref<9x4x4xbf16, #tpu.memory_space<vmem>>, vector<1x4x4xbf16>
    %107 = vector.shape_cast %106 : vector<1x4x4xbf16> to vector<4x4xbf16>
    %cst_70 = arith.constant dense<0.000000e+00> : vector<256x4xf32>
    %108 = tpu.matmul %105, %107, %cst_70 {dimension_numbers = #tpu.dot_dimension_numbers<[1], [0], [0], [1], [0, 0, 1, 1], [], []>} : vector<256x4xbf16>, vector<4x4xbf16>, vector<256x4xf32> -> vector<256x4xf32>
    %109 = arith.addf %103, %108 : vector<256x4xf32>
    %110 = vector.extract_strided_slice %96 {offsets = [0, 2, 0], sizes = [16, 16, 4], strides = [1, 1, 1]} : vector<18x18x4xbf16> to vector<16x16x4xbf16>
    %111 = vector.shape_cast %110 : vector<16x16x4xbf16> to vector<256x4xbf16>
    %c2_71 = arith.constant 2 : index
    %c0_72 = arith.constant 0 : index
    %c0_73 = arith.constant 0 : index
    %112 = vector.load %arg4[%c2_71, %c0_72, %c0_73] : memref<9x4x4xbf16, #tpu.memory_space<vmem>>, vector<1x4x4xbf16>
    %113 = vector.shape_cast %112 : vector<1x4x4xbf16> to vector<4x4xbf16>
    %cst_74 = arith.constant dense<0.000000e+00> : vector<256x4xf32>
    %114 = tpu.matmul %111, %113, %cst_74 {dimension_numbers = #tpu.dot_dimension_numbers<[1], [0], [0], [1], [0, 0, 1, 1], [], []>} : vector<256x4xbf16>, vector<4x4xbf16>, vector<256x4xf32> -> vector<256x4xf32>
    %115 = arith.addf %109, %114 : vector<256x4xf32>
    %116 = vector.extract_strided_slice %96 {offsets = [1, 0, 0], sizes = [16, 16, 4], strides = [1, 1, 1]} : vector<18x18x4xbf16> to vector<16x16x4xbf16>
    %117 = vector.shape_cast %116 : vector<16x16x4xbf16> to vector<256x4xbf16>
    %c3_75 = arith.constant 3 : index
    %c0_76 = arith.constant 0 : index
    %c0_77 = arith.constant 0 : index
    %118 = vector.load %arg4[%c3_75, %c0_76, %c0_77] : memref<9x4x4xbf16, #tpu.memory_space<vmem>>, vector<1x4x4xbf16>
    %119 = vector.shape_cast %118 : vector<1x4x4xbf16> to vector<4x4xbf16>
    %cst_78 = arith.constant dense<0.000000e+00> : vector<256x4xf32>
    %120 = tpu.matmul %117, %119, %cst_78 {dimension_numbers = #tpu.dot_dimension_numbers<[1], [0], [0], [1], [0, 0, 1, 1], [], []>} : vector<256x4xbf16>, vector<4x4xbf16>, vector<256x4xf32> -> vector<256x4xf32>
    %121 = arith.addf %115, %120 : vector<256x4xf32>
    %122 = vector.extract_strided_slice %96 {offsets = [1, 1, 0], sizes = [16, 16, 4], strides = [1, 1, 1]} : vector<18x18x4xbf16> to vector<16x16x4xbf16>
    %123 = vector.shape_cast %122 : vector<16x16x4xbf16> to vector<256x4xbf16>
    %c4_79 = arith.constant 4 : index
    %c0_80 = arith.constant 0 : index
    %c0_81 = arith.constant 0 : index
    %124 = vector.load %arg4[%c4_79, %c0_80, %c0_81] : memref<9x4x4xbf16, #tpu.memory_space<vmem>>, vector<1x4x4xbf16>
    %125 = vector.shape_cast %124 : vector<1x4x4xbf16> to vector<4x4xbf16>
    %cst_82 = arith.constant dense<0.000000e+00> : vector<256x4xf32>
    %126 = tpu.matmul %123, %125, %cst_82 {dimension_numbers = #tpu.dot_dimension_numbers<[1], [0], [0], [1], [0, 0, 1, 1], [], []>} : vector<256x4xbf16>, vector<4x4xbf16>, vector<256x4xf32> -> vector<256x4xf32>
    %127 = arith.addf %121, %126 : vector<256x4xf32>
    %128 = vector.extract_strided_slice %96 {offsets = [1, 2, 0], sizes = [16, 16, 4], strides = [1, 1, 1]} : vector<18x18x4xbf16> to vector<16x16x4xbf16>
    %129 = vector.shape_cast %128 : vector<16x16x4xbf16> to vector<256x4xbf16>
    %c5_83 = arith.constant 5 : index
    %c0_84 = arith.constant 0 : index
    %c0_85 = arith.constant 0 : index
    %130 = vector.load %arg4[%c5_83, %c0_84, %c0_85] : memref<9x4x4xbf16, #tpu.memory_space<vmem>>, vector<1x4x4xbf16>
    %131 = vector.shape_cast %130 : vector<1x4x4xbf16> to vector<4x4xbf16>
    %cst_86 = arith.constant dense<0.000000e+00> : vector<256x4xf32>
    %132 = tpu.matmul %129, %131, %cst_86 {dimension_numbers = #tpu.dot_dimension_numbers<[1], [0], [0], [1], [0, 0, 1, 1], [], []>} : vector<256x4xbf16>, vector<4x4xbf16>, vector<256x4xf32> -> vector<256x4xf32>
    %133 = arith.addf %127, %132 : vector<256x4xf32>
    %134 = vector.extract_strided_slice %96 {offsets = [2, 0, 0], sizes = [16, 16, 4], strides = [1, 1, 1]} : vector<18x18x4xbf16> to vector<16x16x4xbf16>
    %135 = vector.shape_cast %134 : vector<16x16x4xbf16> to vector<256x4xbf16>
    %c6_87 = arith.constant 6 : index
    %c0_88 = arith.constant 0 : index
    %c0_89 = arith.constant 0 : index
    %136 = vector.load %arg4[%c6_87, %c0_88, %c0_89] : memref<9x4x4xbf16, #tpu.memory_space<vmem>>, vector<1x4x4xbf16>
    %137 = vector.shape_cast %136 : vector<1x4x4xbf16> to vector<4x4xbf16>
    %cst_90 = arith.constant dense<0.000000e+00> : vector<256x4xf32>
    %138 = tpu.matmul %135, %137, %cst_90 {dimension_numbers = #tpu.dot_dimension_numbers<[1], [0], [0], [1], [0, 0, 1, 1], [], []>} : vector<256x4xbf16>, vector<4x4xbf16>, vector<256x4xf32> -> vector<256x4xf32>
    %139 = arith.addf %133, %138 : vector<256x4xf32>
    %140 = vector.extract_strided_slice %96 {offsets = [2, 1, 0], sizes = [16, 16, 4], strides = [1, 1, 1]} : vector<18x18x4xbf16> to vector<16x16x4xbf16>
    %141 = vector.shape_cast %140 : vector<16x16x4xbf16> to vector<256x4xbf16>
    %c7_91 = arith.constant 7 : index
    %c0_92 = arith.constant 0 : index
    %c0_93 = arith.constant 0 : index
    %142 = vector.load %arg4[%c7_91, %c0_92, %c0_93] : memref<9x4x4xbf16, #tpu.memory_space<vmem>>, vector<1x4x4xbf16>
    %143 = vector.shape_cast %142 : vector<1x4x4xbf16> to vector<4x4xbf16>
    %cst_94 = arith.constant dense<0.000000e+00> : vector<256x4xf32>
    %144 = tpu.matmul %141, %143, %cst_94 {dimension_numbers = #tpu.dot_dimension_numbers<[1], [0], [0], [1], [0, 0, 1, 1], [], []>} : vector<256x4xbf16>, vector<4x4xbf16>, vector<256x4xf32> -> vector<256x4xf32>
    %145 = arith.addf %139, %144 : vector<256x4xf32>
    %146 = vector.extract_strided_slice %96 {offsets = [2, 2, 0], sizes = [16, 16, 4], strides = [1, 1, 1]} : vector<18x18x4xbf16> to vector<16x16x4xbf16>
    %147 = vector.shape_cast %146 : vector<16x16x4xbf16> to vector<256x4xbf16>
    %c8_95 = arith.constant 8 : index
    %c0_96 = arith.constant 0 : index
    %c0_97 = arith.constant 0 : index
    %148 = vector.load %arg4[%c8_95, %c0_96, %c0_97] : memref<9x4x4xbf16, #tpu.memory_space<vmem>>, vector<1x4x4xbf16>
    %149 = vector.shape_cast %148 : vector<1x4x4xbf16> to vector<4x4xbf16>
    %cst_98 = arith.constant dense<0.000000e+00> : vector<256x4xf32>
    %150 = tpu.matmul %147, %149, %cst_98 {dimension_numbers = #tpu.dot_dimension_numbers<[1], [0], [0], [1], [0, 0, 1, 1], [], []>} : vector<256x4xbf16>, vector<4x4xbf16>, vector<256x4xf32> -> vector<256x4xf32>
    %151 = arith.addf %145, %150 : vector<256x4xf32>
    %c0_99 = arith.constant 0 : index
    %c0_100 = arith.constant 0 : index
    %152 = vector.load %arg5[%c0_99, %c0_100] : memref<1x4xf32, #tpu.memory_space<vmem>>, vector<1x4xf32>
    %153 = vector.broadcast %152 : vector<1x4xf32> to vector<256x4xf32>
    %154 = arith.addf %151, %153 : vector<256x4xf32>
    %cst_101 = arith.constant dense<0.000000e+00> : vector<4xf32>
    %155 = vector.multi_reduction <add>, %154, %cst_101 [0] : vector<256x4xf32> to vector<4xf32>
    %156 = vector.shape_cast %155 : vector<4xf32> to vector<1x4xf32>
    %cst_102 = arith.constant 3.906250e-03 : f32
    %157 = vector.broadcast %cst_102 : f32 to vector<1x4xf32>
    %158 = arith.mulf %156, %157 : vector<1x4xf32>
    %159 = arith.mulf %154, %154 : vector<256x4xf32>
    %cst_103 = arith.constant dense<0.000000e+00> : vector<4xf32>
    %160 = vector.multi_reduction <add>, %159, %cst_103 [0] : vector<256x4xf32> to vector<4xf32>
    %161 = vector.shape_cast %160 : vector<4xf32> to vector<1x4xf32>
    %cst_104 = arith.constant 3.906250e-03 : f32
    %162 = vector.broadcast %cst_104 : f32 to vector<1x4xf32>
    %163 = arith.mulf %161, %162 : vector<1x4xf32>
    %164 = arith.mulf %158, %158 : vector<1x4xf32>
    %165 = arith.subf %163, %164 : vector<1x4xf32>
    %cst_105 = arith.constant 0.000000e+00 : f32
    %166 = vector.broadcast %cst_105 : f32 to vector<1x4xf32>
    %167 = arith.maximumf %165, %166 : vector<1x4xf32>
    %168 = vector.broadcast %158 : vector<1x4xf32> to vector<256x4xf32>
    %169 = arith.subf %154, %168 : vector<256x4xf32>
    %cst_106 = arith.constant 9.99999974E-6 : f32
    %170 = vector.broadcast %cst_106 : f32 to vector<1x4xf32>
    %171 = arith.addf %167, %170 : vector<1x4xf32>
    %172 = math.rsqrt %171 : vector<1x4xf32>
    %173 = vector.broadcast %172 : vector<1x4xf32> to vector<256x4xf32>
    %174 = arith.mulf %169, %173 : vector<256x4xf32>
    %175 = arith.addf %3, %174 : vector<256x4xf32>
    %c0_107 = arith.constant 0 : index
    %c0_108 = arith.constant 0 : index
    %c0_109 = arith.constant 0 : index
    %176 = vector.load %arg6[%c0_107, %c0_108, %c0_109] : memref<1x256x4xf32, #tpu.memory_space<vmem>>, vector<1x256x4xf32>
    %177 = vector.shape_cast %176 : vector<1x256x4xf32> to vector<256x4xf32>
    %178 = vector.shape_cast %175 : vector<256x4xf32> to vector<1x256x4xf32>
    tpu.vector_store %arg6[%c0_107, %c0_108, %c0_109], %178 {strides = array<i32>} : memref<1x256x4xf32, #tpu.memory_space<vmem>>, vector<1x256x4xf32>,
    return
  }
  func.func @transform_0(%arg0: i32) -> (i32, i32, i32, i32) {
    %c0_i32 = arith.constant 0 : i32
    %c0_i32_0 = arith.constant 0 : i32
    %c0_i32_1 = arith.constant 0 : i32
    %c0_i32_2 = arith.constant 0 : i32
    return %arg0, %c0_i32, %c0_i32_0, %c0_i32_1 : i32, i32, i32, i32
  }
  func.func @transform_1(%arg0: i32) -> (i32, i32, i32) {
    %c0_i32 = arith.constant 0 : i32
    %c0_i32_0 = arith.constant 0 : i32
    %c0_i32_1 = arith.constant 0 : i32
    %c0_i32_2 = arith.constant 0 : i32
    return %c0_i32, %c0_i32_0, %c0_i32_1 : i32, i32, i32
  }
  func.func @transform_2(%arg0: i32) -> (i32, i32) {
    %c0_i32 = arith.constant 0 : i32
    %c0_i32_0 = arith.constant 0 : i32
    %c0_i32_1 = arith.constant 0 : i32
    return %c0_i32, %c0_i32_0 : i32, i32
  }
  func.func @transform_3(%arg0: i32) -> (i32, i32, i32) {
    %c0_i32 = arith.constant 0 : i32
    %c0_i32_0 = arith.constant 0 : i32
    %c0_i32_1 = arith.constant 0 : i32
    %c0_i32_2 = arith.constant 0 : i32
    return %c0_i32, %c0_i32_0, %c0_i32_1 : i32, i32, i32
  }
  func.func @transform_4(%arg0: i32) -> (i32, i32) {
    %c0_i32 = arith.constant 0 : i32
    %c0_i32_0 = arith.constant 0 : i32
    %c0_i32_1 = arith.constant 0 : i32
    return %c0_i32, %c0_i32_0 : i32, i32
  }
  func.func @transform_5(%arg0: i32) -> (i32, i32, i32) {
    %c0_i32 = arith.constant 0 : i32
    %c0_i32_0 = arith.constant 0 : i32
    %c0_i32_1 = arith.constant 0 : i32
    return %arg0, %c0_i32, %c0_i32_0 : i32, i32, i32
  }
}

</mosaic_0001>

<bundles_post_ra>
// kernel: tpu_custom_call.1
= control target key start
LH: loop header
LB: loop body
LE: loop exit
PB: predicated region body
PF: predicated region fallthrough
CT: control target
= control target key end

     0   :  { %s6515_s18 = smov 0   ;;  %s10542_s0 = inlined_call_operand.vmem [shape: f32[2,18,18,4], index: 0, kind: input, shape index: {}]   ;;  %s10543_s1 = inlined_call_operand.vmem [shape: bf16[9,4,4], index: 1, kind: input, shape index: {}]   ;;  %s10544_s2 = inlined_call_operand.vmem [shape: f32[1,4], index: 2, kind: input, shape index: {}]   ;;  %s10545_s3 = inlined_call_operand.vmem [shape: bf16[9,4,4], index: 3, kind: input, shape index: {}]   ;;  %s10546_s4 = inlined_call_operand.vmem [shape: f32[1,4], index: 4, kind: input, shape index: {}]   ;;  %s10547_s5 = inlined_call_operand.vmem [shape: f32[2,256,4], index: 5, kind: output, shape index: {}]  }
   0x1 LB: > { %s5973_s19 = sadd.s32 4294967295, %s6483_s18   ;;  %p5977_p0 = scmp.ge.s32.totalorder %s6483_s18, 1  ;;  %s6483_s18 = sphi %s6515_s18, %s15_s18  }
   0x2   : > { %p187_p1 = scmp.lt.s32.totalorder %s6483_s18, 3 }
   0x4   : > { %p188_p2 = pnand %p5977_p0, %p187_p1 }
   0x6   : > { %191 = sbr.rel (%p188_p2) target bundleno = 1954 (0x7a2), region = 40 }
   0xb   : > { %v495_v0 = vld [vmem:[%s10543_s1] sm:$0x3]  ;;  %vm982_vm0 = vcmask 1041408   ;;  %p215_p3 = scmp.lt.s32.totalorder %s5973_s19, 1  ;;  %v5981_v2 = vld [vmem:[%s10543_s1 + $0x2] sm:$0x3] }
   0xc   : > { %v1204_v1 = vsel %vm982_vm0, %v495_v0, 0  ;;  %v984_v3 = vsel %vm982_vm0, %v5981_v2, 0  ;;  %v6030_v4 = vld [vmem:[%s10543_s1 + $0x4] sm:$0x3]  ;;  %v6047_v6 = vld [vmem:[%s10543_s1 + $0x6] sm:$0x3] }
   0xd   : > { %6447 = vmatpush.bf16.msra.mxu3 %v1204_v1  ;;  %s11197_s19 = smov (!%p215_p3, %s5973_s19), 1  ;;  %1213 = vmatpush.bf16.msra.mxu1 %v1204_v1  ;;  %v1525_v5 = vsel %vm982_vm0, %v6030_v4, 0  ;;  %v6064_v7 = vld [vmem:[%s10543_s1 + $0x8] sm:$0x3]  ;;  %v1659_v8 = vsel %vm982_vm0, %v6047_v6, 0  ;;  %vm328_vm1 = vcmask 1046528  }
   0xe   : > { %6446 = vmatpush.bf16.msra.mxu2 %v984_v3  ;;  %993 = vmatpush.bf16.msra.mxu0 %v984_v3  ;;  %s6448_s30 = smul.u32 432, %s11197_s19  ;;  %v1815_v9 = vsel %vm982_vm0, %v6064_v7, 0  ;;  %vm933_vm2 = vcmask 31744   ;;  %vm496_vm3 = vsmask.f32 3328  ;;  %v10680_v48 = vmov 0 }
   0xf   : > { %vm497_vm4 = vsmask.f32 7440  ;;  %vm1311_vm6 = vcmask 1042432   ;;  %vm1312_vm7 = vcmask 1046532   ;;  %vm2858_vm10 = vsmask.f32 256 }
  0x10   : > { %s6549_s8 = scalar_lea.vmem %s10542_s0, %s6448_s30  ;;  %vm6593_vm5 = vmor %vm496_vm3, %vm497_vm4  ;;  %vm2859_vm11 = vsmask.f32 4368  ;;  %vm3190_vm13 = vcmask 24576   ;;  %vm3182_vm4 = vcmask 27648   ;;  %s6427_s17 = sshll.u32 %s11197_s19, 8 }
  0x11   : > { %1668 = vmatpush.bf16.msrb.mxu3 %v1659_v8  ;;  %v250_v10 = vld [vmem:[%s6549_s8 + $0xc0] sm:$0xff]  ;;  %v251_v11 = vld [vmem:[%s6549_s8 + $0xc8] sm:$0xff]  ;;  %v252_v12 = vld [vmem:[%s6549_s8 + $0xd0] sm:$0x3]  ;;  %v10681_v48 = vsel %vm6593_vm5, 4294967295, %v10680_v48  ;;  %s10426_s21 = scalar_lea.vmem %s10547_s5, %s6427_s17 }
  0x12   : > { %1534 = vmatpush.bf16.msrb.mxu2 %v1525_v5  ;;  %1824 = vmatpush.bf16.msrb.mxu0 %v1815_v9  ;;  %v364_v13 = vrot.slane %v250_v10, 1  ;;  %v365_v14 = vrot.slane %v251_v11, 1  ;;  %v6554_v15 = vpack.c.bf16 %v250_v10, %v250_v10  ;;  %v6556_v16 = vpack.c.bf16 %v251_v11, %v251_v11  ;;  %v226_v17 = vld [vmem:[%s6549_s8] sm:$0xff]  ;;  %v227_v18 = vld [vmem:[%s6549_s8 + $0x8] sm:$0xff]  ;;  %v228_v21 = vld [vmem:[%s6549_s8 + $0x10] sm:$0x3] }
  0x13   : > { %v367_v19 = vrot.slane %v252_v12, 1  ;;  %v6560_v20 = vpack.c.bf16 %v252_v12, %v252_v12  ;;  %v6563_v22 = vpack.c.bf16 %v226_v17, %v226_v17  ;;  %v6565_v23 = vpack.c.bf16 %v227_v18, %v227_v18  ;;  %10682 = vst [vmem:[#allocation6_spill] sm:$0xff] %v10681_v48  ;;  %v253_v53 = vld [vmem:[%s6549_s8 + $0xd8] sm:$0xff]  ;;  %v254_v58 = vld [vmem:[%s6549_s8 + $0xe0] sm:$0xff]  ;;  %v255_v3 = vld [vmem:[%s6549_s8 + $0xe8] sm:$0x3] }
  0x14   : > { %v6568_v24 = vsel %vm328_vm1, %v364_v13, %v365_v14  ;;  %v1123_v25 = vunpack.c.l.b16 %v6554_v15  ;;  %v1124_v26 = vunpack.c.l.b16 %v6556_v16  ;;  %v692_v27 = vshrl.u32 %v6554_v15, 16  ;;  %vm7109_vm8 = vmor %vm1311_vm6, %vm1312_vm7 }
  0x15   : > { %10677 = vst [vmem:[#allocation3_spill] sm:$0xff] %v6568_v24  ;;  %v6574_v28 = vsel %vm328_vm1, %v365_v14, %v367_v19  ;;  %v695_v29 = vshll.u32 %v6554_v15, 16  ;;  %v701_v30 = vshll.u32 %v6556_v16, 16  ;;  %v705_v31 = vshrl.u32 %v6556_v16, 16  ;;  %vm8252_vm15 = vmor %vm2858_vm10, %vm2859_vm11 }
  0x16   : > { %10678 = vst [vmem:[#allocation4_spill] sm:$0xff] %v6574_v28  ;;  %v6579_v32 = vpack.c.b16 %v1124_v26, %v1123_v25  ;;  %v694_v33 = vrot.slane %v692_v27, 4  ;;  %v711_v34 = vshll.u32 %v6560_v20, 16  ;;  %v6582_v35 = vpack.c.bf16 %v228_v21, %v228_v21  ;;  %vm8262_vm3 = vmand %vm3190_vm13, %vm2858_vm10 }
  0x17   : > { %v697_v36 = vrot.slane %v695_v29, 5  ;;  %v703_v37 = vrot.slane %v701_v30, 5  ;;  %v707_v38 = vrot.slane %v705_v31, 4  ;;  %v500_v39 = vshrl.u32 %v6563_v22, 16  ;;  %v229_v31 = vld [vmem:[%s6549_s8 + $0x18] sm:$0xff] }
  0x18   : > { %10679 = vst [vmem:[#allocation5_spill] sm:$0xff] %v6579_v32  ;;  %6006 = vmatmul.msk.bf16.vlgmr.msra.gmra.mxu3 %vm933_vm2, %v6579_v32  ;;  %v713_v40 = vrot.slane %v711_v34, 5  ;;  %v503_v41 = vshll.u32 %v6563_v22, 16  ;;  %v509_v42 = vshll.u32 %v6565_v23, 16  ;;  %v513_v43 = vshrl.u32 %v6565_v23, 16 }
  0x19   : > { %v698_v44 = vor.u32 %v697_v36, %v694_v33  ;;  %v708_v45 = vor.u32 %v707_v38, %v703_v37  ;;  %v502_v46 = vrot.slane %v500_v39, 4  ;;  %v519_v47 = vshll.u32 %v6582_v35, 16  ;;  %v231_v38 = vld [vmem:[%s6549_s8 + $0x28] sm:$0x3] }
  0x1a   : > { %v505_v49 = vrot.slane %v503_v41, 5  ;;  %v511_v50 = vrot.slane %v509_v42, 5  ;;  %v515_v51 = vrot.slane %v513_v43, 4  ;;  %v1107_v52 = vunpack.c.l.b16 %v6563_v22 }
  0x1b   : > { %v699_v54 = vrot.slane %v698_v44, 4  ;;  %v709_v55 = vrot.slane %v708_v45, 4  ;;  %v521_v56 = vrot.slane %v519_v47, 5  ;;  %v1108_v57 = vunpack.c.l.b16 %v6565_v23 }
  0x1c   : > { %v506_v59 = vor.u32 %v505_v49, %v502_v46  ;;  %v516_v60 = vor.u32 %v515_v51, %v511_v50  ;;  %v369_v61 = vrot.slane %v253_v53, 1  ;;  %v370_v62 = vrot.slane %v254_v58, 1 }
  0x1d   : > { %v704_v63 = vsel %vm6593_vm5, %v699_v54, %v703_v37  ;;  %v714_v0 = vsel %vm6593_vm5, %v709_v55, %v713_v40  ;;  %v1139_v1 = vpack.c.b16 %v1108_v57, %v1107_v52  ;;  %v6605_v2 = vpack.c.bf16 %v253_v53, %v253_v53  ;;  %v230_v37 = vld [vmem:[%s6549_s8 + $0x20] sm:$0xff] }
  0x1e   : > { %v901_v4 = vunpack.c.l.b16 %v704_v63  ;;  %v902_v5 = vunpack.c.l.b16 %v714_v0  ;;  %v507_v6 = vrot.slane %v506_v59, 4  ;;  %v517_v7 = vrot.slane %v516_v60, 4 }
  0x1f   : > { %10683 = vst [vmem:[#allocation7_spill] sm:$0xff] %v6605_v2  ;;  %5998 = vmatmul.msk.bf16.vlgmr.msra.gmra.mxu1 %vm933_vm2, %v1139_v1  ;;  %v6610_v8 = vsel %vm328_vm1, %v369_v61, %v370_v62  ;;  %v6612_v9 = vpack.c.bf16 %v254_v58, %v254_v58  ;;  %v1125_v10 = vunpack.c.l.b16 %v6605_v2  ;;  %v372_v11 = vrot.slane %v255_v3, 1 }
  0x20   : > { %10684 = vst [vmem:[#allocation8_spill] sm:$0xff] %v6610_v8  ;;  %v6615_v12 = vpack.c.b16 %v902_v5, %v901_v4  ;;  %v512_v13 = vsel %vm6593_vm5, %v507_v6, %v511_v50  ;;  %v522_v14 = vsel %vm6593_vm5, %v517_v7, %v521_v56  ;;  %v6621_v17 = vpack.c.bf16 %v255_v3, %v255_v3  ;;  %v256_v6 = vld [vmem:[%s6549_s8 + $0xf0] sm:$0xff]  ;;  %v257_v7 = vld [vmem:[%s6549_s8 + $0xf8] sm:$0xff] }
  0x21   : > { %v885_v18 = vunpack.c.l.b16 %v512_v13  ;;  %v886_v19 = vunpack.c.l.b16 %v522_v14  ;;  %v1126_v21 = vunpack.c.l.b16 %v6612_v9  ;;  %v6625_v25 = vsel %vm328_vm1, %v370_v62, %v372_v11 }
  0x22   : > { %10685 = vst [vmem:[#allocation9_spill] sm:$0xff] %v6615_v12  ;;  %5990 = vmatmul.msk.bf16.vlgmr.msra.gmra.mxu2 %vm933_vm2, %v6615_v12  ;;  %v716_v26 = vshrl.u32 %v6605_v2, 16  ;;  %v719_v27 = vshll.u32 %v6605_v2, 16  ;;  %v725_v29 = vshll.u32 %v6612_v9, 16  ;;  %v729_v30 = vshrl.u32 %v6612_v9, 16 }
  0x23   : > { %10686 = vst [vmem:[#allocation10_spill] sm:$0xff] %v6621_v17  ;;  %v917_v33 = vpack.c.b16 %v886_v19, %v885_v18  ;;  %v6634_v34 = vpack.c.b16 %v1126_v21, %v1125_v10  ;;  %v735_v36 = vshll.u32 %v6621_v17, 16  ;;  %v329_v39 = vrot.slane %v229_v31, 1  ;;  %v273_v17 = vld [vmem:[%s6549_s8 + $0x178] sm:$0x3] }
  0x24   : > { %10687 = vst [vmem:[#allocation11_spill] sm:$0xff] %v6625_v25  ;;  %v718_v40 = vrot.slane %v716_v26, 4  ;;  %v721_v41 = vrot.slane %v719_v27, 5  ;;  %v727_v42 = vrot.slane %v725_v29, 5  ;;  %v731_v43 = vrot.slane %v729_v30, 4  ;;  %v263_v25 = vld [vmem:[%s6549_s8 + $0x128] sm:$0xff] }
  0x25   : > { %10688 = vst [vmem:[#allocation12_spill] sm:$0xff] %v6634_v34  ;;  %5982 = vmatmul.msk.bf16.vlgmr.msra.gmra.mxu0 %vm933_vm2, %v917_v33  ;;  %v737_v44 = vrot.slane %v735_v36, 5  ;;  %v330_v45 = vrot.slane %v230_v37, 1  ;;  %v332_v46 = vrot.slane %v231_v38, 1  ;;  %v6640_v47 = vpack.c.bf16 %v229_v31, %v229_v31  ;;  %v258_v27 = vld [vmem:[%s6549_s8 + $0x100] sm:$0x3] }
  0x26   : > { %v722_v49 = vor.u32 %v721_v41, %v718_v40  ;;  %v732_v50 = vor.u32 %v731_v43, %v727_v42  ;;  %v6642_v51 = vpack.c.bf16 %v230_v37, %v230_v37  ;;  %v6644_v52 = vpack.c.bf16 %v231_v38, %v231_v38 }
  0x27   : > { %v6647_v53 = vsel %vm328_vm1, %v329_v39, %v330_v45  ;;  %v6650_v54 = vsel %vm328_vm1, %v330_v45, %v332_v46  ;;  %v524_v55 = vshrl.u32 %v6640_v47, 16  ;;  %v527_v56 = vshll.u32 %v6640_v47, 16 }
  0x28   : > { %10689 = vst [vmem:[#allocation13_spill] sm:$0xff] %v6647_v53  ;;  %6007 = vmatmul.msk.bf16.gmra.mxu3 %vm933_vm2, %v6634_v34  ;;  %v723_v57 = vrot.slane %v722_v49, 4  ;;  %v733_v58 = vrot.slane %v732_v50, 4  ;;  %v533_v59 = vshll.u32 %v6642_v51, 16  ;;  %v537_v60 = vshrl.u32 %v6642_v51, 16 }
  0x29   : > { %10690 = vst [vmem:[#allocation14_spill] sm:$0xff] %v6650_v54  ;;  %v526_v61 = vrot.slane %v524_v55, 4  ;;  %v529_v62 = vrot.slane %v527_v56, 5  ;;  %v543_v63 = vshll.u32 %v6644_v52, 16  ;;  %v1109_v0 = vunpack.c.l.b16 %v6640_v47 }
  0x2a   : > { %v728_v1 = vsel %vm6593_vm5, %v723_v57, %v727_v42  ;;  %v738_v3 = vsel %vm6593_vm5, %v733_v58, %v737_v44  ;;  %v535_v4 = vrot.slane %v533_v59, 5  ;;  %v539_v5 = vrot.slane %v537_v60, 4  ;;  %v232_v58 = vld [vmem:[%s6549_s8 + $0x30] sm:$0xff]  ;;  %v233_v59 = vld [vmem:[%s6549_s8 + $0x38] sm:$0xff] }
  0x2b   : > { %v903_v10 = vunpack.c.l.b16 %v728_v1  ;;  %v904_v11 = vunpack.c.l.b16 %v738_v3  ;;  %v530_v13 = vor.u32 %v529_v62, %v526_v61  ;;  %v545_v14 = vrot.slane %v543_v63, 5  ;;  %v234_v63 = vld [vmem:[%s6549_s8 + $0x40] sm:$0x3] }
  0x2c   : > { %v540_v18 = vor.u32 %v539_v5, %v535_v4  ;;  %v1110_v19 = vunpack.c.l.b16 %v6642_v51  ;;  %v374_v21 = vrot.slane %v256_v6, 1  ;;  %v375_v26 = vrot.slane %v257_v7, 1 }
  0x2d   : > { %v6668_v29 = vpack.c.b16 %v904_v11, %v903_v10  ;;  %v531_v30 = vrot.slane %v530_v13, 4  ;;  %v6670_v31 = vpack.c.bf16 %v256_v6, %v256_v6  ;;  %v6672_v33 = vpack.c.bf16 %v257_v7, %v257_v7 }
  0x2e   : > { %v541_v36 = vrot.slane %v540_v18, 4  ;;  %v6674_v37 = vpack.c.b16 %v1110_v19, %v1109_v0  ;;  %v6677_v38 = vsel %vm328_vm1, %v374_v21, %v375_v26  ;;  %v377_v39 = vrot.slane %v258_v27, 1 }
  0x2f   : > { %10691 = vst [vmem:[#allocation15_spill] sm:$0xff] %v6668_v29  ;;  %v536_v40 = vsel %vm6593_vm5, %v531_v30, %v535_v4  ;;  %v1127_v41 = vunpack.c.l.b16 %v6670_v31  ;;  %v1128_v42 = vunpack.c.l.b16 %v6672_v33  ;;  %v6683_v43 = vpack.c.bf16 %v258_v27, %v258_v27 }
  0x30   : > { %10692 = vst [vmem:[#allocation16_spill] sm:$0xff] %v6670_v31  ;;  %v546_v44 = vsel %vm6593_vm5, %v541_v36, %v545_v14  ;;  %v887_v45 = vunpack.c.l.b16 %v536_v40  ;;  %5999 = vmatmul.msk.bf16.gmra.mxu1 %vm933_vm2, %v6674_v37  ;;  %v6690_v46 = vsel %vm328_vm1, %v375_v26, %v377_v39  ;;  %v740_v49 = vshrl.u32 %v6670_v31, 16 }
  0x31   : > { %10693 = vst [vmem:[#allocation17_spill] sm:$0xff] %v6672_v33  ;;  %v888_v50 = vunpack.c.l.b16 %v546_v44  ;;  %v6693_v55 = vpack.c.b16 %v1128_v42, %v1127_v41  ;;  %v743_v56 = vshll.u32 %v6670_v31, 16  ;;  %v749_v57 = vshll.u32 %v6672_v33, 16 }
  0x32   : > { %10694 = vst [vmem:[#allocation18_spill] sm:$0xff] %v6677_v38  ;;  %5991 = vmatmul.msk.bf16.gmra.mxu2 %vm933_vm2, %v6668_v29  ;;  %v742_v60 = vrot.slane %v740_v49, 4  ;;  %v753_v61 = vshrl.u32 %v6672_v33, 16  ;;  %v759_v62 = vshll.u32 %v6683_v43, 16  ;;  %v334_v0 = vrot.slane %v232_v58, 1  ;;  %v262_v38 = vld [vmem:[%s6549_s8 + $0x120] sm:$0xff] }
  0x33   : > { %10695 = vst [vmem:[#allocation19_spill] sm:$0xff] %v6683_v43  ;;  %v6704_v1 = vpack.c.b16 %v888_v50, %v887_v45  ;;  %v745_v3 = vrot.slane %v743_v56, 5  ;;  %v751_v4 = vrot.slane %v749_v57, 5  ;;  %v335_v5 = vrot.slane %v233_v59, 1 }
  0x34   : > { %10696 = vst [vmem:[#allocation20_spill] sm:$0xff] %v6690_v46  ;;  %v755_v6 = vrot.slane %v753_v61, 4  ;;  %v761_v7 = vrot.slane %v759_v62, 5  ;;  %v337_v10 = vrot.slane %v234_v63, 1  ;;  %v6706_v11 = vpack.c.bf16 %v232_v58, %v232_v58 }
  0x35   : > { %10697 = vst [vmem:[#allocation21_spill] sm:$0xff] %v6693_v55  ;;  %5983 = vmatmul.msk.bf16.gmra.mxu0 %vm933_vm2, %v6704_v1  ;;  %v746_v13 = vor.u32 %v745_v3, %v742_v60  ;;  %v6711_v14 = vsel %vm328_vm1, %v334_v0, %v335_v5  ;;  %v6713_v18 = vpack.c.bf16 %v233_v59, %v233_v59  ;;  %v259_v59 = vld [vmem:[%s6549_s8 + $0x108] sm:$0xff]  ;;  %v260_v60 = vld [vmem:[%s6549_s8 + $0x110] sm:$0xff]  ;;  %vm3183_vm6 = vsmask.f32 7938 }
  0x36   : > { %10698 = vst [vmem:[#allocation22_spill] sm:$0xff] %v6711_v14  ;;  %v6715_v19 = vpack.c.bf16 %v234_v63, %v234_v63  ;;  %v756_v21 = vor.u32 %v755_v6, %v751_v4  ;;  %v6718_v26 = vsel %vm328_vm1, %v335_v5, %v337_v10  ;;  %v548_v27 = vshrl.u32 %v6706_v11, 16  ;;  %vm8299_vm7 = vmand %vm3182_vm4, %vm3183_vm6 }
  0x37   : > { %10699 = vst [vmem:[#allocation23_spill] sm:$0xff] %v6718_v26  ;;  %v551_v30 = vshll.u32 %v6706_v11, 16  ;;  %v747_v36 = vrot.slane %v746_v13, 4  ;;  %v557_v39 = vshll.u32 %v6713_v18, 16  ;;  %v561_v40 = vshrl.u32 %v6713_v18, 16 }
  0x38   : > { %v567_v41 = vshll.u32 %v6715_v19, 16  ;;  %6008 = vmatmul.msk.bf16.gmra.mxu3 %vm933_vm2, %v6693_v55  ;;  %v757_v42 = vrot.slane %v756_v21, 4  ;;  %v550_v44 = vrot.slane %v548_v27, 4  ;;  %v1111_v49 = vunpack.c.l.b16 %v6706_v11  ;;  %v261_v13 = vld [vmem:[%s6549_s8 + $0x118] sm:$0x3] }
  0x39   : > { %v553_v45 = vrot.slane %v551_v30, 5  ;;  %v752_v50 = vsel %vm6593_vm5, %v747_v36, %v751_v4  ;;  %v559_v56 = vrot.slane %v557_v39, 5  ;;  %v563_v57 = vrot.slane %v561_v40, 4  ;;  %v264_v26 = vld [vmem:[%s6549_s8 + $0x130] sm:$0x3] }
  0x3a   : > { %v569_v58 = vrot.slane %v567_v41, 5  ;;  %v762_v61 = vsel %vm6593_vm5, %v757_v42, %v761_v7  ;;  %v905_v62 = vunpack.c.l.b16 %v752_v50  ;;  %v1112_v0 = vunpack.c.l.b16 %v6713_v18 }
  0x3b   : > { %v554_v63 = vor.u32 %v553_v45, %v550_v44  ;;  %v906_v3 = vunpack.c.l.b16 %v762_v61  ;;  %v564_v5 = vor.u32 %v563_v57, %v559_v56  ;;  %v379_v6 = vrot.slane %v259_v59, 1 }
  0x3c   : > { %v380_v10 = vrot.slane %v260_v60, 1  ;;  %v6736_v27 = vpack.c.b16 %v1112_v0, %v1111_v49  ;;  %v6738_v4 = vpack.c.bf16 %v259_v59, %v259_v59  ;;  %v6740_v30 = vpack.c.bf16 %v260_v60, %v260_v60  ;;  %v236_v0 = vld [vmem:[%s6549_s8 + $0x50] sm:$0xff] }
  0x3d   : > { %v555_v21 = vrot.slane %v554_v63, 4  ;;  %v6742_v36 = vpack.c.b16 %v906_v3, %v905_v62  ;;  %v565_v39 = vrot.slane %v564_v5, 4  ;;  %v382_v40 = vrot.slane %v261_v13, 1  ;;  %v235_v63 = vld [vmem:[%s6549_s8 + $0x48] sm:$0xff] }
  0x3e   : > { %10700 = vst [vmem:[#allocation24_spill] sm:$0xff] %v6738_v4  ;;  %v6745_v7 = vsel %vm328_vm1, %v379_v6, %v380_v10  ;;  %v1129_v42 = vunpack.c.l.b16 %v6738_v4  ;;  %v1130_v44 = vunpack.c.l.b16 %v6740_v30  ;;  %v6751_v45 = vpack.c.bf16 %v261_v13, %v261_v13  ;;  %v237_v6 = vld [vmem:[%s6549_s8 + $0x58] sm:$0x3] }
  0x3f   : > { %10701 = vst [vmem:[#allocation25_spill] sm:$0xff] %v6740_v30  ;;  %v560_v41 = vsel %vm6593_vm5, %v555_v21, %v559_v56  ;;  %v570_v49 = vsel %vm6593_vm5, %v565_v39, %v569_v58  ;;  %v6756_v57 = vsel %vm328_vm1, %v380_v10, %v382_v40  ;;  %v764_v59 = vshrl.u32 %v6738_v4, 16 }
  0x40   : > { %10702 = vst [vmem:[#allocation26_spill] sm:$0xff] %v6742_v36  ;;  %v889_v50 = vunpack.c.l.b16 %v560_v41  ;;  %v890_v60 = vunpack.c.l.b16 %v570_v49  ;;  %6000 = vmatmul.msk.bf16.gmra.mxu1 %vm933_vm2, %v6736_v27  ;;  %v6761_v56 = vpack.c.b16 %v1130_v44, %v1129_v42  ;;  %v767_v61 = vshll.u32 %v6738_v4, 16 }
  0x41   : > { %10703 = vst [vmem:[#allocation27_spill] sm:$0xff] %v6745_v7  ;;  %v773_v62 = vshll.u32 %v6740_v30, 16  ;;  %v766_v3 = vrot.slane %v764_v59, 4  ;;  %v777_v58 = vshrl.u32 %v6740_v30, 16  ;;  %v783_v5 = vshll.u32 %v6751_v45, 16 }
  0x42   : > { %10704 = vst [vmem:[#allocation28_spill] sm:$0xff] %v6751_v45  ;;  %v339_v10 = vrot.slane %v235_v63, 1  ;;  %5992 = vmatmul.msk.bf16.gmra.mxu2 %vm933_vm2, %v6742_v36  ;;  %v6772_v13 = vpack.c.b16 %v890_v60, %v889_v50  ;;  %v769_v21 = vrot.slane %v767_v61, 5  ;;  %v340_v40 = vrot.slane %v236_v0, 1 }
  0x43   : > { %10705 = vst [vmem:[#allocation29_spill] sm:$0xff] %v6756_v57  ;;  %v775_v39 = vrot.slane %v773_v62, 5  ;;  %v779_v41 = vrot.slane %v777_v58, 4  ;;  %v785_v42 = vrot.slane %v783_v5, 5  ;;  %v342_v44 = vrot.slane %v237_v6, 1 }
  0x44   : > { %10706 = vst [vmem:[#allocation30_spill] sm:$0xff] %v6761_v56  ;;  %v6774_v49 = vpack.c.bf16 %v235_v63, %v235_v63  ;;  %v770_v59 = vor.u32 %v769_v21, %v766_v3  ;;  %v6777_v57 = vsel %vm328_vm1, %v339_v10, %v340_v40  ;;  %v6779_v7 = vpack.c.bf16 %v236_v0, %v236_v0 }
  0x45   : > { %10707 = vst [vmem:[#allocation31_spill] sm:$0xff] %v6777_v57  ;;  %v6781_v46 = vpack.c.bf16 %v237_v6, %v237_v6  ;;  %5984 = vmatmul.msk.bf16.gmra.mxu0 %vm933_vm2, %v6772_v13  ;;  %v780_v50 = vor.u32 %v779_v41, %v775_v39  ;;  %v6786_v60 = vsel %vm328_vm1, %v340_v40, %v342_v44  ;;  %v385_v57 = vrot.slane %v263_v25, 1 }
  0x46   : > { %10708 = vst [vmem:[#allocation32_spill] sm:$0xff] %v6786_v60  ;;  %v572_v61 = vshrl.u32 %v6774_v49, 16  ;;  %v575_v62 = vshll.u32 %v6774_v49, 16  ;;  %v771_v63 = vrot.slane %v770_v59, 4  ;;  %v581_v3 = vshll.u32 %v6779_v7, 16 }
  0x47   : > { %v585_v0 = vshrl.u32 %v6779_v7, 16  ;;  %v591_v58 = vshll.u32 %v6781_v46, 16  ;;  %v781_v5 = vrot.slane %v780_v50, 4  ;;  %v1113_v21 = vunpack.c.l.b16 %v6774_v49 }
  0x48   : > { %v574_v6 = vrot.slane %v572_v61, 4  ;;  %v577_v10 = vrot.slane %v575_v62, 5  ;;  %6009 = vmatmul.msk.bf16.gmra.mxu3 %vm933_vm2, %v6761_v56  ;;  %v776_v40 = vsel %vm6593_vm5, %v771_v63, %v775_v39  ;;  %v583_v41 = vrot.slane %v581_v3, 5 }
  0x49   : > { %v587_v44 = vrot.slane %v585_v0, 4  ;;  %v593_v59 = vrot.slane %v591_v58, 5  ;;  %v786_v8 = vsel %vm6593_vm5, %v781_v5, %v785_v42  ;;  %v907_v50 = vunpack.c.l.b16 %v776_v40 }
  0x4a   : > { %v578_v61 = vor.u32 %v577_v10, %v574_v6  ;;  %v1114_v62 = vunpack.c.l.b16 %v6779_v7  ;;  %v908_v28 = vunpack.c.l.b16 %v786_v8  ;;  %v384_v60 = vrot.slane %v262_v38, 1 }
  0x4b   : > { %v588_v24 = vor.u32 %v587_v44, %v583_v41  ;;  %v6806_v39 = vpack.c.bf16 %v262_v38, %v262_v38  ;;  %v6808_v63 = vpack.c.bf16 %v263_v25, %v263_v25  ;;  %v387_v8 = vrot.slane %v264_v26, 1  ;;  %v239_v44 = vld [vmem:[%s6549_s8 + $0x68] sm:$0xff] }
  0x4c   : > { %v579_v14 = vrot.slane %v578_v61, 4  ;;  %v6804_v54 = vpack.c.b16 %v1114_v62, %v1113_v21  ;;  %v6810_v3 = vpack.c.b16 %v908_v28, %v907_v50  ;;  %v6813_v0 = vsel %vm328_vm1, %v384_v60, %v385_v57  ;;  %v240_v50 = vld [vmem:[%s6549_s8 + $0x70] sm:$0x3] }
  0x4d   : > { %10709 = vst [vmem:[#allocation33_spill] sm:$0xff] %v6806_v39  ;;  %v589_v42 = vrot.slane %v588_v24, 4  ;;  %v1131_v5 = vunpack.c.l.b16 %v6806_v39  ;;  %v1132_v6 = vunpack.c.l.b16 %v6808_v63  ;;  %v6819_v38 = vpack.c.bf16 %v264_v26, %v264_v26 }
  0x4e   : > { %10710 = vst [vmem:[#allocation34_spill] sm:$0xff] %v6808_v63  ;;  %v584_v58 = vsel %vm6593_vm5, %v579_v14, %v583_v41  ;;  %v6824_v24 = vsel %vm328_vm1, %v385_v57, %v387_v8  ;;  %v788_v60 = vshrl.u32 %v6806_v39, 16  ;;  %v791_v14 = vshll.u32 %v6806_v39, 16  ;;  %v238_v41 = vld [vmem:[%s6549_s8 + $0x60] sm:$0xff] }
  0x4f   : > { %10711 = vst [vmem:[#allocation35_spill] sm:$0xff] %v6810_v3  ;;  %v594_v28 = vsel %vm6593_vm5, %v589_v42, %v593_v59  ;;  %v891_v25 = vunpack.c.l.b16 %v584_v58  ;;  %v6827_v21 = vpack.c.b16 %v1132_v6, %v1131_v5  ;;  %v797_v40 = vshll.u32 %v6808_v63, 16 }
  0x50   : > { %10712 = vst [vmem:[#allocation36_spill] sm:$0xff] %v6813_v0  ;;  %v892_v10 = vunpack.c.l.b16 %v594_v28  ;;  %6001 = vmatmul.msk.bf16.gmra.mxu1 %vm933_vm2, %v6804_v54  ;;  %v790_v26 = vrot.slane %v788_v60, 4  ;;  %v801_v59 = vshrl.u32 %v6808_v63, 16  ;;  %v807_v57 = vshll.u32 %v6819_v38, 16 }
  0x51   : > { %10713 = vst [vmem:[#allocation37_spill] sm:$0xff] %v6819_v38  ;;  %v344_v61 = vrot.slane %v238_v41, 1  ;;  %v793_v42 = vrot.slane %v791_v14, 5  ;;  %v799_v8 = vrot.slane %v797_v40, 5  ;;  %v345_v58 = vrot.slane %v239_v44, 1 }
  0x52   : > { %10714 = vst [vmem:[#allocation38_spill] sm:$0xff] %v6824_v24  ;;  %v6838_v62 = vpack.c.b16 %v892_v10, %v891_v25  ;;  %5993 = vmatmul.msk.bf16.gmra.mxu2 %vm933_vm2, %v6810_v3  ;;  %v803_v5 = vrot.slane %v801_v59, 4  ;;  %v809_v6 = vrot.slane %v807_v57, 5  ;;  %v347_v28 = vrot.slane %v240_v50, 1 }
  0x53   : > { %10715 = vst [vmem:[#allocation39_spill] sm:$0xff] %v6827_v21  ;;  %v6842_v24 = vpack.c.bf16 %v238_v41, %v238_v41  ;;  %v794_v60 = vor.u32 %v793_v42, %v790_v26  ;;  %v6845_v0 = vsel %vm328_vm1, %v344_v61, %v345_v58  ;;  %v6847_v53 = vpack.c.bf16 %v239_v44, %v239_v44 }
  0x54   : > { %10716 = vst [vmem:[#allocation40_spill] sm:$0xff] %v6845_v0  ;;  %v6849_v38 = vpack.c.bf16 %v240_v50, %v240_v50  ;;  %v804_v25 = vor.u32 %v803_v5, %v799_v8  ;;  %v6852_v10 = vsel %vm328_vm1, %v345_v58, %v347_v28  ;;  %v265_v0 = vld [vmem:[%s6549_s8 + $0x138] sm:$0xff] }
  0x55   : > { %10717 = vst [vmem:[#allocation41_spill] sm:$0xff] %v6852_v10  ;;  %v596_v14 = vshrl.u32 %v6842_v24, 16  ;;  %v599_v40 = vshll.u32 %v6842_v24, 16  ;;  %5985 = vmatmul.msk.bf16.gmra.mxu0 %vm933_vm2, %v6838_v62  ;;  %v795_v41 = vrot.slane %v794_v60, 4  ;;  %v605_v26 = vshll.u32 %v6847_v53, 16  ;;  %v266_v60 = vld [vmem:[%s6549_s8 + $0x140] sm:$0xff] }
  0x56   : > { %v609_v44 = vshrl.u32 %v6847_v53, 16  ;;  %v615_v59 = vshll.u32 %v6849_v38, 16  ;;  %v805_v57 = vrot.slane %v804_v25, 4  ;;  %v1115_v42 = vunpack.c.l.b16 %v6842_v24 }
  0x57   : > { %v598_v50 = vrot.slane %v596_v14, 4  ;;  %v601_v61 = vrot.slane %v599_v40, 5  ;;  %v800_v58 = vsel %vm6593_vm5, %v795_v41, %v799_v8  ;;  %v607_v5 = vrot.slane %v605_v26, 5  ;;  %v267_v8 = vld [vmem:[%s6549_s8 + $0x148] sm:$0x3] }
  0x58   : > { %v611_v28 = vrot.slane %v609_v44, 4  ;;  %v617_v10 = vrot.slane %v615_v59, 5  ;;  %6010 = vmatmul.msk.bf16.gmra.mxu3 %vm933_vm2, %v6827_v21  ;;  %v810_v3 = vsel %vm6593_vm5, %v805_v57, %v809_v6  ;;  %v909_v25 = vunpack.c.l.b16 %v800_v58 }
  0x59   : > { %v602_v14 = vor.u32 %v601_v61, %v598_v50  ;;  %v1116_v40 = vunpack.c.l.b16 %v6847_v53  ;;  %v910_v39 = vunpack.c.l.b16 %v810_v3  ;;  %v389_v56 = vrot.slane %v265_v0, 1 }
  0x5a   : > { %v612_v63 = vor.u32 %v611_v28, %v607_v5  ;;  %v390_v36 = vrot.slane %v266_v60, 1  ;;  %v6874_v44 = vpack.c.bf16 %v265_v0, %v265_v0  ;;  %v6876_v59 = vpack.c.bf16 %v266_v60, %v266_v60 }
  0x5b   : > { %v603_v41 = vrot.slane %v602_v14, 4  ;;  %v6872_v26 = vpack.c.b16 %v1116_v40, %v1115_v42  ;;  %v6878_v21 = vpack.c.b16 %v910_v39, %v909_v25  ;;  %v392_v3 = vrot.slane %v267_v8, 1  ;;  %v241_v14 = vld [vmem:[%s6549_s8 + $0x78] sm:$0xff]  ;;  %v242_v40 = vld [vmem:[%s6549_s8 + $0x80] sm:$0xff] }
  0x5c   : > { %10718 = vst [vmem:[#allocation42_spill] sm:$0xff] %v6874_v44  ;;  %v613_v6 = vrot.slane %v612_v63, 4  ;;  %v6881_v57 = vsel %vm328_vm1, %v389_v56, %v390_v36  ;;  %v1133_v61 = vunpack.c.l.b16 %v6874_v44  ;;  %v1134_v0 = vunpack.c.l.b16 %v6876_v59 }
  0x5d   : > { %10719 = vst [vmem:[#allocation43_spill] sm:$0xff] %v6876_v59  ;;  %v608_v50 = vsel %vm6593_vm5, %v603_v41, %v607_v5  ;;  %v6887_v42 = vpack.c.bf16 %v267_v8, %v267_v8  ;;  %v6892_v63 = vsel %vm328_vm1, %v390_v36, %v392_v3  ;;  %v812_v56 = vshrl.u32 %v6874_v44, 16 }
  0x5e   : > { %10720 = vst [vmem:[#allocation44_spill] sm:$0xff] %v6878_v21  ;;  %v618_v39 = vsel %vm6593_vm5, %v613_v6, %v617_v10  ;;  %v893_v58 = vunpack.c.l.b16 %v608_v50  ;;  %v6895_v60 = vpack.c.b16 %v1134_v0, %v1133_v61  ;;  %v815_v5 = vshll.u32 %v6874_v44, 16  ;;  %v243_v6 = vld [vmem:[%s6549_s8 + $0x88] sm:$0x3] }
  0x5f   : > { %10721 = vst [vmem:[#allocation45_spill] sm:$0xff] %v6881_v57  ;;  %v894_v28 = vunpack.c.l.b16 %v618_v39  ;;  %v821_v25 = vshll.u32 %v6876_v59, 16  ;;  %v814_v8 = vrot.slane %v812_v56, 4  ;;  %v825_v41 = vshrl.u32 %v6876_v59, 16 }
  0x60   : > { %10722 = vst [vmem:[#allocation46_spill] sm:$0xff] %v6887_v42  ;;  %v831_v10 = vshll.u32 %v6887_v42, 16  ;;  %v349_v50 = vrot.slane %v241_v14, 1  ;;  %6002 = vmatmul.msk.bf16.gmra.mxu1 %vm933_vm2, %v6872_v26  ;;  %v817_v3 = vrot.slane %v815_v5, 5  ;;  %v350_v0 = vrot.slane %v242_v40, 1 }
  0x61   : > { %10723 = vst [vmem:[#allocation47_spill] sm:$0xff] %v6892_v63  ;;  %v6904_v36 = vpack.c.b16 %v894_v28, %v893_v58  ;;  %v823_v61 = vrot.slane %v821_v25, 5  ;;  %v827_v39 = vrot.slane %v825_v41, 4  ;;  %v352_v57 = vrot.slane %v243_v6, 1 }
  0x62   : > { %10724 = vst [vmem:[#allocation48_spill] sm:$0xff] %v6895_v60  ;;  %v833_v63 = vrot.slane %v831_v10, 5  ;;  %v6908_v44 = vpack.c.bf16 %v241_v14, %v241_v14  ;;  %5994 = vmatmul.msk.bf16.gmra.mxu2 %vm933_vm2, %v6878_v21  ;;  %v818_v56 = vor.u32 %v817_v3, %v814_v8  ;;  %v6913_v42 = vsel %vm328_vm1, %v349_v50, %v350_v0  ;;  %v269_v21 = vld [vmem:[%s6549_s8 + $0x158] sm:$0xff] }
  0x63   : > { %10725 = vst [vmem:[#allocation49_spill] sm:$0xff] %v6913_v42  ;;  %v6915_v58 = vpack.c.bf16 %v242_v40, %v242_v40  ;;  %v6917_v28 = vpack.c.bf16 %v243_v6, %v243_v6  ;;  %v828_v59 = vor.u32 %v827_v39, %v823_v61  ;;  %v6920_v5 = vsel %vm328_vm1, %v350_v0, %v352_v57  ;;  %v268_v42 = vld [vmem:[%s6549_s8 + $0x150] sm:$0xff] }
  0x64   : > { %10726 = vst [vmem:[#allocation50_spill] sm:$0xff] %v6920_v5  ;;  %v620_v25 = vshrl.u32 %v6908_v44, 16  ;;  %v623_v14 = vshll.u32 %v6908_v44, 16  ;;  %v819_v41 = vrot.slane %v818_v56, 4  ;;  %v1117_v3 = vunpack.c.l.b16 %v6908_v44 }
  0x65   : > { %v629_v8 = vshll.u32 %v6915_v58, 16  ;;  %v633_v10 = vshrl.u32 %v6915_v58, 16  ;;  %v639_v40 = vshll.u32 %v6917_v28, 16  ;;  %5986 = vmatmul.msk.bf16.gmra.mxu0 %vm933_vm2, %v6904_v36  ;;  %v829_v6 = vrot.slane %v828_v59, 4 }
  0x66   : > { %v622_v50 = vrot.slane %v620_v25, 4  ;;  %v625_v57 = vrot.slane %v623_v14, 5  ;;  %v824_v0 = vsel %vm6593_vm5, %v819_v41, %v823_v61  ;;  %v1118_v59 = vunpack.c.l.b16 %v6915_v58  ;;  %v270_v61 = vld [vmem:[%s6549_s8 + $0x160] sm:$0x3] }
  0x67   : > { %v631_v39 = vrot.slane %v629_v8, 5  ;;  %v635_v56 = vrot.slane %v633_v10, 4  ;;  %v641_v5 = vrot.slane %v639_v40, 5  ;;  %v834_v45 = vsel %vm6593_vm5, %v829_v6, %v833_v63 }
  0x68   : > { %v911_v4 = vunpack.c.l.b16 %v824_v0  ;;  %v626_v30 = vor.u32 %v625_v57, %v622_v50  ;;  %6011 = vmatmul.msk.bf16.gmra.mxu3 %vm933_vm2, %v6895_v60  ;;  %v912_v25 = vunpack.c.l.b16 %v834_v45  ;;  %v394_v55 = vrot.slane %v268_v42, 1 }
  0x69   : > { %v636_v14 = vor.u32 %v635_v56, %v631_v39  ;;  %v395_v29 = vrot.slane %v269_v21, 1  ;;  %v6940_v8 = vpack.c.b16 %v1118_v59, %v1117_v3  ;;  %v6942_v10 = vpack.c.bf16 %v268_v42, %v268_v42 }
  0x6a   : > { %v627_v41 = vrot.slane %v626_v30, 4  ;;  %v6944_v40 = vpack.c.bf16 %v269_v21, %v269_v21  ;;  %v6946_v63 = vpack.c.b16 %v912_v25, %v911_v4  ;;  %v397_v45 = vrot.slane %v270_v61, 1 }
  0x6b   : > { %10727 = vst [vmem:[#allocation51_spill] sm:$0xff] %v6942_v10  ;;  %v637_v6 = vrot.slane %v636_v14, 4  ;;  %v6949_v50 = vsel %vm328_vm1, %v394_v55, %v395_v29  ;;  %v1135_v30 = vunpack.c.l.b16 %v6942_v10  ;;  %v6955_v3 = vpack.c.bf16 %v270_v61, %v270_v61  ;;  %v244_v14 = vld [vmem:[%s6549_s8 + $0x90] sm:$0xff] }
  0x6c   : > { %10728 = vst [vmem:[#allocation52_spill] sm:$0xff] %v6944_v40  ;;  %v632_v57 = vsel %vm6593_vm5, %v627_v41, %v631_v39  ;;  %v1136_v42 = vunpack.c.l.b16 %v6944_v40  ;;  %v6960_v0 = vsel %vm328_vm1, %v395_v29, %v397_v45  ;;  %v836_v55 = vshrl.u32 %v6942_v10, 16  ;;  %v245_v41 = vld [vmem:[%s6549_s8 + $0x98] sm:$0xff] }
  0x6d   : > { %10729 = vst [vmem:[#allocation53_spill] sm:$0xff] %v6946_v63  ;;  %v642_v4 = vsel %vm6593_vm5, %v637_v6, %v641_v5  ;;  %v895_v21 = vunpack.c.l.b16 %v632_v57  ;;  %v839_v39 = vshll.u32 %v6942_v10, 16  ;;  %v845_v25 = vshll.u32 %v6944_v40, 16  ;;  %v246_v6 = vld [vmem:[%s6549_s8 + $0xa0] sm:$0x3] }
  0x6e   : > { %10730 = vst [vmem:[#allocation54_spill] sm:$0xff] %v6949_v50  ;;  %v896_v56 = vunpack.c.l.b16 %v642_v4  ;;  %v6963_v59 = vpack.c.b16 %v1136_v42, %v1135_v30  ;;  %v838_v61 = vrot.slane %v836_v55, 4  ;;  %v849_v50 = vshrl.u32 %v6944_v40, 16 }
  0x6f   : > { %10731 = vst [vmem:[#allocation55_spill] sm:$0xff] %v6955_v3  ;;  %v855_v5 = vshll.u32 %v6955_v3, 16  ;;  %v354_v57 = vrot.slane %v244_v14, 1  ;;  %v841_v45 = vrot.slane %v839_v39, 5  ;;  %v355_v4 = vrot.slane %v245_v41, 1 }
  0x70   : > { %10732 = vst [vmem:[#allocation56_spill] sm:$0xff] %v6960_v0  ;;  %v6972_v29 = vpack.c.b16 %v896_v56, %v895_v21  ;;  %v847_v0 = vrot.slane %v845_v25, 5  ;;  %6003 = vmatmul.msk.bf16.gmra.mxu1 %vm933_vm2, %v6940_v8  ;;  %v851_v30 = vrot.slane %v849_v50, 4  ;;  %v357_v10 = vrot.slane %v246_v6, 1 }
  0x71   : > { %10733 = vst [vmem:[#allocation57_spill] sm:$0xff] %v6963_v59  ;;  %v857_v42 = vrot.slane %v855_v5, 5  ;;  %v6976_v60 = vpack.c.bf16 %v244_v14, %v244_v14  ;;  %v842_v55 = vor.u32 %v841_v45, %v838_v61  ;;  %v6979_v40 = vsel %vm328_vm1, %v354_v57, %v355_v4 }
  0x72   : > { %10734 = vst [vmem:[#allocation58_spill] sm:$0xff] %v6979_v40  ;;  %v6981_v3 = vpack.c.bf16 %v245_v41, %v245_v41  ;;  %v6983_v43 = vpack.c.bf16 %v246_v6, %v246_v6  ;;  %5995 = vmatmul.msk.bf16.gmra.mxu2 %vm933_vm2, %v6946_v63  ;;  %v852_v21 = vor.u32 %v851_v30, %v847_v0  ;;  %v272_v40 = vld [vmem:[%s6549_s8 + $0x170] sm:$0xff] }
  0x73   : > { %v6988_v56 = vsel %vm328_vm1, %v355_v4, %v357_v10  ;;  %v644_v50 = vshrl.u32 %v6976_v60, 16  ;;  %v647_v39 = vshll.u32 %v6976_v60, 16  ;;  %v843_v25 = vrot.slane %v842_v55, 4 }
  0x74   : > { %10735 = vst [vmem:[#allocation59_spill] sm:$0xff] %v6988_v56  ;;  %v653_v14 = vshll.u32 %v6981_v3, 16  ;;  %v657_v41 = vshrl.u32 %v6981_v3, 16  ;;  %v663_v61 = vshll.u32 %v6983_v43, 16  ;;  %v853_v5 = vrot.slane %v852_v21, 4  ;;  %v271_v56 = vld [vmem:[%s6549_s8 + $0x168] sm:$0xff] }
  0x75   : > { %v646_v6 = vrot.slane %v644_v50, 4  ;;  %v649_v57 = vrot.slane %v647_v39, 5  ;;  %v1119_v45 = vunpack.c.l.b16 %v6976_v60  ;;  %5987 = vmatmul.msk.bf16.gmra.mxu0 %vm933_vm2, %v6972_v29  ;;  %v848_v10 = vsel %vm6593_vm5, %v843_v25, %v847_v0 }
  0x76   : > { %v655_v4 = vrot.slane %v653_v14, 5  ;;  %v659_v30 = vrot.slane %v657_v41, 4  ;;  %v665_v55 = vrot.slane %v663_v61, 5  ;;  %v858_v63 = vsel %vm6593_vm5, %v853_v5, %v857_v42 }
  0x77   : > { %v913_v21 = vunpack.c.l.b16 %v848_v10  ;;  %v650_v50 = vor.u32 %v649_v57, %v646_v6  ;;  %v1120_v39 = vunpack.c.l.b16 %v6981_v3  ;;  %v914_v31 = vunpack.c.l.b16 %v858_v63 }
  0x78   : > { %v660_v33 = vor.u32 %v659_v30, %v655_v4  ;;  %v399_v34 = vrot.slane %v271_v56, 1  ;;  %v400_v12 = vrot.slane %v272_v40, 1  ;;  %6012 = vmatmul.msk.bf16.gmra.mxu3 %vm933_vm2, %v6963_v59  ;;  %v7008_v25 = vpack.c.bf16 %v271_v56, %v271_v56 }
  0x79   : > { %v651_v0 = vrot.slane %v650_v50, 4  ;;  %v7010_v14 = vpack.c.bf16 %v272_v40, %v272_v40  ;;  %v402_v61 = vrot.slane %v273_v17, 1  ;;  %v7015_v5 = vpack.c.b16 %v914_v31, %v913_v21 }
  0x7a   : > { %10736 = vst [vmem:[#allocation60_spill] sm:$0xff] %v7008_v25  ;;  %v661_v41 = vrot.slane %v660_v33, 4  ;;  %v7013_v42 = vsel %vm328_vm1, %v399_v34, %v400_v12  ;;  %v7019_v6 = vpack.c.b16 %v1120_v39, %v1119_v45  ;;  %v7021_v57 = vpack.c.bf16 %v273_v17, %v273_v17  ;;  %v247_v45 = vld [vmem:[%s6549_s8 + $0xa8] sm:$0xff]  ;;  %v249_v39 = vld [vmem:[%s6549_s8 + $0xb8] sm:$0x3] }
  0x7b   : > { %10737 = vst [vmem:[#allocation61_spill] sm:$0xff] %v7010_v14  ;;  %v656_v63 = vsel %vm6593_vm5, %v651_v0, %v655_v4  ;;  %v7026_v33 = vsel %vm328_vm1, %v400_v12, %v402_v61  ;;  %v860_v34 = vshrl.u32 %v7008_v25, 16  ;;  %v1137_v10 = vunpack.c.l.b16 %v7008_v25 }
  0x7c   : > { %10738 = vst [vmem:[#allocation62_spill] sm:$0xff] %v7013_v42  ;;  %v666_v40 = vsel %vm6593_vm5, %v661_v41, %v665_v55  ;;  %v897_v56 = vunpack.c.l.b16 %v656_v63  ;;  %v863_v30 = vshll.u32 %v7008_v25, 16  ;;  %v869_v4 = vshll.u32 %v7010_v14, 16  ;;  %v248_v55 = vld [vmem:[%s6549_s8 + $0xb0] sm:$0xff] }
  0x7d   : > { %10739 = vst [vmem:[#allocation63_spill] sm:$0xff] %v7015_v5  ;;  %v898_v31 = vunpack.c.l.b16 %v666_v40  ;;  %v1138_v17 = vunpack.c.l.b16 %v7010_v14  ;;  %v862_v21 = vrot.slane %v860_v34, 4  ;;  %v873_v50 = vshrl.u32 %v7010_v14, 16 }
  0x7e   : > { %10740 = vst [vmem:[#allocation64_spill] sm:$0xff] %v7019_v6  ;;  %v359_v0 = vrot.slane %v247_v45, 1  ;;  %v865_v12 = vrot.slane %v863_v30, 5  ;;  %v871_v41 = vrot.slane %v869_v4, 5  ;;  %v879_v61 = vshll.u32 %v7021_v57, 16 }
  0x7f   : > { %10741 = vst [vmem:[#allocation65_spill] sm:$0xff] %v7021_v57  ;;  %v360_v63 = vrot.slane %v248_v55, 1  ;;  %v7038_v40 = vpack.c.b16 %v898_v31, %v897_v56  ;;  %v362_v42 = vrot.slane %v249_v39, 1  ;;  %v7040_v25 = vpack.c.bf16 %v247_v45, %v247_v45 }
  0x80   : > { %10742 = vst [vmem:[#allocation66_spill] sm:$0xff] %v7026_v33  ;;  %v875_v33 = vrot.slane %v873_v50, 4  ;;  %6004 = vmatmul.msk.bf16.gmra.mxu1 %vm933_vm2, %v7019_v6  ;;  %v866_v34 = vor.u32 %v865_v12, %v862_v21  ;;  %v7047_v59 = vpack.c.bf16 %v248_v55, %v248_v55  ;;  %v7049_v30 = vpack.c.bf16 %v249_v39, %v249_v39 }
  0x81   : > { %10743 = vst [vmem:[#allocation67_spill] sm:$0xff] %v7038_v40  ;;  %v7045_v14 = vsel %vm328_vm1, %v359_v0, %v360_v63  ;;  %v7052_v57 = vsel %vm328_vm1, %v360_v63, %v362_v42  ;;  %v668_v56 = vshrl.u32 %v7040_v25, 16  ;;  %v671_v31 = vshll.u32 %v7040_v25, 16 }
  0x82   : > { %10744 = vst [vmem:[#allocation68_spill] sm:$0xff] %v7045_v14  ;;  %v876_v4 = vor.u32 %v875_v33, %v871_v41  ;;  %5996 = vmatmul.msk.bf16.gmra.mxu2 %vm933_vm2, %v7015_v5  ;;  %v881_v45 = vrot.slane %v879_v61, 5  ;;  %v677_v21 = vshll.u32 %v7047_v59, 16  ;;  %v681_v50 = vshrl.u32 %v7047_v59, 16  ;;  %v6099_v61 = vld [vmem:[%s10543_s1 + $0xc] sm:$0x3] }
  0x83   : > { %10745 = vst [vmem:[#allocation69_spill] sm:$0xff] %v7052_v57  ;;  %v687_v55 = vshll.u32 %v7049_v30, 16  ;;  %v867_v39 = vrot.slane %v866_v34, 4  ;;  %v670_v33 = vrot.slane %v668_v56, 4  ;;  %v673_v12 = vrot.slane %v671_v31, 5 }
  0x84   : > { %v877_v0 = vrot.slane %v876_v4, 4  ;;  %v7061_v42 = vpack.c.b16 %v1138_v17, %v1137_v10  ;;  %v679_v63 = vrot.slane %v677_v21, 5  ;;  %v683_v57 = vrot.slane %v681_v50, 4  ;;  %v6116_v34 = vld [vmem:[%s10543_s1 + $0xe] sm:$0x3] }
  0x85   : > { %5988 = vmatmul.msk.bf16.gmra.mxu0 %vm933_vm2, %v7038_v40  ;;  %v674_v14 = vor.u32 %v673_v12, %v670_v33  ;;  %v689_v2 = vrot.slane %v687_v55, 5  ;;  %v872_v10 = vsel %vm6593_vm5, %v867_v39, %v871_v41  ;;  %v1121_v31 = vunpack.c.l.b16 %v7040_v25  ;;  %v6134_v39 = vld [vmem:[%s10543_s1 + $0x10] sm:$0x3] }
  0x86   : > { %10746 = vst [vmem:[#allocation70_spill] sm:$0xff] %v7061_v42  ;;  %v684_v5 = vor.u32 %v683_v57, %v679_v63  ;;  %v882_v17 = vsel %vm6593_vm5, %v877_v0, %v881_v45  ;;  %v1122_v57 = vunpack.c.l.b16 %v7047_v59  ;;  %v2089_v21 = vsel %vm982_vm0, %v6099_v61, 0 }
  0x87   : > { %v675_v4 = vrot.slane %v674_v14, 4  ;;  %2098 = vmatpush.bf16.msra.mxu2 %v2089_v21  ;;  %v2245_v50 = vsel %vm982_vm0, %v6116_v34, 0  ;;  %v915_v55 = vunpack.c.l.b16 %v872_v10  ;;  %v916_v33 = vunpack.c.l.b16 %v882_v17 }
  0x88   : > { %6013 = vmatmul.msk.bf16.gmra.mxu3 %vm933_vm2, %v7061_v42  ;;  %v685_v56 = vrot.slane %v684_v5, 4  ;;  %v6082_v5 = vld [vmem:[%s10543_s1 + $0xa] sm:$0x3]  ;;  %v7092_v0 = vpack.c.b16 %v1122_v57, %v1121_v31  ;;  %v2385_v12 = vsel %vm982_vm0, %v6134_v39, 0  ;;  %v1316_v10 = vrot.slane %v6565_v23, 5 }
  0x89   : > { %v680_v41 = vsel %vm6593_vm5, %v675_v4, %v679_v63  ;;  %2254 = vmatpush.bf16.msra.mxu3 %v2245_v50  ;;  %v1955_v45 = vsel %vm982_vm0, %v6082_v5, 0  ;;  %2394 = vmatpush.bf16.msra.mxu0 %v2385_v12  ;;  %v7096_v34 = vpack.c.b16 %v916_v33, %v915_v55  ;;  %v6015_v4 = vrot.slane %v6640_v47, 9 }
  0x8a   : > { %v690_v14 = vsel %vm6593_vm5, %v685_v56, %v689_v2  ;;  %10747 = vst [vmem:[#allocation71_spill] sm:$0xff] %v7092_v0  ;;  %1964 = vmatpush.bf16.msrb.mxu1 %v1955_v45  ;;  %v899_v63 = vunpack.c.l.b16 %v680_v41  ;;  %v1323_v2 = vrot.slane %v6642_v51, 5  ;;  %v1326_v31 = vrot.slane %v6644_v52, 5 }
  0x8b   : > { %v900_v61 = vunpack.c.l.b16 %v690_v14  ;;  %v6014_v51 = vrot.slane %v6563_v22, 9  ;;  %v1318_v57 = vrot.slane %v1316_v10, 4  ;;  %v1319_v23 = vrot.slane %v6582_v35, 5 }
  0x8c   : > { %v1325_v56 = vrot.slane %v1323_v2, 4  ;;  %v10749_v21 = vmov 0  ;;  %v1324_v47 = vsel %vm7109_vm8, %v6015_v4, %v1323_v2  ;;  %v1330_v39 = vrot.slane %v6713_v18, 5 }
  0x8d   : > { %v7101_v17 = vpack.c.b16 %v900_v61, %v899_v63  ;;  %v10750_v21 = vsel %vm7109_vm8, 4294967295, %v10749_v21  ;;  %v1317_v50 = vsel %vm7109_vm8, %v6014_v51, %v1316_v10  ;;  %v1320_v22 = vsel %vm7109_vm8, %v1318_v57, %v1319_v23 }
  0x8e   : > { %10751 = vst [vmem:[#allocation73_spill] sm:$0xff] %v10750_v21  ;;  %v1327_v52 = vsel %vm7109_vm8, %v1325_v56, %v1326_v31  ;;  %v1430_v35 = vunpack.c.l.b16 %v1324_v47  ;;  %v1428_v33 = vunpack.c.l.b16 %v1317_v50  ;;  %v1429_v41 = vunpack.c.l.b16 %v1320_v22 }
  0x8f   : > { %10748 = vst [vmem:[#allocation72_spill] sm:$0xff] %v7101_v17  ;;  %v1431_v55 = vunpack.c.l.b16 %v1327_v52  ;;  %v6016_v63 = vrot.slane %v6706_v11, 9  ;;  %v1332_v61 = vrot.slane %v1330_v39, 4  ;;  %v1333_v2 = vrot.slane %v6715_v19, 5 }
  0x90   : > { %6005 = vmatmul.msk.bf16.gmra.mxu1 %vm933_vm2, %v7092_v0  ;;  %v1460_v12 = vpack.c.b16 %v1429_v41, %v1428_v33  ;;  %v6017_v33 = vrot.slane %v6774_v49, 9 }
  0x91   : > { %v1461_v45 = vpack.c.b16 %v1431_v55, %v1430_v35  ;;  %v1331_v18 = vsel %vm7109_vm8, %v6016_v63, %v1330_v39  ;;  %v1334_v11 = vsel %vm7109_vm8, %v1332_v61, %v1333_v2  ;;  %v1337_v35 = vrot.slane %v6779_v7, 5 }
  0x92   : > { %5997 = vmatmul.msk.bf16.gmra.mxu2 %vm933_vm2, %v7096_v34  ;;  %v1432_v19 = vunpack.c.l.b16 %v1331_v18  ;;  %v1433_v57 = vunpack.c.l.b16 %v1334_v11 }
  0x93   : > { %v1339_v41 = vrot.slane %v1337_v35, 4  ;;  %v1338_v61 = vsel %vm7109_vm8, %v6017_v33, %v1337_v35 }
  0x94   : > { %v7144_v50 = vpack.c.b16 %v1433_v57, %v1432_v19  ;;  %v1344_v19 = vrot.slane %v6847_v53, 5 }
  0x95   : > { %5989 = vmatmul.msk.bf16.gmra.mxu0 %vm933_vm2, %v7101_v17 }
  0x98   : > { %6048 = vmatmul.msk.bf16.vlgmr.msrb.gmra.mxu3 %vm933_vm2, %v6674_v37 }
  0x9b   : > { %v1255_v14 = vpop.f32.mrf.mxu3 }
  0x9c   : > { %v1215_v5 = vpop.f32.mrf.mxu1 }
  0xa0   : > { %6083 = vmatmul.msk.bf16.vlgmr.msrb.gmra.mxu1 %vm933_vm2, %v1461_v45 }
  0xa2   : > { %v995_v10 = vpop.f32.mrf.mxu0  ;;  %6031 = vmatmul.msk.bf16.vlgmr.msrb.gmra.mxu2 %vm933_vm2, %v1460_v12 }
  0xa3   : > { %v7130_v37 = vadd.f32 %v1215_v5, %v995_v10  ;;  %v1257_v4 = vpop.f32.mrf.mxu3 }
  0xa4   : > { %v1217_v56 = vpop.f32.mrf.mxu1 }
  0xa5   : > { %6065 = vmatmul.msk.bf16.vlgmr.msrb.gmra.mxu0 %vm933_vm2, %v6704_v1  ;;  %v1035_v31 = vpop.f32.mrf.mxu2 }
  0xa6   : > { %v7138_v51 = vadd.f32 %v1255_v14, %v1035_v31  ;;  %v1340_v14 = vrot.slane %v6781_v46, 5  ;;  %v1434_v46 = vunpack.c.l.b16 %v1338_v61 }
  0xa8   : > { %6049 = vmatmul.msk.bf16.gmra.mxu3 %vm933_vm2, %v6736_v27  ;;  %v1341_v49 = vsel %vm7109_vm8, %v1339_v41, %v1340_v14 }
  0xaa   : > { %v997_v23 = vpop.f32.mrf.mxu0 }
  0xab   : > { %v7142_v47 = vadd.f32 %v1217_v56, %v997_v23  ;;  %v1260_v52 = vpop.f32.mrf.mxu3  ;;  %v6018_v23 = vrot.slane %v6842_v24, 9 }
  0xad   : > { %v1037_v1 = vpop.f32.mrf.mxu2  ;;  %v1220_v22 = vpop.f32.mrf.mxu1  ;;  %v1345_v14 = vsel %vm7109_vm8, %v6018_v23, %v1344_v19 }
  0xae   : > { %v7147_v55 = vadd.f32 %v1257_v4, %v1037_v1  ;;  %v1347_v1 = vrot.slane %v6849_v38, 5  ;;  %v1436_v38 = vunpack.c.l.b16 %v1345_v14 }
  0xb0   : > { %6084 = vmatmul.msk.bf16.gmra.mxu1 %vm933_vm2, %v7144_v50 }
  0xb2   : > { %v1000_v5 = vpop.f32.mrf.mxu0  ;;  %6032 = vmatmul.msk.bf16.gmra.mxu2 %vm933_vm2, %v1461_v45  ;;  %v1435_v45 = vunpack.c.l.b16 %v1341_v49 }
  0xb3   : > { %v7154_v39 = vadd.f32 %v1220_v22, %v1000_v5  ;;  %v1262_v12 = vpop.f32.mrf.mxu3 }
  0xb4   : > { %v7168_v31 = vpack.c.b16 %v1435_v45, %v1434_v46 }
  0xb5   : > { %6066 = vmatmul.msk.bf16.gmra.mxu0 %vm933_vm2, %v6772_v13  ;;  %v1040_v7 = vpop.f32.mrf.mxu2  ;;  %v1222_v63 = vpop.f32.mrf.mxu1 }
  0xb6   : > { %v7162_v2 = vadd.f32 %v1260_v52, %v1040_v7  ;;  %v1346_v52 = vrot.slane %v1344_v19, 4  ;;  %v1354_v19 = vrot.slane %v6917_v28, 5 }
  0xb8   : > { %6050 = vmatmul.msk.bf16.gmra.mxu3 %vm933_vm2, %v6804_v54  ;;  %v1348_v24 = vsel %vm7109_vm8, %v1346_v52, %v1347_v1 }
  0xba   : > { %v1002_v10 = vpop.f32.mrf.mxu0 }
  0xbb   : > { %v7166_v4 = vadd.f32 %v1222_v63, %v1002_v10  ;;  %v1265_v56 = vpop.f32.mrf.mxu3  ;;  %v1351_v10 = vrot.slane %v6915_v58, 5 }
  0xbd   : > { %v1042_v18 = vpop.f32.mrf.mxu2  ;;  %v1225_v11 = vpop.f32.mrf.mxu1 }
  0xbe   : > { %v7171_v57 = vadd.f32 %v1262_v12, %v1042_v18  ;;  %v1437_v12 = vunpack.c.l.b16 %v1348_v24 }
  0xc0   : > { %6085 = vmatmul.msk.bf16.gmra.mxu1 %vm933_vm2, %v7168_v31  ;;  %v7193_v49 = vpack.c.b16 %v1437_v12, %v1436_v38 }
  0xc2   : > { %v1005_v22 = vpop.f32.mrf.mxu0  ;;  %6033 = vmatmul.msk.bf16.gmra.mxu2 %vm933_vm2, %v7144_v50 }
  0xc3   : > { %v7179_v35 = vadd.f32 %v1225_v11, %v1005_v22  ;;  %v1267_v33 = vpop.f32.mrf.mxu3  ;;  %v1353_v11 = vrot.slane %v1351_v10, 4 }
  0xc5   : > { %6067 = vmatmul.msk.bf16.gmra.mxu0 %vm933_vm2, %v6838_v62  ;;  %v1045_v53 = vpop.f32.mrf.mxu2  ;;  %v1227_v41 = vpop.f32.mrf.mxu1 }
  0xc6   : > { %v7187_v5 = vadd.f32 %v1265_v56, %v1045_v53  ;;  %v6019_v56 = vrot.slane %v6908_v44, 9  ;;  %v1355_v44 = vsel %vm7109_vm8, %v1353_v11, %v1354_v19  ;;  %v1361_v11 = vrot.slane %v6983_v43, 5 }
  0xc8   : > { %6051 = vmatmul.msk.bf16.gmra.mxu3 %vm933_vm2, %v6872_v26 }
  0xca   : > { %v1007_v7 = vpop.f32.mrf.mxu0 }
  0xcb   : > { %v7191_v63 = vadd.f32 %v1227_v41, %v1007_v7  ;;  %v1270_v61 = vpop.f32.mrf.mxu3  ;;  %v1439_v41 = vunpack.c.l.b16 %v1355_v44 }
  0xcd   : > { %v1047_v46 = vpop.f32.mrf.mxu2  ;;  %v1230_v45 = vpop.f32.mrf.mxu1 }
  0xce   : > { %v7196_v18 = vadd.f32 %v1267_v33, %v1047_v46  ;;  %v1352_v33 = vsel %vm7109_vm8, %v6019_v56, %v1351_v10 }
  0xcf   : > { %v1438_v28 = vunpack.c.l.b16 %v1352_v33 }
  0xd0   : > { %6086 = vmatmul.msk.bf16.gmra.mxu1 %vm933_vm2, %v7193_v49 }
  0xd1   : > { %v7218_v12 = vpack.c.b16 %v1439_v41, %v1438_v28 }
  0xd2   : > { %v1010_v23 = vpop.f32.mrf.mxu0  ;;  %6034 = vmatmul.msk.bf16.gmra.mxu2 %vm933_vm2, %v7168_v31 }
  0xd3   : > { %v7204_v52 = vadd.f32 %v1230_v45, %v1010_v23  ;;  %v1272_v1 = vpop.f32.mrf.mxu3  ;;  %v1358_v45 = vrot.slane %v6981_v3, 5 }
  0xd5   : > { %6068 = vmatmul.msk.bf16.gmra.mxu0 %vm933_vm2, %v6904_v36  ;;  %v1050_v58 = vpop.f32.mrf.mxu2  ;;  %v1232_v22 = vpop.f32.mrf.mxu1  ;;  %v1360_v56 = vrot.slane %v1358_v45, 4 }
  0xd6   : > { %v7212_v53 = vadd.f32 %v1270_v61, %v1050_v58  ;;  %v6020_v61 = vrot.slane %v6976_v60, 9 }
  0xd7   : > { %v1362_v60 = vsel %vm7109_vm8, %v1360_v56, %v1361_v11  ;;  %v1368_v11 = vrot.slane %v7049_v30, 5 }
  0xd8   : > { %6052 = vmatmul.msk.bf16.gmra.mxu3 %vm933_vm2, %v6940_v8  ;;  %v1441_v44 = vunpack.c.l.b16 %v1362_v60 }
  0xda   : > { %v1012_v14 = vpop.f32.mrf.mxu0 }
  0xdb   : > { %v7216_v24 = vadd.f32 %v1232_v22, %v1012_v14  ;;  %v1275_v38 = vpop.f32.mrf.mxu3  ;;  %v1359_v22 = vsel %vm7109_vm8, %v6020_v61, %v1358_v45  ;;  %v1365_v45 = vrot.slane %v7047_v59, 5 }
  0xdc   : > { %v1440_v43 = vunpack.c.l.b16 %v1359_v22 }
  0xdd   : > { %v1052_v7 = vpop.f32.mrf.mxu2  ;;  %v1235_v46 = vpop.f32.mrf.mxu1  ;;  %v1367_v56 = vrot.slane %v1365_v45, 4 }
  0xde   : > { %v7221_v10 = vadd.f32 %v1272_v1, %v1052_v7  ;;  %v7243_v7 = vpack.c.b16 %v1441_v44, %v1440_v43 }
  0xe0   : > { %10752 = vst [vmem:[#allocation74_spill] sm:$0xff] %v7221_v10  ;;  %6087 = vmatmul.msk.bf16.gmra.mxu1 %vm933_vm2, %v7218_v12 }
  0xe1   : > { %10754 = vst [vmem:[#allocation76_spill] sm:$0xff] %v7243_v7 }
  0xe2   : > { %v1015_v19 = vpop.f32.mrf.mxu0  ;;  %6035 = vmatmul.msk.bf16.gmra.mxu2 %vm933_vm2, %v7193_v49 }
  0xe3   : > { %v7229_v23 = vadd.f32 %v1235_v46, %v1015_v19  ;;  %v1277_v58 = vpop.f32.mrf.mxu3 }
  0xe5   : > { %6069 = vmatmul.msk.bf16.gmra.mxu0 %vm933_vm2, %v6972_v29  ;;  %v1055_v3 = vpop.f32.mrf.mxu2  ;;  %v1237_v1 = vpop.f32.mrf.mxu1 }
  0xe6   : > { %v7237_v33 = vadd.f32 %v1275_v38, %v1055_v3  ;;  %v6021_v38 = vrot.slane %v7040_v25, 9  ;;  %v1369_v25 = vsel %vm7109_vm8, %v1367_v56, %v1368_v11  ;;  %v1375_v11 = vrot.slane %v6560_v20, 5 }
  0xe7   : > { %v1443_v44 = vunpack.c.l.b16 %v1369_v25 }
  0xe8   : > { %10753 = vst [vmem:[#allocation75_spill] sm:$0xff] %v7237_v33  ;;  %6053 = vmatmul.msk.bf16.gmra.mxu3 %vm933_vm2, %v7019_v6  ;;  %v1366_v60 = vsel %vm7109_vm8, %v6021_v38, %v1365_v45  ;;  %v1372_v45 = vrot.slane %v6556_v16, 5 }
  0xe9   : > { %v1442_v30 = vunpack.c.l.b16 %v1366_v60 }
  0xea   : > { %v1017_v28 = vpop.f32.mrf.mxu0  ;;  %v1374_v56 = vrot.slane %v1372_v45, 4 }
  0xeb   : > { %v7241_v41 = vadd.f32 %v1237_v1, %v1017_v28  ;;  %v1280_v14 = vpop.f32.mrf.mxu3 }
  0xed   : > { %v1057_v46 = vpop.f32.mrf.mxu2  ;;  %v1240_v19 = vpop.f32.mrf.mxu1 }
  0xee   : > { %v7246_v61 = vadd.f32 %v1277_v58, %v1057_v46 }
  0xf0   : > { %10755 = vst [vmem:[#allocation77_spill] sm:$0xff] %v7246_v61  ;;  %6088 = vmatmul.msk.bf16.gmra.mxu1 %vm933_vm2, %v7243_v7 }
  0xf2   : > { %v1020_v3 = vpop.f32.mrf.mxu0  ;;  %6036 = vmatmul.msk.bf16.gmra.mxu2 %vm933_vm2, %v7218_v12 }
  0xf3   : > { %v7254_v1 = vadd.f32 %v1240_v19, %v1020_v3  ;;  %v1282_v22 = vpop.f32.mrf.mxu3  ;;  %v7268_v3 = vpack.c.b16 %v1443_v44, %v1442_v30 }
  0xf5   : > { %6070 = vmatmul.msk.bf16.gmra.mxu0 %vm933_vm2, %v7038_v40  ;;  %v1060_v59 = vpop.f32.mrf.mxu2  ;;  %v1242_v58 = vpop.f32.mrf.mxu1  ;;  %10757 = vst [vmem:[#allocation79_spill] sm:$0xff] %v7268_v3 }
  0xf6   : > { %v7262_v43 = vadd.f32 %v1280_v14, %v1060_v59  ;;  %v6022_v14 = vrot.slane %v6554_v15, 9  ;;  %v1376_v15 = vsel %vm7109_vm8, %v1374_v56, %v1375_v11 }
  0xf8   : > { %10756 = vst [vmem:[#allocation78_spill] sm:$0xff] %v7262_v43  ;;  %6054 = vmatmul.msk.bf16.gmra.mxu3 %vm933_vm2, %v7092_v0 }
  0xfa   : > { %v1022_v28 = vpop.f32.mrf.mxu0 }
  0xfb   : > { %v7266_v46 = vadd.f32 %v1242_v58, %v1022_v28  ;;  %v1285_v19 = vpop.f32.mrf.mxu3 }
  0xfd   : > { %v1062_v61 = vpop.f32.mrf.mxu2  ;;  %v1245_v33 = vpop.f32.mrf.mxu1 }
  0xfe   : > { %v7271_v38 = vadd.f32 %v1282_v22, %v1062_v61  ;;  %v1373_v22 = vsel %vm7109_vm8, %v6022_v14, %v1372_v45  ;;  %v1379_v45 = vrot.slane %v6612_v9, 5 }
  0xff   : > { %v1444_v20 = vunpack.c.l.b16 %v1373_v22 }
 0x100   : > { %10758 = vst [vmem:[#allocation80_spill] sm:$0xff] %v7271_v38  ;;  %6089 = vmatmul.msk.bf16.gmra.mxu1 %vm933_vm2, %v7268_v3  ;;  %v1381_v11 = vrot.slane %v1379_v45, 4 }
 0x102   : > { %v1025_v59 = vpop.f32.mrf.mxu0  ;;  %6037 = vmatmul.msk.bf16.gmra.mxu2 %vm933_vm2, %v7243_v7 }
 0x103   : > { %v7279_v58 = vadd.f32 %v1245_v33, %v1025_v59  ;;  %v1287_v60 = vpop.f32.mrf.mxu3  ;;  %v1445_v33 = vunpack.c.l.b16 %v1376_v15 }
 0x105   : > { %6071 = vmatmul.msk.bf16.gmra.mxu0 %vm933_vm2, %v7101_v17  ;;  %v1065_v16 = vpop.f32.mrf.mxu2  ;;  %v1247_v61 = vpop.f32.mrf.mxu1  ;;  %v7293_v59 = vpack.c.b16 %v1445_v33, %v1444_v20  ;;  %v10764_v33 = vld [vmem:[#allocation9_spill] sm:$0xff] }
 0x106   : > { %v7287_v25 = vadd.f32 %v1285_v19, %v1065_v16  ;;  %v10762_v19 = vld [vmem:[#allocation7_spill] sm:$0xff]  ;;  %v10763_v16 = vld [vmem:[#allocation10_spill] sm:$0xff]  ;;  %v10767_v17 = vld [vmem:[#allocation17_spill] sm:$0xff] }
 0x107   : > { %10760 = vst [vmem:[#allocation82_spill] sm:$0xff] %v7293_v59  ;;  %v6023_v56 = vrot.slane %v10762_v19, 9  ;;  %v1382_v22 = vrot.slane %v10763_v16, 5  ;;  %v10766_v16 = vld [vmem:[#allocation12_spill] sm:$0xff] }
 0x108   : > { %10759 = vst [vmem:[#allocation81_spill] sm:$0xff] %v7287_v25  ;;  %6055 = vmatmul.msk.bf16.gmra.mxu3 %vm933_vm2, %v6579_v32 }
 0x10a   : > { %v1027_v30 = vpop.f32.mrf.mxu0 }
 0x10b   : > { %v7291_v44 = vadd.f32 %v1247_v61, %v1027_v30  ;;  %v1290_v28 = vpop.f32.mrf.mxu3  ;;  %v1383_v30 = vsel %vm7109_vm8, %v1381_v11, %v1382_v22 }
 0x10d   : > { %v1067_v38 = vpop.f32.mrf.mxu2  ;;  %v1250_v43 = vpop.f32.mrf.mxu1 }
 0x10e   : > { %v7296_v14 = vadd.f32 %v1287_v60, %v1067_v38  ;;  %v1380_v60 = vsel %vm7109_vm8, %v6023_v56, %v1379_v45  ;;  %v1386_v45 = vrot.slane %v10767_v17, 5 }
 0x110   : > { %10761 = vst [vmem:[#allocation83_spill] sm:$0xff] %v7296_v14  ;;  %6090 = vmatmul.msk.bf16.gmra.mxu1 %vm933_vm2, %v7293_v59  ;;  %v1446_v14 = vunpack.c.l.b16 %v1380_v60  ;;  %v1388_v22 = vrot.slane %v1386_v45, 4 }
 0x112   : > { %v1030_v15 = vpop.f32.mrf.mxu0  ;;  %6038 = vmatmul.msk.bf16.gmra.mxu2 %vm933_vm2, %v7268_v3 }
 0x113   : > { %v7304_v61 = vadd.f32 %v1250_v43, %v1030_v15  ;;  %v1292_v20 = vpop.f32.mrf.mxu3  ;;  %v1447_v43 = vunpack.c.l.b16 %v1383_v30 }
 0x115   : > { %6072 = vmatmul.msk.bf16.gmra.mxu0 %vm933_vm2, %v10764_v33  ;;  %v1070_v9 = vpop.f32.mrf.mxu2  ;;  %v1252_v38 = vpop.f32.mrf.mxu1  ;;  %v7318_v33 = vpack.c.b16 %v1447_v43, %v1446_v14 }
 0x116   : > { %v7312_v19 = vadd.f32 %v1290_v28, %v1070_v9  ;;  %v10769_v28 = vld [vmem:[#allocation16_spill] sm:$0xff]  ;;  %v10770_v9 = vld [vmem:[#allocation19_spill] sm:$0xff] }
 0x117   : > { %v6024_v11 = vrot.slane %v10769_v28, 9  ;;  %v1389_v60 = vrot.slane %v10770_v9, 5  ;;  %v10772_v9 = vld [vmem:[#allocation21_spill] sm:$0xff] }
 0x118   : > { %10765 = vst [vmem:[#allocation7_spill] sm:$0xff] %v7312_v19  ;;  %6056 = vmatmul.msk.bf16.gmra.mxu3 %vm933_vm2, %v10766_v16 }
 0x11a   : > { %v1032_v15 = vpop.f32.mrf.mxu0 }
 0x11b   : > { %v7316_v25 = vadd.f32 %v1252_v38, %v1032_v15  ;;  %v1670_v32 = vpop.f32.mrf.mxu3  ;;  %v10771_v38 = vld [vmem:[#allocation15_spill] sm:$0xff] }
 0x11d   : > { %v1072_v3 = vpop.f32.mrf.mxu2  ;;  %v1966_v0 = vpop.f32.mrf.mxu1 }
 0x11e   : > { %v7321_v56 = vadd.f32 %v1292_v20, %v1072_v3  ;;  %v1387_v3 = vsel %vm7109_vm8, %v6024_v11, %v1386_v45  ;;  %v1390_v20 = vsel %vm7109_vm8, %v1388_v22, %v1389_v60  ;;  %v10774_v11 = vld [vmem:[#allocation25_spill] sm:$0xff] }
 0x11f   : > { %v1449_v19 = vunpack.c.l.b16 %v1390_v20  ;;  %v1393_v40 = vrot.slane %v10774_v11, 5 }
 0x120   : > { %10768 = vst [vmem:[#allocation10_spill] sm:$0xff] %v7321_v56  ;;  %6091 = vmatmul.msk.bf16.gmra.mxu1 %vm933_vm2, %v7318_v33  ;;  %v1448_v56 = vunpack.c.l.b16 %v1387_v3  ;;  %v10776_v3 = vld [vmem:[#allocation28_spill] sm:$0xff] }
 0x122   : > { %v1826_v30 = vpop.f32.mrf.mxu0  ;;  %6039 = vmatmul.msk.bf16.gmra.mxu2 %vm933_vm2, %v7293_v59  ;;  %v7340_v6 = vpack.c.b16 %v1449_v19, %v1448_v56  ;;  %v10778_v56 = vld [vmem:[#allocation26_spill] sm:$0xff] }
 0x123   : > { %v1672_v14 = vpop.f32.mrf.mxu3 }
 0x125   : > { %6073 = vmatmul.msk.bf16.gmra.mxu0 %vm933_vm2, %v10771_v38  ;;  %v1536_v43 = vpop.f32.mrf.mxu2  ;;  %v1968_v17 = vpop.f32.mrf.mxu1 }
 0x126   : > { %v1616_v15 = vadd.f32 %v1536_v43, %v7130_v37  ;;  %v1395_v43 = vrot.slane %v1393_v40, 4 }
 0x128   : > { %v1750_v28 = vadd.f32 %v1670_v32, %v1616_v15  ;;  %6057 = vmatmul.msk.bf16.gmra.mxu3 %vm933_vm2, %v10772_v9  ;;  %v10775_v32 = vld [vmem:[#allocation24_spill] sm:$0xff] }
 0x129   : > { %v6025_v60 = vrot.slane %v10775_v32, 9 }
 0x12a   : > { %v1828_v16 = vpop.f32.mrf.mxu0  ;;  %v1906_v59 = vadd.f32 %v1826_v30, %v1750_v28  ;;  %v1396_v30 = vrot.slane %v10776_v3, 5 }
 0x12b   : > { %v1675_v7 = vpop.f32.mrf.mxu3 }
 0x12c   : > { %v7338_v38 = vadd.f32 %v1966_v0, %v1906_v59  ;;  %v1397_v15 = vsel %vm7109_vm8, %v1395_v43, %v1396_v30 }
 0x12d   : > { %v1538_v10 = vpop.f32.mrf.mxu2  ;;  %v1971_v45 = vpop.f32.mrf.mxu1 }
 0x12e   : > { %10773 = vst [vmem:[#allocation17_spill] sm:$0xff] %v7338_v38  ;;  %v1617_v22 = vadd.f32 %v1538_v10, %v7142_v47 }
 0x130   : > { %v1751_v37 = vadd.f32 %v1672_v14, %v1617_v22  ;;  %6092 = vmatmul.msk.bf16.gmra.mxu1 %vm933_vm2, %v7340_v6  ;;  %v1394_v14 = vsel %vm7109_vm8, %v6025_v60, %v1393_v40  ;;  %v10779_v22 = vld [vmem:[#allocation30_spill] sm:$0xff] }
 0x131   : > { %v10781_v60 = vld [vmem:[#allocation34_spill] sm:$0xff] }
 0x132   : > { %v1831_v20 = vpop.f32.mrf.mxu0  ;;  %6040 = vmatmul.msk.bf16.gmra.mxu2 %vm933_vm2, %v7318_v33  ;;  %v1907_v0 = vadd.f32 %v1828_v16, %v1751_v37  ;;  %v1450_v16 = vunpack.c.l.b16 %v1394_v14  ;;  %v1400_v9 = vrot.slane %v10781_v60, 5  ;;  %v10783_v14 = vld [vmem:[#allocation37_spill] sm:$0xff] }
 0x133   : > { %v1677_v59 = vpop.f32.mrf.mxu3 }
 0x134   : > { %v7350_v19 = vadd.f32 %v1968_v17, %v1907_v0  ;;  %v1451_v17 = vunpack.c.l.b16 %v1397_v15 }
 0x135   : > { %6074 = vmatmul.msk.bf16.gmra.mxu0 %vm933_vm2, %v10778_v56  ;;  %v1541_v47 = vpop.f32.mrf.mxu2  ;;  %v1973_v10 = vpop.f32.mrf.mxu1 }
 0x136   : > { %10777 = vst [vmem:[#allocation16_spill] sm:$0xff] %v7350_v19  ;;  %v1618_v28 = vadd.f32 %v1541_v47, %v7154_v39  ;;  %v7363_v19 = vpack.c.b16 %v1451_v17, %v1450_v16  ;;  %v1402_v47 = vrot.slane %v1400_v9, 4  ;;  %v10785_v16 = vld [vmem:[#allocation35_spill] sm:$0xff] }
 0x138   : > { %v1752_v11 = vadd.f32 %v1675_v7, %v1618_v28  ;;  %6058 = vmatmul.msk.bf16.gmra.mxu3 %vm933_vm2, %v10779_v22  ;;  %v10782_v7 = vld [vmem:[#allocation33_spill] sm:$0xff] }
 0x139   : > { %v6026_v30 = vrot.slane %v10782_v7, 9 }
 0x13a   : > { %v1833_v37 = vpop.f32.mrf.mxu0  ;;  %v1908_v32 = vadd.f32 %v1831_v20, %v1752_v11  ;;  %v1403_v20 = vrot.slane %v10783_v14, 5 }
 0x13b   : > { %v1680_v3 = vpop.f32.mrf.mxu3 }
 0x13c   : > { %v7361_v0 = vadd.f32 %v1971_v45, %v1908_v32  ;;  %v1404_v17 = vsel %vm7109_vm8, %v1402_v47, %v1403_v20 }
 0x13d   : > { %v1543_v38 = vpop.f32.mrf.mxu2  ;;  %v1976_v40 = vpop.f32.mrf.mxu1 }
 0x13e   : > { %10780 = vst [vmem:[#allocation19_spill] sm:$0xff] %v7361_v0  ;;  %v1619_v43 = vadd.f32 %v1543_v38, %v7166_v4 }
 0x140   : > { %v1753_v39 = vadd.f32 %v1677_v59, %v1619_v43  ;;  %6093 = vmatmul.msk.bf16.gmra.mxu1 %vm933_vm2, %v7363_v19  ;;  %v1401_v59 = vsel %vm7109_vm8, %v6026_v30, %v1400_v9  ;;  %v10786_v43 = vld [vmem:[#allocation39_spill] sm:$0xff] }
 0x141   : > { %v10788_v30 = vld [vmem:[#allocation43_spill] sm:$0xff] }
 0x142   : > { %v1836_v15 = vpop.f32.mrf.mxu0  ;;  %6041 = vmatmul.msk.bf16.gmra.mxu2 %vm933_vm2, %v7340_v6  ;;  %v1909_v45 = vadd.f32 %v1833_v37, %v1753_v39  ;;  %v1452_v37 = vunpack.c.l.b16 %v1401_v59  ;;  %v1407_v22 = vrot.slane %v10788_v30, 5  ;;  %v10790_v59 = vld [vmem:[#allocation46_spill] sm:$0xff] }
 0x143   : > { %v1682_v28 = vpop.f32.mrf.mxu3 }
 0x144   : > { %v7373_v11 = vadd.f32 %v1973_v10, %v1909_v45  ;;  %v1453_v10 = vunpack.c.l.b16 %v1404_v17 }
 0x145   : > { %6075 = vmatmul.msk.bf16.gmra.mxu0 %vm933_vm2, %v10785_v16  ;;  %v1546_v4 = vpop.f32.mrf.mxu2  ;;  %v1978_v38 = vpop.f32.mrf.mxu1 }
 0x146   : > { %10784 = vst [vmem:[#allocation25_spill] sm:$0xff] %v7373_v11  ;;  %v1620_v32 = vadd.f32 %v1546_v4, %v7179_v35  ;;  %v7386_v11 = vpack.c.b16 %v1453_v10, %v1452_v37  ;;  %v1409_v4 = vrot.slane %v1407_v22, 4  ;;  %v10792_v37 = vld [vmem:[#allocation44_spill] sm:$0xff] }
 0x148   : > { %v1754_v60 = vadd.f32 %v1680_v3, %v1620_v32  ;;  %6059 = vmatmul.msk.bf16.gmra.mxu3 %vm933_vm2, %v10786_v43  ;;  %v10789_v3 = vld [vmem:[#allocation42_spill] sm:$0xff] }
 0x149   : > { %v6027_v20 = vrot.slane %v10789_v3, 9 }
 0x14a   : > { %v1838_v39 = vpop.f32.mrf.mxu0  ;;  %v1910_v7 = vadd.f32 %v1836_v15, %v1754_v60  ;;  %v1410_v15 = vrot.slane %v10790_v59, 5 }
 0x14b   : > { %v1685_v14 = vpop.f32.mrf.mxu3 }
 0x14c   : > { %v7384_v45 = vadd.f32 %v1976_v40, %v1910_v7  ;;  %v1411_v10 = vsel %vm7109_vm8, %v1409_v4, %v1410_v15 }
 0x14d   : > { %v1548_v0 = vpop.f32.mrf.mxu2  ;;  %v1981_v9 = vpop.f32.mrf.mxu1 }
 0x14e   : > { %10787 = vst [vmem:[#allocation24_spill] sm:$0xff] %v7384_v45  ;;  %v1621_v47 = vadd.f32 %v1548_v0, %v7191_v63 }
 0x150   : > { %v1755_v35 = vadd.f32 %v1682_v28, %v1621_v47  ;;  %6094 = vmatmul.msk.bf16.gmra.mxu1 %vm933_vm2, %v7386_v11  ;;  %v1408_v28 = vsel %vm7109_vm8, %v6027_v20, %v1407_v22  ;;  %v10793_v47 = vld [vmem:[#allocation48_spill] sm:$0xff] }
 0x151   : > { %v10796_v20 = vld [vmem:[#allocation52_spill] sm:$0xff] }
 0x152   : > { %v1841_v17 = vpop.f32.mrf.mxu0  ;;  %6042 = vmatmul.msk.bf16.gmra.mxu2 %vm933_vm2, %v7363_v19  ;;  %v1911_v40 = vadd.f32 %v1838_v39, %v1755_v35  ;;  %v1454_v39 = vunpack.c.l.b16 %v1408_v28  ;;  %v1414_v43 = vrot.slane %v10796_v20, 5  ;;  %v10798_v28 = vld [vmem:[#allocation55_spill] sm:$0xff] }
 0x153   : > { %v1687_v32 = vpop.f32.mrf.mxu3 }
 0x154   : > { %v7396_v60 = vadd.f32 %v1978_v38, %v1911_v40  ;;  %v1455_v38 = vunpack.c.l.b16 %v1411_v10 }
 0x155   : > { %6076 = vmatmul.msk.bf16.gmra.mxu0 %vm933_vm2, %v10792_v37  ;;  %v1551_v63 = vpop.f32.mrf.mxu2  ;;  %v1983_v0 = vpop.f32.mrf.mxu1 }
 0x156   : > { %10791 = vst [vmem:[#allocation28_spill] sm:$0xff] %v7396_v60  ;;  %v1622_v7 = vadd.f32 %v1551_v63, %v7204_v52  ;;  %v7409_v60 = vpack.c.b16 %v1455_v38, %v1454_v39  ;;  %v1416_v63 = vrot.slane %v1414_v43, 4  ;;  %v10800_v39 = vld [vmem:[#allocation53_spill] sm:$0xff] }
 0x158   : > { %v1756_v30 = vadd.f32 %v1685_v14, %v1622_v7  ;;  %6060 = vmatmul.msk.bf16.gmra.mxu3 %vm933_vm2, %v10793_v47  ;;  %10795 = vst [vmem:[#allocation34_spill] sm:$0xff] %v7409_v60  ;;  %v10797_v14 = vld [vmem:[#allocation51_spill] sm:$0xff] }
 0x159   : > { %v6028_v15 = vrot.slane %v10797_v14, 9 }
 0x15a   : > { %v1843_v35 = vpop.f32.mrf.mxu0  ;;  %v1912_v3 = vadd.f32 %v1841_v17, %v1756_v30  ;;  %v1417_v17 = vrot.slane %v10798_v28, 5 }
 0x15b   : > { %v1690_v59 = vpop.f32.mrf.mxu3 }
 0x15c   : > { %v7407_v40 = vadd.f32 %v1981_v9, %v1912_v3  ;;  %v1418_v38 = vsel %vm7109_vm8, %v1416_v63, %v1417_v17  ;;  %v10804_v63 = vld [vmem:[#allocation61_spill] sm:$0xff] }
 0x15d   : > { %v1553_v45 = vpop.f32.mrf.mxu2  ;;  %v1986_v22 = vpop.f32.mrf.mxu1  ;;  %v1421_v17 = vrot.slane %v10804_v63, 5  ;;  %v10808_v63 = vld [vmem:[#allocation63_spill] sm:$0xff] }
 0x15e   : > { %10794 = vst [vmem:[#allocation26_spill] sm:$0xff] %v7407_v40  ;;  %v1623_v4 = vadd.f32 %v1553_v45, %v7216_v24 }
 0x160   : > { %v1757_v52 = vadd.f32 %v1687_v32, %v1623_v4  ;;  %6095 = vmatmul.msk.bf16.gmra.mxu1 %vm933_vm2, %v7409_v60  ;;  %v1415_v32 = vsel %vm7109_vm8, %v6028_v15, %v1414_v43  ;;  %v10802_v4 = vld [vmem:[#allocation57_spill] sm:$0xff] }
 0x162   : > { %v1846_v10 = vpop.f32.mrf.mxu0  ;;  %6043 = vmatmul.msk.bf16.gmra.mxu2 %vm933_vm2, %v7386_v11  ;;  %v1913_v9 = vadd.f32 %v1843_v35, %v1757_v52  ;;  %v1457_v35 = vunpack.c.l.b16 %v1418_v38  ;;  %v10806_v38 = vld [vmem:[#allocation65_spill] sm:$0xff] }
 0x163   : > { %v1692_v7 = vpop.f32.mrf.mxu3 }
 0x164   : > { %v7419_v30 = vadd.f32 %v1983_v0, %v1913_v9  ;;  %v1456_v0 = vunpack.c.l.b16 %v1415_v32 }
 0x165   : > { %6077 = vmatmul.msk.bf16.gmra.mxu0 %vm933_vm2, %v10800_v39  ;;  %v1556_v24 = vpop.f32.mrf.mxu2  ;;  %v7423_v45 = vpop.f32.mrf.mxu1 }
 0x166   : > { %10799 = vst [vmem:[#allocation33_spill] sm:$0xff] %v7419_v30  ;;  %v1624_v3 = vadd.f32 %v1556_v24, %v7229_v23  ;;  %v10805_v24 = vld [vmem:[#allocation60_spill] sm:$0xff] }
 0x167   : > { %10801 = vst [vmem:[#allocation37_spill] sm:$0xff] %v7423_v45  ;;  %v7434_v45 = vpack.c.b16 %v1457_v35, %v1456_v0  ;;  %v6029_v32 = vrot.slane %v10805_v24, 9  ;;  %v274_v0 = vld [vmem:[%s6549_s8 + $0x180] sm:$0xff] }
 0x168   : > { %v1758_v20 = vadd.f32 %v1690_v59, %v1624_v3  ;;  %6061 = vmatmul.msk.bf16.gmra.mxu3 %vm933_vm2, %v10802_v4  ;;  %v1424_v3 = vrot.slane %v10806_v38, 5 }
 0x16a   : > { %v1848_v52 = vpop.f32.mrf.mxu0  ;;  %v1914_v14 = vadd.f32 %v1846_v10, %v1758_v20  ;;  %v1423_v10 = vrot.slane %v1421_v17, 4 }
 0x16b   : > { %v1695_v28 = vpop.f32.mrf.mxu3 }
 0x16c   : > { %v7432_v9 = vadd.f32 %v1986_v22, %v1914_v14  ;;  %v275_v14 = vld [vmem:[%s6549_s8 + $0x188] sm:$0xff]  ;;  %v1425_v24 = vsel %vm7109_vm8, %v1423_v10, %v1424_v3 }
 0x16d   : > { %v1558_v43 = vpop.f32.mrf.mxu2  ;;  %v1991_v15 = vpop.f32.mrf.mxu1 }
 0x16e   : > { %10803 = vst [vmem:[#allocation35_spill] sm:$0xff] %v7432_v9  ;;  %v1625_v23 = vadd.f32 %v1558_v43, %v7241_v41  ;;  %v489_v43 = vpack.c.bf16 %v274_v0, %v274_v0  ;;  %v1459_v9 = vunpack.c.l.b16 %v1425_v24 }
 0x170   : > { %v1759_v59 = vadd.f32 %v1692_v7, %v1625_v23  ;;  %6096 = vmatmul.msk.bf16.gmra.mxu1 %vm933_vm2, %v7434_v45  ;;  %v1422_v23 = vsel %vm7109_vm8, %v6029_v32, %v1421_v17  ;;  %v1783_v4 = vshrl.u32 %v489_v43, 16  ;;  %v1786_v0 = vshll.u32 %v489_v43, 16 }
 0x172   : > { %v1851_v22 = vpop.f32.mrf.mxu0  ;;  %6044 = vmatmul.msk.bf16.gmra.mxu2 %vm933_vm2, %v7409_v60  ;;  %v7444_v20 = vadd.f32 %v1848_v52, %v1759_v59  ;;  %v490_v59 = vpack.c.bf16 %v275_v14, %v275_v14  ;;  %v1785_v14 = vrot.slane %v1783_v4, 4  ;;  %v1788_v24 = vrot.slane %v1786_v0, 5 }
 0x173   : > { %v1697_v35 = vpop.f32.mrf.mxu3 }
 0x174   : > { %10807 = vst [vmem:[#allocation43_spill] sm:$0xff] %v7444_v20  ;;  %v1458_v20 = vunpack.c.l.b16 %v1422_v23  ;;  %v1792_v40 = vshll.u32 %v490_v59, 16  ;;  %v1796_v60 = vshrl.u32 %v490_v59, 16  ;;  %v1653_v47 = vunpack.c.l.b16 %v490_v59 }
 0x175   : > { %6078 = vmatmul.msk.bf16.gmra.mxu0 %vm933_vm2, %v10808_v63  ;;  %v1561_v41 = vpop.f32.mrf.mxu2  ;;  %v7450_v7 = vpop.f32.mrf.mxu1 }
 0x176   : > { %10809 = vst [vmem:[#allocation42_spill] sm:$0xff] %v7450_v7  ;;  %v1626_v52 = vadd.f32 %v1561_v41, %v7254_v1  ;;  %v276_v7 = vld [vmem:[%s6549_s8 + $0x190] sm:$0x3]  ;;  %v7462_v10 = vpack.c.b16 %v1459_v9, %v1458_v20  ;;  %v1941_v41 = vrot.slane %v490_v59, 5 }
 0x178   : > { %v1760_v38 = vadd.f32 %v1695_v28, %v1626_v52  ;;  %6062 = vmatmul.msk.bf16.gmra.mxu3 %vm933_vm2, %v7061_v42  ;;  %v491_v28 = vpack.c.bf16 %v276_v7, %v276_v7  ;;  %v1794_v52 = vrot.slane %v1792_v40, 5  ;;  %v1798_v42 = vrot.slane %v1796_v60, 4 }
 0x179   : > { %v1789_v7 = vor.u32 %v1788_v24, %v1785_v14 }
 0x17a   : > { %v1853_v30 = vpop.f32.mrf.mxu0  ;;  %v1916_v63 = vadd.f32 %v1851_v22, %v1760_v38  ;;  %v1652_v38 = vunpack.c.l.b16 %v489_v43  ;;  %v1944_v9 = vrot.slane %v491_v28, 5  ;;  %v1802_v0 = vshll.u32 %v491_v28, 16 }
 0x17b   : > { %v1700_v17 = vpop.f32.mrf.mxu3  ;;  %v1790_v14 = vrot.slane %v1789_v7, 4 }
 0x17c   : > { %v7460_v32 = vadd.f32 %v1991_v15, %v1916_v63  ;;  %v6081_v15 = vrot.slane %v489_v43, 9  ;;  %v1943_v63 = vrot.slane %v1941_v41, 4  ;;  %v7471_v60 = vpack.c.b16 %v1653_v47, %v1652_v38 }
 0x17d   : > { %v1563_v1 = vpop.f32.mrf.mxu2  ;;  %v1996_v3 = vpop.f32.mrf.mxu1  ;;  %v1804_v28 = vrot.slane %v1802_v0, 5 }
 0x17e   : > { %v1627_v23 = vadd.f32 %v1563_v1, %v7266_v46  ;;  %v1799_v46 = vor.u32 %v1798_v42, %v1794_v52  ;;  %v1942_v43 = vsel %vm7109_vm8, %v6081_v15, %v1941_v41  ;;  %v1945_v1 = vsel %vm7109_vm8, %v1943_v63, %v1944_v9 }
 0x17f   : > { %v1948_v47 = vunpack.c.l.b16 %v1942_v43  ;;  %v1949_v24 = vunpack.c.l.b16 %v1945_v1 }
 0x180   : > { %v1761_v22 = vadd.f32 %v1697_v35, %v1627_v23  ;;  %6097 = vmatmul.msk.bf16.gmra.mxu1 %vm933_vm2, %v7462_v10  ;;  %v1800_v42 = vrot.slane %v1799_v46, 4 }
 0x182   : > { %v1856_v20 = vpop.f32.mrf.mxu0  ;;  %6045 = vmatmul.msk.bf16.gmra.mxu2 %vm933_vm2, %v7434_v45  ;;  %v7469_v4 = vadd.f32 %v1853_v30, %v1761_v22  ;;  %v1805_v41 = vsel %vm6593_vm5, %v1800_v42, %v1804_v28 }
 0x183   : > { %v1702_v40 = vpop.f32.mrf.mxu3  ;;  %v1809_v7 = vunpack.c.l.b16 %v1805_v41 }
 0x185   : > { %6079 = vmatmul.msk.bf16.gmra.mxu0 %vm933_vm2, %v7096_v34  ;;  %v1566_v35 = vpop.f32.mrf.mxu2  ;;  %v7475_v59 = vpop.f32.mrf.mxu1 }
 0x186   : > { %10810 = vst [vmem:[#allocation46_spill] sm:$0xff] %v7475_v59  ;;  %v1628_v30 = vadd.f32 %v1566_v35, %v7279_v58  ;;  %v1795_v59 = vsel %vm6593_vm5, %v1790_v14, %v1794_v52  ;;  %v7490_v58 = vpack.c.b16 %v1949_v24, %v1948_v47 }
 0x188   : > { %v1762_v23 = vadd.f32 %v1700_v17, %v1628_v30  ;;  %6063 = vmatmul.msk.bf16.gmra.mxu3 %vm933_vm2, %v7471_v60  ;;  %v1808_v17 = vunpack.c.l.b16 %v1795_v59 }
 0x18a   : > { %v1858_v22 = vpop.f32.mrf.mxu0  ;;  %v1918_v38 = vadd.f32 %v1856_v20, %v1762_v23  ;;  %v7495_v20 = vpack.c.b16 %v1809_v7, %v1808_v17 }
 0x18b   : > { %v1705_v15 = vpop.f32.mrf.mxu3 }
 0x18c   : > { %v7488_v63 = vadd.f32 %v1996_v3, %v1918_v38 }
 0x18d   : > { %v1568_v9 = vpop.f32.mrf.mxu2  ;;  %v2001_v46 = vpop.f32.mrf.mxu1 }
 0x18e   : > { %v1629_v0 = vadd.f32 %v1568_v9, %v7291_v44 }
 0x190   : > { %v1763_v35 = vadd.f32 %v1702_v40, %v1629_v0  ;;  %6098 = vmatmul.msk.bf16.gmra.mxu1 %vm933_vm2, %v7490_v58 }
 0x192   : > { %v1861_v52 = vpop.f32.mrf.mxu0  ;;  %6046 = vmatmul.msk.bf16.gmra.mxu2 %vm933_vm2, %v7462_v10  ;;  %v7499_v3 = vadd.f32 %v1858_v22, %v1763_v35 }
 0x193   : > { %v1707_v43 = vpop.f32.mrf.mxu3 }
 0x195   : > { %6080 = vmatmul.msk.bf16.gmra.mxu0 %vm933_vm2, %v7495_v20  ;;  %v1571_v59 = vpop.f32.mrf.mxu2  ;;  %v7504_v44 = vpop.f32.mrf.mxu1 }
 0x196   : > { %v1630_v1 = vadd.f32 %v1571_v59, %v7304_v61 }
 0x198   : > { %v1764_v40 = vadd.f32 %v1705_v15, %v1630_v1  ;;  %6117 = vmatmul.msk.bf16.vlgmr.msra.gmra.mxu3 %vm933_vm2, %v6772_v13 }
 0x19a   : > { %v1863_v30 = vpop.f32.mrf.mxu0  ;;  %v1920_v14 = vadd.f32 %v1861_v52, %v1764_v40 }
 0x19b   : > { %v1710_v42 = vpop.f32.mrf.mxu3 }
 0x19c   : > { %v7508_v28 = vadd.f32 %v2001_v46, %v1920_v14 }
 0x19d   : > { %v1573_v23 = vpop.f32.mrf.mxu2  ;;  %v2006_v22 = vpop.f32.mrf.mxu1 }
 0x19e   : > { %v1631_v47 = vadd.f32 %v1573_v23, %v7316_v25 }
 0x1a0   : > { %v1765_v24 = vadd.f32 %v1707_v43, %v1631_v47 }
 0x1a2   : > { %v1866_v38 = vpop.f32.mrf.mxu0  ;;  %6100 = vmatmul.msk.bf16.vlgmr.msra.gmra.mxu2 %vm933_vm2, %v6736_v27  ;;  %v7513_v61 = vadd.f32 %v1863_v30, %v1765_v24 }
 0x1a3   : > { %v1712_v41 = vpop.f32.mrf.mxu3 }
 0x1a5   : > { %6135 = vmatmul.msk.bf16.vlgmr.msra.gmra.mxu0 %vm933_vm2, %v7144_v50  ;;  %v1576_v13 = vpop.f32.mrf.mxu2  ;;  %v7520_v46 = vpop.f32.mrf.mxu1 }
 0x1a6   : > { %v1632_v15 = vadd.f32 %v1576_v13, %v7138_v51 }
 0x1a8   : > { %v1766_v9 = vadd.f32 %v1710_v42, %v1632_v15  ;;  %6118 = vmatmul.msk.bf16.gmra.mxu3 %vm933_vm2, %v6838_v62 }
 0x1aa   : > { %v1868_v25 = vpop.f32.mrf.mxu0  ;;  %v1922_v17 = vadd.f32 %v1866_v38, %v1766_v9 }
 0x1ab   : > { %v1715_v7 = vpop.f32.mrf.mxu3 }
 0x1ac   : > { %v7522_v0 = vadd.f32 %v2006_v22, %v1922_v17 }
 0x1ad   : > { %v1578_v27 = vpop.f32.mrf.mxu2  ;;  %v2011_v59 = vpop.f32.mrf.mxu1 }
 0x1ae   : > { %v1633_v35 = vadd.f32 %v1578_v27, %v7147_v55 }
 0x1b0   : > { %v1767_v52 = vadd.f32 %v1712_v41, %v1633_v35 }
 0x1b2   : > { %v1871_v43 = vpop.f32.mrf.mxu0  ;;  %6101 = vmatmul.msk.bf16.gmra.mxu2 %vm933_vm2, %v6804_v54  ;;  %v7527_v51 = vadd.f32 %v1868_v25, %v1767_v52 }
 0x1b3   : > { %v1717_v50 = vpop.f32.mrf.mxu3 }
 0x1b5   : > { %6136 = vmatmul.msk.bf16.gmra.mxu0 %vm933_vm2, %v7168_v31  ;;  %v1581_v62 = vpop.f32.mrf.mxu2  ;;  %v7537_v47 = vpop.f32.mrf.mxu1 }
 0x1b6   : > { %v1634_v1 = vadd.f32 %v1581_v62, %v7162_v2 }
 0x1b8   : > { %v1768_v40 = vadd.f32 %v1715_v7, %v1634_v1  ;;  %6119 = vmatmul.msk.bf16.gmra.mxu3 %vm933_vm2, %v6904_v36  ;;  %v10812_v1 = vld [vmem:[#allocation74_spill] sm:$0xff] }
 0x1ba   : > { %v1873_v55 = vpop.f32.mrf.mxu0  ;;  %v1924_v30 = vadd.f32 %v1871_v43, %v1768_v40  ;;  %v10811_v43 = vld [vmem:[#allocation67_spill] sm:$0xff] }
 0x1bb   : > { %v1720_v14 = vpop.f32.mrf.mxu3 }
 0x1bc   : > { %v7534_v42 = vadd.f32 %v2011_v59, %v1924_v30  ;;  %v10813_v30 = vld [vmem:[#allocation64_spill] sm:$0xff] }
 0x1bd   : > { %v1583_v54 = vpop.f32.mrf.mxu2 }
 0x1be   : > { %v1635_v23 = vadd.f32 %v1583_v54, %v7171_v57  ;;  %v2016_v57 = vpop.f32.mrf.mxu1 }
 0x1c0   : > { %v1769_v24 = vadd.f32 %v1717_v50, %v1635_v23  ;;  %v10815_v23 = vld [vmem:[#allocation75_spill] sm:$0xff] }
 0x1c2   : > { %v1876_v31 = vpop.f32.mrf.mxu0  ;;  %6102 = vmatmul.msk.bf16.gmra.mxu2 %vm933_vm2, %v6872_v26  ;;  %v7541_v2 = vadd.f32 %v1873_v55, %v1769_v24 }
 0x1c3   : > { %v1722_v22 = vpop.f32.mrf.mxu3 }
 0x1c5   : > { %6137 = vmatmul.msk.bf16.gmra.mxu0 %vm933_vm2, %v7193_v49  ;;  %v1586_v36 = vpop.f32.mrf.mxu2 }
 0x1c6   : > { %v1636_v38 = vadd.f32 %v1586_v36, %v7187_v5 }
 0x1c8   : > { %v1770_v41 = vadd.f32 %v1720_v14, %v1636_v38  ;;  %6120 = vmatmul.msk.bf16.gmra.mxu3 %vm933_vm2, %v6972_v29 }
 0x1ca   : > { %v1878_v13 = vpop.f32.mrf.mxu0  ;;  %v1926_v15 = vadd.f32 %v1876_v31, %v1770_v41 }
 0x1cb   : > { %v1725_v9 = vpop.f32.mrf.mxu3 }
 0x1cc   : > { %v7548_v25 = vadd.f32 %v2016_v57, %v1926_v15 }
 0x1cd   : > { %v1588_v26 = vpop.f32.mrf.mxu2 }
 0x1ce   : > { %v1637_v17 = vadd.f32 %v1588_v26, %v7196_v18 }
 0x1d0   : > { %v1771_v7 = vadd.f32 %v1722_v22, %v1637_v17  ;;  %v10816_v22 = vld [vmem:[#allocation72_spill] sm:$0xff]  ;;  %v10818_v17 = vld [vmem:[#allocation71_spill] sm:$0xff] }
 0x1d2   : > { %v1881_v27 = vpop.f32.mrf.mxu0  ;;  %6103 = vmatmul.msk.bf16.gmra.mxu2 %vm933_vm2, %v6940_v8  ;;  %v7553_v49 = vadd.f32 %v1878_v13, %v1771_v7  ;;  %v10817_v13 = vld [vmem:[#allocation77_spill] sm:$0xff] }
 0x1d3   : > { %v1727_v5 = vpop.f32.mrf.mxu3 }
 0x1d5   : > { %6138 = vmatmul.msk.bf16.gmra.mxu0 %vm933_vm2, %v7218_v12  ;;  %v1591_v29 = vpop.f32.mrf.mxu2 }
 0x1d6   : > { %v1638_v35 = vadd.f32 %v1591_v29, %v7212_v53  ;;  %v10814_v53 = vld [vmem:[#allocation76_spill] sm:$0xff] }
 0x1d8   : > { %v1772_v52 = vadd.f32 %v1725_v9, %v1638_v35  ;;  %6121 = vmatmul.msk.bf16.gmra.mxu3 %vm933_vm2, %v10811_v43  ;;  %v10820_v35 = vld [vmem:[#allocation78_spill] sm:$0xff] }
 0x1da   : > { %v1883_v50 = vpop.f32.mrf.mxu0  ;;  %v7560_v18 = vadd.f32 %v1881_v27, %v1772_v52 }
 0x1db   : > { %v1730_v62 = vpop.f32.mrf.mxu3 }
 0x1dd   : > { %v1593_v59 = vpop.f32.mrf.mxu2 }
 0x1de   : > { %v1639_v8 = vadd.f32 %v1593_v59, %v10812_v1 }
 0x1e0   : > { %v1773_v40 = vadd.f32 %v1727_v5, %v1639_v8  ;;  %v10819_v5 = vld [vmem:[#allocation79_spill] sm:$0xff] }
 0x1e2   : > { %v1886_v55 = vpop.f32.mrf.mxu0  ;;  %6104 = vmatmul.msk.bf16.gmra.mxu2 %vm933_vm2, %v10813_v30  ;;  %v7565_v12 = vadd.f32 %v1883_v50, %v1773_v40  ;;  %v10821_v50 = vld [vmem:[#allocation9_spill] sm:$0xff]  ;;  %v10823_v40 = vld [vmem:[#allocation80_spill] sm:$0xff] }
 0x1e3   : > { %v1732_v14 = vpop.f32.mrf.mxu3 }
 0x1e5   : > { %6139 = vmatmul.msk.bf16.gmra.mxu0 %vm933_vm2, %v10814_v53  ;;  %v1596_v54 = vpop.f32.mrf.mxu2  ;;  %v10824_v53 = vld [vmem:[#allocation5_spill] sm:$0xff] }
 0x1e6   : > { %v1640_v24 = vadd.f32 %v1596_v54, %v10815_v23 }
 0x1e8   : > { %v1774_v31 = vadd.f32 %v1730_v62, %v1640_v24  ;;  %6122 = vmatmul.msk.bf16.gmra.mxu3 %vm933_vm2, %v10816_v22  ;;  %v10826_v24 = vld [vmem:[#allocation82_spill] sm:$0xff]  ;;  %v10827_v22 = vld [vmem:[#allocation81_spill] sm:$0xff] }
 0x1ea   : > { %v1888_v36 = vpop.f32.mrf.mxu0  ;;  %v7572_v38 = vadd.f32 %v1886_v55, %v1774_v31 }
 0x1eb   : > { %v1735_v41 = vpop.f32.mrf.mxu3 }
 0x1ed   : > { %v1598_v57 = vpop.f32.mrf.mxu2 }
 0x1ee   : > { %v1641_v15 = vadd.f32 %v1598_v57, %v10817_v13  ;;  %v10828_v57 = vld [vmem:[#allocation15_spill] sm:$0xff] }
 0x1f0   : > { %v1775_v9 = vadd.f32 %v1732_v14, %v1641_v15 }
 0x1f2   : > { %v1891_v26 = vpop.f32.mrf.mxu0  ;;  %6105 = vmatmul.msk.bf16.gmra.mxu2 %vm933_vm2, %v10818_v17  ;;  %v7577_v7 = vadd.f32 %v1888_v36, %v1775_v9  ;;  %v10830_v17 = vld [vmem:[#allocation83_spill] sm:$0xff] }
 0x1f3   : > { %v1737_v27 = vpop.f32.mrf.mxu3 }
 0x1f5   : > { %6140 = vmatmul.msk.bf16.gmra.mxu0 %vm933_vm2, %v10819_v5  ;;  %v1601_v29 = vpop.f32.mrf.mxu2 }
 0x1f6   : > { %v1642_v52 = vadd.f32 %v1601_v29, %v10820_v35  ;;  %v10831_v35 = vld [vmem:[#allocation12_spill] sm:$0xff] }
 0x1f8   : > { %v1776_v43 = vadd.f32 %v1735_v41, %v1642_v52  ;;  %6123 = vmatmul.msk.bf16.gmra.mxu3 %vm933_vm2, %v10821_v50 }
 0x1fa   : > { %v1893_v62 = vpop.f32.mrf.mxu0  ;;  %v7584_v59 = vadd.f32 %v1891_v26, %v1776_v43 }
 0x1fb   : > { %v1740_v1 = vpop.f32.mrf.mxu3 }
 0x1fc   : > { %10822 = vst [vmem:[#allocation44_spill] sm:$0xff] %v7584_v59 }
 0x1fd   : > { %v1603_v8 = vpop.f32.mrf.mxu2 }
 0x1fe   : > { %v1643_v55 = vadd.f32 %v1603_v8, %v10823_v40 }
 0x200   : > { %v1777_v30 = vadd.f32 %v1737_v27, %v1643_v55 }
 0x202   : > { %v1896_v14 = vpop.f32.mrf.mxu0  ;;  %6106 = vmatmul.msk.bf16.gmra.mxu2 %vm933_vm2, %v10824_v53  ;;  %v7589_v54 = vadd.f32 %v1893_v62, %v1777_v30  ;;  %v10833_v62 = vld [vmem:[#allocation7_spill] sm:$0xff]  ;;  %v10835_v53 = vld [vmem:[#allocation10_spill] sm:$0xff] }
 0x203   : > { %v1742_v23 = vpop.f32.mrf.mxu3 }
 0x204   : > { %10825 = vst [vmem:[#allocation52_spill] sm:$0xff] %v7589_v54 }
 0x205   : > { %6141 = vmatmul.msk.bf16.gmra.mxu0 %vm933_vm2, %v10826_v24  ;;  %v1606_v31 = vpop.f32.mrf.mxu2 }
 0x206   : > { %v1644_v36 = vadd.f32 %v1606_v31, %v10827_v22  ;;  %v10836_v22 = vld [vmem:[#allocation21_spill] sm:$0xff] }
 0x208   : > { %v1778_v41 = vadd.f32 %v1740_v1, %v1644_v36  ;;  %6124 = vmatmul.msk.bf16.gmra.mxu3 %vm933_vm2, %v10828_v57 }
 0x20a   : > { %v1898_v13 = vpop.f32.mrf.mxu0  ;;  %v7596_v15 = vadd.f32 %v1896_v14, %v1778_v41 }
 0x20b   : > { %v1745_v9 = vpop.f32.mrf.mxu3 }
 0x20c   : > { %10829 = vst [vmem:[#allocation51_spill] sm:$0xff] %v7596_v15 }
 0x20d   : > { %v1608_v26 = vpop.f32.mrf.mxu2 }
 0x20e   : > { %v1645_v27 = vadd.f32 %v1608_v26, %v10830_v17 }
 0x210   : > { %v1779_v5 = vadd.f32 %v1742_v23, %v1645_v27 }
 0x212   : > { %v1901_v29 = vpop.f32.mrf.mxu0  ;;  %6107 = vmatmul.msk.bf16.gmra.mxu2 %vm933_vm2, %v10831_v35  ;;  %v7601_v52 = vadd.f32 %v1898_v13, %v1779_v5  ;;  %v10839_v5 = vld [vmem:[#allocation16_spill] sm:$0xff] }
 0x213   : > { %v1747_v43 = vpop.f32.mrf.mxu3 }
 0x214   : > { %10832 = vst [vmem:[#allocation55_spill] sm:$0xff] %v7601_v52 }
 0x215   : > { %6142 = vmatmul.msk.bf16.gmra.mxu0 %vm933_vm2, %v7318_v33  ;;  %v1611_v50 = vpop.f32.mrf.mxu2 }
 0x216   : > { %v1646_v1 = vadd.f32 %v1611_v50, %v10833_v62  ;;  %v10840_v62 = vld [vmem:[#allocation30_spill] sm:$0xff] }
 0x218   : > { %v1780_v8 = vadd.f32 %v1745_v9, %v1646_v1  ;;  %6125 = vmatmul.msk.bf16.gmra.mxu3 %vm933_vm2, %v10778_v56  ;;  %v10838_v56 = vld [vmem:[#allocation17_spill] sm:$0xff] }
 0x21a   : > { %v1903_v40 = vpop.f32.mrf.mxu0  ;;  %v7608_v55 = vadd.f32 %v1901_v29, %v1780_v8 }
 0x21b   : > { %v2256_v30 = vpop.f32.mrf.mxu3 }
 0x21c   : > { %10834 = vst [vmem:[#allocation53_spill] sm:$0xff] %v7608_v55 }
 0x21d   : > { %v1613_v14 = vpop.f32.mrf.mxu2 }
 0x21e   : > { %v1647_v23 = vadd.f32 %v1613_v14, %v10835_v53 }
 0x220   : > { %v1781_v24 = vadd.f32 %v1747_v43, %v1647_v23 }
 0x222   : > { %v2396_v31 = vpop.f32.mrf.mxu0  ;;  %6108 = vmatmul.msk.bf16.gmra.mxu2 %vm933_vm2, %v10836_v22  ;;  %v7613_v33 = vadd.f32 %v1903_v40, %v1781_v24  ;;  %v10842_v24 = vld [vmem:[#allocation25_spill] sm:$0xff] }
 0x223   : > { %v2258_v36 = vpop.f32.mrf.mxu3 }
 0x224   : > { %10837 = vst [vmem:[#allocation61_spill] sm:$0xff] %v7613_v33 }
 0x225   : > { %6143 = vmatmul.msk.bf16.gmra.mxu0 %vm933_vm2, %v7340_v6  ;;  %v2100_v41 = vpop.f32.mrf.mxu2 }
 0x226   : > { %v2180_v57 = vadd.f32 %v2100_v41, %v10838_v56  ;;  %v10843_v56 = vld [vmem:[#allocation39_spill] sm:$0xff] }
 0x228   : > { %v2336_v13 = vadd.f32 %v2256_v30, %v2180_v57  ;;  %6126 = vmatmul.msk.bf16.gmra.mxu3 %vm933_vm2, %v10785_v16  ;;  %v10841_v16 = vld [vmem:[#allocation19_spill] sm:$0xff] }
 0x22a   : > { %v7620_v9 = vadd.f32 %v2396_v31, %v2336_v13  ;;  %v2398_v26 = vpop.f32.mrf.mxu0 }
 0x22b   : > { %v2261_v17 = vpop.f32.mrf.mxu3 }
 0x22d   : > { %v2102_v27 = vpop.f32.mrf.mxu2 }
 0x22e   : > { %v2181_v29 = vadd.f32 %v2102_v27, %v10839_v5 }
 0x230   : > { %v2337_v35 = vadd.f32 %v2258_v36, %v2181_v29 }
 0x232   : > { %v7623_v43 = vadd.f32 %v2398_v26, %v2337_v35  ;;  %v2401_v50 = vpop.f32.mrf.mxu0  ;;  %6109 = vmatmul.msk.bf16.gmra.mxu2 %vm933_vm2, %v10840_v62  ;;  %v10845_v35 = vld [vmem:[#allocation28_spill] sm:$0xff] }
 0x233   : > { %v2263_v6 = vpop.f32.mrf.mxu3 }
 0x235   : > { %6144 = vmatmul.msk.bf16.gmra.mxu0 %vm933_vm2, %v7363_v19  ;;  %v2105_v1 = vpop.f32.mrf.mxu2 }
 0x236   : > { %v2182_v8 = vadd.f32 %v2105_v1, %v10841_v16  ;;  %v10846_v16 = vld [vmem:[#allocation48_spill] sm:$0xff] }
 0x238   : > { %v2338_v40 = vadd.f32 %v2261_v17, %v2182_v8  ;;  %6127 = vmatmul.msk.bf16.gmra.mxu3 %vm933_vm2, %v10792_v37  ;;  %v10844_v37 = vld [vmem:[#allocation24_spill] sm:$0xff]  ;;  %v10847_v8 = vld [vmem:[#allocation34_spill] sm:$0xff] }
 0x23a   : > { %v7632_v30 = vadd.f32 %v2401_v50, %v2338_v40  ;;  %v2403_v14 = vpop.f32.mrf.mxu0 }
 0x23b   : > { %v2266_v53 = vpop.f32.mrf.mxu3 }
 0x23d   : > { %v2107_v23 = vpop.f32.mrf.mxu2 }
 0x23e   : > { %v2183_v31 = vadd.f32 %v2107_v23, %v10842_v24  ;;  %v10849_v23 = vld [vmem:[#allocation63_spill] sm:$0xff] }
 0x240   : > { %v2339_v22 = vadd.f32 %v2263_v6, %v2183_v31 }
 0x242   : > { %v7635_v36 = vadd.f32 %v2403_v14, %v2339_v22  ;;  %v2406_v41 = vpop.f32.mrf.mxu0  ;;  %6110 = vmatmul.msk.bf16.gmra.mxu2 %vm933_vm2, %v10843_v56  ;;  %v10850_v56 = vld [vmem:[#allocation33_spill] sm:$0xff] }
 0x243   : > { %v2268_v19 = vpop.f32.mrf.mxu3 }
 0x245   : > { %6145 = vmatmul.msk.bf16.gmra.mxu0 %vm933_vm2, %v7386_v11  ;;  %v2110_v57 = vpop.f32.mrf.mxu2 }
 0x246   : > { %v2184_v13 = vadd.f32 %v2110_v57, %v10844_v37 }
 0x248   : > { %v2340_v26 = vadd.f32 %v2266_v53, %v2184_v13  ;;  %6128 = vmatmul.msk.bf16.gmra.mxu3 %vm933_vm2, %v10800_v39  ;;  %v10848_v39 = vld [vmem:[#allocation26_spill] sm:$0xff] }
 0x24a   : > { %v7644_v17 = vadd.f32 %v2406_v41, %v2340_v26  ;;  %v2408_v27 = vpop.f32.mrf.mxu0  ;;  %v10851_v26 = vld [vmem:[#allocation57_spill] sm:$0xff] }
 0x24b   : > { %v2271_v5 = vpop.f32.mrf.mxu3 }
 0x24d   : > { %v2112_v29 = vpop.f32.mrf.mxu2 }
 0x24e   : > { %v2185_v50 = vadd.f32 %v2112_v29, %v10845_v35  ;;  %v10852_v29 = vld [vmem:[#allocation35_spill] sm:$0xff] }
 0x250   : > { %v2341_v62 = vadd.f32 %v2268_v19, %v2185_v50  ;;  %v277_v50 = vld [vmem:[%s6549_s8 + $0x198] sm:$0xff] }
 0x252   : > { %v7647_v6 = vadd.f32 %v2408_v27, %v2341_v62  ;;  %v2411_v1 = vpop.f32.mrf.mxu0  ;;  %6111 = vmatmul.msk.bf16.gmra.mxu2 %vm933_vm2, %v10846_v16  ;;  %v278_v62 = vld [vmem:[%s6549_s8 + $0x1a0] sm:$0xff] }
 0x253   : > { %v2273_v11 = vpop.f32.mrf.mxu3  ;;  %v6183_v16 = vld [vmem:[%s10545_s3 + $0x2] sm:$0x3] }
 0x255   : > { %6146 = vmatmul.msk.bf16.gmra.mxu0 %vm933_vm2, %v10847_v8  ;;  %v2115_v40 = vpop.f32.mrf.mxu2  ;;  %v7677_v8 = vpack.c.bf16 %v278_v62, %v278_v62 }
 0x256   : > { %v2186_v14 = vadd.f32 %v2115_v40, %v10848_v39  ;;  %v4047_v39 = vsel %vm982_vm0, %v6183_v16, 0 }
 0x257   : > { %4056 = vmatpush.bf16.msra.mxu1 %v4047_v39 }
 0x258   : > { %v2342_v53 = vadd.f32 %v2271_v5, %v2186_v14  ;;  %6129 = vmatmul.msk.bf16.gmra.mxu3 %vm933_vm2, %v10849_v23  ;;  %v279_v23 = vld [vmem:[%s6549_s8 + $0x1a8] sm:$0x3] }
 0x25a   : > { %v7656_v24 = vadd.f32 %v2411_v1, %v2342_v53  ;;  %v2413_v31 = vpop.f32.mrf.mxu0 }
 0x25b   : > { %v2276_v22 = vpop.f32.mrf.mxu3 }
 0x25d   : > { %v2117_v41 = vpop.f32.mrf.mxu2 }
 0x25e   : > { %v2187_v19 = vadd.f32 %v2117_v41, %v10850_v56  ;;  %v2226_v41 = vshrl.u32 %v7677_v8, 16  ;;  %v494_v56 = vpack.c.bf16 %v279_v23, %v279_v23 }
 0x260   : > { %v2343_v57 = vadd.f32 %v2273_v11, %v2187_v19  ;;  %v7675_v11 = vpack.c.bf16 %v277_v50, %v277_v50  ;;  %v2232_v16 = vshll.u32 %v494_v56, 16 }
 0x262   : > { %v7659_v37 = vadd.f32 %v2413_v31, %v2343_v57  ;;  %v2416_v13 = vpop.f32.mrf.mxu0  ;;  %6112 = vmatmul.msk.bf16.gmra.mxu2 %vm933_vm2, %v10851_v26  ;;  %v2216_v31 = vshll.u32 %v7675_v11, 16  ;;  %v2228_v26 = vrot.slane %v2226_v41, 4 }
 0x263   : > { %v7663_v27 = vpop.f32.mrf.mxu3 }
 0x264   : > { %v2218_v57 = vrot.slane %v2216_v31, 5 }
 0x265   : > { %6147 = vmatmul.msk.bf16.gmra.mxu0 %vm933_vm2, %v7434_v45  ;;  %v2120_v5 = vpop.f32.mrf.mxu2 }
 0x266   : > { %v2188_v35 = vadd.f32 %v2120_v5, %v10852_v29  ;;  %v10853_v29 = vld [vmem:[#allocation70_spill] sm:$0xff] }
 0x268   : > { %v2344_v1 = vadd.f32 %v2276_v22, %v2188_v35  ;;  %6130 = vmatmul.msk.bf16.gmra.mxu3 %vm933_vm2, %v7096_v34  ;;  %v2213_v34 = vshrl.u32 %v7675_v11, 16  ;;  %v2222_v22 = vshll.u32 %v7677_v8, 16 }
 0x26a   : > { %v7679_v40 = vadd.f32 %v2416_v13, %v2344_v1  ;;  %v7681_v45 = vpop.f32.mrf.mxu0  ;;  %v2215_v19 = vrot.slane %v2213_v34, 4  ;;  %v2224_v13 = vrot.slane %v2222_v22, 5  ;;  %v2234_v22 = vrot.slane %v2232_v16, 5 }
 0x26b   : > { %v2281_v14 = vpop.f32.mrf.mxu3  ;;  %v2374_v16 = vrot.slane %v494_v56, 5 }
 0x26c   : > { %v2219_v62 = vor.u32 %v2218_v57, %v2215_v19  ;;  %v2229_v1 = vor.u32 %v2228_v26, %v2224_v13 }
 0x26d   : > { %v7684_v53 = vpop.f32.mrf.mxu2 }
 0x26e   : > { %v2220_v34 = vrot.slane %v2219_v62, 4  ;;  %v2230_v31 = vrot.slane %v2229_v1, 4  ;;  %v6133_v62 = vrot.slane %v7675_v11, 9 }
 0x272   : > { %v2421_v5 = vpop.f32.mrf.mxu0  ;;  %6113 = vmatmul.msk.bf16.gmra.mxu2 %vm933_vm2, %v10853_v29 }
 0x273   : > { %v7693_v35 = vpop.f32.mrf.mxu3 }
 0x275   : > { %6148 = vmatmul.msk.bf16.gmra.mxu0 %vm933_vm2, %v7462_v10  ;;  %v2125_v50 = vpop.f32.mrf.mxu2  ;;  %v2225_v10 = vsel %vm6593_vm5, %v2220_v34, %v2224_v13 }
 0x276   : > { %v2190_v39 = vadd.f32 %v2125_v50, %v7460_v32  ;;  %v2235_v32 = vsel %vm6593_vm5, %v2230_v31, %v2234_v22  ;;  %v2083_v31 = vunpack.c.l.b16 %v7677_v8 }
 0x277   : > { %v2239_v19 = vunpack.c.l.b16 %v2235_v32 }
 0x278   : > { %v2346_v23 = vadd.f32 %v2281_v14, %v2190_v39  ;;  %6131 = vmatmul.msk.bf16.gmra.mxu3 %vm933_vm2, %v7495_v20  ;;  %v2238_v14 = vunpack.c.l.b16 %v2225_v10  ;;  %v2371_v20 = vrot.slane %v7677_v8, 5 }
 0x27a   : > { %v7700_v41 = vadd.f32 %v2421_v5, %v2346_v23  ;;  %v7702_v29 = vpop.f32.mrf.mxu0  ;;  %v2240_v5 = vpack.c.b16 %v2239_v19, %v2238_v14  ;;  %v2373_v1 = vrot.slane %v2371_v20, 4 }
 0x27b   : > { %v2286_v33 = vpop.f32.mrf.mxu3 }
 0x27d   : > { %v7704_v55 = vpop.f32.mrf.mxu2 }
 0x282   : > { %v2426_v57 = vpop.f32.mrf.mxu0  ;;  %6114 = vmatmul.msk.bf16.gmra.mxu2 %vm933_vm2, %v7471_v60  ;;  %v2082_v60 = vunpack.c.l.b16 %v7675_v11 }
 0x283   : > { %v7713_v26 = vpop.f32.mrf.mxu3 }
 0x284   : > { %v2084_v32 = vpack.c.b16 %v2083_v31, %v2082_v60 }
 0x285   : > { %6149 = vmatmul.msk.bf16.gmra.mxu0 %vm933_vm2, %v7490_v58  ;;  %v2130_v50 = vpop.f32.mrf.mxu2  ;;  %v2372_v58 = vsel %vm7109_vm8, %v6133_v62, %v2371_v20 }
 0x286   : > { %v2192_v13 = vadd.f32 %v2130_v50, %v7488_v63  ;;  %v2375_v63 = vsel %vm7109_vm8, %v2373_v1, %v2374_v16 }
 0x287   : > { %v2379_v56 = vunpack.c.l.b16 %v2375_v63 }
 0x288   : > { %v2348_v39 = vadd.f32 %v2286_v33, %v2192_v13  ;;  %6132 = vmatmul.msk.bf16.gmra.mxu3 %vm933_vm2, %v2240_v5  ;;  %v2378_v33 = vunpack.c.l.b16 %v2372_v58 }
 0x28a   : > { %v7721_v23 = vadd.f32 %v2426_v57, %v2348_v39  ;;  %v7723_v34 = vpop.f32.mrf.mxu0  ;;  %v2380_v14 = vpack.c.b16 %v2379_v56, %v2378_v33 }
 0x28b   : > { %v2291_v22 = vpop.f32.mrf.mxu3 }
 0x28d   : > { %v7730_v10 = vpop.f32.mrf.mxu2 }
 0x292   : > { %v2431_v11 = vpop.f32.mrf.mxu0  ;;  %6115 = vmatmul.msk.bf16.gmra.mxu2 %vm933_vm2, %v2084_v32  ;;  %v7754_v32 = vpop.f32.mrf.mxu1 }
 0x293   : > { %v7733_v19 = vpop.f32.mrf.mxu3 }
 0x295   : > { %6150 = vmatmul.msk.bf16.gmra.mxu0 %vm933_vm2, %v2380_v14  ;;  %v2135_v8 = vpop.f32.mrf.mxu2 }
 0x296   : > { %v2194_v57 = vadd.f32 %v2135_v8, %v7508_v28 }
 0x298   : > { %v2350_v20 = vadd.f32 %v2291_v22, %v2194_v57 }
 0x29a   : > { %v7737_v5 = vadd.f32 %v2431_v11, %v2350_v20  ;;  %v7739_v50 = vpop.f32.mrf.mxu0 }
 0x29b   : > { %v2296_v13 = vpop.f32.mrf.mxu3 }
 0x29d   : > { %v7741_v62 = vpop.f32.mrf.mxu2 }
 0x2a2   : > { %v2436_v1 = vpop.f32.mrf.mxu0 }
 0x2a3   : > { %v7743_v16 = vpop.f32.mrf.mxu3 }
 0x2a5   : > { %v2140_v39 = vpop.f32.mrf.mxu2 }
 0x2a6   : > { %v2196_v60 = vadd.f32 %v2140_v39, %v7522_v0 }
 0x2a8   : > { %v2352_v31 = vadd.f32 %v2296_v13, %v2196_v60 }
 0x2aa   : > { %v7746_v58 = vadd.f32 %v2436_v1, %v2352_v31  ;;  %v7748_v63 = vpop.f32.mrf.mxu0  ;;  %v7763_v1 = vpop.f32.mrf.mxu1 }
 0x2ab   : > { %v2301_v28 = vpop.f32.mrf.mxu3 }
 0x2ad   : > { %v7750_v22 = vpop.f32.mrf.mxu2 }
 0x2b2   : > { %v2441_v33 = vpop.f32.mrf.mxu0  ;;  %v7768_v52 = vpop.f32.mrf.mxu1 }
 0x2b3   : > { %v7752_v56 = vpop.f32.mrf.mxu3 }
 0x2b5   : > { %v2145_v14 = vpop.f32.mrf.mxu2 }
 0x2b6   : > { %v2198_v11 = vadd.f32 %v2145_v14, %v7534_v42  ;;  %v7773_v42 = vld [vmem:[%s10544_s2] ss:$0 sm:$0xff] }
 0x2b8   : > { %v2354_v8 = vadd.f32 %v2301_v28, %v2198_v11  ;;  %v7783_v11 = vadd.f32 %v7773_v42, %v7623_v43 }
 0x2ba   : > { %v7757_v57 = vadd.f32 %v2441_v33, %v2354_v8  ;;  %v7759_v0 = vpop.f32.mrf.mxu0  ;;  %10859 = vst [vmem:[#allocation76_spill] sm:$0xff] %v7783_v11  ;;  %v2615_v43 = vmul.f32 %v7783_v11, %v7783_v11 }
 0x2bb   : > { %10855 = vst [vmem:[#allocation65_spill] sm:$0xff] %v7759_v0  ;;  %v2306_v20 = vpop.f32.mrf.mxu3 }
 0x2bc   : > { %10854 = vst [vmem:[#allocation60_spill] sm:$0xff] %v7757_v57 }
 0x2bd   : > { %v7761_v13 = vpop.f32.mrf.mxu2 }
 0x2c2   : > { %v2446_v39 = vpop.f32.mrf.mxu0 }
 0x2c3   : > { %v7765_v60 = vpop.f32.mrf.mxu3 }
 0x2c5   : > { %v2150_v31 = vpop.f32.mrf.mxu2 }
 0x2c6   : > { %v2200_v48 = vadd.f32 %v2150_v31, %v7548_v25  ;;  %v10861_v25 = vld [vmem:[#allocation43_spill] sm:$0xff] }
 0x2c8   : > { %v2356_v21 = vadd.f32 %v2306_v20, %v2200_v48  ;;  %v7789_v48 = vadd.f32 %v7773_v42, %v7620_v9  ;;  %v10862_v20 = vld [vmem:[#allocation37_spill] sm:$0xff] }
 0x2c9   : > { %v2055_v31 = vadd.f32 %v10862_v20, %v10861_v25  ;;  %v10865_v25 = vld [vmem:[#allocation42_spill] sm:$0xff] }
 0x2ca   : > { %v7775_v28 = vadd.f32 %v2446_v39, %v2356_v21  ;;  %v7777_v33 = vpop.f32.mrf.mxu0  ;;  %10860 = vst [vmem:[#allocation75_spill] sm:$0xff] %v7789_v48  ;;  %v7795_v21 = vadd.f32 %v7773_v42, %v7632_v30  ;;  %v7799_v39 = vadd.f32 %v7773_v42, %v7635_v36  ;;  %v2614_v9 = vmul.f32 %v7789_v48, %v7789_v48 }
 0x2cb   : > { %10857 = vst [vmem:[#allocation74_spill] sm:$0xff] %v7777_v33  ;;  %v7779_v14 = vpop.f32.mrf.mxu3  ;;  %v2189_v15 = vadd.f32 %v7684_v53, %v2055_v31  ;;  %v2057_v20 = vadd.f32 %v10865_v25, %v7469_v4  ;;  %v2545_v30 = vsel %vm933_vm2, %v7783_v11, 0.0  ;;  %v7818_v33 = vadd.f32 %v7773_v42, %v7644_v17 }
 0x2cc   : > { %10856 = vst [vmem:[#allocation67_spill] sm:$0xff] %v7775_v28  ;;  %v7810_v28 = vpop.f32.mrf.mxu1  ;;  %v2616_v36 = vmul.f32 %v7795_v21, %v7795_v21  ;;  %v2544_v31 = vsel %vm933_vm2, %v7789_v48, 0.0  ;;  %v2617_v4 = vmul.f32 %v7799_v39, %v7799_v39  ;;  %v7828_v25 = vadd.f32 %v7773_v42, %v7647_v6  ;;  %v10867_v48 = vld [vmem:[#allocation46_spill] sm:$0xff] }
 0x2cd   : > { %10858 = vst [vmem:[#allocation64_spill] sm:$0xff] %v7779_v14  ;;  %v7785_v8 = vpop.f32.mrf.mxu2  ;;  %v2647_v11 = vsel %vm933_vm2, %v2615_v43, 0.0  ;;  %v2345_v17 = vadd.f32 %v7663_v27, %v2189_v15  ;;  %v2191_v57 = vadd.f32 %v7704_v55, %v2057_v20  ;;  %v2059_v14 = vadd.f32 %v10867_v48, %v7499_v3 }
 0x2ce   : > { %10863 = vst [vmem:[#allocation72_spill] sm:$0xff] %v7795_v21  ;;  %v2646_v59 = vsel %vm933_vm2, %v2614_v9, 0.0  ;;  %v2546_v0 = vadd.f32 %v2545_v30, %v2544_v31  ;;  %v2649_v6 = vsel %vm933_vm2, %v2616_v36, 0.0  ;;  %v2549_v43 = vsel %vm933_vm2, %v7799_v39, 0.0 }
 0x2cf   : > { %v7847_v15 = vadd.f32 %v7773_v42, %v7656_v24  ;;  %v2648_v55 = vadd.f32 %v2647_v11, %v2646_v59  ;;  %v2651_v20 = vsel %vm933_vm2, %v2617_v4, 0.0  ;;  %v2619_v3 = vmul.f32 %v7828_v25, %v7828_v25 }
 0x2d0   : > { %v2551_v48 = vsel %vm933_vm2, %v7818_v33, 0.0  ;;  %v7856_v9 = vadd.f32 %v7773_v42, %v7659_v37  ;;  %v2485_v30 = vadd.f32 %v7681_v45, %v2345_v17  ;;  %v2347_v36 = vadd.f32 %v7693_v35, %v2191_v57 }
 0x2d1   : > { %v2650_v24 = vadd.f32 %v2649_v6, %v2648_v55  ;;  %v7862_v59 = vadd.f32 %v7773_v42, %v7679_v40  ;;  %v2553_v37 = vsel %vm933_vm2, %v7828_v25, 0.0  ;;  %v2620_v45 = vmul.f32 %v7847_v15, %v7847_v15 }
 0x2d2   : > { %v7806_v54 = vpop.f32.mrf.mxu0  ;;  %v2061_v35 = vadd.f32 %v7504_v44, %v7513_v61  ;;  %v2655_v17 = vsel %vm933_vm2, %v2619_v3, 0.0  ;;  %v7884_v6 = vadd.f32 %v7773_v42, %v2485_v30 }
 0x2d3   : > { %10864 = vst [vmem:[#allocation77_spill] sm:$0xff] %v7806_v54  ;;  %v7820_v53 = vpop.f32.mrf.mxu3  ;;  %v2547_v54 = vsel %vm933_vm2, %v7795_v21, 0.0  ;;  %v2618_v21 = vmul.f32 %v7818_v33, %v7818_v33  ;;  %v2652_v57 = vadd.f32 %v2651_v20, %v2650_v24  ;;  %v2657_v3 = vsel %vm933_vm2, %v2620_v45, 0.0 }
 0x2d4   : > { %10866 = vst [vmem:[#allocation71_spill] sm:$0xff] %v7820_v53  ;;  %v2548_v27 = vadd.f32 %v2547_v54, %v2546_v0  ;;  %v2193_v54 = vadd.f32 %v7730_v10, %v2059_v14  ;;  %v7877_v10 = vpop.f32.mrf.mxu1  ;;  %v2555_v14 = vsel %vm933_vm2, %v7847_v15, 0.0  ;;  %v2195_v30 = vadd.f32 %v7741_v62, %v2061_v35 }
 0x2d5   : > { %v7835_v53 = vpop.f32.mrf.mxu2  ;;  %v2653_v11 = vsel %vm933_vm2, %v2618_v21, 0.0  ;;  %v2621_v21 = vmul.f32 %v7856_v9, %v7856_v9  ;;  %v2559_v62 = vsel %vm933_vm2, %v7862_v59, 0.0  ;;  %v7918_v35 = vadd.f32 %v7773_v42, %v7721_v23 }
 0x2d6   : > { %v2550_v31 = vadd.f32 %v2549_v43, %v2548_v27  ;;  %v2487_v43 = vadd.f32 %v7702_v29, %v2347_v36  ;;  %v2654_v44 = vadd.f32 %v2653_v11, %v2652_v57  ;;  %v2622_v27 = vmul.f32 %v7862_v59, %v7862_v59 }
 0x2d7   : > { %v2349_v20 = vadd.f32 %v7713_v26, %v2193_v54  ;;  %v2063_v29 = vadd.f32 %v7520_v46, %v7527_v51  ;;  %v2659_v11 = vsel %vm933_vm2, %v2621_v21, 0.0  ;;  %v2623_v26 = vmul.f32 %v7884_v6, %v7884_v6 }
 0x2d8   : > { %v2552_v40 = vadd.f32 %v2551_v48, %v2550_v31  ;;  %v7895_v48 = vadd.f32 %v7773_v42, %v7700_v41  ;;  %v2656_v36 = vadd.f32 %v2655_v17, %v2654_v44  ;;  %v2557_v31 = vsel %vm933_vm2, %v7856_v9, 0.0 }
 0x2d9   : > { %v7906_v54 = vadd.f32 %v7773_v42, %v2487_v43  ;;  %v2489_v46 = vadd.f32 %v7723_v34, %v2349_v20  ;;  %v2351_v57 = vadd.f32 %v7733_v19, %v2195_v30  ;;  %v2067_v43 = vadd.f32 %v7754_v32, %v7553_v49 }
 0x2da   : > { %v7865_v0 = vpop.f32.mrf.mxu0  ;;  %v2554_v61 = vadd.f32 %v2553_v37, %v2552_v40  ;;  %v2658_v41 = vadd.f32 %v2657_v3, %v2656_v36  ;;  %v2661_v37 = vsel %vm933_vm2, %v2622_v27, 0.0  ;;  %v2624_v45 = vmul.f32 %v7895_v48, %v7895_v48 }
 0x2db   : > { %v7872_v4 = vpop.f32.mrf.mxu3  ;;  %v2197_v40 = vadd.f32 %v7750_v22, %v2063_v29  ;;  %v2561_v44 = vsel %vm933_vm2, %v7884_v6, 0.0  ;;  %v2663_v23 = vsel %vm933_vm2, %v2623_v26, 0.0  ;;  %v2625_v19 = vmul.f32 %v7906_v54, %v7906_v54 }
 0x2dc   : > { %v2556_v24 = vadd.f32 %v2555_v14, %v2554_v61  ;;  %v2065_v14 = vadd.f32 %v7537_v47, %v7541_v2  ;;  %v2660_v34 = vadd.f32 %v2659_v11, %v2658_v41  ;;  %v2563_v20 = vsel %vm933_vm2, %v7895_v48, 0.0  ;;  %v2031_v2 = vpop.f32.mrf.mxu1 }
 0x2dd   : > { %v7887_v55 = vpop.f32.mrf.mxu2  ;;  %v7936_v47 = vadd.f32 %v7773_v42, %v2489_v46  ;;  %v2665_v49 = vsel %vm933_vm2, %v2624_v45, 0.0  ;;  %v2626_v32 = vmul.f32 %v7918_v35, %v7918_v35  ;;  %v2491_v3 = vadd.f32 %v7739_v50, %v2351_v57 }
 0x2de   : > { %v2558_v21 = vadd.f32 %v2557_v31, %v2556_v24  ;;  %v2662_v27 = vadd.f32 %v2661_v37, %v2660_v34  ;;  %v2353_v30 = vadd.f32 %v7743_v16, %v2197_v40  ;;  %v7945_v24 = vadd.f32 %v7773_v42, %v7737_v5 }
 0x2df   : > { %v2199_v31 = vadd.f32 %v7761_v13, %v2065_v14  ;;  %v2068_v11 = vadd.f32 %v7763_v1, %v7560_v18  ;;  %v2069_v26 = vadd.f32 %v7768_v52, %v7565_v12  ;;  %v2565_v41 = vsel %vm933_vm2, %v7906_v54, 0.0 }
 0x2e0   : > { %v2560_v22 = vadd.f32 %v2559_v62, %v2558_v21  ;;  %v2664_v36 = vadd.f32 %v2663_v23, %v2662_v27  ;;  %v2667_v50 = vsel %vm933_vm2, %v2625_v19, 0.0  ;;  %v2567_v37 = vsel %vm933_vm2, %v7918_v35, 0.0 }
 0x2e1   : > { %v2627_v5 = vmul.f32 %v7936_v47, %v7936_v47  ;;  %v2669_v18 = vsel %vm933_vm2, %v2626_v32, 0.0  ;;  %v7963_v1 = vadd.f32 %v7773_v42, %v2491_v3  ;;  %v2493_v12 = vadd.f32 %v7748_v63, %v2353_v30 }
 0x2e2   : > { %v7912_v51 = vpop.f32.mrf.mxu0  ;;  %v2562_v29 = vadd.f32 %v2561_v44, %v2560_v22  ;;  %v2666_v62 = vadd.f32 %v2665_v49, %v2664_v36  ;;  %v2201_v52 = vadd.f32 %v7785_v8, %v2067_v43  ;;  %v2628_v57 = vmul.f32 %v7945_v24, %v7945_v24  ;;  %v10869_v49 = vld [vmem:[#allocation44_spill] sm:$0xff] }
 0x2e3   : > { %v7922_v17 = vpop.f32.mrf.mxu3  ;;  %v2355_v40 = vadd.f32 %v7752_v56, %v2199_v31  ;;  %v2070_v14 = vadd.f32 %v7810_v28, %v7572_v38  ;;  %v2569_v21 = vsel %vm933_vm2, %v7936_v47, 0.0  ;;  %v7976_v34 = vadd.f32 %v7773_v42, %v7746_v58  ;;  %v10870_v36 = vld [vmem:[#allocation64_spill] sm:$0xff] }
 0x2e4   : > { %v2564_v16 = vadd.f32 %v2563_v20, %v2562_v29  ;;  %v2668_v45 = vadd.f32 %v2667_v50, %v2666_v62  ;;  %v2202_v63 = vadd.f32 %v7835_v53, %v2068_v11  ;;  %v2071_v44 = vadd.f32 %v7877_v10, %v7577_v7  ;;  %v10868_v20 = vld [vmem:[#allocation65_spill] sm:$0xff]  ;;  %v2033_v3 = vpop.f32.mrf.mxu1 }
 0x2e5   : > { %v2160_v61 = vpop.f32.mrf.mxu2  ;;  %v2671_v56 = vsel %vm933_vm2, %v2627_v5, 0.0  ;;  %v2571_v38 = vsel %vm933_vm2, %v7945_v24, 0.0  ;;  %v2629_v28 = vmul.f32 %v7963_v1, %v7963_v1  ;;  %v7987_v58 = vadd.f32 %v7773_v42, %v2493_v12 }
 0x2e6   : > { %v2566_v46 = vadd.f32 %v2565_v41, %v2564_v16  ;;  %v2670_v19 = vadd.f32 %v2669_v18, %v2668_v45  ;;  %v2357_v53 = vadd.f32 %v7765_v60, %v2201_v52  ;;  %v2673_v27 = vsel %vm933_vm2, %v2628_v57, 0.0  ;;  %v10871_v41 = vld [vmem:[#allocation60_spill] sm:$0xff]  ;;  %v10873_v52 = vld [vmem:[#allocation71_spill] sm:$0xff] }
 0x2e7   : > { %v2495_v7 = vadd.f32 %v10868_v20, %v2355_v40  ;;  %v2203_v10 = vadd.f32 %v7887_v55, %v2069_v26  ;;  %v2072_v32 = vadd.f32 %v2031_v2, %v10869_v49  ;;  %v2630_v29 = vmul.f32 %v7976_v34, %v7976_v34  ;;  %v10874_v40 = vld [vmem:[#allocation67_spill] sm:$0xff] }
 0x2e8   : > { %v2568_v23 = vadd.f32 %v2567_v37, %v2566_v46  ;;  %v2672_v30 = vadd.f32 %v2671_v56, %v2670_v19  ;;  %v2358_v31 = vadd.f32 %v10870_v36, %v2202_v63  ;;  %v2573_v60 = vsel %vm933_vm2, %v7963_v1, 0.0  ;;  %v10872_v37 = vld [vmem:[#allocation74_spill] sm:$0xff] }
 0x2e9   : > { %v8001_v50 = vadd.f32 %v7773_v42, %v10871_v41  ;;  %v2204_v16 = vadd.f32 %v2160_v61, %v2070_v14  ;;  %v2675_v2 = vsel %vm933_vm2, %v2629_v28, 0.0  ;;  %v2631_v26 = vmul.f32 %v7987_v58, %v7987_v58 }
 0x2ea   : > { %v7959_v13 = vpop.f32.mrf.mxu0  ;;  %v2570_v22 = vadd.f32 %v2569_v21, %v2568_v23  ;;  %v2674_v55 = vadd.f32 %v2673_v27, %v2672_v30  ;;  %v2497_v5 = vadd.f32 %v10872_v37, %v2357_v53  ;;  %v2575_v18 = vsel %vm933_vm2, %v7976_v34, 0.0  ;;  %v10875_v21 = vld [vmem:[#allocation77_spill] sm:$0xff] }
 0x2eb   : > { %v2321_v43 = vpop.f32.mrf.mxu3  ;;  %v8010_v12 = vadd.f32 %v7773_v42, %v2495_v7  ;;  %v2359_v46 = vadd.f32 %v10873_v52, %v2203_v10  ;;  %v2677_v61 = vsel %vm933_vm2, %v2630_v29, 0.0  ;;  %v8016_v14 = vadd.f32 %v7773_v42, %v10874_v40 }
 0x2ec   : > { %v2572_v11 = vadd.f32 %v2571_v38, %v2570_v22  ;;  %v2498_v63 = vadd.f32 %v10875_v21, %v2358_v31  ;;  %v2577_v19 = vsel %vm933_vm2, %v7987_v58, 0.0  ;;  %v2632_v56 = vmul.f32 %v8001_v50, %v8001_v50 }
 0x2ed   : > { %v2162_v8 = vpop.f32.mrf.mxu2  ;;  %v2360_v38 = vadd.f32 %v7872_v4, %v2204_v16  ;;  %v2679_v53 = vsel %vm933_vm2, %v2631_v26, 0.0  ;;  %v8026_v22 = vadd.f32 %v7773_v42, %v2497_v5  ;;  %v2579_v20 = vsel %vm933_vm2, %v8001_v50, 0.0 }
 0x2ee   : > { %v2205_v45 = vadd.f32 %v2162_v8, %v2071_v44  ;;  %v2574_v57 = vadd.f32 %v2573_v60, %v2572_v11  ;;  %v2676_v8 = vadd.f32 %v2675_v2, %v2674_v55  ;;  %v2633_v7 = vmul.f32 %v8010_v12, %v8010_v12 }
 0x2ef   : > { %v2499_v10 = vadd.f32 %v7865_v0, %v2359_v46  ;;  %v2634_v30 = vmul.f32 %v8016_v14, %v8016_v14  ;;  %v8037_v29 = vadd.f32 %v7773_v42, %v2498_v63  ;;  %v2681_v36 = vsel %vm933_vm2, %v2632_v56, 0.0  ;;  %v10876_v0 = vld [vmem:[#allocation52_spill] sm:$0xff] }
 0x2f0   : > { %v2576_v44 = vadd.f32 %v2575_v18, %v2574_v57  ;;  %v2361_v49 = vadd.f32 %v7922_v17, %v2205_v45  ;;  %v2678_v4 = vadd.f32 %v2677_v61, %v2676_v8  ;;  %v2581_v31 = vsel %vm933_vm2, %v8010_v12, 0.0  ;;  %v2036_v17 = vpop.f32.mrf.mxu1 }
 0x2f1   : > { %v2500_v11 = vadd.f32 %v7912_v51, %v2360_v38  ;;  %v2073_v16 = vadd.f32 %v2033_v3, %v10876_v0  ;;  %v2635_v26 = vmul.f32 %v8026_v22, %v8026_v22  ;;  %v2683_v37 = vsel %vm933_vm2, %v2633_v7, 0.0 }
 0x2f2   : > { %v2461_v62 = vpop.f32.mrf.mxu0  ;;  %v2680_v55 = vadd.f32 %v2679_v53, %v2678_v4  ;;  %v2583_v5 = vsel %vm933_vm2, %v8016_v14, 0.0  ;;  %v8050_v18 = vadd.f32 %v7773_v42, %v2499_v10  ;;  %v2501_v51 = vadd.f32 %v7959_v13, %v2361_v49  ;;  %v10877_v4 = vld [vmem:[#allocation51_spill] sm:$0xff] }
 0x2f3   : > { %v2323_v27 = vpop.f32.mrf.mxu3  ;;  %v2685_v3 = vsel %vm933_vm2, %v2634_v30, 0.0  ;;  %v2636_v46 = vmul.f32 %v8037_v29, %v8037_v29  ;;  %v2585_v57 = vsel %vm933_vm2, %v8026_v22, 0.0  ;;  %v8059_v61 = vadd.f32 %v7773_v42, %v2500_v11 }
 0x2f4   : > { %v2687_v13 = vsel %vm933_vm2, %v2635_v26, 0.0  ;;  %v2637_v56 = vmul.f32 %v8050_v18, %v8050_v18  ;;  %v8067_v38 = vadd.f32 %v7773_v42, %v2501_v51 }
 0x2f5   : > { %v2165_v23 = vpop.f32.mrf.mxu2  ;;  %v2689_v53 = vsel %vm933_vm2, %v2636_v46, 0.0  ;;  %v2638_v7 = vmul.f32 %v8059_v61, %v8059_v61  ;;  %v2591_v11 = vsel %vm933_vm2, %v8059_v61, 0.0 }
 0x2f6   : > { %v2206_v28 = vadd.f32 %v2165_v23, %v2072_v32  ;;  %v2578_v32 = vadd.f32 %v2577_v19, %v2576_v44  ;;  %v2587_v19 = vsel %vm933_vm2, %v8037_v29, 0.0  ;;  %v2593_v26 = vsel %vm933_vm2, %v8067_v38, 0.0 }
 0x2f8   : > { %v2362_v60 = vadd.f32 %v2321_v43, %v2206_v28  ;;  %v2580_v2 = vadd.f32 %v2579_v20, %v2578_v32  ;;  %v2682_v43 = vadd.f32 %v2681_v36, %v2680_v55  ;;  %v2589_v20 = vsel %vm933_vm2, %v8050_v18, 0.0 }
 0x2f9   : > { %v2074_v32 = vadd.f32 %v2036_v17, %v10877_v4  ;;  %v2693_v17 = vsel %vm933_vm2, %v2638_v7, 0.0 }
 0x2fa   : > { %v2463_v41 = vpop.f32.mrf.mxu0  ;;  %v2582_v52 = vadd.f32 %v2581_v31, %v2580_v2  ;;  %v2502_v40 = vadd.f32 %v2461_v62, %v2362_v60  ;;  %v2684_v63 = vadd.f32 %v2683_v37, %v2682_v43  ;;  %v2691_v31 = vsel %vm933_vm2, %v2637_v56, 0.0 }
 0x2fb   : > { %v2326_v62 = vpop.f32.mrf.mxu3  ;;  %v2639_v60 = vmul.f32 %v8067_v38, %v8067_v38 }
 0x2fc   : > { %v2584_v23 = vadd.f32 %v2583_v5, %v2582_v52  ;;  %v2686_v8 = vadd.f32 %v2685_v3, %v2684_v63  ;;  %v8075_v10 = vadd.f32 %v7773_v42, %v2502_v40 }
 0x2fd   : > { %v2167_v45 = vpop.f32.mrf.mxu2  ;;  %v2695_v52 = vsel %vm933_vm2, %v2639_v60, 0.0 }
 0x2fe   : > { %v2207_v21 = vadd.f32 %v2167_v45, %v2073_v16  ;;  %v2586_v44 = vadd.f32 %v2585_v57, %v2584_v23  ;;  %v2688_v30 = vadd.f32 %v2687_v13, %v2686_v8  ;;  %v2038_v16 = vpop.f32.mrf.mxu1  ;;  %v2640_v37 = vmul.f32 %v8075_v10, %v8075_v10 }
 0x2ff   : > { %v2595_v3 = vsel %vm933_vm2, %v8075_v10, 0.0 }
 0x300   : > { %v2363_v28 = vadd.f32 %v2323_v27, %v2207_v21  ;;  %v2588_v36 = vadd.f32 %v2587_v19, %v2586_v44  ;;  %v2690_v55 = vadd.f32 %v2689_v53, %v2688_v30  ;;  %v2697_v21 = vsel %vm933_vm2, %v2640_v37, 0.0 }
 0x302   : > { %v2503_v49 = vadd.f32 %v2463_v41, %v2363_v28  ;;  %v2466_v27 = vpop.f32.mrf.mxu0  ;;  %v2590_v2 = vadd.f32 %v2589_v20, %v2588_v36  ;;  %v2692_v51 = vadd.f32 %v2691_v31, %v2690_v55  ;;  %v10878_v28 = vld [vmem:[#allocation55_spill] sm:$0xff] }
 0x303   : > { %v2328_v56 = vpop.f32.mrf.mxu3  ;;  %v2075_v8 = vadd.f32 %v2038_v16, %v10878_v28 }
 0x304   : > { %v8084_v0 = vadd.f32 %v7773_v42, %v2503_v49  ;;  %v2592_v43 = vadd.f32 %v2591_v11, %v2590_v2  ;;  %v2694_v57 = vadd.f32 %v2693_v17, %v2692_v51  ;;  %v10879_v2 = vld [vmem:[#allocation53_spill] sm:$0xff] }
 0x305   : > { %v2170_v41 = vpop.f32.mrf.mxu2 }
 0x306   : > { %v2208_v5 = vadd.f32 %v2170_v41, %v2074_v32  ;;  %v2641_v46 = vmul.f32 %v8084_v0, %v8084_v0  ;;  %v2594_v40 = vadd.f32 %v2593_v26, %v2592_v43  ;;  %v2597_v63 = vsel %vm933_vm2, %v8084_v0, 0.0  ;;  %v2041_v36 = vpop.f32.mrf.mxu1 }
 0x307   : > { %v2696_v13 = vadd.f32 %v2695_v52, %v2694_v57  ;;  %v2076_v41 = vadd.f32 %v2041_v36, %v10879_v2 }
 0x308   : > { %v2364_v45 = vadd.f32 %v2326_v62, %v2208_v5  ;;  %v2596_v19 = vadd.f32 %v2595_v3, %v2594_v40  ;;  %v2699_v44 = vsel %vm933_vm2, %v2641_v46, 0.0 }
 0x309   : > { %v2698_v20 = vadd.f32 %v2697_v21, %v2696_v13 }
 0x30a   : > { %v2504_v23 = vadd.f32 %v2466_v27, %v2364_v45  ;;  %v2598_v62 = vadd.f32 %v2597_v63, %v2596_v19  ;;  %v2468_v7 = vpop.f32.mrf.mxu0  ;;  %v10880_v63 = vld [vmem:[#allocation61_spill] sm:$0xff] }
 0x30b   : > { %v2700_v27 = vadd.f32 %v2699_v44, %v2698_v20  ;;  %v2331_v26 = vpop.f32.mrf.mxu3 }
 0x30c   : > { %v8102_v53 = vadd.f32 %v7773_v42, %v2504_v23 }
 0x30d   : > { %v2172_v49 = vpop.f32.mrf.mxu2 }
 0x30e   : > { %v2599_v4 = vsel %vm933_vm2, %v8102_v53, 0.0  ;;  %v2642_v32 = vmul.f32 %v8102_v53, %v8102_v53  ;;  %v2209_v30 = vadd.f32 %v2172_v49, %v2075_v8  ;;  %v2043_v57 = vpop.f32.mrf.mxu1 }
 0x30f   : > { %v2600_v31 = vadd.f32 %v2599_v4, %v2598_v62  ;;  %v2077_v23 = vadd.f32 %v2043_v57, %v10880_v63 }
 0x310   : > { %v2701_v11 = vsel %vm933_vm2, %v2642_v32, 0.0  ;;  %v2365_v60 = vadd.f32 %v2328_v56, %v2209_v30 }
 0x311   : > { %v2702_v16 = vadd.f32 %v2701_v11, %v2700_v27 }
 0x312   : > { %v2505_v55 = vadd.f32 %v2468_v7, %v2365_v60  ;;  %v2471_v3 = vpop.f32.mrf.mxu0 }
 0x313   : > { %v2333_v20 = vpop.f32.mrf.mxu3 }
 0x314   : > { %v8111_v17 = vadd.f32 %v7773_v42, %v2505_v55 }
 0x315   : > { %v2175_v37 = vpop.f32.mrf.mxu2 }
 0x316   : > { %v2601_v5 = vsel %vm933_vm2, %v8111_v17, 0.0  ;;  %v2643_v51 = vmul.f32 %v8111_v17, %v8111_v17  ;;  %v2210_v43 = vadd.f32 %v2175_v37, %v2076_v41 }
 0x317   : > { %v2602_v52 = vadd.f32 %v2601_v5, %v2600_v31 }
 0x318   : > { %v2703_v46 = vsel %vm933_vm2, %v2643_v51, 0.0  ;;  %v2366_v45 = vadd.f32 %v2331_v26, %v2210_v43 }
 0x319   : > { %v2704_v40 = vadd.f32 %v2703_v46, %v2702_v16 }
 0x31a   : > { %v2506_v21 = vadd.f32 %v2471_v3, %v2366_v45  ;;  %v2473_v4 = vpop.f32.mrf.mxu0 }
 0x31c   : > { %v8120_v13 = vadd.f32 %v7773_v42, %v2506_v21 }
 0x31d   : > { %v2177_v19 = vpop.f32.mrf.mxu2 }
 0x31e   : > { %v2603_v56 = vsel %vm933_vm2, %v8120_v13, 0.0  ;;  %v2644_v28 = vmul.f32 %v8120_v13, %v8120_v13  ;;  %v2211_v8 = vadd.f32 %v2177_v19, %v2077_v23 }
 0x31f   : > { %v2604_v44 = vadd.f32 %v2603_v56, %v2602_v52 }
 0x320   : > { %v2705_v62 = vsel %vm933_vm2, %v2644_v28, 0.0  ;;  %v2367_v7 = vadd.f32 %v2333_v20, %v2211_v8 }
 0x321   : > { %v2706_v49 = vadd.f32 %v2705_v62, %v2704_v40 }
 0x322   : > { %v2507_v32 = vadd.f32 %v2473_v4, %v2367_v7  ;;  %v10881_v7 = vld [vmem:[#allocation75_spill] sm:$0xff]  ;;  %v10882_v4 = vld [vmem:[#allocation76_spill] sm:$0xff] }
 0x324   : > { %v8128_v30 = vadd.f32 %v7773_v42, %v2507_v32 }
 0x326   : > { %v2605_v36 = vsel %vm933_vm2, %v8128_v30, 0.0  ;;  %v2645_v27 = vmul.f32 %v8128_v30, %v8128_v30 }
 0x327   : > { %v2606_v31 = vadd.f32 %v2605_v36, %v2604_v44 }
 0x328   : > { %v2707_v11 = vsel %vm933_vm2, %v2645_v27, 0.0 }
 0x329   : > { %v2607_v60 = vrot.slane %v2606_v31, 4  ;;  %v2708_v16 = vadd.f32 %v2707_v11, %v2706_v49 }
 0x32b   : > { %v2608_v55 = vadd.f32 %v2607_v60, %v2606_v31  ;;  %v2709_v2 = vrot.slane %v2708_v16, 4 }
 0x32d   : > { %v2609_v41 = vrot.slane %v2608_v55, 2  ;;  %v2710_v26 = vadd.f32 %v2709_v2, %v2708_v16 }
 0x32f   : > { %v2610_v37 = vadd.f32 %v2609_v41, %v2608_v55  ;;  %v2711_v5 = vrot.slane %v2710_v26, 2 }
 0x331   : > { %v2611_v51 = vrot.slane %v2610_v37, 1  ;;  %v2712_v42 = vadd.f32 %v2711_v5, %v2710_v26 }
 0x333   : > { %v2612_v43 = vadd.f32 %v2611_v51, %v2610_v37  ;;  %v2713_v52 = vrot.slane %v2712_v42, 1 }
 0x335   : > { %v8135_v3 = vmul.f32 0.00390625, %v2612_v43  ;;  %v2714_v46 = vadd.f32 %v2713_v52, %v2712_v42 }
 0x337   : > { %v2715_v45 = vmul.f32 0.00390625, %v2714_v46  ;;  %v2716_v57 = vmul.f32 %v8135_v3, %v8135_v3  ;;  %v2749_v40 = vsub.f32 %v8120_v13, %v8135_v3  ;;  %v2750_v21 = vsub.f32 %v8128_v30, %v8135_v3  ;;  %v6313_v13 = vld [vmem:[%s10545_s3 + $0x6] sm:$0x3] }
 0x338   : > { %v2746_v56 = vsub.f32 %v8084_v0, %v8135_v3  ;;  %v2747_v28 = vsub.f32 %v8102_v53, %v8135_v3  ;;  %v2748_v8 = vsub.f32 %v8111_v17, %v8135_v3  ;;  %v2719_v49 = vsub.f32 %v10881_v7, %v8135_v3  ;;  %v10883_v30 = vld [vmem:[#allocation72_spill] sm:$0xff] }
 0x339   : > { %v2717_v63 = vsub.f32 %v2715_v45, %v2716_v57  ;;  %v2720_v32 = vsub.f32 %v10882_v4, %v8135_v3  ;;  %v2721_v36 = vsub.f32 %v10883_v30, %v8135_v3  ;;  %v4719_v27 = vsel %vm982_vm0, %v6313_v13, 0 }
 0x33a   : > { %v2722_v11 = vsub.f32 %v7799_v39, %v8135_v3  ;;  %v2723_v60 = vsub.f32 %v7818_v33, %v8135_v3  ;;  %v2724_v16 = vsub.f32 %v7828_v25, %v8135_v3  ;;  %4728 = vmatpush.bf16.msrb.mxu0 %v4719_v27  ;;  %v2725_v55 = vsub.f32 %v7847_v15, %v8135_v3 }
 0x33b   : > { %v2718_v23 = vmax.f32 %v2717_v63, 0.0  ;;  %v2726_v2 = vsub.f32 %v7856_v9, %v8135_v3  ;;  %v2727_v41 = vsub.f32 %v7862_v59, %v8135_v3  ;;  %v2728_v26 = vsub.f32 %v7884_v6, %v8135_v3 }
 0x33c   : > { %v2729_v33 = vsub.f32 %v7895_v48, %v8135_v3  ;;  %v2730_v25 = vsub.f32 %v7906_v54, %v8135_v3  ;;  %v2731_v15 = vsub.f32 %v7918_v35, %v8135_v3  ;;  %v2732_v9 = vsub.f32 %v7936_v47, %v8135_v3 }
 0x33d   : > { %v2751_v19 = vadd.f32 1e-05, %v2718_v23  ;;  %v2733_v59 = vsub.f32 %v7945_v24, %v8135_v3  ;;  %v2734_v6 = vsub.f32 %v7963_v1, %v8135_v3  ;;  %v2735_v48 = vsub.f32 %v7976_v34, %v8135_v3 }
 0x33e   : > { %v2736_v54 = vsub.f32 %v7987_v58, %v8135_v3  ;;  %v2737_v35 = vsub.f32 %v8001_v50, %v8135_v3  ;;  %v2738_v47 = vsub.f32 %v8010_v12, %v8135_v3  ;;  %v2739_v24 = vsub.f32 %v8016_v14, %v8135_v3 }
 0x33f   : > { %6459 = vrsqrt.f32 %v2751_v19  ;;  %vm2758_vm12 = vweird.f32 %v2751_v19  ;;  %v2740_v1 = vsub.f32 %v8026_v22, %v8135_v3  ;;  %v2741_v34 = vsub.f32 %v8037_v29, %v8135_v3 }
 0x340   : > { %v2742_v58 = vsub.f32 %v8050_v18, %v8135_v3  ;;  %v2743_v51 = vsub.f32 %v8059_v61, %v8135_v3  ;;  %v2744_v30 = vsub.f32 %v8067_v38, %v8135_v3 }
 0x345   : > { %v6460_v44 = vpop.eup %6459 }
 0x346   : > { %v2753_v20 = vmul.f32 %v6460_v44, %v2751_v19  ;;  %vm2759_vm9 = vweird.f32 %v6460_v44 }
 0x347   : > { %vm2760_vm14 = vmor %vm2758_vm12, %vm2759_vm9 }
 0x348   : > { %v2754_v62 = vmul.f32 %v6460_v44, %v2753_v20  ;;  %vm8305_vm9 = vmand %vm3190_vm13, %vm3183_vm6 }
 0x34a   : > { %v2755_v31 = vmul.f32 0.5, %v2754_v62 }
 0x34c   : > { %v2756_v39 = vsub.f32 1.5, %v2755_v31 }
 0x34e   : > { %v2757_v37 = vmul.f32 %v6460_v44, %v2756_v39 }
 0x350   : > { %v2761_v5 = vsel %vm2760_vm14, %v6460_v44, %v2757_v37 }
 0x351   : > { %v2792_v50 = vmul.f32 %v2761_v5, %v2749_v40  ;;  %v2793_v42 = vmul.f32 %v2761_v5, %v2750_v21  ;;  %v2762_v43 = vmul.f32 %v2761_v5, %v2719_v49  ;;  %v2763_v12 = vmul.f32 %v2761_v5, %v2720_v32 }
 0x352   : > { %v8203_v52 = vmul.f32 %v2761_v5, %v2721_v36  ;;  %v8205_v14 = vmul.f32 %v2761_v5, %v2722_v11  ;;  %v8207_v46 = vmul.f32 %v2761_v5, %v2723_v60  ;;  %v8209_v22 = vmul.f32 %v2761_v5, %v2724_v16 }
 0x353   : > { %v2824_v45 = vmax.f32 %v2792_v50, 0.0  ;;  %v2825_v29 = vmax.f32 %v2793_v42, 0.0  ;;  %v8211_v57 = vmul.f32 %v2761_v5, %v2725_v55  ;;  %v8213_v18 = vmul.f32 %v2761_v5, %v2726_v2 }
 0x354   : > { %v8215_v63 = vmul.f32 %v2761_v5, %v2727_v41  ;;  %v8217_v61 = vmul.f32 %v2761_v5, %v2728_v26  ;;  %v8219_v40 = vmul.f32 %v2761_v5, %v2729_v33  ;;  %v8221_v21 = vmul.f32 %v2761_v5, %v2730_v25  ;;  %v3297_v26 = vld [vmem:[#allocation2 + $0xc8] sm:$0x1] }
 0x355   : > { %v8223_v23 = vpack.c.bf16 %v2824_v45, %v2824_v45  ;;  %v2857_v19 = vpack.c.bf16 %v2825_v29, %v2825_v29  ;;  %v8225_v44 = vmul.f32 %v2761_v5, %v2731_v15  ;;  %v8227_v20 = vmul.f32 %v2761_v5, %v2732_v9  ;;  %v3293_v45 = vld [vmem:[#allocation2 + $0xc0] sm:$0xf] }
 0x356   : > { %v8229_v62 = vmul.f32 %v2761_v5, %v2733_v59  ;;  %v8231_v13 = vmul.f32 %v2761_v5, %v2734_v6  ;;  %v8233_v7 = vmul.f32 %v2761_v5, %v2735_v48  ;;  %v8235_v49 = vmul.f32 %v2761_v5, %v2736_v54 }
 0x357   : > { %v3117_v4 = vshrl.u32 %v8223_v23, 16  ;;  %v3125_v32 = vshrl.u32 %v2857_v19, 16  ;;  %v2745_v36 = vsub.f32 %v8075_v10, %v8135_v3  ;;  %v8242_v27 = vmul.f32 %v2761_v5, %v2737_v35 }
 0x358   : > { %v8244_v31 = vmul.f32 %v2761_v5, %v2738_v47  ;;  %v8246_v11 = vmul.f32 %v2761_v5, %v2739_v24  ;;  %v8248_v60 = vmul.f32 %v2761_v5, %v2740_v1  ;;  %v3128_v2 = vshll.u32 %v2857_v19, 16 }
 0x359   : > { %v3119_v38 = vrot.slane %v3117_v4, 7  ;;  %v3127_v55 = vrot.slane %v3125_v32, 7  ;;  %v8258_v10 = vmul.f32 %v2761_v5, %v2741_v34  ;;  %v10886_v41 = vmov 0  ;;  %v3185_v34 = vld [vmem:[#allocation2 + $0xc] sm:$0xf] }
 0x35a   : > { %v10887_v41 = vsel %vm8262_vm3, 4294967295, %v10886_v41  ;;  %v8266_v39 = vmul.f32 %v2761_v5, %v2742_v58  ;;  %v8268_v33 = vmul.f32 %v2761_v5, %v2743_v51  ;;  %v8270_v25 = vmul.f32 %v2761_v5, %v2744_v30 }
 0x35b   : > { %10888 = vst [vmem:[#allocation79_spill] sm:$0xff] %v10887_v41  ;;  %v8272_v15 = vmul.f32 %v2761_v5, %v2745_v36  ;;  %v3123_v9 = vrot.slane %v3119_v38, 4  ;;  %v3130_v59 = vor.u32 %v3128_v2, %v3127_v55  ;;  %v3132_v6 = vrot.slane %v3127_v55, 4  ;;  %v3563_v36 = vld [vmem:[%s10545_s3] sm:$0x3] }
 0x35c   : > { %v8277_v37 = vmul.f32 %v2761_v5, %v2746_v56  ;;  %v8282_v48 = vmul.f32 %v2761_v5, %v2747_v28  ;;  %v8287_v54 = vmul.f32 %v2761_v5, %v2748_v8  ;;  %v2794_v35 = vmax.f32 %v2762_v43, 0.0 }
 0x35d   : > { %v3131_v47 = vsel %vm8252_vm15, %v3123_v9, %v3130_v59  ;;  %v3298_v0 = vsel %vm8262_vm3, %v3132_v6, %v3297_v26  ;;  %v2795_v56 = vmax.f32 %v2763_v12, 0.0  ;;  %v3120_v3 = vshll.u32 %v8223_v23, 16 }
 0x35e   : > { %3296 = vst.msk [vmem:[#allocation2 + $0xc4] sm:$0xf] %vm3182_vm4, %v3131_v47  ;;  %v2826_v24 = vpack.c.bf16 %v2794_v35, %v2794_v35  ;;  %v10889_v5 = vmov 0  ;;  %v6182_v29 = vrot.slane %v3128_v2, 11  ;;  %v2797_v9 = vmax.f32 %v8205_v14, 0.0 }
 0x35f   : > { %3299 = vst [vmem:[#allocation2 + $0xc8] sm:$0x1] %v3298_v0  ;;  %v8294_v53 = vpack.c.bf16 %v2795_v56, %v2795_v56  ;;  %v10890_v5 = vsel %vm8299_vm7, 4294967295, %v10889_v5  ;;  %v3122_v42 = vor.u32 %v3120_v3, %v3119_v38  ;;  %v2796_v38 = vmax.f32 %v8203_v52, 0.0 }
 0x360   : > { %v2862_v28 = vshrl.u32 %v2826_v24, 16  ;;  %v2865_v1 = vshll.u32 %v2826_v24, 16  ;;  %10891 = vst [vmem:[#allocation78_spill] sm:$0xff] %v10890_v5  ;;  %v2798_v59 = vmax.f32 %v8207_v46, 0.0  ;;  %v2799_v6 = vmax.f32 %v8209_v22, 0.0 }
 0x361   : > { %v2870_v17 = vshrl.u32 %v8294_v53, 16  ;;  %v2873_v51 = vshll.u32 %v8294_v53, 16  ;;  %v3294_v2 = vsel %vm8299_vm7, %v3122_v42, %v3293_v45  ;;  %v4267_v35 = vsel %vm982_vm0, %v3563_v36, 0  ;;  %v3195_v42 = vld [vmem:[#allocation2 + $0x18] sm:$0xf] }
 0x362   : > { %v2864_v8 = vrot.slane %v2862_v28, 7  ;;  %v2800_v47 = vmax.f32 %v8211_v57, 0.0  ;;  %v2801_v0 = vmax.f32 %v8213_v18, 0.0  ;;  %v2802_v56 = vmax.f32 %v8215_v63, 0.0  ;;  %4276 = vmatpush.bf16.msrb.mxu2 %v4267_v35  ;;  %3295 = vst [vmem:[#allocation2 + $0xc0] sm:$0xf] %v3294_v2 }
 0x363   : > { %v2872_v58 = vrot.slane %v2870_v17, 7  ;;  %v2803_v52 = vmax.f32 %v8217_v61, 0.0  ;;  %v2804_v24 = vmax.f32 %v8219_v40, 0.0  ;;  %v2805_v53 = vmax.f32 %v8221_v21, 0.0  ;;  %v3192_v63 = vld [vmem:[#allocation2 + $0x14] sm:$0x1] }
 0x364   : > { %v2867_v43 = vor.u32 %v2865_v1, %v2864_v8  ;;  %v2868_v12 = vrot.slane %v2864_v8, 4  ;;  %v2806_v14 = vmax.f32 %v8225_v44, 0.0  ;;  %v2807_v46 = vmax.f32 %v8227_v20, 0.0 }
 0x365   : > { %v2875_v19 = vor.u32 %v2873_v51, %v2872_v58  ;;  %v2808_v22 = vmax.f32 %v8229_v62, 0.0  ;;  %v2809_v57 = vmax.f32 %v8231_v13, 0.0  ;;  %v2877_v17 = vrot.slane %v2872_v58, 4 }
 0x366   : > { %v3490_v32 = vld [vmem:[#allocation2 + $0xc8] sm:$0x1]  ;;  %v3186_v30 = vsel %vm8299_vm7, %v2867_v43, %v3185_v34  ;;  %v8336_v18 = vpack.c.bf16 %v2796_v38, %v2796_v38  ;;  %v2810_v61 = vmax.f32 %v8233_v7, 0.0  ;;  %v2811_v3 = vmax.f32 %v8235_v49, 0.0 }
 0x367   : > { %v3491_v55 = vsel %vm8305_vm9, %v6182_v29, %v3490_v32  ;;  %v2876_v26 = vsel %vm8252_vm15, %v2868_v12, %v2875_v19  ;;  %3187 = vst [vmem:[#allocation2 + $0xc] sm:$0xf] %v3186_v30  ;;  %v2812_v40 = vmax.f32 %v8242_v27, 0.0  ;;  %v8341_v21 = vpack.c.bf16 %v2797_v9, %v2797_v9 }
 0x368   : > { %3492 = vst [vmem:[#allocation2 + $0xc8] sm:$0x1] %v3491_v55  ;;  %v2813_v20 = vmax.f32 %v8244_v31, 0.0  ;;  %v2814_v8 = vmax.f32 %v8246_v11, 0.0  ;;  %v2815_v62 = vmax.f32 %v8248_v60, 0.0  ;;  %v2816_v13 = vmax.f32 %v8258_v10, 0.0 }
 0x369   : > { %3189 = vst.msk [vmem:[#allocation2 + $0x10] sm:$0xf] %vm3182_vm4, %v2876_v26  ;;  %v2817_v7 = vmax.f32 %v8266_v39, 0.0  ;;  %v2818_v49 = vmax.f32 %v8268_v33, 0.0  ;;  %v2819_v27 = vmax.f32 %v8270_v25, 0.0  ;;  %v2820_v34 = vmax.f32 %v8272_v15, 0.0 }
 0x36a   : > { %v2821_v31 = vmax.f32 %v8277_v37, 0.0  ;;  %v3193_v11 = vsel %vm8262_vm3, %v2877_v17, %v3192_v63  ;;  %v2879_v60 = vshrl.u32 %v8336_v18, 16  ;;  %v2822_v10 = vmax.f32 %v8282_v48, 0.0 }
 0x36b   : > { %v8359_v58 = vrot.slane %v2873_v51, 11  ;;  %v2887_v39 = vshrl.u32 %v8341_v21, 16  ;;  %3194 = vst [vmem:[#allocation2 + $0x14] sm:$0x1] %v3193_v11  ;;  %v8362_v33 = vpack.c.bf16 %v2798_v59, %v2798_v59  ;;  %v8364_v25 = vpack.c.bf16 %v2799_v6, %v2799_v6  ;;  %v6296_v11 = vld [vmem:[%s10545_s3 + $0x4] sm:$0x3] }
 0x36c   : > { %v2881_v15 = vrot.slane %v2879_v60, 7  ;;  %v2882_v37 = vshll.u32 %v8336_v18, 16  ;;  %v8369_v43 = vpack.c.bf16 %v2800_v47, %v2800_v47  ;;  %v8371_v48 = vpack.c.bf16 %v2801_v0, %v2801_v0  ;;  %v3393_v18 = vld [vmem:[#allocation2 + $0xc0] sm:$0x1] }
 0x36d   : > { %10894 = vst [vmem:[#allocation9_spill] sm:$0xff] %v8362_v33  ;;  %v2890_v51 = vshll.u32 %v8341_v21, 16  ;;  %v8376_v12 = vpack.c.bf16 %v2802_v56, %v2802_v56  ;;  %v8378_v45 = vpack.c.bf16 %v2803_v52, %v2803_v52  ;;  %v8380_v32 = vpack.c.bf16 %v2804_v24, %v2804_v24 }
 0x36e   : > { %v3348_v44 = vld [vmem:[#allocation2 + $0xc] sm:$0x1]  ;;  %10895 = vst [vmem:[#allocation80_spill] sm:$0xff] %v8364_v25  ;;  %v2884_v29 = vor.u32 %v2882_v37, %v2881_v15  ;;  %v2885_v19 = vrot.slane %v2881_v15, 4  ;;  %v8382_v30 = vpack.c.bf16 %v2805_v53, %v2805_v53  ;;  %v8384_v36 = vpack.c.bf16 %v2806_v14, %v2806_v14 }
 0x36f   : > { %v3349_v1 = vsel %vm8262_vm3, %v2862_v28, %v3348_v44  ;;  %v2823_v28 = vmax.f32 %v8287_v54, 0.0  ;;  %10896 = vst [vmem:[#allocation5_spill] sm:$0xff] %v8369_v43  ;;  %v8373_v54 = vrot.slane %v2887_v39, 7  ;;  %v8389_v26 = vpack.c.bf16 %v2807_v46, %v2807_v46 }
 0x370   : > { %3350 = vst [vmem:[#allocation2 + $0xc] sm:$0x1] %v3349_v1  ;;  %v8391_v38 = vpack.c.bf16 %v2808_v22, %v2808_v22  ;;  %v8393_v2 = vpack.c.bf16 %v2809_v57, %v2809_v57  ;;  %v3196_v9 = vsel %vm8299_vm7, %v2884_v29, %v3195_v42  ;;  %v8399_v6 = vpack.c.bf16 %v2810_v61, %v2810_v61 }
 0x371   : > { %10897 = vst [vmem:[#allocation82_spill] sm:$0xff] %v8371_v48  ;;  %v2892_v55 = vor.u32 %v2890_v51, %v8373_v54  ;;  %v8401_v35 = vpack.c.bf16 %v2811_v3, %v2811_v3  ;;  %v8403_v47 = vpack.c.bf16 %v2812_v40, %v2812_v40  ;;  %v8407_v56 = vpack.c.bf16 %v2813_v20, %v2813_v20 }
 0x372   : > { %10898 = vst [vmem:[#allocation81_spill] sm:$0xff] %v8376_v12  ;;  %v8409_v52 = vpack.c.bf16 %v2814_v8, %v2814_v8  ;;  %v8411_v24 = vpack.c.bf16 %v2815_v62, %v2815_v62  ;;  %v8413_v53 = vpack.c.bf16 %v2816_v13, %v2816_v13  ;;  %v8418_v14 = vpack.c.bf16 %v2817_v7, %v2817_v7 }
 0x373   : > { %10899 = vst [vmem:[#allocation15_spill] sm:$0xff] %v8378_v45  ;;  %v2893_v0 = vsel %vm8252_vm15, %v2885_v19, %v2892_v55  ;;  %v8420_v46 = vpack.c.bf16 %v2818_v49, %v2818_v49  ;;  %v8422_v22 = vpack.c.bf16 %v2819_v27, %v2819_v27  ;;  %v8424_v57 = vpack.c.bf16 %v2820_v34, %v2820_v34 }
 0x374   : > { %10900 = vst [vmem:[#allocation83_spill] sm:$0xff] %v8380_v32  ;;  %v8426_v17 = vpack.c.bf16 %v2821_v31, %v2821_v31  ;;  %v8428_v63 = vpack.c.bf16 %v2822_v10, %v2822_v10  ;;  %v8430_v61 = vpack.c.bf16 %v2823_v28, %v2823_v28  ;;  %v10614_v3 = vshrl.u32 %v8362_v33, 16 }
 0x375   : > { %10901 = vst [vmem:[#allocation12_spill] sm:$0xff] %v8382_v30  ;;  %v2904_v44 = vshrl.u32 %v8364_v25, 16  ;;  %v10613_v8 = vshrl.u32 %v8369_v43, 16  ;;  %v2921_v13 = vshrl.u32 %v8371_v48, 16  ;;  %v10611_v7 = vshrl.u32 %v8376_v12, 16 }
 0x376   : > { %10902 = vst [vmem:[#allocation7_spill] sm:$0xff] %v8384_v36  ;;  %v2894_v49 = vrot.slane %v8373_v54, 4  ;;  %v2938_v34 = vshrl.u32 %v8378_v45, 16  ;;  %v10612_v28 = vshrl.u32 %v8380_v32, 16  ;;  %v2955_v15 = vshrl.u32 %v8382_v30, 16 }
 0x377   : > { %10903 = vst [vmem:[#allocation10_spill] sm:$0xff] %v8389_v26  ;;  %v8397_v59 = vld [vmem:[#allocation2 + $0xc] sm:$0xff]  ;;  %v2972_v55 = vshrl.u32 %v8389_v26, 16  ;;  %v2989_v37 = vshrl.u32 %v8393_v2, 16  ;;  %v4585_v19 = vsel %vm982_vm0, %v6296_v11, 0  ;;  %v3023_v27 = vshrl.u32 %v8407_v56, 16 }
 0x378   : > { %10904 = vst [vmem:[#allocation21_spill] sm:$0xff] %v8391_v38  ;;  %6318 = vmatmul.msk.bf16.vlgmr.msrb.gmra.mxu0 %vm933_vm2, %v8397_v59  ;;  %4594 = vmatpush.bf16.msrb.mxu3 %v4585_v19  ;;  %v3040_v11 = vshrl.u32 %v8411_v24, 16  ;;  %v3057_v39 = vshrl.u32 %v8418_v14, 16  ;;  %v3074_v1 = vshrl.u32 %v8422_v22, 16  ;;  %v3091_v20 = vshrl.u32 %v8426_v17, 16 }
 0x379   : > { %10905 = vst [vmem:[#allocation17_spill] sm:$0xff] %v8393_v2  ;;  %v3394_v62 = vsel %vm8262_vm3, %v3117_v4, %v3393_v18  ;;  %v8505_v40 = vrot.slane %v10614_v3, 7  ;;  %v8513_v29 = vrot.slane %v10613_v8, 7  ;;  %v8517_v23 = vrot.slane %v2921_v13, 7 }
 0x37a   : > { %10906 = vst [vmem:[#allocation16_spill] sm:$0xff] %v8397_v59  ;;  %v8521_v4 = vrot.slane %v10611_v7, 7  ;;  %v8523_v21 = vrot.slane %v2938_v34, 7  ;;  %v8535_v18 = vrot.slane %v2972_v55, 7  ;;  %v10922_v13 = vshrl.u32 %v8391_v38, 16 }
 0x37b   : > { %10907 = vst [vmem:[#allocation30_spill] sm:$0xff] %v8399_v6  ;;  %v8543_v34 = vrot.slane %v2989_v37, 7  ;;  %v8557_v3 = vrot.slane %v3023_v27, 7  ;;  %v8563_v37 = vrot.slane %v3040_v11, 7  ;;  %v8577_v27 = vrot.slane %v3074_v1, 7 }
 0x37c   : > { %10908 = vst [vmem:[#allocation19_spill] sm:$0xff] %v8401_v35  ;;  %v8583_v5 = vrot.slane %v3091_v20, 7  ;;  %v10937_v1 = vshll.u32 %v8362_v33, 16  ;;  %v10938_v20 = vshll.u32 %v8364_v25, 16  ;;  %v10940_v33 = vshll.u32 %v8371_v48, 16 }
 0x37d   : > { %10909 = vst [vmem:[#allocation25_spill] sm:$0xff] %v8403_v47  ;;  %v10943_v48 = vshll.u32 %v8380_v32, 16 }
 0x37e   : > { %3197 = vst [vmem:[#allocation2 + $0x18] sm:$0xf] %v3196_v9 }
 0x37f   : > { %10910 = vst [vmem:[#allocation39_spill] sm:$0xff] %v8407_v56 }
 0x380   : > { %10911 = vst [vmem:[#allocation24_spill] sm:$0xff] %v8409_v52 }
 0x381   : > { %10912 = vst [vmem:[#allocation28_spill] sm:$0xff] %v8411_v24 }
 0x382   : > { %10913 = vst [vmem:[#allocation48_spill] sm:$0xff] %v8413_v53 }
 0x383   : > { %3198 = vst.msk [vmem:[#allocation2 + $0x1c] sm:$0xf] %vm3182_vm4, %v2893_v0  ;;  %v6168_v0 = vrot.slane %v2890_v51, 11  ;;  %v8527_v51 = vrot.slane %v10612_v28, 7  ;;  %v10925_v28 = vshrl.u32 %v8399_v6, 16 }
 0x384   : > { %10914 = vst [vmem:[#allocation34_spill] sm:$0xff] %v8418_v14 }
 0x385   : > { %10915 = vst [vmem:[#allocation26_spill] sm:$0xff] %v8420_v46  ;;  %v3351_v10 = vld [vmem:[#allocation2 + $0x18] sm:$0x1]  ;;  %v8547_v8 = vrot.slane %v10925_v28, 7 }
 0x386   : > { %10916 = vst [vmem:[#allocation63_spill] sm:$0xff] %v8422_v22  ;;  %v3352_v42 = vsel %vm8262_vm3, %v2879_v60, %v3351_v10  ;;  %v3199_v10 = vld [vmem:[#allocation2 + $0x20] sm:$0x1]  ;;  %v10931_v60 = vshrl.u32 %v8413_v53, 16 }
 0x387   : > { %10917 = vst [vmem:[#allocation33_spill] sm:$0xff] %v8424_v57  ;;  %v3200_v31 = vsel %vm8262_vm3, %v2894_v49, %v3199_v10  ;;  %v10921_v49 = vshrl.u32 %v8384_v36, 16  ;;  %v8539_v10 = vrot.slane %v10922_v13, 7  ;;  %v10929_v13 = vshrl.u32 %v8409_v52, 16 }
 0x388   : > { %10918 = vst [vmem:[#allocation57_spill] sm:$0xff] %v8426_v17  ;;  %v8567_v28 = vrot.slane %v10931_v60, 7  ;;  %v10935_v60 = vshrl.u32 %v8428_v63, 16 }
 0x389   : > { %10919 = vst [vmem:[#allocation35_spill] sm:$0xff] %v8428_v63  ;;  %v8561_v19 = vrot.slane %v10929_v13, 7  ;;  %v10934_v13 = vshrl.u32 %v8424_v57, 16  ;;  %v10944_v63 = vshll.u32 %v8382_v30, 16 }
 0x38a   : > { %10920 = vst [vmem:[#allocation70_spill] sm:$0xff] %v8430_v61  ;;  %v3495_v54 = vld [vmem:[#allocation2 + $0x1c] sm:$0xf]  ;;  %v8587_v53 = vrot.slane %v10935_v60, 7 }
 0x38b   : > { %3353 = vst [vmem:[#allocation2 + $0x18] sm:$0x1] %v3352_v42  ;;  %v3006_v42 = vshrl.u32 %v8401_v35, 16  ;;  %v8581_v41 = vrot.slane %v10934_v13, 7  ;;  %v2902_v13 = vrot.slane %v8505_v40, 4 }
 0x38c   : > { %3498 = vst.msk [vmem:[#allocation2 + $0x4] sm:$0xf] %vm3182_vm4, %v3495_v54  ;;  %v3108_v54 = vshrl.u32 %v8430_v61, 16 }
 0x38d   : > { %3201 = vst [vmem:[#allocation2 + $0x20] sm:$0x1] %v3200_v31  ;;  %v8533_v31 = vrot.slane %v10921_v49, 7 }
 0x38e   : > { %3395 = vst [vmem:[#allocation2 + $0xc0] sm:$0x1] %v3394_v62  ;;  %v8549_v62 = vrot.slane %v3006_v42, 7  ;;  %v8571_v42 = vrot.slane %v3057_v39, 7  ;;  %v10939_v39 = vshll.u32 %v8369_v43, 16 }
 0x38f   : > { %10924 = vst [vmem:[#allocation37_spill] sm:$0xff] %v8543_v34 }
 0x390   : > { %10926 = vst [vmem:[#allocation42_spill] sm:$0xff] %v8549_v62 }
 0x391   : > { %10928 = vst [vmem:[#allocation46_spill] sm:$0xff] %v8557_v3 }
 0x392   : > { %v3494_v9 = vld [vmem:[#allocation2 + $0x18] sm:$0xf]  ;;  %10930 = vst [vmem:[#allocation65_spill] sm:$0xff] %v8563_v37 }
 0x393   : > { %3497 = vst.msk [vmem:[#allocation2] sm:$0xf] %vm3182_vm4, %v3494_v9  ;;  %v8509_v9 = vrot.slane %v2904_v44, 7  ;;  %v8529_v44 = vrot.slane %v2955_v15, 7  ;;  %v8541_v7 = vld [vmem:[#allocation2 + $0x18] sm:$0xff]  ;;  %v10927_v15 = vshrl.u32 %v8403_v47, 16 }
 0x394   : > { %10923 = vst [vmem:[#allocation43_spill] sm:$0xff] %v8541_v7  ;;  %v8555_v55 = vld [vmem:[#allocation2 + $0x4] sm:$0xf]  ;;  %6319 = vmatmul.msk.bf16.gmra.mxu0 %vm933_vm2, %v8541_v7  ;;  %v8589_v7 = vrot.slane %v3108_v54, 7 }
 0x395   : > { %v8553_v49 = vrot.slane %v10927_v15, 7  ;;  %10932 = vst [vmem:[#allocation44_spill] sm:$0xff] %v8571_v42  ;;  %v10933_v15 = vshrl.u32 %v8420_v46, 16  ;;  %v3448_v46 = vld [vmem:[#allocation2 + $0x20] sm:$0x1]  ;;  %v2909_v57 = vor.u32 %v10938_v20, %v8509_v9  ;;  %v2926_v20 = vor.u32 %v10940_v33, %v8517_v23 }
 0x396   : > { %10936 = vst [vmem:[#allocation64_spill] sm:$0xff] %v8589_v7  ;;  %v3449_v54 = vsel %vm8305_vm9, %v6168_v0, %v3448_v46  ;;  %v2936_v0 = vrot.slane %v8521_v4, 4  ;;  %v8630_v33 = vor.u32 %v10943_v48, %v8527_v51  ;;  %v10946_v48 = vshll.u32 %v8389_v26, 16 }
 0x397   : > { %v8575_v59 = vrot.slane %v10933_v15, 7  ;;  %v8595_v15 = vor.u32 %v10937_v1, %v8505_v40  ;;  %v8610_v1 = vor.u32 %v10939_v39, %v8513_v29  ;;  %v2919_v40 = vrot.slane %v8513_v29, 4  ;;  %3450 = vst [vmem:[#allocation2 + $0x20] sm:$0x1] %v3449_v54 }
 0x398   : > { %v10942_v39 = vshll.u32 %v8378_v45, 16  ;;  %v2953_v54 = vrot.slane %v8527_v51, 4  ;;  %v2970_v29 = vrot.slane %v8533_v31, 4  ;;  %v2977_v32 = vor.u32 %v10946_v48, %v8535_v18 }
 0x399   : > { %v10947_v51 = vshll.u32 %v8391_v38, 16  ;;  %v10950_v48 = vshll.u32 %v8401_v35, 16  ;;  %v10954_v35 = vshll.u32 %v8418_v14, 16  ;;  %v10957_v14 = vshll.u32 %v8430_v61, 16 }
 0x39a   : > { %v6428_v11 = vld [vmem:[#allocation2] sm:$0xff]  ;;  %v2943_v43 = vor.u32 %v10942_v39, %v8523_v21  ;;  %v10945_v39 = vshll.u32 %v8384_v36, 16  ;;  %v2927_v61 = vsel %vm8252_vm15, %v2919_v40, %v2926_v20 }
 0x39b   : > { %6264 = vmatmul.msk.bf16.vlgmr.msrb.gmra.mxu2 %vm933_vm2, %v6428_v11  ;;  %v8605_v60 = vld [vmem:[#allocation2] sm:$0xf]  ;;  %v10941_v11 = vshll.u32 %v8376_v12, 16  ;;  %v8650_v30 = vor.u32 %v10947_v51, %v8539_v10  ;;  %v3011_v26 = vor.u32 %v10950_v48, %v8549_v62  ;;  %v10951_v51 = vshll.u32 %v8403_v47, 16  ;;  %3212 = vst.msk [vmem:[#allocation2 + $0x34] sm:$0xf] %vm3182_vm4, %v2927_v61 }
 0x39c   : > { %v8641_v45 = vor.u32 %v10945_v39, %v8533_v31  ;;  %v10949_v39 = vshll.u32 %v8399_v6, 16  ;;  %v3004_v31 = vrot.slane %v8547_v8, 4  ;;  %v3055_v48 = vrot.slane %v8567_v28, 4  ;;  %v8740_v20 = vld [vmem:[#allocation2 + $0x60] sm:$0xf] }
 0x39d   : > { %v8620_v46 = vor.u32 %v10941_v11, %v8521_v4  ;;  %v2960_v11 = vor.u32 %v10944_v63, %v8529_v44  ;;  %v2987_v63 = vrot.slane %v8539_v10, 4  ;;  %v10948_v4 = vshll.u32 %v8393_v2, 16  ;;  %v3445_v10 = vld [vmem:[#allocation2 + $0x14] sm:$0x1] }
 0x39e   : > { %v8659_v36 = vor.u32 %v10949_v39, %v8547_v8  ;;  %v8668_v38 = vor.u32 %v10951_v51, %v8553_v49  ;;  %v3021_v2 = vrot.slane %v8553_v49, 4  ;;  %v3038_v39 = vrot.slane %v8561_v19, 4 }
 0x39f   : > { %v2994_v12 = vor.u32 %v10948_v4, %v8543_v34  ;;  %v10952_v4 = vshll.u32 %v8407_v56, 16  ;;  %v10953_v8 = vshll.u32 %v8411_v24, 16  ;;  %v3062_v51 = vor.u32 %v10954_v35, %v8571_v42  ;;  %v3202_v56 = vld [vmem:[#allocation2 + $0x24] sm:$0xf]  ;;  %v3206_v42 = vld [vmem:[#allocation2 + $0x2c] sm:$0x1] }
 0x3a0   : > { %v3072_v47 = vrot.slane %v8575_v59, 4  ;;  %v10955_v49 = vshll.u32 %v8422_v22, 16  ;;  %v10956_v24 = vshll.u32 %v8426_v17, 16  ;;  %v3113_v35 = vor.u32 %v10957_v14, %v8589_v7  ;;  %v3209_v34 = vld [vmem:[#allocation2 + $0x30] sm:$0xf] }
 0x3a1   : > { %v3028_v6 = vor.u32 %v10952_v4, %v8557_v3  ;;  %v3045_v25 = vor.u32 %v10953_v8, %v8563_v37  ;;  %v3496_v4 = vld [vmem:[#allocation2 + $0x20] sm:$0x1]  ;;  %v3089_v3 = vrot.slane %v8581_v41, 4  ;;  %v3106_v37 = vrot.slane %v8587_v53, 4  ;;  %v3213_v14 = vld [vmem:[#allocation2 + $0x38] sm:$0x1] }
 0x3a2   : > { %v3079_v62 = vor.u32 %v10955_v49, %v8577_v27  ;;  %v3096_v8 = vor.u32 %v10956_v24, %v8583_v5  ;;  %3500 = vst.msk [vmem:[#allocation2 + $0x8] sm:$0x1] %vm3190_vm13, %v3496_v4  ;;  %v10958_v49 = vshll.u32 %v8409_v52, 16  ;;  %v3446_v17 = vsel %vm8305_vm9, %v8359_v58, %v3445_v10  ;;  %v3216_v7 = vld [vmem:[#allocation2 + $0x3c] sm:$0xf] }
 0x3a3   : > { %v2910_v24 = vsel %vm8252_vm15, %v2902_v13, %v2909_v57  ;;  %v2944_v4 = vsel %vm8252_vm15, %v2936_v0, %v2943_v43  ;;  %v8711_v52 = vsel %vm8252_vm15, %v2953_v54, %v2960_v11  ;;  %v8719_v58 = vsel %vm8252_vm15, %v2987_v63, %v2994_v12  ;;  %3447 = vst [vmem:[#allocation2 + $0x14] sm:$0x1] %v3446_v17  ;;  %v3220_v57 = vld [vmem:[#allocation2 + $0x44] sm:$0x1]  ;;  %v8721_v13 = vld [vmem:[#allocation2 + $0x54] sm:$0xf] }
 0x3a4   : > { %v8698_v22 = vor.u32 %v10958_v49, %v8561_v19  ;;  %v8715_v19 = vsel %vm8252_vm15, %v2970_v29, %v2977_v32  ;;  %v8725_v40 = vsel %vm8252_vm15, %v3004_v31, %v3011_v26  ;;  %v8729_v43 = vsel %vm8252_vm15, %v3021_v2, %v3028_v6  ;;  %3205 = vst.msk [vmem:[#allocation2 + $0x28] sm:$0xf] %vm3182_vm4, %v2910_v24  ;;  %v3223_v17 = vld [vmem:[#allocation2 + $0x48] sm:$0xf]  ;;  %v8742_v0 = vld [vmem:[#allocation2 + $0x6c] sm:$0xf] }
 0x3a5   : > { %v8733_v32 = vsel %vm8252_vm15, %v3038_v39, %v3045_v25  ;;  %v8737_v12 = vsel %vm8252_vm15, %v3055_v48, %v3062_v51  ;;  %v8746_v26 = vsel %vm8252_vm15, %v3072_v47, %v3079_v62  ;;  %v8750_v2 = vsel %vm8252_vm15, %v3089_v3, %v3096_v8  ;;  %v8760_v54 = vld [vmem:[#allocation2 + $0x78] sm:$0xf]  ;;  %v8762_v11 = vld [vmem:[#allocation2 + $0x84] sm:$0xf]  ;;  %v3227_v31 = vld [vmem:[#allocation2 + $0x50] sm:$0x1] }
 0x3a6   : > { %v8754_v25 = vsel %vm8252_vm15, %v3106_v37, %v3113_v35  ;;  %v3203_v29 = vsel %vm8299_vm7, %v8595_v15, %v3202_v56  ;;  %v10960_v47 = vld [vmem:[#allocation48_spill] sm:$0xff]  ;;  %v10962_v3 = vrot.slane %v8509_v9, 4  ;;  %v3210_v56 = vsel %vm8299_vm7, %v8610_v1, %v3209_v34  ;;  %v8780_v10 = vld [vmem:[#allocation2 + $0x90] sm:$0xf]  ;;  %v8799_v1 = vld [vmem:[#allocation2 + $0x9c] sm:$0xf] }
 0x3a7   : > { %v10961_v62 = vshll.u32 %v10960_v47, 16  ;;  %v10964_v61 = vrot.slane %v8517_v23, 4  ;;  %3204 = vst [vmem:[#allocation2 + $0x24] sm:$0xf] %v3203_v29  ;;  %v3217_v23 = vsel %vm8299_vm7, %v8620_v46, %v3216_v7  ;;  %v3231_v34 = vsel %vm8299_vm7, %v8641_v45, %v8721_v13  ;;  %v8801_v8 = vld [vmem:[#allocation2 + $0xa8] sm:$0xf] }
 0x3a8   : > { %v3207_v37 = vsel %vm8262_vm3, %v10962_v3, %v3206_v42  ;;  %v10967_v42 = vld [vmem:[#allocation33_spill] sm:$0xff]  ;;  %v10970_v35 = vrot.slane %v8605_v60, 9  ;;  %v10972_v24 = vld [vmem:[#allocation35_spill] sm:$0xff]  ;;  %v3238_v45 = vsel %vm8299_vm7, %v8650_v30, %v8740_v20  ;;  %3211 = vst [vmem:[#allocation2 + $0x30] sm:$0xf] %v3210_v56  ;;  %v3252_v30 = vsel %vm8299_vm7, %v8668_v38, %v8760_v54 }
 0x3a9   : > { %v8767_v63 = vor.u32 %v10961_v62, %v8567_v28  ;;  %v3214_v15 = vsel %vm8262_vm3, %v10964_v61, %v3213_v14  ;;  %v10965_v28 = vld [vmem:[#allocation26_spill] sm:$0xff]  ;;  %v10968_v48 = vshll.u32 %v10967_v42, 16  ;;  %3208 = vst [vmem:[#allocation2 + $0x2c] sm:$0x1] %v3207_v37  ;;  %v10973_v7 = vshll.u32 %v10972_v24, 16 }
 0x3aa   : > { %v10966_v39 = vshll.u32 %v10965_v28, 16  ;;  %v3245_v14 = vsel %vm8299_vm7, %v8659_v36, %v8742_v0  ;;  %v8822_v13 = vld [vmem:[#allocation2 + $0xb4] sm:$0xf]  ;;  %v8824_v29 = vld [vmem:[#allocation2 + $0x8] sm:$0x1]  ;;  %v10974_v62 = vrot.slane %v8523_v21, 4  ;;  %v3259_v36 = vsel %vm8299_vm7, %v8698_v22, %v8762_v11 }
 0x3ab   : > { %v8790_v51 = vor.u32 %v10968_v48, %v8581_v41  ;;  %v8812_v46 = vor.u32 %v10973_v7, %v8587_v53  ;;  %3215 = vst [vmem:[#allocation2 + $0x38] sm:$0x1] %v3214_v15  ;;  %v4379_v3 = vrot.slane %v8824_v29, 5  ;;  %v3224_v21 = vsel %vm8299_vm7, %v8630_v33, %v3223_v17  ;;  %v3234_v17 = vld [vmem:[#allocation2 + $0x5c] sm:$0x1]  ;;  %v10978_v15 = vld [vmem:[#allocation37_spill] sm:$0xff] }
 0x3ac   : > { %v8785_v9 = vor.u32 %v10966_v39, %v8575_v59  ;;  %v10969_v59 = vrot.slane %v8555_v55, 5  ;;  %v3221_v53 = vsel %vm8262_vm3, %v10974_v62, %v3220_v57  ;;  %v3266_v38 = vsel %vm8299_vm7, %v8767_v63, %v8780_v10  ;;  %3218 = vst [vmem:[#allocation2 + $0x3c] sm:$0xf] %v3217_v23  ;;  %v10976_v57 = vld [vmem:[#allocation16_spill] sm:$0xff]  ;;  %v3248_v48 = vld [vmem:[#allocation2 + $0x74] sm:$0x1] }
 0x3ad   : > { %6265 = vmatmul.msk.bf16.gmra.mxu2 %vm933_vm2, %v10976_v57  ;;  %v2979_v54 = vrot.slane %v8535_v18, 4  ;;  %v3280_v33 = vsel %vm8299_vm7, %v8790_v51, %v8801_v8  ;;  %3219 = vst.msk [vmem:[#allocation2 + $0x40] sm:$0xf] %vm3182_vm4, %v2944_v4  ;;  %v10977_v37 = vrot.slane %v8529_v44, 4  ;;  %v3287_v56 = vsel %vm8299_vm7, %v8812_v46, %v8822_v13  ;;  %v3241_v4 = vld [vmem:[#allocation2 + $0x68] sm:$0x1] }
 0x3ae   : > { %v4377_v49 = vsel %vm7109_vm8, %v10970_v35, %v10969_v59  ;;  %v10975_v20 = vmov %v10969_v59  ;;  %v3273_v11 = vsel %vm8299_vm7, %v8785_v9, %v8799_v1  ;;  %3222 = vst [vmem:[#allocation2 + $0x44] sm:$0x1] %v3221_v53  ;;  %v2996_v10 = vrot.slane %v10978_v15, 4  ;;  %v3255_v59 = vld [vmem:[#allocation2 + $0x80] sm:$0x1]  ;;  %v10981_v35 = vld [vmem:[#allocation65_spill] sm:$0xff] }
 0x3af   : > { %v4378_v0 = vrot.slane %v10975_v20, 4  ;;  %v4488_v22 = vunpack.c.l.b16 %v4377_v49  ;;  %v3228_v18 = vsel %vm8262_vm3, %v10977_v37, %v3227_v31  ;;  %3225 = vst [vmem:[#allocation2 + $0x48] sm:$0xf] %v3224_v21  ;;  %v3235_v44 = vsel %vm8262_vm3, %v2979_v54, %v3234_v17  ;;  %v10979_v31 = vld [vmem:[#allocation42_spill] sm:$0xff]  ;;  %v3354_v15 = vld [vmem:[#allocation2 + $0x24] sm:$0x1] }
 0x3b0   : > { %3226 = vst.msk [vmem:[#allocation2 + $0x4c] sm:$0xf] %vm3182_vm4, %v8711_v52  ;;  %v3013_v9 = vrot.slane %v10979_v31, 4  ;;  %v3242_v23 = vsel %vm8262_vm3, %v2996_v10, %v3241_v4  ;;  %v10980_v52 = vld [vmem:[#allocation46_spill] sm:$0xff]  ;;  %v3047_v49 = vrot.slane %v10981_v35, 4 }
 0x3b1   : > { %v4380_v63 = vsel %vm7109_vm8, %v4378_v0, %v4379_v3  ;;  %3229 = vst [vmem:[#allocation2 + $0x50] sm:$0x1] %v3228_v18  ;;  %v3030_v1 = vrot.slane %v10980_v52, 4  ;;  %v3283_v0 = vld [vmem:[#allocation2 + $0xb0] sm:$0x1]  ;;  %v10984_v3 = vld [vmem:[#allocation80_spill] sm:$0xff] }
 0x3b2   : > { %v4489_v61 = vunpack.c.l.b16 %v4380_v63  ;;  %3232 = vst [vmem:[#allocation2 + $0x54] sm:$0xf] %v3231_v34  ;;  %v3249_v34 = vsel %vm8262_vm3, %v3013_v9, %v3248_v48  ;;  %v10985_v21 = vshll.u32 %v10984_v3, 16  ;;  %v10986_v57 = vld [vmem:[#allocation82_spill] sm:$0xff]  ;;  %v10992_v18 = vld [vmem:[#allocation64_spill] sm:$0xff]  ;;  %v3584_v9 = vshll.u32 %v8824_v29, 16 }
 0x3b3   : > { %3233 = vst.msk [vmem:[#allocation2 + $0x58] sm:$0xf] %vm3182_vm4, %v8715_v19  ;;  %v3262_v19 = vld [vmem:[#allocation2 + $0x8c] sm:$0x1]  ;;  %v3256_v7 = vsel %vm8262_vm3, %v3030_v1, %v3255_v59  ;;  %v3357_v4 = vld [vmem:[#allocation2 + $0x30] sm:$0x1] }
 0x3b4   : > { %v4520_v39 = vpack.c.b16 %v4489_v61, %v4488_v22  ;;  %3236 = vst [vmem:[#allocation2 + $0x5c] sm:$0x1] %v3235_v44  ;;  %v3263_v53 = vsel %vm8262_vm3, %v3047_v49, %v3262_v19  ;;  %v10987_v22 = vshll.u32 %v10986_v57, 16  ;;  %v3115_v61 = vrot.slane %v10992_v18, 4  ;;  %v3360_v31 = vld [vmem:[#allocation2 + $0x3c] sm:$0x1] }
 0x3b5   : > { %3239 = vst [vmem:[#allocation2 + $0x60] sm:$0xf] %v3238_v45  ;;  %v10982_v45 = vld [vmem:[#allocation44_spill] sm:$0xff]  ;;  %v3568_v44 = vshll.u32 %v8605_v60, 16  ;;  %v3513_v8 = vld [vmem:[#allocation2 + $0x10] sm:$0xf] }
 0x3b6   : > { %6297 = vmatmul.msk.bf16.vlgmr.msrb.gmra.mxu3 %vm933_vm2, %v4520_v39  ;;  %3240 = vst.msk [vmem:[#allocation2 + $0x64] sm:$0xf] %vm3182_vm4, %v8719_v58  ;;  %v3064_v62 = vrot.slane %v10982_v45, 4  ;;  %v10983_v58 = vld [vmem:[#allocation43_spill] sm:$0xff]  ;;  %v8914_v54 = vrot.slane %v10987_v22, 11  ;;  %v3565_v39 = vshrl.u32 %v8605_v60, 16 }
 0x3b7   : > { %3243 = vst [vmem:[#allocation2 + $0x68] sm:$0x1] %v3242_v23  ;;  %v3363_v48 = vld [vmem:[#allocation2 + $0x48] sm:$0x1]  ;;  %v3570_v60 = vrot.slane %v3568_v44, 5 }
 0x3b8   : > { %3246 = vst [vmem:[#allocation2 + $0x6c] sm:$0xf] %v3245_v14  ;;  %v3269_v14 = vld [vmem:[#allocation2 + $0x98] sm:$0x1]  ;;  %v3567_v52 = vrot.slane %v3565_v39, 4  ;;  %v10995_v19 = vld [vmem:[#allocation5_spill] sm:$0xff] }
 0x3b9   : > { %3247 = vst.msk [vmem:[#allocation2 + $0x70] sm:$0xf] %vm3182_vm4, %v8725_v40  ;;  %v3081_v40 = vrot.slane %v8577_v27, 4  ;;  %v3270_v20 = vsel %vm8262_vm3, %v3064_v62, %v3269_v14  ;;  %v3290_v27 = vld [vmem:[#allocation2 + $0xbc] sm:$0x1]  ;;  %v10996_v6 = vshrl.u32 %v10995_v19, 16 }
 0x3ba   : > { %3250 = vst [vmem:[#allocation2 + $0x74] sm:$0x1] %v3249_v34  ;;  %v3366_v23 = vld [vmem:[#allocation2 + $0x54] sm:$0x1]  ;;  %v3291_v1 = vsel %vm8262_vm3, %v3115_v61, %v3290_v27  ;;  %v3571_v35 = vor.u32 %v3570_v60, %v3567_v52  ;;  %v6334_v49 = vld [vmem:[%s10545_s3 + $0x8] sm:$0x3] }
 0x3bb   : > { %3253 = vst [vmem:[#allocation2 + $0x78] sm:$0xf] %v3252_v30  ;;  %v3276_v30 = vld [vmem:[#allocation2 + $0xa4] sm:$0x1]  ;;  %v3358_v46 = vsel %vm8262_vm3, %v10996_v6, %v3357_v4  ;;  %v4875_v45 = vsel %vm982_vm0, %v6334_v49, 0  ;;  %v10997_v62 = vld [vmem:[#allocation81_spill] sm:$0xff] }
 0x3bc   : > { %3254 = vst.msk [vmem:[#allocation2 + $0x7c] sm:$0xf] %vm3182_vm4, %v8729_v43  ;;  %v3098_v43 = vrot.slane %v8583_v5, 4  ;;  %v3369_v59 = vld [vmem:[#allocation2 + $0x60] sm:$0x1]  ;;  %4884 = vmatpush.bf16.msrb.mxu1 %v4875_v45  ;;  %v11003_v22 = vld [vmem:[#allocation21_spill] sm:$0xff] }
 0x3bd   : > { %6266 = vmatmul.msk.bf16.gmra.mxu2 %vm933_vm2, %v10983_v58  ;;  %3257 = vst [vmem:[#allocation2 + $0x80] sm:$0x1] %v3256_v7  ;;  %v3586_v7 = vrot.slane %v3584_v9, 5  ;;  %v10998_v58 = vshrl.u32 %v10997_v62, 16  ;;  %v3598_v4 = vshll.u32 %v3513_v8, 16  ;;  %v11008_v39 = vld [vmem:[#allocation25_spill] sm:$0xff] }
 0x3be   : > { %3260 = vst [vmem:[#allocation2 + $0x84] sm:$0xf] %v3259_v36  ;;  %v3277_v36 = vsel %vm8262_vm3, %v3081_v40, %v3276_v30  ;;  %v3284_v10 = vsel %vm8262_vm3, %v3098_v43, %v3283_v0  ;;  %v3512_v40 = vld [vmem:[#allocation2 + $0xc] sm:$0xf]  ;;  %v10999_v30 = vld [vmem:[#allocation83_spill] sm:$0xff]  ;;  %v11009_v44 = vshrl.u32 %v11008_v39, 16 }
 0x3bf   : > { %3261 = vst.msk [vmem:[#allocation2 + $0x88] sm:$0xf] %vm3182_vm4, %v8733_v32  ;;  %v8910_v32 = vrot.slane %v10985_v21, 11  ;;  %v3361_v14 = vsel %vm8262_vm3, %v10998_v58, %v3360_v31  ;;  %v11001_v0 = vld [vmem:[#allocation7_spill] sm:$0xff]  ;;  %v6281_v57 = vrot.slane %v3512_v40, 9 }
 0x3c0   : > { %3264 = vst [vmem:[#allocation2 + $0x8c] sm:$0x1] %v3263_v53  ;;  %v3572_v53 = vrot.slane %v3571_v35, 4  ;;  %v3451_v49 = vld [vmem:[#allocation2 + $0x2c] sm:$0x1]  ;;  %v11020_v39 = vld [vmem:[#allocation19_spill] sm:$0xff] }
 0x3c1   : > { %3267 = vst [vmem:[#allocation2 + $0x90] sm:$0xf] %v3266_v38  ;;  %v10988_v38 = vld [vmem:[#allocation15_spill] sm:$0xff] }
 0x3c2   : > { %3268 = vst.msk [vmem:[#allocation2 + $0x94] sm:$0xf] %vm3182_vm4, %v8737_v12  ;;  %v10989_v17 = vshll.u32 %v10988_v38, 16  ;;  %v10990_v12 = vld [vmem:[#allocation12_spill] sm:$0xff]  ;;  %v3375_v13 = vld [vmem:[#allocation2 + $0x78] sm:$0x1] }
 0x3c3   : > { %3271 = vst [vmem:[#allocation2 + $0x98] sm:$0x1] %v3270_v20  ;;  %v10991_v63 = vshll.u32 %v10990_v12, 16  ;;  %v11000_v20 = vshrl.u32 %v10999_v30, 16  ;;  %v11004_v38 = vshrl.u32 %v11003_v22, 16  ;;  %v11005_v12 = vld [vmem:[#allocation30_spill] sm:$0xff] }
 0x3c4   : > { %v8918_v5 = vrot.slane %v10989_v17, 11  ;;  %3274 = vst [vmem:[#allocation2 + $0x9c] sm:$0xf] %v3273_v11  ;;  %v3574_v11 = vshll.u32 %v8555_v55, 16  ;;  %v3454_v62 = vld [vmem:[#allocation2 + $0x38] sm:$0x1] }
 0x3c5   : > { %v8922_v37 = vrot.slane %v10991_v63, 11  ;;  %3275 = vst.msk [vmem:[#allocation2 + $0xa0] sm:$0xf] %vm3182_vm4, %v8746_v26  ;;  %v3578_v26 = vshrl.u32 %v8555_v55, 16  ;;  %v10993_v55 = vld [vmem:[#allocation9_spill] sm:$0xff]  ;;  %v3364_v43 = vsel %vm8262_vm3, %v11000_v20, %v3363_v48  ;;  %v3370_v17 = vsel %vm8262_vm3, %v11004_v38, %v3369_v59  ;;  %v11010_v59 = vld [vmem:[#allocation24_spill] sm:$0xff] }
 0x3c6   : > { %3278 = vst [vmem:[#allocation2 + $0xa4] sm:$0x1] %v3277_v36  ;;  %v3576_v34 = vrot.slane %v3574_v11, 5  ;;  %v11002_v36 = vshrl.u32 %v11001_v0, 16  ;;  %v3378_v3 = vld [vmem:[#allocation2 + $0x84] sm:$0x1]  ;;  %v3376_v11 = vsel %vm8262_vm3, %v11009_v44, %v3375_v13 }
 0x3c7   : > { %3281 = vst [vmem:[#allocation2 + $0xa8] sm:$0xf] %v3280_v33  ;;  %v3580_v51 = vrot.slane %v3578_v26, 4  ;;  %v3372_v33 = vld [vmem:[#allocation2 + $0x6c] sm:$0x1]  ;;  %v11006_v63 = vshrl.u32 %v11005_v12, 16 }
 0x3c8   : > { %3282 = vst.msk [vmem:[#allocation2 + $0xac] sm:$0xf] %vm3182_vm4, %v8750_v2  ;;  %v10994_v2 = vshrl.u32 %v10993_v55, 16  ;;  %v3367_v27 = vsel %vm8262_vm3, %v11002_v36, %v3366_v23  ;;  %v3381_v31 = vld [vmem:[#allocation2 + $0x90] sm:$0x1]  ;;  %v9001_v13 = vrot.slane %v3598_v4, 5 }
 0x3c9   : > { %3285 = vst [vmem:[#allocation2 + $0xb0] sm:$0x1] %v3284_v10  ;;  %v3373_v18 = vsel %vm8262_vm3, %v11006_v63, %v3372_v33  ;;  %v8984_v10 = vld [vmem:[#allocation2 + $0x14] sm:$0x1]  ;;  %v3602_v33 = vshrl.u32 %v3513_v8, 16  ;;  %v11015_v30 = vshrl.u32 %v10965_v28, 16 }
 0x3ca   : > { %3288 = vst [vmem:[#allocation2 + $0xb4] sm:$0xf] %v3287_v56  ;;  %v3355_v29 = vsel %vm8262_vm3, %v10994_v2, %v3354_v15  ;;  %v3581_v56 = vor.u32 %v3580_v51, %v3576_v34  ;;  %v3577_v15 = vsel %vm6593_vm5, %v3572_v53, %v3576_v34  ;;  %v4386_v60 = vrot.slane %v8984_v10, 5  ;;  %v11013_v53 = vld [vmem:[#allocation10_spill] sm:$0xff]  ;;  %v9021_v28 = vld [vmem:[#allocation2 + $0x1c] sm:$0xf] }
 0x3cb   : > { %3289 = vst.msk [vmem:[#allocation2 + $0xb8] sm:$0xf] %vm3182_vm4, %v8754_v25  ;;  %v4383_v25 = vrot.slane %v3513_v8, 5  ;;  %v3950_v9 = vunpack.c.l.b16 %v3577_v15  ;;  %v11011_v34 = vshrl.u32 %v11010_v59, 16  ;;  %v3384_v55 = vld [vmem:[#allocation2 + $0x9c] sm:$0x1]  ;;  %v3452_v15 = vsel %vm8305_vm9, %v8910_v32, %v3451_v49 }
 0x3cc   : > { %3292 = vst [vmem:[#allocation2 + $0xbc] sm:$0x1] %v3291_v1  ;;  %v3582_v21 = vrot.slane %v3581_v56, 4  ;;  %v3589_v1 = vshrl.u32 %v3512_v40, 16  ;;  %v11012_v56 = vshrl.u32 %v10960_v47, 16  ;;  %v3385_v20 = vsel %vm8262_vm3, %v11015_v30, %v3384_v55  ;;  %v11018_v12 = vld [vmem:[#allocation17_spill] sm:$0xff] }
 0x3cd   : > { %3356 = vst [vmem:[#allocation2 + $0x24] sm:$0x1] %v3355_v29  ;;  %v4384_v48 = vsel %vm7109_vm8, %v6281_v57, %v4383_v25  ;;  %v4385_v52 = vrot.slane %v4383_v25, 4  ;;  %v3379_v51 = vsel %vm8262_vm3, %v11011_v34, %v3378_v3  ;;  %v3592_v29 = vshll.u32 %v3512_v40, 16  ;;  %v9037_v4 = vld [vmem:[#allocation2 + $0x20] sm:$0x1] }
 0x3ce   : > { %3359 = vst [vmem:[#allocation2 + $0x30] sm:$0x1] %v3358_v46  ;;  %v3587_v26 = vsel %vm6593_vm5, %v3582_v21, %v3586_v7  ;;  %v4490_v2 = vunpack.c.l.b16 %v4384_v48  ;;  %v3387_v35 = vld [vmem:[#allocation2 + $0xa8] sm:$0x1]  ;;  %v3591_v46 = vrot.slane %v3589_v1, 4  ;;  %v3382_v7 = vsel %vm8262_vm3, %v11012_v56, %v3381_v31 }
 0x3cf   : > { %3362 = vst [vmem:[#allocation2 + $0x3c] sm:$0x1] %v3361_v14  ;;  %v3951_v23 = vunpack.c.l.b16 %v3587_v26  ;;  %v4387_v6 = vsel %vm7109_vm8, %v4385_v52, %v4386_v60  ;;  %v3594_v8 = vrot.slane %v3592_v29, 5  ;;  %v3604_v14 = vrot.slane %v3602_v33, 4  ;;  %v3469_v26 = vld [vmem:[#allocation2 + $0x74] sm:$0x1] }
 0x3d0   : > { %3365 = vst [vmem:[#allocation2 + $0x48] sm:$0x1] %v3364_v43  ;;  %v4491_v58 = vunpack.c.l.b16 %v4387_v6  ;;  %v11014_v40 = vshll.u32 %v11013_v53, 16  ;;  %v3457_v43 = vld [vmem:[#allocation2 + $0x44] sm:$0x1]  ;;  %v11016_v0 = vshrl.u32 %v10967_v42, 16  ;;  %v3455_v31 = vsel %vm8305_vm9, %v8914_v54, %v3454_v62 }
 0x3d1   : > { %3368 = vst [vmem:[#allocation2 + $0x54] sm:$0x1] %v3367_v27  ;;  %v3982_v19 = vpack.c.b16 %v3951_v23, %v3950_v9  ;;  %v3390_v45 = vld [vmem:[#allocation2 + $0xb4] sm:$0x1]  ;;  %v3460_v27 = vld [vmem:[#allocation2 + $0x50] sm:$0x1]  ;;  %v3595_v21 = vor.u32 %v3594_v8, %v3591_v46  ;;  %v3458_v52 = vsel %vm8305_vm9, %v8918_v5, %v3457_v43 }
 0x3d2   : > { %3371 = vst [vmem:[#allocation2 + $0x60] sm:$0x1] %v3370_v17  ;;  %v6173_v25 = vrot.slane %v11014_v40, 11  ;;  %v3388_v36 = vsel %vm8262_vm3, %v11016_v0, %v3387_v35  ;;  %v9018_v3 = vpack.c.b16 %v4491_v58, %v4490_v2  ;;  %v3608_v57 = vshll.u32 %v8984_v10, 16  ;;  %v3463_v17 = vld [vmem:[#allocation2 + $0x5c] sm:$0x1] }
 0x3d3   : > { %3374 = vst [vmem:[#allocation2 + $0x6c] sm:$0x1] %v3373_v18  ;;  %6184 = vmatmul.msk.bf16.vlgmr.msra.gmra.mxu1 %vm933_vm2, %v3982_v19  ;;  %v11017_v22 = vshrl.u32 %v10972_v24, 16  ;;  %v3515_v42 = vld [vmem:[#allocation2 + $0x18] sm:$0xf]  ;;  %v11019_v63 = vshll.u32 %v11018_v12, 16  ;;  %v3605_v24 = vor.u32 %v3604_v14, %v9001_v13  ;;  %v3461_v59 = vsel %vm8305_vm9, %v8922_v37, %v3460_v27 }
 0x3d4   : > { %3377 = vst [vmem:[#allocation2 + $0x78] sm:$0x1] %v3376_v11  ;;  %v6431_v47 = vld [vmem:[#allocation2 + $0x24] sm:$0xff]  ;;  %6298 = vmatmul.msk.bf16.gmra.mxu3 %vm933_vm2, %v9018_v3  ;;  %v3596_v16 = vrot.slane %v3595_v21, 4  ;;  %v11021_v44 = vshll.u32 %v11020_v39, 16  ;;  %v4390_v32 = vrot.slane %v9021_v28, 5  ;;  %v3464_v54 = vsel %vm8305_vm9, %v6173_v25, %v3463_v17 }
 0x3d5   : > { %3380 = vst [vmem:[#allocation2 + $0x84] sm:$0x1] %v3379_v51  ;;  %v3391_v38 = vsel %vm8262_vm3, %v11017_v22, %v3390_v45  ;;  %6320 = vmatmul.msk.bf16.gmra.mxu0 %vm933_vm2, %v6431_v47  ;;  %6267 = vmatmul.msk.bf16.gmra.mxu2 %vm933_vm2, %v6431_v47  ;;  %v6174_v18 = vrot.slane %v11019_v63, 11  ;;  %v3466_v10 = vld [vmem:[#allocation2 + $0x68] sm:$0x1]  ;;  %v11022_v9 = vld [vmem:[#allocation39_spill] sm:$0xff] }
 0x3d6   : > { %3383 = vst [vmem:[#allocation2 + $0x90] sm:$0x1] %v3382_v7  ;;  %v6175_v11 = vrot.slane %v11021_v44, 11  ;;  %v11023_v48 = vshll.u32 %v11022_v9, 16  ;;  %v3472_v60 = vld [vmem:[#allocation2 + $0x80] sm:$0x1]  ;;  %v3601_v2 = vsel %vm6593_vm5, %v3596_v16, %v9001_v13 }
 0x3d7   : > { %3386 = vst [vmem:[#allocation2 + $0x9c] sm:$0x1] %v3385_v20  ;;  %v3610_v1 = vrot.slane %v3608_v57, 5  ;;  %v3475_v34 = vld [vmem:[#allocation2 + $0x8c] sm:$0x1]  ;;  %v6282_v51 = vrot.slane %v3515_v42, 9  ;;  %v3467_v56 = vsel %vm8305_vm9, %v6174_v18, %v3466_v10  ;;  %v3952_v20 = vunpack.c.l.b16 %v3601_v2 }
 0x3d8   : > { %3389 = vst [vmem:[#allocation2 + $0xa8] sm:$0x1] %v3388_v36  ;;  %v6176_v23 = vrot.slane %v11023_v48, 11  ;;  %v4393_v55 = vrot.slane %v9037_v4, 5  ;;  %v3606_v5 = vrot.slane %v3605_v24, 4  ;;  %v3613_v29 = vshrl.u32 %v3515_v42, 16 }
 0x3d9   : > { %3392 = vst [vmem:[#allocation2 + $0xb4] sm:$0x1] %v3391_v38  ;;  %v3616_v33 = vshll.u32 %v3515_v42, 16  ;;  %v11024_v35 = vld [vmem:[#allocation28_spill] sm:$0xff]  ;;  %v11026_v6 = vld [vmem:[#allocation34_spill] sm:$0xff]  ;;  %v4392_v7 = vrot.slane %v4390_v32, 4  ;;  %v3470_v13 = vsel %vm8305_vm9, %v6175_v11, %v3469_v26  ;;  %v4391_v43 = vsel %vm7109_vm8, %v6282_v51, %v4390_v32 }
 0x3da   : > { %3453 = vst [vmem:[#allocation2 + $0x2c] sm:$0x1] %v3452_v15  ;;  %v11025_v49 = vshll.u32 %v11024_v35, 16  ;;  %v11027_v37 = vshll.u32 %v11026_v6, 16  ;;  %v11028_v45 = vld [vmem:[#allocation63_spill] sm:$0xff]  ;;  %v3473_v8 = vsel %vm8305_vm9, %v6176_v23, %v3472_v60  ;;  %v3611_v53 = vsel %vm6593_vm5, %v3606_v5, %v3610_v1  ;;  %v11030_v57 = vld [vmem:[#allocation57_spill] sm:$0xff] }
 0x3db   : > { %3456 = vst [vmem:[#allocation2 + $0x38] sm:$0x1] %v3455_v31  ;;  %v11029_v62 = vshll.u32 %v11028_v45, 16  ;;  %v3478_v14 = vld [vmem:[#allocation2 + $0x98] sm:$0x1]  ;;  %v4394_v47 = vsel %vm7109_vm8, %v4392_v7, %v4393_v55  ;;  %v3615_v0 = vrot.slane %v3613_v29, 4  ;;  %v3953_v12 = vunpack.c.l.b16 %v3611_v53 }
 0x3dc   : > { %v6177_v19 = vrot.slane %v11025_v49, 11  ;;  %v6178_v46 = vrot.slane %v11027_v37, 11  ;;  %3459 = vst [vmem:[#allocation2 + $0x44] sm:$0x1] %v3458_v52  ;;  %v3481_v25 = vld [vmem:[#allocation2 + $0xa4] sm:$0x1]  ;;  %v4492_v16 = vunpack.c.l.b16 %v4391_v43  ;;  %v4493_v24 = vunpack.c.l.b16 %v4394_v47 }
 0x3dd   : > { %v6179_v58 = vrot.slane %v11029_v62, 11  ;;  %3462 = vst [vmem:[#allocation2 + $0x50] sm:$0x1] %v3461_v59  ;;  %v3484_v30 = vld [vmem:[#allocation2 + $0xb0] sm:$0x1]  ;;  %v3618_v36 = vrot.slane %v3616_v33, 5  ;;  %v9091_v39 = vpack.c.b16 %v3953_v12, %v3952_v20 }
 0x3de   : > { %3465 = vst [vmem:[#allocation2 + $0x5c] sm:$0x1] %v3464_v54  ;;  %v3476_v40 = vsel %vm8305_vm9, %v6177_v19, %v3475_v34  ;;  %v3622_v27 = vshll.u32 %v9021_v28, 16  ;;  %v3626_v21 = vshrl.u32 %v9021_v28, 16  ;;  %v11031_v22 = vshll.u32 %v11030_v57, 16  ;;  %v11032_v63 = vld [vmem:[#allocation70_spill] sm:$0xff] }
 0x3df   : > { %3468 = vst [vmem:[#allocation2 + $0x68] sm:$0x1] %v3467_v56  ;;  %v3479_v17 = vsel %vm8305_vm9, %v6178_v46, %v3478_v14  ;;  %v3487_v42 = vld [vmem:[#allocation2 + $0xbc] sm:$0x1]  ;;  %v11033_v18 = vshll.u32 %v11032_v63, 16  ;;  %v3482_v10 = vsel %vm8305_vm9, %v6179_v58, %v3481_v25  ;;  %v3619_v11 = vor.u32 %v3618_v36, %v3615_v0  ;;  %v6432_v32 = vld [vmem:[#allocation2 + $0x30] sm:$0xff] }
 0x3e0   : > { %v6180_v38 = vrot.slane %v11031_v22, 11  ;;  %3471 = vst [vmem:[#allocation2 + $0x74] sm:$0x1] %v3470_v13  ;;  %v3624_v31 = vrot.slane %v3622_v27, 5  ;;  %v3628_v26 = vrot.slane %v3626_v21, 4  ;;  %v9097_v9 = vpack.c.b16 %v4493_v24, %v4492_v16  ;;  %v6433_v53 = vld [vmem:[#allocation2 + $0x3c] sm:$0xff] }
 0x3e1   : > { %v6181_v15 = vrot.slane %v11033_v18, 11  ;;  %3474 = vst [vmem:[#allocation2 + $0x80] sm:$0x1] %v3473_v8  ;;  %v3632_v48 = vshll.u32 %v9037_v4, 16  ;;  %v3519_v23 = vld [vmem:[#allocation2 + $0x28] sm:$0xf] }
 0x3e2   : > { %3477 = vst [vmem:[#allocation2 + $0x8c] sm:$0x1] %v3476_v40  ;;  %v3485_v28 = vsel %vm8305_vm9, %v6180_v38, %v3484_v30  ;;  %v3620_v50 = vrot.slane %v3619_v11, 4  ;;  %v3629_v52 = vor.u32 %v3628_v26, %v3624_v31  ;;  %v3518_v60 = vld [vmem:[#allocation2 + $0x24] sm:$0xf]  ;;  %v4397_v59 = vrot.slane %v3519_v23, 5 }
 0x3e3   : > { %3480 = vst [vmem:[#allocation2 + $0x98] sm:$0x1] %v3479_v17  ;;  %v3488_v44 = vsel %vm8305_vm9, %v6181_v15, %v3487_v42  ;;  %6185 = vmatmul.msk.bf16.gmra.mxu1 %vm933_vm2, %v9091_v39  ;;  %v3520_v1 = vld [vmem:[#allocation2 + $0x2c] sm:$0x1]  ;;  %v3634_v54 = vrot.slane %v3632_v48, 5  ;;  %v6283_v34 = vrot.slane %v3518_v60, 9 }
 0x3e4   : > { %3483 = vst [vmem:[#allocation2 + $0xa4] sm:$0x1] %v3482_v10  ;;  %6299 = vmatmul.msk.bf16.gmra.mxu3 %vm933_vm2, %v9097_v9  ;;  %v4400_v51 = vrot.slane %v3520_v1, 5  ;;  %v3625_v4 = vsel %vm6593_vm5, %v3620_v50, %v3624_v31  ;;  %v3630_v55 = vrot.slane %v3629_v52, 4  ;;  %v3637_v2 = vshrl.u32 %v3518_v60, 16  ;;  %v6434_v52 = vld [vmem:[#allocation2 + $0x48] sm:$0xff] }
 0x3e5   : > { %3486 = vst [vmem:[#allocation2 + $0xb0] sm:$0x1] %v3485_v28  ;;  %6321 = vmatmul.msk.bf16.gmra.mxu0 %vm933_vm2, %v6432_v32  ;;  %6268 = vmatmul.msk.bf16.gmra.mxu2 %vm933_vm2, %v6432_v32  ;;  %v3640_v5 = vshll.u32 %v3518_v60, 16  ;;  %v4399_v29 = vrot.slane %v4397_v59, 4  ;;  %v3954_v35 = vunpack.c.l.b16 %v3625_v4  ;;  %v4398_v49 = vsel %vm7109_vm8, %v6283_v34, %v4397_v59  ;;  %v3522_v30 = vld [vmem:[#allocation2 + $0x34] sm:$0xf] }
 0x3e6   : > { %3489 = vst [vmem:[#allocation2 + $0xbc] sm:$0x1] %v3488_v44  ;;  %v3635_v33 = vsel %vm6593_vm5, %v3630_v55, %v3634_v54  ;;  %v3639_v6 = vrot.slane %v3637_v2, 4  ;;  %v3646_v46 = vshll.u32 %v3519_v23, 16  ;;  %v3650_v56 = vshrl.u32 %v3519_v23, 16 }
 0x3e7   : > { %v4401_v19 = vsel %vm7109_vm8, %v4399_v29, %v4400_v51  ;;  %v3642_v37 = vrot.slane %v3640_v5, 5  ;;  %v3955_v7 = vunpack.c.l.b16 %v3635_v33  ;;  %v4494_v45 = vunpack.c.l.b16 %v4398_v49  ;;  %v3521_v47 = vld [vmem:[#allocation2 + $0x30] sm:$0xf]  ;;  %v3523_v0 = vld [vmem:[#allocation2 + $0x38] sm:$0x1] }
 0x3e8   : > { %v4495_v62 = vunpack.c.l.b16 %v4401_v19  ;;  %v3648_v8 = vrot.slane %v3646_v46, 5  ;;  %v3652_v14 = vrot.slane %v3650_v56, 4  ;;  %v3656_v25 = vshll.u32 %v3520_v1, 16  ;;  %v3525_v59 = vld [vmem:[#allocation2 + $0x40] sm:$0xf] }
 0x3e9   : > { %v9112_v58 = vpack.c.b16 %v3955_v7, %v3954_v35  ;;  %v3643_v13 = vor.u32 %v3642_v37, %v3639_v6  ;;  %v4404_v36 = vrot.slane %v3522_v30, 5  ;;  %v6284_v21 = vrot.slane %v3521_v47, 9  ;;  %v3524_v51 = vld [vmem:[#allocation2 + $0x3c] sm:$0xf]  ;;  %v3526_v4 = vld [vmem:[#allocation2 + $0x44] sm:$0x1] }
 0x3ea   : > { %v9116_v40 = vpack.c.b16 %v4495_v62, %v4494_v45  ;;  %v3653_v43 = vor.u32 %v3652_v14, %v3648_v8  ;;  %v3658_v27 = vrot.slane %v3656_v25, 5  ;;  %v4407_v57 = vrot.slane %v3523_v0, 5 }
 0x3eb   : > { %v3644_v20 = vrot.slane %v3643_v13, 4  ;;  %v3661_v17 = vshrl.u32 %v3521_v47, 16  ;;  %v3664_v42 = vshll.u32 %v3521_v47, 16  ;;  %v4406_v12 = vrot.slane %v4404_v36, 4 }
 0x3ec   : > { %v3654_v38 = vrot.slane %v3653_v43, 4  ;;  %v4405_v15 = vsel %vm7109_vm8, %v6284_v21, %v4404_v36  ;;  %v3670_v28 = vshll.u32 %v3522_v30, 16  ;;  %v3674_v44 = vshrl.u32 %v3522_v30, 16  ;;  %v3528_v21 = vld [vmem:[#allocation2 + $0x4c] sm:$0xf] }
 0x3ed   : > { %v3649_v22 = vsel %vm6593_vm5, %v3644_v20, %v3648_v8  ;;  %v4408_v10 = vsel %vm7109_vm8, %v4406_v12, %v4407_v57  ;;  %v3663_v16 = vrot.slane %v3661_v17, 4  ;;  %v3666_v24 = vrot.slane %v3664_v42, 5  ;;  %v3527_v57 = vld [vmem:[#allocation2 + $0x48] sm:$0xf]  ;;  %v3529_v17 = vld [vmem:[#allocation2 + $0x50] sm:$0x1] }
 0x3ee   : > { %v3659_v63 = vsel %vm6593_vm5, %v3654_v38, %v3658_v27  ;;  %v3956_v18 = vunpack.c.l.b16 %v3649_v22  ;;  %v4496_v31 = vunpack.c.l.b16 %v4405_v15  ;;  %v4497_v26 = vunpack.c.l.b16 %v4408_v10  ;;  %v3503_v42 = vld [vmem:[#allocation2 + $0xb8] sm:$0xf] }
 0x3ef   : > { %v3957_v11 = vunpack.c.l.b16 %v3659_v63  ;;  %v3667_v48 = vor.u32 %v3666_v24, %v3663_v16  ;;  %v3672_v23 = vrot.slane %v3670_v28, 5  ;;  %v3676_v50 = vrot.slane %v3674_v44, 4  ;;  %3507 = vst.msk [vmem:[#allocation2 + $0xd0] sm:$0xf] %vm3182_vm4, %v3503_v42 }
 0x3f0   : > { %v9134_v60 = vpack.c.b16 %v4497_v26, %v4496_v31  ;;  %v3680_v1 = vshll.u32 %v3523_v0, 16  ;;  %v4411_v55 = vrot.slane %v3525_v59, 5  ;;  %v6285_v5 = vrot.slane %v3524_v51, 9  ;;  %v6435_v0 = vld [vmem:[#allocation2 + $0x54] sm:$0xff] }
 0x3f1   : > { %v9130_v32 = vpack.c.b16 %v3957_v11, %v3956_v18  ;;  %v3668_v54 = vrot.slane %v3667_v48, 4  ;;  %v3677_v34 = vor.u32 %v3676_v50, %v3672_v23  ;;  %v4414_v29 = vrot.slane %v3526_v4, 5 }
 0x3f2   : > { %v3682_v2 = vrot.slane %v3680_v1, 5  ;;  %v3685_v49 = vshrl.u32 %v3524_v51, 16  ;;  %v3688_v19 = vshll.u32 %v3524_v51, 16  ;;  %v4413_v6 = vrot.slane %v4411_v55, 4 }
 0x3f3   : > { %6186 = vmatmul.msk.bf16.gmra.mxu1 %vm933_vm2, %v9112_v58  ;;  %v3673_v33 = vsel %vm6593_vm5, %v3668_v54, %v3672_v23  ;;  %v3678_v35 = vrot.slane %v3677_v34, 4  ;;  %v4412_v56 = vsel %vm7109_vm8, %v6285_v5, %v4411_v55  ;;  %v3694_v13 = vshll.u32 %v3525_v59, 16  ;;  %v3502_v54 = vld [vmem:[#allocation2 + $0xb4] sm:$0xf] }
 0x3f4   : > { %6300 = vmatmul.msk.bf16.gmra.mxu3 %vm933_vm2, %v9116_v40  ;;  %v3958_v46 = vunpack.c.l.b16 %v3673_v33  ;;  %v4415_v7 = vsel %vm7109_vm8, %v4413_v6, %v4414_v29  ;;  %v3687_v45 = vrot.slane %v3685_v49, 4  ;;  %v3690_v62 = vrot.slane %v3688_v19, 5  ;;  %3506 = vst.msk [vmem:[#allocation2 + $0xcc] sm:$0xf] %vm3182_vm4, %v3502_v54  ;;  %v6436_v33 = vld [vmem:[#allocation2 + $0x60] sm:$0xff] }
 0x3f5   : > { %6322 = vmatmul.msk.bf16.gmra.mxu0 %vm933_vm2, %v6433_v53  ;;  %6269 = vmatmul.msk.bf16.gmra.mxu2 %vm933_vm2, %v6433_v53  ;;  %v3683_v37 = vsel %vm6593_vm5, %v3678_v35, %v3682_v2  ;;  %v3698_v8 = vshrl.u32 %v3525_v59, 16  ;;  %v4498_v53 = vunpack.c.l.b16 %v4412_v56  ;;  %v4499_v25 = vunpack.c.l.b16 %v4415_v7  ;;  %v3531_v19 = vld [vmem:[#allocation2 + $0x58] sm:$0xf]  ;;  %v3532_v56 = vld [vmem:[#allocation2 + $0x5c] sm:$0x1] }
 0x3f6   : > { %v3959_v14 = vunpack.c.l.b16 %v3683_v37  ;;  %v3691_v20 = vor.u32 %v3690_v62, %v3687_v45  ;;  %v3696_v43 = vrot.slane %v3694_v13, 5  ;;  %v3704_v27 = vshll.u32 %v3526_v4, 16  ;;  %v3504_v4 = vld [vmem:[#allocation2 + $0xbc] sm:$0x1] }
 0x3f7   : > { %v3700_v47 = vrot.slane %v3698_v8, 4  ;;  %v9152_v36 = vpack.c.b16 %v4499_v25, %v4498_v53  ;;  %v4418_v12 = vrot.slane %v3528_v21, 5  ;;  %v6286_v18 = vrot.slane %v3527_v57, 9  ;;  %3508 = vst.msk [vmem:[#allocation2 + $0xd4] sm:$0x1] %vm3190_vm13, %v3504_v4  ;;  %v9183_v25 = vpop.f32.mrf.mxu0 }
 0x3f8   : > { %v9148_v30 = vpack.c.b16 %v3959_v14, %v3958_v46  ;;  %v3692_v22 = vrot.slane %v3691_v20, 4  ;;  %v3706_v63 = vrot.slane %v3704_v27, 5  ;;  %v4421_v15 = vrot.slane %v3529_v17, 5  ;;  %v3530_v46 = vld [vmem:[#allocation2 + $0x54] sm:$0xf] }
 0x3f9   : > { %11034 = vst [vmem:[#allocation60_spill] sm:$0xff] %v9152_v36  ;;  %v3701_v38 = vor.u32 %v3700_v47, %v3696_v43  ;;  %v3709_v24 = vshrl.u32 %v3527_v57, 16  ;;  %v3712_v28 = vshll.u32 %v3527_v57, 16  ;;  %v4420_v44 = vrot.slane %v4418_v12, 4 }
 0x3fa   : > { %v3697_v10 = vsel %vm6593_vm5, %v3692_v22, %v3696_v43  ;;  %v4419_v26 = vsel %vm7109_vm8, %v6286_v18, %v4418_v12  ;;  %v3722_v1 = vshrl.u32 %v3528_v21, 16  ;;  %v3728_v49 = vshll.u32 %v3529_v17, 16 }
 0x3fb   : > { %v3702_v16 = vrot.slane %v3701_v38, 4  ;;  %v3960_v31 = vunpack.c.l.b16 %v3697_v10  ;;  %v4422_v48 = vsel %vm7109_vm8, %v4420_v44, %v4421_v15  ;;  %v3711_v23 = vrot.slane %v3709_v24, 4 }
 0x3fc   : > { %v3714_v50 = vrot.slane %v3712_v28, 5  ;;  %v4500_v34 = vunpack.c.l.b16 %v4419_v26  ;;  %v4501_v51 = vunpack.c.l.b16 %v4422_v48  ;;  %v3724_v29 = vrot.slane %v3722_v1, 4  ;;  %v6437_v28 = vld [vmem:[#allocation2 + $0x6c] sm:$0xff]  ;;  %v3534_v48 = vld [vmem:[#allocation2 + $0x64] sm:$0xf] }
 0x3fd   : > { %v3707_v11 = vsel %vm6593_vm5, %v3702_v16, %v3706_v63  ;;  %v4425_v7 = vrot.slane %v3531_v19, 5  ;;  %v3730_v45 = vrot.slane %v3728_v49, 5  ;;  %v6287_v62 = vrot.slane %v3530_v46, 9  ;;  %v3535_v1 = vld [vmem:[#allocation2 + $0x68] sm:$0x1] }
 0x3fe   : > { %v3961_v59 = vunpack.c.l.b16 %v3707_v11  ;;  %v3715_v2 = vor.u32 %v3714_v50, %v3711_v23  ;;  %v9173_v35 = vpack.c.b16 %v4501_v51, %v4500_v34  ;;  %v4428_v13 = vrot.slane %v3532_v56, 5 }
 0x3ff   : > { %v3733_v20 = vshrl.u32 %v3530_v46, 16  ;;  %v3736_v43 = vshll.u32 %v3530_v46, 16  ;;  %v4427_v47 = vrot.slane %v4425_v7, 4  ;;  %v3742_v17 = vshll.u32 %v3531_v19, 16  ;;  %v9199_v26 = vpop.f32.mrf.mxu0 }
 0x400   : > { %v9168_v55 = vpack.c.b16 %v3961_v59, %v3960_v31  ;;  %11035 = vst [vmem:[#allocation74_spill] sm:$0xff] %v9173_v35  ;;  %v3716_v6 = vrot.slane %v3715_v2, 4  ;;  %v3746_v42 = vshrl.u32 %v3531_v19, 16  ;;  %v3752_v31 = vshll.u32 %v3532_v56, 16  ;;  %v3560_v56 = vld [vmem:[#allocation2 + $0xcc] sm:$0xf] }
 0x401   : > { %v4429_v57 = vsel %vm7109_vm8, %v4427_v47, %v4428_v13  ;;  %v3735_v22 = vrot.slane %v3733_v20, 4  ;;  %v3738_v38 = vrot.slane %v3736_v43, 5  ;;  %v3744_v16 = vrot.slane %v3742_v17, 5 }
 0x402   : > { %v4503_v18 = vunpack.c.l.b16 %v4429_v57  ;;  %v3748_v24 = vrot.slane %v3746_v42, 4  ;;  %v4432_v59 = vrot.slane %v3534_v48, 5  ;;  %v3754_v54 = vrot.slane %v3752_v31, 5  ;;  %v9221_v42 = vld [vmem:[#allocation2 + $0x78] sm:$0xff] }
 0x403   : > { %6187 = vmatmul.msk.bf16.gmra.mxu1 %vm933_vm2, %v9130_v32  ;;  %v3739_v10 = vor.u32 %v3738_v38, %v3735_v22  ;;  %v4435_v51 = vrot.slane %v3535_v1, 5  ;;  %v3766_v13 = vshll.u32 %v3534_v48, 16 }
 0x404   : > { %6301 = vmatmul.msk.bf16.gmra.mxu3 %vm933_vm2, %v9134_v60  ;;  %v3749_v50 = vor.u32 %v3748_v24, %v3744_v16  ;;  %v3776_v24 = vshll.u32 %v3535_v1, 16 }
 0x405   : > { %6323 = vmatmul.msk.bf16.gmra.mxu0 %vm933_vm2, %v6434_v52  ;;  %6270 = vmatmul.msk.bf16.gmra.mxu2 %vm933_vm2, %v6434_v52  ;;  %v3718_v52 = vshll.u32 %v3528_v21, 16  ;;  %v4426_v21 = vsel %vm7109_vm8, %v6287_v62, %v4425_v7  ;;  %v3740_v23 = vrot.slane %v3739_v10, 4  ;;  %v3768_v38 = vrot.slane %v3766_v13, 5 }
 0x406   : > { %v4502_v63 = vunpack.c.l.b16 %v4426_v21  ;;  %v3750_v2 = vrot.slane %v3749_v50, 4 }
 0x407   : > { %v3720_v5 = vrot.slane %v3718_v52, 5  ;;  %v3533_v52 = vld [vmem:[#allocation2 + $0x60] sm:$0xf]  ;;  %v3745_v4 = vsel %vm6593_vm5, %v3740_v23, %v3744_v16 }
 0x408   : > { %v9197_v11 = vpack.c.b16 %v4503_v18, %v4502_v63  ;;  %v6288_v34 = vrot.slane %v3533_v52, 9  ;;  %v3755_v19 = vsel %vm6593_vm5, %v3750_v2, %v3754_v54  ;;  %v3538_v54 = vld [vmem:[#allocation2 + $0x74] sm:$0x1] }
 0x409   : > { %v3725_v37 = vor.u32 %v3724_v29, %v3720_v5  ;;  %v3721_v14 = vsel %vm6593_vm5, %v3716_v6, %v3720_v5  ;;  %v3757_v5 = vshrl.u32 %v3533_v52, 16  ;;  %v3760_v29 = vshll.u32 %v3533_v52, 16 }
 0x40a   : > { %v3962_v27 = vunpack.c.l.b16 %v3721_v14  ;;  %11036 = vst [vmem:[#allocation71_spill] sm:$0xff] %v9197_v11  ;;  %v3964_v6 = vunpack.c.l.b16 %v3745_v4  ;;  %v3770_v14 = vshrl.u32 %v3534_v48, 16  ;;  %v3965_v20 = vunpack.c.l.b16 %v3755_v19 }
 0x40b   : > { %v3726_v53 = vrot.slane %v3725_v37, 4  ;;  %v4433_v37 = vsel %vm7109_vm8, %v6288_v34, %v4432_v59  ;;  %v3762_v62 = vrot.slane %v3760_v29, 5  ;;  %v4442_v29 = vrot.slane %v3538_v54, 5 }
 0x40c   : > { %v4504_v43 = vunpack.c.l.b16 %v4433_v37  ;;  %v9217_v21 = vpack.c.b16 %v3965_v20, %v3964_v6  ;;  %v3772_v17 = vrot.slane %v3770_v14, 4 }
 0x40e   : > { %v3773_v52 = vor.u32 %v3772_v17, %v3768_v38 }
 0x410   : > { %v3774_v19 = vrot.slane %v3773_v52, 4 }
 0x411   : > { %v9215_v7 = vpop.f32.mrf.mxu0 }
 0x412   : > { %11037 = vst [vmem:[#allocation67_spill] sm:$0xff] %v9215_v7 }
 0x413   : > { %6188 = vmatmul.msk.bf16.gmra.mxu1 %vm933_vm2, %v9148_v30 }
 0x414   : > { %6302 = vmatmul.msk.bf16.gmra.mxu3 %vm933_vm2, %v9152_v36 }
 0x415   : > { %6324 = vmatmul.msk.bf16.gmra.mxu0 %vm933_vm2, %v6435_v0  ;;  %6271 = vmatmul.msk.bf16.gmra.mxu2 %vm933_vm2, %v6435_v0  ;;  %v3731_v0 = vsel %vm6593_vm5, %v3726_v53, %v3730_v45  ;;  %v3759_v45 = vrot.slane %v3757_v5, 4  ;;  %v3561_v53 = vld [vmem:[#allocation2 + $0xd0] sm:$0xf] }
 0x416   : > { %v3963_v12 = vunpack.c.l.b16 %v3731_v0  ;;  %v3562_v0 = vld [vmem:[#allocation2 + $0xd4] sm:$0x1]  ;;  %v5431_v57 = vrot.slane %v3561_v53, 5 }
 0x417   : > { %v3763_v22 = vor.u32 %v3762_v62, %v3759_v45  ;;  %v5434_v10 = vrot.slane %v3562_v0, 5 }
 0x418   : > { %v9191_v15 = vpack.c.b16 %v3963_v12, %v3962_v27  ;;  %v6407_v27 = vrot.slane %v3560_v56, 9  ;;  %v5433_v18 = vrot.slane %v5431_v57, 4 }
 0x419   : > { %v3764_v50 = vrot.slane %v3763_v22, 4  ;;  %v9237_v4 = vpop.f32.mrf.mxu0 }
 0x41a   : > { %v5432_v63 = vsel %vm7109_vm8, %v6407_v27, %v5431_v57  ;;  %v5435_v23 = vsel %vm7109_vm8, %v5433_v18, %v5434_v10  ;;  %11039 = vst [vmem:[#allocation52_spill] sm:$0xff] %v9237_v4 }
 0x41b   : > { %v5438_v31 = vunpack.c.l.b16 %v5432_v63  ;;  %v5439_v1 = vunpack.c.l.b16 %v5435_v23 }
 0x41d   : > { %v9239_v2 = vpack.c.b16 %v5439_v1, %v5438_v31 }
 0x41e   : > { %v9179_v8 = vpop.f32.mrf.mxu2 }
 0x41f   : > { %11040 = vst [vmem:[#allocation51_spill] sm:$0xff] %v9239_v2 }
 0x423   : > { %6189 = vmatmul.msk.bf16.gmra.mxu1 %vm933_vm2, %v9168_v55 }
 0x424   : > { %6303 = vmatmul.msk.bf16.gmra.mxu3 %vm933_vm2, %v9173_v35 }
 0x425   : > { %6325 = vmatmul.msk.bf16.gmra.mxu0 %vm933_vm2, %v6436_v33  ;;  %6272 = vmatmul.msk.bf16.gmra.mxu2 %vm933_vm2, %v6436_v33  ;;  %v4434_v33 = vrot.slane %v4432_v59, 4  ;;  %v3536_v59 = vld [vmem:[#allocation2 + $0x6c] sm:$0xf] }
 0x426   : > { %v9195_v44 = vpop.f32.mrf.mxu2  ;;  %v6289_v5 = vrot.slane %v3536_v59, 9  ;;  %v3781_v6 = vshrl.u32 %v3536_v59, 16  ;;  %v3784_v37 = vshll.u32 %v3536_v59, 16  ;;  %v3800_v59 = vshll.u32 %v3538_v54, 16 }
 0x427   : > { %v4436_v46 = vsel %vm7109_vm8, %v4434_v33, %v4435_v51  ;;  %v3778_v51 = vrot.slane %v3776_v24, 5  ;;  %v3769_v33 = vsel %vm6593_vm5, %v3764_v50, %v3768_v38 }
 0x428   : > { %v4505_v47 = vunpack.c.l.b16 %v4436_v46  ;;  %v3966_v62 = vunpack.c.l.b16 %v3769_v33  ;;  %v3783_v53 = vrot.slane %v3781_v6, 4  ;;  %v3786_v20 = vrot.slane %v3784_v37, 5 }
 0x429   : > { %v3779_v45 = vsel %vm6593_vm5, %v3774_v19, %v3778_v51  ;;  %v3541_v51 = vld [vmem:[#allocation2 + $0x80] sm:$0x1]  ;;  %v3802_v33 = vrot.slane %v3800_v59, 5 }
 0x42a   : > { %v9227_v16 = vpack.c.b16 %v4505_v47, %v4504_v43  ;;  %v3967_v0 = vunpack.c.l.b16 %v3779_v45  ;;  %v3787_v10 = vor.u32 %v3786_v20, %v3783_v53  ;;  %v4449_v37 = vrot.slane %v3541_v51, 5 }
 0x42c   : > { %11038 = vst [vmem:[#allocation77_spill] sm:$0xff] %v9227_v16  ;;  %v9252_v63 = vpack.c.b16 %v3967_v0, %v3966_v62 }
 0x430   : > { %v9207_v49 = vpop.f32.mrf.mxu2 }
 0x433   : > { %6190 = vmatmul.msk.bf16.gmra.mxu1 %vm933_vm2, %v9191_v15 }
 0x434   : > { %6304 = vmatmul.msk.bf16.gmra.mxu3 %vm933_vm2, %v9197_v11 }
 0x435   : > { %6326 = vmatmul.msk.bf16.gmra.mxu0 %vm933_vm2, %v6437_v28  ;;  %6273 = vmatmul.msk.bf16.gmra.mxu2 %vm933_vm2, %v6437_v28  ;;  %v3537_v28 = vld [vmem:[#allocation2 + $0x70] sm:$0xf] }
 0x436   : > { %v4439_v34 = vrot.slane %v3537_v28, 5  ;;  %v3790_v43 = vshll.u32 %v3537_v28, 16  ;;  %v3794_v47 = vshrl.u32 %v3537_v28, 16  ;;  %v9260_v28 = vld [vmem:[#allocation2 + $0x84] sm:$0xff] }
 0x438   : > { %v9223_v12 = vpop.f32.mrf.mxu2  ;;  %v4441_v46 = vrot.slane %v4439_v34, 4  ;;  %v4440_v13 = vsel %vm7109_vm8, %v6289_v5, %v4439_v34  ;;  %v3792_v24 = vrot.slane %v3790_v43, 5  ;;  %v3796_v31 = vrot.slane %v3794_v47, 4  ;;  %v3539_v34 = vld [vmem:[#allocation2 + $0x78] sm:$0xf] }
 0x439   : > { %v4596_v48 = vpop.f32.mrf.mxu3  ;;  %v4506_v22 = vunpack.c.l.b16 %v4440_v13  ;;  %v6290_v6 = vrot.slane %v3539_v34, 9  ;;  %v3805_v13 = vshrl.u32 %v3539_v34, 16 }
 0x43a   : > { %v4443_v14 = vsel %vm7109_vm8, %v4441_v46, %v4442_v29  ;;  %v3797_v1 = vor.u32 %v3796_v31, %v3792_v24 }
 0x43b   : > { %v4507_v38 = vunpack.c.l.b16 %v4443_v14  ;;  %v3808_v14 = vshll.u32 %v3539_v34, 16 }
 0x43c   : > { %v3798_v45 = vrot.slane %v3797_v1, 4 }
 0x43d   : > { %v9264_v52 = vpack.c.b16 %v4507_v38, %v4506_v22  ;;  %v3807_v22 = vrot.slane %v3805_v13, 4  ;;  %v3810_v38 = vrot.slane %v3808_v14, 5  ;;  %v3542_v14 = vld [vmem:[#allocation2 + $0x84] sm:$0xf] }
 0x43e   : > { %v3803_v47 = vsel %vm6593_vm5, %v3798_v45, %v3802_v33  ;;  %v3543_v45 = vld [vmem:[#allocation2 + $0x88] sm:$0xf] }
 0x43f   : > { %11042 = vst [vmem:[#allocation53_spill] sm:$0xff] %v9264_v52  ;;  %v3811_v33 = vor.u32 %v3810_v38, %v3807_v22  ;;  %v6291_v22 = vrot.slane %v3542_v14, 9  ;;  %v3842_v2 = vshrl.u32 %v3543_v45, 16 }
 0x440   : > { %v9243_v56 = vpop.f32.mrf.mxu2 }
 0x441   : > { %v4598_v27 = vpop.f32.mrf.mxu3 }
 0x443   : > { %6191 = vmatmul.msk.bf16.gmra.mxu1 %vm933_vm2, %v9217_v21 }
 0x444   : > { %6305 = vmatmul.msk.bf16.gmra.mxu3 %vm933_vm2, %v9227_v16 }
 0x445   : > { %6327 = vmatmul.msk.bf16.gmra.mxu0 %vm933_vm2, %v9221_v42  ;;  %6274 = vmatmul.msk.bf16.gmra.mxu2 %vm933_vm2, %v9221_v42 }
 0x448   : > { %v9262_v50 = vpop.f32.mrf.mxu2 }
 0x450   : > { %v4058_v57 = vpop.f32.mrf.mxu1 }
 0x451   : > { %v4279_v17 = vadd.f32 %v9179_v8, %v4058_v57  ;;  %v3540_v8 = vld [vmem:[#allocation2 + $0x7c] sm:$0xf] }
 0x452   : > { %v9254_v18 = vpop.f32.mrf.mxu0  ;;  %v4446_v5 = vrot.slane %v3540_v8, 5 }
 0x453   : > { %11041 = vst [vmem:[#allocation55_spill] sm:$0xff] %v9254_v18  ;;  %v9256_v23 = vadd.f32 %v4596_v48, %v4279_v17  ;;  %6192 = vmatmul.msk.bf16.gmra.mxu1 %vm933_vm2, %v9252_v63  ;;  %v3788_v48 = vrot.slane %v3787_v10, 4  ;;  %v3814_v17 = vshll.u32 %v3540_v8, 16  ;;  %v3818_v10 = vshrl.u32 %v3540_v8, 16  ;;  %v9296_v8 = vld [vmem:[#allocation2 + $0x90] sm:$0xff] }
 0x454   : > { %6306 = vmatmul.msk.bf16.gmra.mxu3 %vm933_vm2, %v9264_v52  ;;  %v4448_v20 = vrot.slane %v4446_v5, 4  ;;  %v4447_v0 = vsel %vm7109_vm8, %v6290_v6, %v4446_v5  ;;  %11046 = vst [vmem:[#allocation72_spill] sm:$0xff] %v9296_v8 }
 0x455   : > { %6328 = vmatmul.msk.bf16.gmra.mxu0 %vm933_vm2, %v9260_v28  ;;  %6275 = vmatmul.msk.bf16.gmra.mxu2 %vm933_vm2, %v9260_v28  ;;  %v3793_v46 = vsel %vm6593_vm5, %v3788_v48, %v3792_v24  ;;  %v3969_v24 = vunpack.c.l.b16 %v3803_v47  ;;  %v4508_v31 = vunpack.c.l.b16 %v4447_v0  ;;  %v3816_v5 = vrot.slane %v3814_v17, 5 }
 0x456   : > { %v4450_v57 = vsel %vm7109_vm8, %v4448_v20, %v4449_v37  ;;  %v3544_v20 = vld [vmem:[#allocation2 + $0x8c] sm:$0x1]  ;;  %v4453_v47 = vrot.slane %v3543_v45, 5 }
 0x457   : > { %v4601_v54 = vpop.f32.mrf.mxu3  ;;  %v4509_v59 = vunpack.c.l.b16 %v4450_v57  ;;  %v4456_v38 = vrot.slane %v3544_v20, 5 }
 0x458   : > { %v4060_v29 = vpop.f32.mrf.mxu1  ;;  %v9279_v43 = vpop.f32.mrf.mxu2 }
 0x459   : > { %v4281_v19 = vadd.f32 %v9195_v44, %v4060_v29  ;;  %v3968_v44 = vunpack.c.l.b16 %v3793_v46  ;;  %v9300_v46 = vpack.c.b16 %v4509_v59, %v4508_v31  ;;  %v3832_v31 = vshll.u32 %v3542_v14, 16 }
 0x45a   : > { %v9275_v62 = vpop.f32.mrf.mxu0 }
 0x45b   : > { %11043 = vst [vmem:[#allocation61_spill] sm:$0xff] %v9275_v62  ;;  %v9277_v53 = vadd.f32 %v4598_v27, %v4281_v19  ;;  %v9288_v1 = vpack.c.b16 %v3969_v24, %v3968_v44  ;;  %v3820_v19 = vrot.slane %v3818_v10, 4 }
 0x45c   : > { %11047 = vst [vmem:[#allocation78_spill] sm:$0xff] %v9300_v46 }
 0x45d   : > { %v3821_v13 = vor.u32 %v3820_v19, %v3816_v5 }
 0x45f   : > { %v4603_v34 = vpop.f32.mrf.mxu3  ;;  %v3822_v10 = vrot.slane %v3821_v13, 4  ;;  %v3834_v13 = vrot.slane %v3832_v31, 5  ;;  %v3546_v31 = vld [vmem:[#allocation2 + $0x94] sm:$0xf] }
 0x460   : > { %v4063_v27 = vpop.f32.mrf.mxu1  ;;  %v9298_v37 = vpop.f32.mrf.mxu2 }
 0x461   : > { %v4284_v48 = vadd.f32 %v9207_v49, %v4063_v27  ;;  %v3824_v49 = vshll.u32 %v3541_v51, 16  ;;  %v3829_v27 = vshrl.u32 %v3542_v14, 16 }
 0x462   : > { %v9290_v29 = vpop.f32.mrf.mxu0 }
 0x463   : > { %11044 = vst [vmem:[#allocation75_spill] sm:$0xff] %v9290_v29  ;;  %v9292_v6 = vadd.f32 %v4601_v54, %v4284_v48  ;;  %6193 = vmatmul.msk.bf16.gmra.mxu1 %vm933_vm2, %v9288_v1  ;;  %v3812_v54 = vrot.slane %v3811_v33, 4  ;;  %v3826_v0 = vrot.slane %v3824_v49, 5  ;;  %v4455_v48 = vrot.slane %v4453_v47, 4 }
 0x464   : > { %6307 = vmatmul.msk.bf16.gmra.mxu3 %vm933_vm2, %v9300_v46  ;;  %v4454_v49 = vsel %vm7109_vm8, %v6291_v22, %v4453_v47  ;;  %v3844_v22 = vrot.slane %v3842_v2, 4 }
 0x465   : > { %11045 = vst [vmem:[#allocation76_spill] sm:$0xff] %v9292_v6  ;;  %6329 = vmatmul.msk.bf16.gmra.mxu0 %vm933_vm2, %v9296_v8  ;;  %6276 = vmatmul.msk.bf16.gmra.mxu2 %vm933_vm2, %v9296_v8  ;;  %v3817_v17 = vsel %vm6593_vm5, %v3812_v54, %v3816_v5  ;;  %v3827_v19 = vsel %vm6593_vm5, %v3822_v10, %v3826_v0  ;;  %v3831_v54 = vrot.slane %v3829_v27, 4 }
 0x466   : > { %v4457_v5 = vsel %vm7109_vm8, %v4455_v48, %v4456_v38  ;;  %v3971_v14 = vunpack.c.l.b16 %v3827_v19  ;;  %v3547_v48 = vld [vmem:[#allocation2 + $0x98] sm:$0x1]  ;;  %v4460_v19 = vrot.slane %v3546_v31, 5 }
 0x467   : > { %v4606_v51 = vpop.f32.mrf.mxu3  ;;  %v3835_v10 = vor.u32 %v3834_v13, %v3831_v54  ;;  %v4463_v54 = vrot.slane %v3547_v48, 5 }
 0x468   : > { %v4065_v44 = vpop.f32.mrf.mxu1  ;;  %v9315_v33 = vpop.f32.mrf.mxu2 }
 0x469   : > { %v4286_v57 = vadd.f32 %v9223_v12, %v4065_v44  ;;  %v3970_v12 = vunpack.c.l.b16 %v3817_v17  ;;  %v3838_v44 = vshll.u32 %v3543_v45, 16  ;;  %v9332_v45 = vld [vmem:[#allocation2 + $0x9c] sm:$0xff]  ;;  %v3836_v2 = vrot.slane %v3835_v10, 4 }
 0x46a   : > { %v9311_v24 = vpop.f32.mrf.mxu0  ;;  %11052 = vst [vmem:[#allocation73_spill] sm:$0xff] %v9332_v45 }
 0x46b   : > { %11048 = vst [vmem:[#allocation48_spill] sm:$0xff] %v9311_v24  ;;  %v9313_v59 = vadd.f32 %v4603_v34, %v4286_v57  ;;  %v4510_v57 = vunpack.c.l.b16 %v4454_v49  ;;  %v4511_v24 = vunpack.c.l.b16 %v4457_v5  ;;  %v9324_v62 = vpack.c.b16 %v3971_v14, %v3970_v12 }
 0x46c   : > { %v3840_v47 = vrot.slane %v3838_v44, 5 }
 0x46d   : > { %11049 = vst [vmem:[#allocation79_spill] sm:$0xff] %v9313_v59  ;;  %v9336_v27 = vpack.c.b16 %v4511_v24, %v4510_v57 }
 0x46e   : > { %v3841_v13 = vsel %vm6593_vm5, %v3836_v2, %v3840_v47 }
 0x46f   : > { %v4608_v0 = vpop.f32.mrf.mxu3  ;;  %11053 = vst [vmem:[#allocation35_spill] sm:$0xff] %v9336_v27 }
 0x470   : > { %v4068_v34 = vpop.f32.mrf.mxu1  ;;  %v9334_v38 = vpop.f32.mrf.mxu2 }
 0x471   : > { %v4289_v29 = vadd.f32 %v9243_v56, %v4068_v34  ;;  %v3848_v56 = vshll.u32 %v3544_v20, 16 }
 0x472   : > { %v9326_v17 = vpop.f32.mrf.mxu0 }
 0x473   : > { %11050 = vst [vmem:[#allocation26_spill] sm:$0xff] %v9326_v17  ;;  %v9328_v18 = vadd.f32 %v4606_v51, %v4289_v29  ;;  %6194 = vmatmul.msk.bf16.gmra.mxu1 %vm933_vm2, %v9324_v62  ;;  %v3845_v29 = vor.u32 %v3844_v22, %v3840_v47  ;;  %v3545_v51 = vld [vmem:[#allocation2 + $0x90] sm:$0xf]  ;;  %v3850_v49 = vrot.slane %v3848_v56, 5  ;;  %v4462_v22 = vrot.slane %v4460_v19, 4 }
 0x474   : > { %6308 = vmatmul.msk.bf16.gmra.mxu3 %vm933_vm2, %v9336_v27  ;;  %v6292_v5 = vrot.slane %v3545_v51, 9  ;;  %v3853_v34 = vshrl.u32 %v3545_v51, 16  ;;  %v3856_v57 = vshll.u32 %v3545_v51, 16 }
 0x475   : > { %11051 = vst [vmem:[#allocation33_spill] sm:$0xff] %v9328_v18  ;;  %6330 = vmatmul.msk.bf16.gmra.mxu0 %vm933_vm2, %v9332_v45  ;;  %6277 = vmatmul.msk.bf16.gmra.mxu2 %vm933_vm2, %v9332_v45  ;;  %v3846_v44 = vrot.slane %v3845_v29, 4  ;;  %v4464_v47 = vsel %vm7109_vm8, %v4462_v22, %v4463_v54  ;;  %v3866_v45 = vshrl.u32 %v3546_v31, 16 }
 0x476   : > { %v3855_v2 = vrot.slane %v3853_v34, 4  ;;  %v3858_v29 = vrot.slane %v3856_v57, 5  ;;  %v3549_v57 = vld [vmem:[#allocation2 + $0xa0] sm:$0xf] }
 0x477   : > { %v4611_v20 = vpop.f32.mrf.mxu3  ;;  %v3851_v56 = vsel %vm6593_vm5, %v3846_v44, %v3850_v49  ;;  %v3868_v59 = vrot.slane %v3866_v45, 4  ;;  %v4467_v22 = vrot.slane %v3549_v57, 5 }
 0x478   : > { %v4070_v12 = vpop.f32.mrf.mxu1  ;;  %v9351_v17 = vpop.f32.mrf.mxu2  ;;  %v3973_v51 = vunpack.c.l.b16 %v3851_v56 }
 0x479   : > { %v4291_v24 = vadd.f32 %v9262_v50, %v4070_v12  ;;  %v3972_v50 = vunpack.c.l.b16 %v3841_v13  ;;  %v4461_v12 = vsel %vm7109_vm8, %v6292_v5, %v4460_v19  ;;  %v3859_v13 = vor.u32 %v3858_v29, %v3855_v2 }
 0x47a   : > { %v9347_v14 = vpop.f32.mrf.mxu0 }
 0x47b   : > { %11054 = vst [vmem:[#allocation16_spill] sm:$0xff] %v9347_v14  ;;  %v9349_v10 = vadd.f32 %v4608_v0, %v4291_v24  ;;  %v3862_v14 = vshll.u32 %v3546_v31, 16  ;;  %v4512_v24 = vunpack.c.l.b16 %v4461_v12  ;;  %v9360_v4 = vpack.c.b16 %v3973_v51, %v3972_v50  ;;  %v9368_v31 = vld [vmem:[#allocation2 + $0xa8] sm:$0xff] }
 0x47c   : > { %11058 = vst [vmem:[#allocation65_spill] sm:$0xff] %v9368_v31 }
 0x47d   : > { %11055 = vst [vmem:[#allocation37_spill] sm:$0xff] %v9349_v10  ;;  %v4513_v10 = vunpack.c.l.b16 %v4464_v47  ;;  %v3864_v44 = vrot.slane %v3862_v14, 5  ;;  %v3550_v14 = vld [vmem:[#allocation2 + $0xa4] sm:$0x1] }
 0x47e   : > { %v4470_v47 = vrot.slane %v3550_v14, 5 }
 0x47f   : > { %v4613_v49 = vpop.f32.mrf.mxu3  ;;  %v9372_v34 = vpack.c.b16 %v4513_v10, %v4512_v24  ;;  %v3869_v45 = vor.u32 %v3868_v59, %v3864_v44 }
 0x480   : > { %v4073_v0 = vpop.f32.mrf.mxu1  ;;  %v9370_v54 = vpop.f32.mrf.mxu2 }
 0x481   : > { %v4294_v18 = vadd.f32 %v9279_v43, %v4073_v0  ;;  %11059 = vst [vmem:[#allocation44_spill] sm:$0xff] %v9372_v34  ;;  %v3872_v43 = vshll.u32 %v3547_v48, 16  ;;  %v3870_v29 = vrot.slane %v3869_v45, 4 }
 0x482   : > { %v9366_v5 = vpop.f32.mrf.mxu0 }
 0x483   : > { %v9362_v19 = vadd.f32 %v4611_v20, %v4294_v18  ;;  %6195 = vmatmul.msk.bf16.gmra.mxu1 %vm933_vm2, %v9360_v4  ;;  %11057 = vst [vmem:[#allocation46_spill] sm:$0xff] %v9366_v5  ;;  %v3860_v18 = vrot.slane %v3859_v13, 4  ;;  %v3548_v20 = vld [vmem:[#allocation2 + $0x9c] sm:$0xf]  ;;  %v3874_v50 = vrot.slane %v3872_v43, 5  ;;  %v4469_v13 = vrot.slane %v4467_v22, 4 }
 0x484   : > { %6309 = vmatmul.msk.bf16.gmra.mxu3 %vm933_vm2, %v9372_v34  ;;  %v6293_v12 = vrot.slane %v3548_v20, 9  ;;  %v3877_v51 = vshrl.u32 %v3548_v20, 16  ;;  %v3880_v0 = vshll.u32 %v3548_v20, 16  ;;  %v3886_v20 = vshll.u32 %v3549_v57, 16 }
 0x485   : > { %11056 = vst [vmem:[#allocation42_spill] sm:$0xff] %v9362_v19  ;;  %6331 = vmatmul.msk.bf16.gmra.mxu0 %vm933_vm2, %v9368_v31  ;;  %6278 = vmatmul.msk.bf16.gmra.mxu2 %vm933_vm2, %v9368_v31  ;;  %v3865_v2 = vsel %vm6593_vm5, %v3860_v18, %v3864_v44  ;;  %v3875_v5 = vsel %vm6593_vm5, %v3870_v29, %v3874_v50 }
 0x486   : > { %v3974_v43 = vunpack.c.l.b16 %v3865_v2  ;;  %v4471_v44 = vsel %vm7109_vm8, %v4469_v13, %v4470_v47  ;;  %v3879_v18 = vrot.slane %v3877_v51, 4  ;;  %v3882_v45 = vrot.slane %v3880_v0, 5  ;;  %v3552_v51 = vld [vmem:[#allocation2 + $0xac] sm:$0xf]  ;;  %v3553_v0 = vld [vmem:[#allocation2 + $0xb0] sm:$0x1] }
 0x487   : > { %v4616_v48 = vpop.f32.mrf.mxu3  ;;  %v4515_v19 = vunpack.c.l.b16 %v4471_v44  ;;  %v3896_v47 = vshll.u32 %v3550_v14, 16 }
 0x488   : > { %v4075_v56 = vpop.f32.mrf.mxu1  ;;  %v9385_v59 = vpop.f32.mrf.mxu2  ;;  %v3883_v29 = vor.u32 %v3882_v45, %v3879_v18  ;;  %v4477_v18 = vrot.slane %v3553_v0, 5 }
 0x489   : > { %v4296_v10 = vadd.f32 %v9298_v37, %v4075_v56  ;;  %v4468_v37 = vsel %vm7109_vm8, %v6293_v12, %v4467_v22  ;;  %v3975_v56 = vunpack.c.l.b16 %v3875_v5  ;;  %v9402_v12 = vld [vmem:[#allocation2 + $0xb4] sm:$0xff] }
 0x48a   : > { %v9389_v31 = vpop.f32.mrf.mxu0  ;;  %11063 = vst [vmem:[#allocation15_spill] sm:$0xff] %v9402_v12 }
 0x48b   : > { %v9383_v24 = vadd.f32 %v4613_v49, %v4296_v10  ;;  %11061 = vst [vmem:[#allocation80_spill] sm:$0xff] %v9389_v31  ;;  %v3890_v49 = vshrl.u32 %v3549_v57, 16  ;;  %v9396_v50 = vpack.c.b16 %v3975_v56, %v3974_v43  ;;  %v3888_v31 = vrot.slane %v3886_v20, 5 }
 0x48c   : > { %v4474_v43 = vrot.slane %v3552_v51, 5 }
 0x48d   : > { %11060 = vst [vmem:[#allocation43_spill] sm:$0xff] %v9383_v24  ;;  %v4514_v24 = vunpack.c.l.b16 %v4468_v37  ;;  %v3892_v7 = vrot.slane %v3890_v49, 4 }
 0x48f   : > { %v4618_v2 = vpop.f32.mrf.mxu3  ;;  %v9406_v5 = vpack.c.b16 %v4515_v19, %v4514_v24  ;;  %v3898_v24 = vrot.slane %v3896_v47, 5  ;;  %v6390_v47 = vld [vmem:[%s10545_s3 + $0xe] sm:$0x3] }
 0x490   : > { %v4078_v10 = vpop.f32.mrf.mxu1  ;;  %v9404_v57 = vpop.f32.mrf.mxu2 }
 0x491   : > { %v4299_v8 = vadd.f32 %v9315_v33, %v4078_v10  ;;  %11064 = vst [vmem:[#allocation12_spill] sm:$0xff] %v9406_v5  ;;  %v3893_v33 = vor.u32 %v3892_v7, %v3888_v31  ;;  %v4476_v7 = vrot.slane %v4474_v43, 4 }
 0x492   : > { %v9414_v13 = vpop.f32.mrf.mxu0 }
 0x493   : > { %v9398_v22 = vadd.f32 %v4616_v48, %v4299_v8  ;;  %6196 = vmatmul.msk.bf16.gmra.mxu1 %vm933_vm2, %v9396_v50  ;;  %v3884_v8 = vrot.slane %v3883_v29, 4  ;;  %v3551_v48 = vld [vmem:[#allocation2 + $0xa8] sm:$0xf]  ;;  %11065 = vst [vmem:[#allocation64_spill] sm:$0xff] %v9414_v13  ;;  %v3894_v20 = vrot.slane %v3893_v33, 4 }
 0x494   : > { %6310 = vmatmul.msk.bf16.gmra.mxu3 %vm933_vm2, %v9406_v5  ;;  %v6294_v44 = vrot.slane %v3551_v48, 9  ;;  %v3901_v49 = vshrl.u32 %v3551_v48, 16  ;;  %v3904_v56 = vshll.u32 %v3551_v48, 16  ;;  %v3910_v48 = vshll.u32 %v3552_v51, 16 }
 0x495   : > { %11062 = vst [vmem:[#allocation82_spill] sm:$0xff] %v9398_v22  ;;  %6332 = vmatmul.msk.bf16.gmra.mxu0 %vm933_vm2, %v9402_v12  ;;  %6279 = vmatmul.msk.bf16.gmra.mxu2 %vm933_vm2, %v9402_v12  ;;  %v3889_v45 = vsel %vm6593_vm5, %v3884_v8, %v3888_v31 }
 0x496   : > { %v3976_v13 = vunpack.c.l.b16 %v3889_v45  ;;  %v4475_v31 = vsel %vm7109_vm8, %v6294_v44, %v4474_v43  ;;  %v3903_v8 = vrot.slane %v3901_v49, 4  ;;  %v3906_v33 = vrot.slane %v3904_v56, 5  ;;  %v3555_v56 = vld [vmem:[#allocation2 + $0xb8] sm:$0xf] }
 0x497   : > { %v4621_v37 = vpop.f32.mrf.mxu3  ;;  %v4516_v22 = vunpack.c.l.b16 %v4475_v31  ;;  %v3912_v44 = vrot.slane %v3910_v48, 5  ;;  %v4481_v31 = vrot.slane %v3555_v56, 5 }
 0x498   : > { %v4080_v19 = vpop.f32.mrf.mxu1  ;;  %v9421_v29 = vpop.f32.mrf.mxu2  ;;  %v3907_v43 = vor.u32 %v3906_v33, %v3903_v8 }
 0x499   : > { %v4301_v14 = vadd.f32 %v9334_v38, %v4080_v19  ;;  %v3899_v38 = vsel %vm6593_vm5, %v3894_v20, %v3898_v24  ;;  %v5305_v19 = vsel %vm982_vm0, %v6390_v47, 0 }
 0x49a   : > { %5314 = vmatpush.bf16.msra.mxu0 %v5305_v19  ;;  %v9436_v45 = vpop.f32.mrf.mxu0  ;;  %v3556_v19 = vld [vmem:[#allocation2 + $0xbc] sm:$0x1] }
 0x49b   : > { %v9419_v10 = vadd.f32 %v4618_v2, %v4301_v14  ;;  %v4478_v2 = vsel %vm7109_vm8, %v4476_v7, %v4477_v18  ;;  %v3914_v14 = vshrl.u32 %v3552_v51, 16  ;;  %11067 = vst [vmem:[#allocation5_spill] sm:$0xff] %v9436_v45  ;;  %v9442_v51 = vld [vmem:[#allocation2 + $0xc0] sm:$0xff]  ;;  %v4484_v33 = vrot.slane %v3556_v19, 5 }
 0x49c   : > { %v4517_v5 = vunpack.c.l.b16 %v4478_v2  ;;  %11069 = vst [vmem:[#allocation83_spill] sm:$0xff] %v9442_v51 }
 0x49d   : > { %11066 = vst [vmem:[#allocation9_spill] sm:$0xff] %v9419_v10  ;;  %v3977_v10 = vunpack.c.l.b16 %v3899_v38  ;;  %v3916_v6 = vrot.slane %v3914_v14, 4  ;;  %v3554_v38 = vld [vmem:[#allocation2 + $0xb4] sm:$0xf] }
 0x49f   : > { %v9434_v20 = vpack.c.b16 %v3977_v10, %v3976_v13  ;;  %v4623_v47 = vpop.f32.mrf.mxu3  ;;  %v3920_v13 = vshll.u32 %v3553_v0, 16  ;;  %v3917_v7 = vor.u32 %v3916_v6, %v3912_v44  ;;  %v6295_v0 = vrot.slane %v3554_v38, 9 }
 0x4a0   : > { %v4083_v12 = vpop.f32.mrf.mxu1  ;;  %v9444_v49 = vpop.f32.mrf.mxu2 }
 0x4a1   : > { %v4304_v24 = vadd.f32 %v9351_v17, %v4083_v12  ;;  %v6352_v17 = vld [vmem:[%s10545_s3 + $0xa] sm:$0x3]  ;;  %v9449_v12 = vpack.c.b16 %v4517_v5, %v4516_v22  ;;  %v3922_v8 = vrot.slane %v3920_v13, 5  ;;  %v3918_v14 = vrot.slane %v3917_v7, 4 }
 0x4a2   : > { %v5015_v10 = vsel %vm982_vm0, %v6352_v17, 0  ;;  %v9463_v17 = vpop.f32.mrf.mxu0 }
 0x4a3   : > { %v9438_v18 = vadd.f32 %v4621_v37, %v4304_v24  ;;  %6197 = vmatmul.msk.bf16.gmra.mxu1 %vm933_vm2, %v9434_v20  ;;  %11070 = vst [vmem:[#allocation7_spill] sm:$0xff] %v9449_v12  ;;  %5024 = vmatpush.bf16.msra.mxu2 %v5015_v10  ;;  %v3908_v37 = vrot.slane %v3907_v43, 4  ;;  %v3925_v24 = vshrl.u32 %v3554_v38, 16  ;;  %v3928_v43 = vshll.u32 %v3554_v38, 16  ;;  %v11121_v61 = vld [vmem:[#allocation83_spill] sm:$0xff] }
 0x4a4   : > { %6311 = vmatmul.msk.bf16.gmra.mxu3 %vm933_vm2, %v9449_v12  ;;  %11072 = vst [vmem:[#allocation30_spill] sm:$0xff] %v9463_v17  ;;  %v4483_v10 = vrot.slane %v4481_v31, 4  ;;  %v3938_v17 = vshrl.u32 %v3555_v56, 16 }
 0x4a5   : > { %11068 = vst [vmem:[#allocation81_spill] sm:$0xff] %v9438_v18  ;;  %6333 = vmatmul.msk.bf16.gmra.mxu0 %vm933_vm2, %v9442_v51  ;;  %v3913_v48 = vsel %vm6593_vm5, %v3908_v37, %v3912_v44  ;;  %v4482_v37 = vsel %vm7109_vm8, %v6295_v0, %v4481_v31  ;;  %v3927_v7 = vrot.slane %v3925_v24, 4  ;;  %v3930_v38 = vrot.slane %v3928_v43, 5 }
 0x4a6   : > { %6353 = vmatmul.msk.bf16.vlgmr.msra.gmra.mxu2 %vm933_vm2, %v9018_v3  ;;  %v6369_v3 = vld [vmem:[%s10545_s3 + $0xc] sm:$0x3]  ;;  %v3978_v44 = vunpack.c.l.b16 %v3913_v48  ;;  %v4518_v51 = vunpack.c.l.b16 %v4482_v37  ;;  %v3940_v31 = vrot.slane %v3938_v17, 4  ;;  %v3944_v43 = vshll.u32 %v3556_v19, 16 }
 0x4a7   : > { %v4626_v5 = vpop.f32.mrf.mxu3 }
 0x4a8   : > { %v4085_v2 = vpop.f32.mrf.mxu1  ;;  %v9468_v13 = vpop.f32.mrf.mxu2 }
 0x4a9   : > { %v4306_v22 = vadd.f32 %v9370_v54, %v4085_v2  ;;  %v3923_v54 = vsel %vm6593_vm5, %v3918_v14, %v3922_v8  ;;  %v5149_v2 = vsel %vm982_vm0, %v6369_v3, 0  ;;  %v3931_v3 = vor.u32 %v3930_v38, %v3927_v7 }
 0x4aa   : > { %5158 = vmatpush.bf16.msra.mxu3 %v5149_v2  ;;  %v3979_v45 = vunpack.c.l.b16 %v3923_v54 }
 0x4ab   : > { %v9461_v6 = vadd.f32 %v4623_v47, %v4306_v22  ;;  %v4485_v47 = vsel %vm7109_vm8, %v4483_v10, %v4484_v33  ;;  %v3934_v22 = vshll.u32 %v3555_v56, 16  ;;  %v6408_v56 = vld [vmem:[%s10545_s3 + $0x10] sm:$0x3]  ;;  %v3946_v10 = vrot.slane %v3944_v43, 5 }
 0x4ac   : > { %v4519_v18 = vunpack.c.l.b16 %v4485_v47  ;;  %v9478_v14 = vpack.c.b16 %v3979_v45, %v3978_v44  ;;  %v9490_v45 = vpop.f32.mrf.mxu0 }
 0x4ad   : > { %11071 = vst [vmem:[#allocation21_spill] sm:$0xff] %v9461_v6  ;;  %v3936_v12 = vrot.slane %v3934_v22, 5 }
 0x4ae   : > { %v9487_v24 = vpack.c.b16 %v4519_v18, %v4518_v51 }
 0x4af   : > { %v4628_v48 = vpop.f32.mrf.mxu3 }
 0x4b0   : > { %v4088_v6 = vpop.f32.mrf.mxu1  ;;  %v4320_v33 = vpop.f32.mrf.mxu2  ;;  %11073 = vst [vmem:[#allocation6_spill] sm:$0xff] %v9487_v24 }
 0x4b1   : > { %v4309_v8 = vadd.f32 %v9385_v59, %v4088_v6  ;;  %v5445_v59 = vsel %vm982_vm0, %v6408_v56, 0  ;;  %v3941_v6 = vor.u32 %v3940_v31, %v3936_v12 }
 0x4b2   : > { %5454 = vmatpush.bf16.msra.mxu1 %v5445_v59 }
 0x4b3   : > { %v9480_v0 = vadd.f32 %v4626_v5, %v4309_v8  ;;  %6198 = vmatmul.msk.bf16.gmra.mxu1 %vm933_vm2, %v9478_v14  ;;  %v3932_v5 = vrot.slane %v3931_v3, 4  ;;  %v3942_v54 = vrot.slane %v3941_v6, 4 }
 0x4b4   : > { %6312 = vmatmul.msk.bf16.gmra.mxu3 %vm933_vm2, %v9487_v24  ;;  %v9505_v7 = vpop.f32.mrf.mxu0 }
 0x4b5   : > { %6391 = vmatmul.msk.bf16.vlgmr.msra.gmra.mxu0 %vm933_vm2, %v9112_v58  ;;  %v3937_v19 = vsel %vm6593_vm5, %v3932_v5, %v3936_v12  ;;  %v3947_v37 = vsel %vm6593_vm5, %v3942_v54, %v3946_v10 }
 0x4b6   : > { %6354 = vmatmul.msk.bf16.gmra.mxu2 %vm933_vm2, %v9097_v9  ;;  %v3980_v47 = vunpack.c.l.b16 %v3937_v19  ;;  %v3981_v38 = vunpack.c.l.b16 %v3947_v37 }
 0x4b7   : > { %v4631_v51 = vpop.f32.mrf.mxu3 }
 0x4b8   : > { %v4090_v17 = vpop.f32.mrf.mxu1  ;;  %v4323_v44 = vpop.f32.mrf.mxu2  ;;  %v9508_v3 = vpack.c.b16 %v3981_v38, %v3980_v47 }
 0x4b9   : > { %v4311_v18 = vadd.f32 %v9404_v57, %v4090_v17 }
 0x4bb   : > { %v9501_v2 = vadd.f32 %v4628_v48, %v4311_v18  ;;  %v6463_v48 = vld [vmem:[#allocation2 + $0x18] sm:$0xff] }
 0x4bf   : > { %v4633_v57 = vpop.f32.mrf.mxu3 }
 0x4c0   : > { %v4093_v22 = vpop.f32.mrf.mxu1  ;;  %v4325_v12 = vpop.f32.mrf.mxu2 }
 0x4c1   : > { %v4314_v8 = vadd.f32 %v9421_v29, %v4093_v22  ;;  %v9519_v29 = vpop.f32.mrf.mxu0 }
 0x4c3   : > { %v9510_v31 = vadd.f32 %v4631_v51, %v4314_v8  ;;  %6199 = vmatmul.msk.bf16.gmra.mxu1 %vm933_vm2, %v9508_v3 }
 0x4c4   : > { %6374 = vmatmul.msk.bf16.vlgmr.msra.gmra.mxu3 %vm933_vm2, %v6463_v48 }
 0x4c5   : > { %6392 = vmatmul.msk.bf16.gmra.mxu0 %vm933_vm2, %v9130_v32 }
 0x4c6   : > { %6355 = vmatmul.msk.bf16.gmra.mxu2 %vm933_vm2, %v9116_v40 }
 0x4c7   : > { %v4636_v59 = vpop.f32.mrf.mxu3 }
 0x4c8   : > { %v4095_v56 = vpop.f32.mrf.mxu1  ;;  %v4328_v6 = vpop.f32.mrf.mxu2 }
 0x4c9   : > { %v4316_v43 = vadd.f32 %v9444_v49, %v4095_v56  ;;  %v9525_v51 = vpop.f32.mrf.mxu0  ;;  %v6464_v49 = vld [vmem:[#allocation2 + $0x24] sm:$0xff] }
 0x4cb   : > { %v9522_v5 = vadd.f32 %v4633_v57, %v4316_v43 }
 0x4cf   : > { %v4638_v18 = vpop.f32.mrf.mxu3 }
 0x4d0   : > { %v4098_v17 = vpop.f32.mrf.mxu1  ;;  %v4330_v54 = vpop.f32.mrf.mxu2 }
 0x4d1   : > { %v4319_v10 = vadd.f32 %v9468_v13, %v4098_v17  ;;  %v9538_v8 = vpop.f32.mrf.mxu0 }
 0x4d3   : > { %v9527_v19 = vadd.f32 %v4636_v59, %v4319_v10  ;;  %6335 = vmatmul.msk.bf16.vlgmr.msrb.gmra.mxu1 %vm933_vm2, %v9091_v39  ;;  %v6465_v59 = vld [vmem:[#allocation2 + $0x30] sm:$0xff] }
 0x4d4   : > { %6375 = vmatmul.msk.bf16.gmra.mxu3 %vm933_vm2, %v6464_v49 }
 0x4d5   : > { %6393 = vmatmul.msk.bf16.gmra.mxu0 %vm933_vm2, %v9148_v30 }
 0x4d6   : > { %6356 = vmatmul.msk.bf16.gmra.mxu2 %vm933_vm2, %v9134_v60 }
 0x4d7   : > { %v4641_v47 = vpop.f32.mrf.mxu3 }
 0x4d8   : > { %v4100_v37 = vpop.f32.mrf.mxu1  ;;  %v4333_v22 = vpop.f32.mrf.mxu2 }
 0x4d9   : > { %v4321_v13 = vadd.f32 %v4320_v33, %v4100_v37  ;;  %v9547_v33 = vpop.f32.mrf.mxu0 }
 0x4db   : > { %v9536_v38 = vadd.f32 %v4638_v18, %v4321_v13 }
 0x4df   : > { %v4643_v48 = vpop.f32.mrf.mxu3 }
 0x4e0   : > { %v4103_v57 = vpop.f32.mrf.mxu1  ;;  %v4335_v43 = vpop.f32.mrf.mxu2 }
 0x4e1   : > { %v4324_v39 = vadd.f32 %v4323_v44, %v4103_v57 }
 0x4e3   : > { %v9540_v56 = vadd.f32 %v4641_v47, %v4324_v39  ;;  %6336 = vmatmul.msk.bf16.gmra.mxu1 %vm933_vm2, %v9112_v58  ;;  %v9553_v58 = vpop.f32.mrf.mxu0 }
 0x4e4   : > { %6376 = vmatmul.msk.bf16.gmra.mxu3 %vm933_vm2, %v6465_v59  ;;  %11074 = vst [vmem:[#allocation25_spill] sm:$0xff] %v9553_v58  ;;  %v6466_v59 = vld [vmem:[#allocation2 + $0x3c] sm:$0xff] }
 0x4e5   : > { %6394 = vmatmul.msk.bf16.gmra.mxu0 %vm933_vm2, %v9168_v55 }
 0x4e6   : > { %6357 = vmatmul.msk.bf16.gmra.mxu2 %vm933_vm2, %v9152_v36 }
 0x4e7   : > { %v4646_v10 = vpop.f32.mrf.mxu3 }
 0x4e8   : > { %v4105_v17 = vpop.f32.mrf.mxu1  ;;  %v4338_v49 = vpop.f32.mrf.mxu2 }
 0x4e9   : > { %v4326_v44 = vadd.f32 %v4325_v12, %v4105_v17 }
 0x4eb   : > { %v9551_v18 = vadd.f32 %v4643_v48, %v4326_v44 }
 0x4ef   : > { %v4648_v47 = vpop.f32.mrf.mxu3 }
 0x4f0   : > { %v4108_v37 = vpop.f32.mrf.mxu1  ;;  %v4340_v39 = vpop.f32.mrf.mxu2 }
 0x4f1   : > { %v4329_v13 = vadd.f32 %v4328_v6, %v4108_v37  ;;  %v9564_v6 = vpop.f32.mrf.mxu0 }
 0x4f3   : > { %v9555_v57 = vadd.f32 %v4646_v10, %v4329_v13  ;;  %6337 = vmatmul.msk.bf16.gmra.mxu1 %vm933_vm2, %v9130_v32 }
 0x4f4   : > { %6377 = vmatmul.msk.bf16.gmra.mxu3 %vm933_vm2, %v6466_v59 }
 0x4f5   : > { %6395 = vmatmul.msk.bf16.gmra.mxu0 %vm933_vm2, %v9191_v15 }
 0x4f6   : > { %6358 = vmatmul.msk.bf16.gmra.mxu2 %vm933_vm2, %v9173_v35 }
 0x4f7   : > { %v4651_v17 = vpop.f32.mrf.mxu3 }
 0x4f8   : > { %v4110_v12 = vpop.f32.mrf.mxu1  ;;  %v4343_v10 = vpop.f32.mrf.mxu2 }
 0x4f9   : > { %v4331_v48 = vadd.f32 %v4330_v54, %v4110_v12  ;;  %v9572_v58 = vpop.f32.mrf.mxu0  ;;  %v6467_v54 = vld [vmem:[#allocation2 + $0x48] sm:$0xff] }
 0x4fa   : > { %11075 = vst [vmem:[#allocation24_spill] sm:$0xff] %v9572_v58 }
 0x4fb   : > { %v9566_v44 = vadd.f32 %v4648_v47, %v4331_v48 }
 0x4ff   : > { %v4653_v13 = vpop.f32.mrf.mxu3 }
 0x500   : > { %v4113_v37 = vpop.f32.mrf.mxu1  ;;  %v4345_v59 = vpop.f32.mrf.mxu2 }
 0x501   : > { %v4334_v32 = vadd.f32 %v4333_v22, %v4113_v37  ;;  %v9581_v37 = vpop.f32.mrf.mxu0 }
 0x502   : > { %11076 = vst [vmem:[#allocation10_spill] sm:$0xff] %v9581_v37 }
 0x503   : > { %v9568_v36 = vadd.f32 %v4651_v17, %v4334_v32  ;;  %6338 = vmatmul.msk.bf16.gmra.mxu1 %vm933_vm2, %v9148_v30 }
 0x504   : > { %6378 = vmatmul.msk.bf16.gmra.mxu3 %vm933_vm2, %v6467_v54 }
 0x505   : > { %6396 = vmatmul.msk.bf16.gmra.mxu0 %vm933_vm2, %v9217_v21 }
 0x506   : > { %6359 = vmatmul.msk.bf16.gmra.mxu2 %vm933_vm2, %v9197_v11  ;;  %v6468_v11 = vld [vmem:[#allocation2 + $0x54] sm:$0xff] }
 0x507   : > { %v4656_v12 = vpop.f32.mrf.mxu3 }
 0x508   : > { %v4115_v47 = vpop.f32.mrf.mxu1  ;;  %v4348_v17 = vpop.f32.mrf.mxu2 }
 0x509   : > { %v4336_v22 = vadd.f32 %v4335_v43, %v4115_v47 }
 0x50b   : > { %v9579_v48 = vadd.f32 %v4653_v13, %v4336_v22  ;;  %v9592_v13 = vpop.f32.mrf.mxu0 }
 0x50f   : > { %v4658_v35 = vpop.f32.mrf.mxu3 }
 0x510   : > { %v4118_v30 = vpop.f32.mrf.mxu1  ;;  %v4350_v54 = vpop.f32.mrf.mxu2 }
 0x511   : > { %v4339_v32 = vadd.f32 %v4338_v49, %v4118_v30 }
 0x513   : > { %v9583_v58 = vadd.f32 %v4656_v12, %v4339_v32  ;;  %6339 = vmatmul.msk.bf16.gmra.mxu1 %vm933_vm2, %v9168_v55  ;;  %v9596_v37 = vpop.f32.mrf.mxu0 }
 0x514   : > { %6379 = vmatmul.msk.bf16.gmra.mxu3 %vm933_vm2, %v6468_v11  ;;  %11078 = vst [vmem:[#allocation19_spill] sm:$0xff] %v9596_v37 }
 0x515   : > { %11077 = vst [vmem:[#allocation17_spill] sm:$0xff] %v9583_v58  ;;  %6397 = vmatmul.msk.bf16.gmra.mxu0 %vm933_vm2, %v9252_v63 }
 0x516   : > { %6360 = vmatmul.msk.bf16.gmra.mxu2 %vm933_vm2, %v9227_v16  ;;  %v6469_v16 = vld [vmem:[#allocation2 + $0x60] sm:$0xff] }
 0x517   : > { %v4661_v47 = vpop.f32.mrf.mxu3 }
 0x518   : > { %v4120_v43 = vpop.f32.mrf.mxu1  ;;  %v4353_v12 = vpop.f32.mrf.mxu2 }
 0x519   : > { %v4341_v49 = vadd.f32 %v4340_v39, %v4120_v43 }
 0x51b   : > { %v9594_v22 = vadd.f32 %v4658_v35, %v4341_v49 }
 0x51f   : > { %v4663_v32 = vpop.f32.mrf.mxu3 }
 0x520   : > { %v4123_v30 = vpop.f32.mrf.mxu1  ;;  %v4355_v11 = vpop.f32.mrf.mxu2 }
 0x521   : > { %v4344_v55 = vadd.f32 %v4343_v10, %v4123_v30 }
 0x523   : > { %v9598_v58 = vadd.f32 %v4661_v47, %v4344_v55  ;;  %6340 = vmatmul.msk.bf16.gmra.mxu1 %vm933_vm2, %v9191_v15  ;;  %v9609_v47 = vpop.f32.mrf.mxu0 }
 0x524   : > { %6380 = vmatmul.msk.bf16.gmra.mxu3 %vm933_vm2, %v6469_v16  ;;  %11079 = vst [vmem:[#allocation39_spill] sm:$0xff] %v9609_v47 }
 0x525   : > { %6398 = vmatmul.msk.bf16.gmra.mxu0 %vm933_vm2, %v9288_v1 }
 0x526   : > { %6361 = vmatmul.msk.bf16.gmra.mxu2 %vm933_vm2, %v9264_v52  ;;  %v6470_v52 = vld [vmem:[#allocation2 + $0x6c] sm:$0xff] }
 0x527   : > { %v4666_v10 = vpop.f32.mrf.mxu3 }
 0x528   : > { %v4125_v35 = vpop.f32.mrf.mxu1 }
 0x529   : > { %v4346_v39 = vadd.f32 %v4345_v59, %v4125_v35  ;;  %v5026_v49 = vpop.f32.mrf.mxu2 }
 0x52b   : > { %v9607_v43 = vadd.f32 %v4663_v32, %v4346_v39  ;;  %v9618_v59 = vpop.f32.mrf.mxu0 }
 0x52f   : > { %v4668_v55 = vpop.f32.mrf.mxu3 }
 0x530   : > { %v4128_v30 = vpop.f32.mrf.mxu1 }
 0x531   : > { %v4349_v15 = vadd.f32 %v4348_v17, %v4128_v30  ;;  %v5028_v16 = vpop.f32.mrf.mxu2 }
 0x533   : > { %v9611_v37 = vadd.f32 %v4666_v10, %v4349_v15  ;;  %6341 = vmatmul.msk.bf16.gmra.mxu1 %vm933_vm2, %v9217_v21  ;;  %v9624_v21 = vpop.f32.mrf.mxu0 }
 0x534   : > { %6381 = vmatmul.msk.bf16.gmra.mxu3 %vm933_vm2, %v6470_v52 }
 0x535   : > { %11080 = vst [vmem:[#allocation28_spill] sm:$0xff] %v9611_v37  ;;  %6399 = vmatmul.msk.bf16.gmra.mxu0 %vm933_vm2, %v9324_v62 }
 0x536   : > { %6362 = vmatmul.msk.bf16.gmra.mxu2 %vm933_vm2, %v9300_v46 }
 0x537   : > { %v4671_v35 = vpop.f32.mrf.mxu3 }
 0x538   : > { %v4130_v32 = vpop.f32.mrf.mxu1 }
 0x539   : > { %v4351_v17 = vadd.f32 %v4350_v54, %v4130_v32  ;;  %v5031_v10 = vpop.f32.mrf.mxu2 }
 0x53b   : > { %v9622_v39 = vadd.f32 %v4668_v55, %v4351_v17 }
 0x53f   : > { %v4673_v37 = vpop.f32.mrf.mxu3 }
 0x540   : > { %v4133_v30 = vpop.f32.mrf.mxu1 }
 0x541   : > { %v4354_v15 = vadd.f32 %v4353_v12, %v4133_v30  ;;  %v5033_v54 = vpop.f32.mrf.mxu2  ;;  %v9636_v12 = vpop.f32.mrf.mxu0 }
 0x543   : > { %v9626_v47 = vadd.f32 %v4671_v35, %v4354_v15  ;;  %6342 = vmatmul.msk.bf16.gmra.mxu1 %vm933_vm2, %v9252_v63  ;;  %v4810_v63 = vadd.f32 %v9183_v25, %v9256_v23  ;;  %v4811_v25 = vadd.f32 %v9199_v26, %v9277_v53  ;;  %v11090_v53 = vld [vmem:[#allocation72_spill] sm:$0xff] }
 0x544   : > { %6382 = vmatmul.msk.bf16.gmra.mxu3 %vm933_vm2, %v9221_v42 }
 0x545   : > { %11081 = vst [vmem:[#allocation34_spill] sm:$0xff] %v9626_v47  ;;  %6400 = vmatmul.msk.bf16.gmra.mxu0 %vm933_vm2, %v9360_v4 }
 0x546   : > { %6363 = vmatmul.msk.bf16.gmra.mxu2 %vm933_vm2, %v9336_v27 }
 0x547   : > { %v5160_v32 = vpop.f32.mrf.mxu3 }
 0x548   : > { %v4135_v52 = vpop.f32.mrf.mxu1 }
 0x549   : > { %v4356_v55 = vadd.f32 %v4355_v11, %v4135_v52  ;;  %v5036_v46 = vpop.f32.mrf.mxu2  ;;  %v9644_v42 = vpop.f32.mrf.mxu0 }
 0x54a   : > { %11083 = vst [vmem:[#allocation57_spill] sm:$0xff] %v9644_v42  ;;  %v6471_v42 = vld [vmem:[#allocation2 + $0xcc] sm:$0xf] }
 0x54b   : > { %v9638_v17 = vadd.f32 %v4673_v37, %v4356_v55  ;;  %v11087_v55 = vld [vmem:[#allocation76_spill] sm:$0xff] }
 0x54d   : > { %11082 = vst [vmem:[#allocation63_spill] sm:$0xff] %v9638_v17  ;;  %v5273_v17 = vshrl.u32 %v6471_v42, 16 }
 0x54f   : > { %v5162_v15 = vpop.f32.mrf.mxu3 }
 0x550   : > { %v4886_v35 = vpop.f32.mrf.mxu1 }
 0x551   : > { %v4966_v30 = vadd.f32 %v4886_v35, %v4810_v63 }
 0x553   : > { %v5106_v47 = vadd.f32 %v5026_v49, %v4966_v30  ;;  %6343 = vmatmul.msk.bf16.gmra.mxu1 %vm933_vm2, %v9288_v1  ;;  %v5038_v49 = vpop.f32.mrf.mxu2 }
 0x554   : > { %6383 = vmatmul.msk.bf16.gmra.mxu3 %vm933_vm2, %v9260_v28 }
 0x555   : > { %v9646_v27 = vadd.f32 %v5160_v32, %v5106_v47  ;;  %6401 = vmatmul.msk.bf16.gmra.mxu0 %vm933_vm2, %v9396_v50  ;;  %v9658_v47 = vpop.f32.mrf.mxu0  ;;  %v11088_v32 = vld [vmem:[#allocation67_spill] sm:$0xff] }
 0x556   : > { %6364 = vmatmul.msk.bf16.gmra.mxu2 %vm933_vm2, %v9372_v34  ;;  %11086 = vst [vmem:[#allocation85_spill] sm:$0xff] %v9658_v47  ;;  %v4812_v63 = vadd.f32 %v11088_v32, %v11087_v55  ;;  %v11096_v32 = vld [vmem:[#allocation33_spill] sm:$0xff] }
 0x557   : > { %11084 = vst [vmem:[#allocation70_spill] sm:$0xff] %v9646_v27  ;;  %v5165_v11 = vpop.f32.mrf.mxu3 }
 0x558   : > { %v4888_v23 = vpop.f32.mrf.mxu1 }
 0x559   : > { %v4967_v37 = vadd.f32 %v4888_v23, %v4811_v25  ;;  %v11092_v25 = vld [vmem:[#allocation52_spill] sm:$0xff] }
 0x55b   : > { %v5107_v1 = vadd.f32 %v5028_v16, %v4967_v37  ;;  %v5041_v16 = vpop.f32.mrf.mxu2 }
 0x55d   : > { %v9656_v52 = vadd.f32 %v5162_v15, %v5107_v1  ;;  %v11091_v15 = vld [vmem:[#allocation79_spill] sm:$0xff]  ;;  %v11093_v1 = vld [vmem:[#allocation12_spill] sm:$0xff] }
 0x55e   : > { %v4813_v23 = vadd.f32 %v11092_v25, %v11091_v15 }
 0x55f   : > { %11085 = vst [vmem:[#allocation84_spill] sm:$0xff] %v9656_v52  ;;  %v5167_v30 = vpop.f32.mrf.mxu3 }
 0x560   : > { %v4891_v35 = vpop.f32.mrf.mxu1 }
 0x561   : > { %v4968_v28 = vadd.f32 %v4891_v35, %v4812_v63  ;;  %v11097_v63 = vld [vmem:[#allocation55_spill] sm:$0xff] }
 0x562   : > { %v4814_v35 = vadd.f32 %v11097_v63, %v11096_v32 }
 0x563   : > { %v5108_v27 = vadd.f32 %v5031_v10, %v4968_v28  ;;  %6344 = vmatmul.msk.bf16.gmra.mxu1 %vm933_vm2, %v9324_v62  ;;  %v9674_v10 = vpop.f32.mrf.mxu0 }
 0x564   : > { %6384 = vmatmul.msk.bf16.gmra.mxu3 %vm933_vm2, %v11090_v53  ;;  %11094 = vst [vmem:[#allocation67_spill] sm:$0xff] %v9674_v10  ;;  %v5043_v53 = vpop.f32.mrf.mxu2 }
 0x565   : > { %v9664_v26 = vadd.f32 %v5165_v11, %v5108_v27  ;;  %6402 = vmatmul.msk.bf16.gmra.mxu0 %vm933_vm2, %v9434_v20 }
 0x566   : > { %6365 = vmatmul.msk.bf16.gmra.mxu2 %vm933_vm2, %v11093_v1  ;;  %v11106_v1 = vld [vmem:[#allocation42_spill] sm:$0xff] }
 0x567   : > { %11089 = vst [vmem:[#allocation76_spill] sm:$0xff] %v9664_v26  ;;  %v5170_v62 = vpop.f32.mrf.mxu3 }
 0x568   : > { %v4893_v37 = vpop.f32.mrf.mxu1 }
 0x569   : > { %v4969_v55 = vadd.f32 %v4893_v37, %v4813_v23  ;;  %v11102_v23 = vld [vmem:[#allocation61_spill] sm:$0xff] }
 0x56b   : > { %v5109_v27 = vadd.f32 %v5033_v54, %v4969_v55  ;;  %v9680_v52 = vpop.f32.mrf.mxu0  ;;  %v11100_v54 = vld [vmem:[#allocation73_spill] sm:$0xff] }
 0x56c   : > { %11098 = vst [vmem:[#allocation79_spill] sm:$0xff] %v9680_v52  ;;  %v9694_v63 = vpop.f32.mrf.mxu2 }
 0x56d   : > { %v9676_v11 = vadd.f32 %v5167_v30, %v5109_v27  ;;  %v11101_v30 = vld [vmem:[#allocation37_spill] sm:$0xff]  ;;  %v11103_v27 = vld [vmem:[#allocation7_spill] sm:$0xff] }
 0x56e   : > { %v4815_v37 = vadd.f32 %v11102_v23, %v11101_v30 }
 0x56f   : > { %11095 = vst [vmem:[#allocation72_spill] sm:$0xff] %v9676_v11  ;;  %v5172_v26 = vpop.f32.mrf.mxu3 }
 0x570   : > { %v4896_v28 = vpop.f32.mrf.mxu1 }
 0x571   : > { %v4970_v34 = vadd.f32 %v4896_v28, %v4814_v35 }
 0x573   : > { %v5110_v15 = vadd.f32 %v5036_v46, %v4970_v34  ;;  %6345 = vmatmul.msk.bf16.gmra.mxu1 %vm933_vm2, %v9360_v4  ;;  %v3557_v34 = vld [vmem:[#allocation2 + $0xc0] sm:$0xf]  ;;  %v9696_v28 = vpop.f32.mrf.mxu0 }
 0x574   : > { %6385 = vmatmul.msk.bf16.gmra.mxu3 %vm933_vm2, %v11100_v54  ;;  %v4846_v35 = vshll.u32 %v3557_v34, 16  ;;  %11104 = vst [vmem:[#allocation33_spill] sm:$0xff] %v9696_v28  ;;  %v3558_v54 = vld [vmem:[#allocation2 + $0xc4] sm:$0xf] }
 0x575   : > { %v9684_v25 = vadd.f32 %v5170_v62, %v5110_v15  ;;  %6403 = vmatmul.msk.bf16.gmra.mxu0 %vm933_vm2, %v9478_v14  ;;  %v4843_v62 = vshrl.u32 %v3557_v34, 16 }
 0x576   : > { %6366 = vmatmul.msk.bf16.gmra.mxu2 %vm933_vm2, %v11103_v27  ;;  %v4848_v52 = vrot.slane %v4846_v35, 5  ;;  %v4852_v27 = vshll.u32 %v3558_v54, 16  ;;  %v11112_v35 = vld [vmem:[#allocation48_spill] sm:$0xff] }
 0x577   : > { %11099 = vst [vmem:[#allocation52_spill] sm:$0xff] %v9684_v25  ;;  %v5175_v46 = vpop.f32.mrf.mxu3  ;;  %v11107_v25 = vld [vmem:[#allocation75_spill] sm:$0xff]  ;;  %v4845_v11 = vrot.slane %v4843_v62, 4 }
 0x578   : > { %v4898_v55 = vpop.f32.mrf.mxu1  ;;  %v4816_v30 = vadd.f32 %v11107_v25, %v11106_v1  ;;  %v11109_v1 = vld [vmem:[#allocation65_spill] sm:$0xff] }
 0x579   : > { %v4971_v32 = vadd.f32 %v4898_v55, %v4815_v37  ;;  %v4856_v37 = vshrl.u32 %v3558_v54, 16 }
 0x57b   : > { %v5111_v4 = vadd.f32 %v5038_v49, %v4971_v32  ;;  %v3559_v49 = vld [vmem:[#allocation2 + $0xc8] sm:$0x1]  ;;  %v9704_v32 = vpop.f32.mrf.mxu2  ;;  %v9712_v62 = vpop.f32.mrf.mxu0 }
 0x57c   : > { %v4862_v25 = vshll.u32 %v3559_v49, 16  ;;  %11110 = vst [vmem:[#allocation37_spill] sm:$0xff] %v9712_v62 }
 0x57d   : > { %v9698_v15 = vadd.f32 %v5172_v26, %v5111_v4  ;;  %v4849_v26 = vor.u32 %v4848_v52, %v4845_v11  ;;  %v4854_v4 = vrot.slane %v4852_v27, 5  ;;  %v5001_v11 = vrot.slane %v3558_v54, 5  ;;  %v11115_v54 = vld [vmem:[#allocation26_spill] sm:$0xff] }
 0x57e   : > { %v4864_v27 = vrot.slane %v4862_v25, 5 }
 0x57f   : > { %11105 = vst [vmem:[#allocation55_spill] sm:$0xff] %v9698_v15  ;;  %v5177_v10 = vpop.f32.mrf.mxu3  ;;  %v4858_v15 = vrot.slane %v4856_v37, 4  ;;  %v6351_v37 = vrot.slane %v3557_v34, 9 }
 0x580   : > { %v4901_v23 = vpop.f32.mrf.mxu1 }
 0x581   : > { %v4972_v55 = vadd.f32 %v4901_v23, %v4816_v30  ;;  %v4850_v23 = vrot.slane %v4849_v26, 4  ;;  %v5002_v34 = vsel %vm7109_vm8, %v6351_v37, %v5001_v11 }
 0x583   : > { %v5112_v47 = vadd.f32 %v5041_v16, %v4972_v55  ;;  %6346 = vmatmul.msk.bf16.gmra.mxu1 %vm933_vm2, %v9396_v50  ;;  %v11111_v16 = vld [vmem:[#allocation43_spill] sm:$0xff]  ;;  %v4859_v55 = vor.u32 %v4858_v15, %v4854_v4  ;;  %v5003_v15 = vrot.slane %v5001_v11, 4  ;;  %v5051_v26 = vpop.f32.mrf.mxu2 }
 0x584   : > { %6386 = vmatmul.msk.bf16.gmra.mxu3 %vm933_vm2, %v11109_v1  ;;  %v4817_v50 = vadd.f32 %v11112_v35, %v11111_v16  ;;  %v4855_v1 = vsel %vm6593_vm5, %v4850_v23, %v4854_v4  ;;  %v5276_v16 = vshll.u32 %v6471_v42, 16  ;;  %v5275_v23 = vrot.slane %v5273_v17, 4 }
 0x585   : > { %v9706_v28 = vadd.f32 %v5175_v46, %v5112_v47  ;;  %6404 = vmatmul.msk.bf16.gmra.mxu0 %vm933_vm2, %v9508_v3  ;;  %v4860_v62 = vrot.slane %v4859_v55, 4 }
 0x586   : > { %6367 = vmatmul.msk.bf16.gmra.mxu2 %vm933_vm2, %v9487_v24  ;;  %v5278_v42 = vrot.slane %v5276_v16, 5  ;;  %v11116_v16 = vld [vmem:[#allocation15_spill] sm:$0xff] }
 0x587   : > { %11108 = vst [vmem:[#allocation73_spill] sm:$0xff] %v9706_v28  ;;  %v5180_v47 = vpop.f32.mrf.mxu3  ;;  %v5004_v28 = vrot.slane %v3559_v49, 5 }
 0x588   : > { %v4903_v30 = vpop.f32.mrf.mxu1 }
 0x589   : > { %v4973_v52 = vadd.f32 %v4903_v30, %v4817_v50  ;;  %v4865_v50 = vsel %vm6593_vm5, %v4860_v62, %v4864_v27  ;;  %v11114_v30 = vld [vmem:[#allocation82_spill] sm:$0xff]  ;;  %v5005_v49 = vsel %vm7109_vm8, %v5003_v15, %v5004_v28  ;;  %v5279_v28 = vor.u32 %v5278_v42, %v5275_v23 }
 0x58a   : > { %v4818_v25 = vadd.f32 %v11115_v54, %v11114_v30  ;;  %v4869_v27 = vunpack.c.l.b16 %v4865_v50  ;;  %v5009_v30 = vunpack.c.l.b16 %v5005_v49  ;;  %v6473_v15 = vld [vmem:[#allocation2 + $0xd4] sm:$0x1] }
 0x58b   : > { %v5113_v46 = vadd.f32 %v5043_v53, %v4973_v52  ;;  %v4868_v53 = vunpack.c.l.b16 %v4855_v1  ;;  %v5292_v50 = vshll.u32 %v6473_v15, 16 }
 0x58d   : > { %v9720_v35 = vadd.f32 %v5177_v10, %v5113_v46  ;;  %v6472_v10 = vld [vmem:[#allocation2 + $0xd0] sm:$0xf]  ;;  %v9730_v46 = vpop.f32.mrf.mxu0  ;;  %v9735_v41 = vpack.c.b16 %v4869_v27, %v4868_v53  ;;  %v5053_v53 = vpop.f32.mrf.mxu2  ;;  %v5294_v23 = vrot.slane %v5292_v50, 5 }
 0x58e   : > { %v5282_v55 = vshll.u32 %v6472_v10, 16  ;;  %v5286_v52 = vshrl.u32 %v6472_v10, 16 }
 0x58f   : > { %11113 = vst [vmem:[#allocation61_spill] sm:$0xff] %v9720_v35  ;;  %v5182_v62 = vpop.f32.mrf.mxu3  ;;  %v5008_v35 = vunpack.c.l.b16 %v5002_v34  ;;  %v5280_v34 = vrot.slane %v5279_v28, 4 }
 0x590   : > { %v4906_v4 = vpop.f32.mrf.mxu1  ;;  %v5284_v17 = vrot.slane %v5282_v55, 5  ;;  %v5288_v11 = vrot.slane %v5286_v52, 4 }
 0x591   : > { %v4974_v24 = vadd.f32 %v4906_v4, %v4818_v25  ;;  %v9743_v54 = vpack.c.b16 %v5009_v30, %v5008_v35  ;;  %v11119_v30 = vld [vmem:[#allocation81_spill] sm:$0xff] }
 0x592   : > { %v5289_v49 = vor.u32 %v5288_v11, %v5284_v17  ;;  %v5285_v35 = vsel %vm6593_vm5, %v5280_v34, %v5284_v17  ;;  %v11123_v34 = vld [vmem:[#allocation80_spill] sm:$0xff] }
 0x593   : > { %v5114_v1 = vadd.f32 %v9694_v63, %v4974_v24  ;;  %6347 = vmatmul.msk.bf16.gmra.mxu1 %vm933_vm2, %v9434_v20  ;;  %v11117_v24 = vld [vmem:[#allocation9_spill] sm:$0xff]  ;;  %v11118_v63 = vld [vmem:[#allocation16_spill] sm:$0xff]  ;;  %v5298_v11 = vunpack.c.l.b16 %v5285_v35 }
 0x594   : > { %6387 = vmatmul.msk.bf16.gmra.mxu3 %vm933_vm2, %v11116_v16  ;;  %v4819_v20 = vadd.f32 %v11118_v63, %v11117_v24  ;;  %v5290_v55 = vrot.slane %v5289_v49, 4 }
 0x595   : > { %v9737_v37 = vadd.f32 %v5180_v47, %v5114_v1  ;;  %6405 = vmatmul.msk.bf16.gmra.mxu0 %vm933_vm2, %v9735_v41  ;;  %v9749_v42 = vpop.f32.mrf.mxu0  ;;  %v11120_v1 = vld [vmem:[#allocation46_spill] sm:$0xff]  ;;  %v5056_v63 = vpop.f32.mrf.mxu2 }
 0x596   : > { %6368 = vmatmul.msk.bf16.gmra.mxu2 %vm933_vm2, %v9743_v54  ;;  %v5295_v27 = vsel %vm6593_vm5, %v5290_v55, %v5294_v23  ;;  %v4820_v28 = vadd.f32 %v11120_v1, %v11119_v30 }
 0x597   : > { %v5185_v4 = vpop.f32.mrf.mxu3  ;;  %v5299_v24 = vunpack.c.l.b16 %v5295_v27 }
 0x598   : > { %v4908_v25 = vpop.f32.mrf.mxu1 }
 0x599   : > { %v4975_v47 = vadd.f32 %v4908_v25, %v4819_v20  ;;  %v11122_v25 = vld [vmem:[#allocation21_spill] sm:$0xff] }
 0x59a   : > { %v4821_v49 = vadd.f32 %v11123_v34, %v11122_v25 }
 0x59b   : > { %v5115_v10 = vadd.f32 %v9704_v32, %v4975_v47  ;;  %v5300_v32 = vpack.c.b16 %v5299_v24, %v5298_v11  ;;  %v6445_v11 = vld [vmem:[#allocation2 + $0xcc] sm:$0xff] }
 0x59d   : > { %v9754_v52 = vadd.f32 %v5182_v62, %v5115_v10  ;;  %v9762_v17 = vpop.f32.mrf.mxu0  ;;  %v5058_v35 = vpop.f32.mrf.mxu2 }
 0x59f   : > { %v5187_v50 = vpop.f32.mrf.mxu3 }
 0x5a0   : > { %v4911_v16 = vpop.f32.mrf.mxu1 }
 0x5a1   : > { %v4976_v15 = vadd.f32 %v4911_v16, %v4820_v28 }
 0x5a3   : > { %v5116_v20 = vadd.f32 %v5051_v26, %v4976_v15  ;;  %6348 = vmatmul.msk.bf16.gmra.mxu1 %vm933_vm2, %v9478_v14  ;;  %v11124_v14 = vld [vmem:[#allocation64_spill] sm:$0xff] }
 0x5a4   : > { %6388 = vmatmul.msk.bf16.gmra.mxu3 %vm933_vm2, %v11121_v61  ;;  %v4822_v27 = vadd.f32 %v11124_v14, %v9480_v0 }
 0x5a5   : > { %v9764_v62 = vadd.f32 %v5185_v4, %v5116_v20  ;;  %6406 = vmatmul.msk.bf16.gmra.mxu0 %vm933_vm2, %v5300_v32  ;;  %v5061_v15 = vpop.f32.mrf.mxu2 }
 0x5a7   : > { %v5190_v10 = vpop.f32.mrf.mxu3 }
 0x5a8   : > { %v4913_v47 = vpop.f32.mrf.mxu1 }
 0x5a9   : > { %v4977_v23 = vadd.f32 %v4913_v47, %v4821_v49 }
 0x5ab   : > { %v5117_v26 = vadd.f32 %v5053_v53, %v4977_v23  ;;  %v11125_v53 = vld [vmem:[#allocation5_spill] sm:$0xff] }
 0x5ad   : > { %v9771_v55 = vadd.f32 %v5187_v50, %v5117_v26  ;;  %v4823_v50 = vadd.f32 %v11125_v53, %v9501_v2  ;;  %v4825_v2 = vadd.f32 %v9490_v45, %v9522_v5  ;;  %v4827_v5 = vadd.f32 %v9519_v29, %v9536_v38 }
 0x5ae   : > { %v4829_v29 = vadd.f32 %v9538_v8, %v9551_v18 }
 0x5af   : > { %v5192_v1 = vpop.f32.mrf.mxu3 }
 0x5b0   : > { %v4916_v4 = vpop.f32.mrf.mxu1 }
 0x5b1   : > { %v4978_v30 = vadd.f32 %v4916_v4, %v4822_v27 }
 0x5b3   : > { %v5118_v28 = vadd.f32 %v5056_v63, %v4978_v30  ;;  %6349 = vmatmul.msk.bf16.gmra.mxu1 %vm933_vm2, %v9508_v3  ;;  %v11126_v63 = vld [vmem:[#allocation30_spill] sm:$0xff]  ;;  %v5063_v3 = vpop.f32.mrf.mxu2 }
 0x5b4   : > { %6389 = vmatmul.msk.bf16.gmra.mxu3 %vm933_vm2, %v6445_v11  ;;  %v4824_v25 = vadd.f32 %v11126_v63, %v9510_v31  ;;  %v4826_v31 = vadd.f32 %v9505_v7, %v9527_v19  ;;  %v4828_v7 = vadd.f32 %v9525_v51, %v9540_v56  ;;  %v4830_v56 = vadd.f32 %v9547_v33, %v9555_v57 }
 0x5b5   : > { %v9777_v16 = vadd.f32 %v5190_v10, %v5118_v28  ;;  %v4832_v33 = vadd.f32 %v9564_v6, %v9568_v36 }
 0x5b7   : > { %v5195_v32 = vpop.f32.mrf.mxu3 }
 0x5b8   : > { %v4918_v24 = vpop.f32.mrf.mxu1 }
 0x5b9   : > { %v4979_v20 = vadd.f32 %v4918_v24, %v4823_v50 }
 0x5bb   : > { %v5119_v0 = vadd.f32 %v5058_v35, %v4979_v20  ;;  %v5066_v14 = vpop.f32.mrf.mxu2 }
 0x5bd   : > { %v9782_v61 = vadd.f32 %v5192_v1, %v5119_v0 }
 0x5bf   : > { %v5197_v47 = vpop.f32.mrf.mxu3 }
 0x5c0   : > { %v4921_v34 = vpop.f32.mrf.mxu1 }
 0x5c1   : > { %v4980_v49 = vadd.f32 %v4921_v34, %v4824_v25  ;;  %v9810_v34 = vpop.f32.mrf.mxu0 }
 0x5c3   : > { %v5120_v23 = vadd.f32 %v5061_v15, %v4980_v49  ;;  %6350 = vmatmul.msk.bf16.gmra.mxu1 %vm933_vm2, %v9735_v41  ;;  %v5068_v41 = vpop.f32.mrf.mxu2 }
 0x5c5   : > { %v9788_v10 = vadd.f32 %v5195_v32, %v5120_v23 }
 0x5c7   : > { %v5200_v4 = vpop.f32.mrf.mxu3 }
 0x5c8   : > { %v4923_v26 = vpop.f32.mrf.mxu1 }
 0x5c9   : > { %v4981_v35 = vadd.f32 %v4923_v26, %v4825_v2 }
 0x5cb   : > { %v5121_v27 = vadd.f32 %v5063_v3, %v4981_v35  ;;  %v5071_v32 = vpop.f32.mrf.mxu2 }
 0x5cd   : > { %v9792_v30 = vadd.f32 %v5197_v47, %v5121_v27  ;;  %v11127_v27 = vld [vmem:[#allocation25_spill] sm:$0xff] }
 0x5cf   : > { %v5202_v45 = vpop.f32.mrf.mxu3 }
 0x5d0   : > { %v4926_v1 = vpop.f32.mrf.mxu1 }
 0x5d1   : > { %v4982_v28 = vadd.f32 %v4926_v1, %v4826_v31 }
 0x5d3   : > { %v5122_v11 = vadd.f32 %v5066_v14, %v4982_v28  ;;  %6409 = vmatmul.msk.bf16.vlgmr.msra.gmra.mxu1 %vm933_vm2, %v9097_v9  ;;  %v5073_v38 = vpop.f32.mrf.mxu2 }
 0x5d5   : > { %v9798_v15 = vadd.f32 %v5200_v4, %v5122_v11  ;;  %v4831_v4 = vadd.f32 %v11127_v27, %v9566_v44  ;;  %v11137_v27 = vld [vmem:[#allocation77_spill] sm:$0xff] }
 0x5d7   : > { %v5205_v0 = vpop.f32.mrf.mxu3 }
 0x5d8   : > { %v4928_v53 = vpop.f32.mrf.mxu1 }
 0x5d9   : > { %v4983_v50 = vadd.f32 %v4928_v53, %v4827_v5 }
 0x5db   : > { %v5123_v24 = vadd.f32 %v5068_v41, %v4983_v50  ;;  %v5076_v35 = vpop.f32.mrf.mxu2  ;;  %v11128_v41 = vld [vmem:[#allocation60_spill] sm:$0xff]  ;;  %v11130_v50 = vld [vmem:[#allocation17_spill] sm:$0xff] }
 0x5dd   : > { %v9802_v20 = vadd.f32 %v5202_v45, %v5123_v24  ;;  %v11129_v45 = vld [vmem:[#allocation24_spill] sm:$0xff]  ;;  %v11131_v24 = vld [vmem:[#allocation10_spill] sm:$0xff] }
 0x5de   : > { %v4833_v5 = vadd.f32 %v11129_v45, %v9579_v48 }
 0x5df   : > { %v5207_v47 = vpop.f32.mrf.mxu3 }
 0x5e0   : > { %v4931_v19 = vpop.f32.mrf.mxu1 }
 0x5e1   : > { %v4984_v63 = vadd.f32 %v4931_v19, %v4828_v7  ;;  %v11132_v19 = vld [vmem:[#allocation74_spill] sm:$0xff] }
 0x5e3   : > { %v5124_v9 = vadd.f32 %v5071_v32, %v4984_v63  ;;  %6410 = vmatmul.msk.bf16.gmra.mxu1 %vm933_vm2, %v9116_v40  ;;  %v9818_v40 = vpop.f32.mrf.mxu0  ;;  %v4834_v32 = vadd.f32 %v11131_v24, %v11130_v50  ;;  %v11140_v50 = vld [vmem:[#allocation63_spill] sm:$0xff]  ;;  %v11141_v24 = vld [vmem:[#allocation57_spill] sm:$0xff] }
 0x5e5   : > { %v9808_v25 = vadd.f32 %v5205_v0, %v5124_v9  ;;  %v4835_v0 = vadd.f32 %v9592_v13, %v9594_v22 }
 0x5e7   : > { %v5210_v8 = vpop.f32.mrf.mxu3 }
 0x5e8   : > { %v4933_v3 = vpop.f32.mrf.mxu1 }
 0x5e9   : > { %v4985_v49 = vadd.f32 %v4933_v3, %v4829_v29  ;;  %v11133_v29 = vld [vmem:[#allocation19_spill] sm:$0xff] }
 0x5eb   : > { %v5125_v23 = vadd.f32 %v5073_v38, %v4985_v49  ;;  %v9826_v28 = vpop.f32.mrf.mxu0  ;;  %v4836_v38 = vadd.f32 %v11133_v29, %v9598_v58 }
 0x5ed   : > { %v9814_v51 = vadd.f32 %v5207_v47, %v5125_v23  ;;  %v11134_v47 = vld [vmem:[#allocation71_spill] sm:$0xff] }
 0x5f0   : > { %v4936_v2 = vpop.f32.mrf.mxu1 }
 0x5f1   : > { %v4986_v26 = vadd.f32 %v4936_v2, %v4830_v56  ;;  %v11135_v56 = vld [vmem:[#allocation39_spill] sm:$0xff] }
 0x5f2   : > { %v4837_v2 = vadd.f32 %v11135_v56, %v9607_v43  ;;  %v11146_v56 = vld [vmem:[#allocation67_spill] sm:$0xff] }
 0x5f3   : > { %v5126_v14 = vadd.f32 %v5076_v35, %v4986_v26  ;;  %6411 = vmatmul.msk.bf16.gmra.mxu1 %vm933_vm2, %v9134_v60  ;;  %v9834_v60 = vpop.f32.mrf.mxu0  ;;  %v11136_v35 = vld [vmem:[#allocation28_spill] sm:$0xff] }
 0x5f5   : > { %v5260_v18 = vadd.f32 %v5210_v8, %v5126_v14  ;;  %v4838_v14 = vadd.f32 %v9618_v59, %v11136_v35 }
 0x5f8   : > { %v4938_v31 = vpop.f32.mrf.mxu1 }
 0x5f9   : > { %v9824_v1 = vadd.f32 %v4938_v31, %v4831_v4  ;;  %v4839_v4 = vadd.f32 %v9624_v21, %v9622_v39 }
 0x5fb   : > { %v9842_v7 = vpop.f32.mrf.mxu0 }
 0x600   : > { %v4941_v57 = vpop.f32.mrf.mxu1 }
 0x601   : > { %v9830_v11 = vadd.f32 %v4941_v57, %v4832_v33  ;;  %v11138_v57 = vld [vmem:[#allocation34_spill] sm:$0xff] }
 0x603   : > { %6412 = vmatmul.msk.bf16.gmra.mxu1 %vm933_vm2, %v11128_v41  ;;  %v9852_v48 = vpop.f32.mrf.mxu0  ;;  %v4840_v41 = vadd.f32 %v9636_v12, %v11138_v57 }
 0x608   : > { %v4943_v44 = vpop.f32.mrf.mxu1 }
 0x609   : > { %v9838_v53 = vadd.f32 %v4943_v44, %v4833_v5  ;;  %v11139_v44 = vld [vmem:[#allocation53_spill] sm:$0xff] }
 0x60b   : > { %v9860_v23 = vpop.f32.mrf.mxu0 }
 0x610   : > { %v4946_v36 = vpop.f32.mrf.mxu1 }
 0x611   : > { %v9844_v6 = vadd.f32 %v4946_v36, %v4834_v32  ;;  %v4841_v32 = vadd.f32 %v11141_v24, %v11140_v50  ;;  %v11151_v50 = vld [vmem:[#allocation33_spill] sm:$0xff] }
 0x613   : > { %6413 = vmatmul.msk.bf16.gmra.mxu1 %vm933_vm2, %v11132_v19  ;;  %v9866_v26 = vpop.f32.mrf.mxu0  ;;  %v11142_v19 = vld [vmem:[#allocation70_spill] sm:$0xff] }
 0x618   : > { %v4948_v63 = vpop.f32.mrf.mxu1 }
 0x619   : > { %v9850_v9 = vadd.f32 %v4948_v63, %v4835_v0  ;;  %v11143_v0 = vld [vmem:[#allocation85_spill] sm:$0xff] }
 0x61a   : > { %v5396_v63 = vadd.f32 %v11143_v0, %v11142_v19  ;;  %v11152_v19 = vld [vmem:[#allocation52_spill] sm:$0xff]  ;;  %v11153_v0 = vld [vmem:[#allocation37_spill] sm:$0xff] }
 0x61b   : > { %v9876_v31 = vpop.f32.mrf.mxu0 }
 0x620   : > { %v4951_v3 = vpop.f32.mrf.mxu1 }
 0x621   : > { %v9856_v49 = vadd.f32 %v4951_v3, %v4836_v38  ;;  %v11144_v38 = vld [vmem:[#allocation78_spill] sm:$0xff] }
 0x623   : > { %6414 = vmatmul.msk.bf16.gmra.mxu1 %vm933_vm2, %v11134_v47  ;;  %v9884_v59 = vpop.f32.mrf.mxu0  ;;  %v11145_v47 = vld [vmem:[#allocation84_spill] sm:$0xff] }
 0x628   : > { %v4953_v13 = vpop.f32.mrf.mxu1 }
 0x629   : > { %v9864_v22 = vadd.f32 %v4953_v13, %v4837_v2  ;;  %v5397_v2 = vadd.f32 %v11146_v56, %v11145_v47  ;;  %v11154_v47 = vld [vmem:[#allocation44_spill] sm:$0xff] }
 0x62b   : > { %v9892_v36 = vpop.f32.mrf.mxu0 }
 0x630   : > { %v4956_v58 = vpop.f32.mrf.mxu1 }
 0x631   : > { %v9870_v8 = vadd.f32 %v4956_v58, %v4838_v14  ;;  %v11147_v14 = vld [vmem:[#allocation76_spill] sm:$0xff]  ;;  %v11148_v58 = vld [vmem:[#allocation79_spill] sm:$0xff] }
 0x633   : > { %6415 = vmatmul.msk.bf16.gmra.mxu1 %vm933_vm2, %v11137_v27  ;;  %v9900_v3 = vpop.f32.mrf.mxu0  ;;  %v5398_v27 = vadd.f32 %v11148_v58, %v11147_v14  ;;  %v11156_v14 = vld [vmem:[#allocation73_spill] sm:$0xff] }
 0x634   : > { %v5402_v58 = vadd.f32 %v9749_v42, %v11156_v14  ;;  %v5405_v42 = vadd.f32 %v9818_v40, %v9754_v52  ;;  %v5408_v52 = vadd.f32 %v9842_v7, %v9777_v16  ;;  %v5411_v16 = vadd.f32 %v9866_v26, %v9792_v30 }
 0x635   : > { %v5414_v30 = vadd.f32 %v9892_v36, %v9808_v25  ;;  %v10011_v25 = vld [vmem:[%s10546_s4] ss:$0 sm:$0xff] }
 0x638   : > { %v4958_v43 = vpop.f32.mrf.mxu1 }
 0x639   : > { %v9878_v33 = vadd.f32 %v4958_v43, %v4839_v4 }
 0x63b   : > { %v5366_v4 = vpop.f32.mrf.mxu0 }
 0x640   : > { %v4961_v45 = vpop.f32.mrf.mxu1 }
 0x641   : > { %v9882_v5 = vadd.f32 %v4961_v45, %v4840_v41  ;;  %v9910_v41 = vadd.f32 %v5366_v4, %v5260_v18  ;;  %v11149_v45 = vld [vmem:[#allocation35_spill] sm:$0xff] }
 0x642   : > { %v11155_v18 = vld [vmem:[#allocation55_spill] sm:$0xff] }
 0x643   : > { %6416 = vmatmul.msk.bf16.gmra.mxu1 %vm933_vm2, %v11139_v44  ;;  %v11150_v44 = vld [vmem:[#allocation72_spill] sm:$0xff]  ;;  %v5401_v56 = vadd.f32 %v9730_v46, %v11155_v18  ;;  %v5404_v46 = vadd.f32 %v9810_v34, %v9737_v37  ;;  %v5407_v37 = vadd.f32 %v9834_v60, %v9771_v55  ;;  %v5410_v55 = vadd.f32 %v9860_v23, %v9788_v10 }
 0x644   : > { %v5399_v24 = vadd.f32 %v11151_v50, %v11150_v44  ;;  %v5413_v10 = vadd.f32 %v9884_v59, %v9802_v20  ;;  %v5415_v20 = vadd.f32 %v9900_v3, %v9814_v51 }
 0x648   : > { %v4963_v39 = vpop.f32.mrf.mxu1 }
 0x649   : > { %v9890_v21 = vadd.f32 %v4963_v39, %v4841_v32 }
 0x650   : > { %v5456_v12 = vpop.f32.mrf.mxu1 }
 0x651   : > { %v9896_v29 = vadd.f32 %v5456_v12, %v5396_v63  ;;  %v5400_v63 = vadd.f32 %v11153_v0, %v11152_v19  ;;  %v11159_v0 = vld [vmem:[#allocation7_spill] sm:$0xff] }
 0x653   : > { %6417 = vmatmul.msk.bf16.gmra.mxu1 %vm933_vm2, %v11144_v38 }
 0x658   : > { %v5458_v13 = vpop.f32.mrf.mxu1 }
 0x659   : > { %v9904_v35 = vadd.f32 %v5458_v13, %v5397_v2 }
 0x660   : > { %v5461_v43 = vpop.f32.mrf.mxu1 }
 0x661   : > { %v9908_v57 = vadd.f32 %v5461_v43, %v5398_v27  ;;  %v11157_v43 = vld [vmem:[#allocation12_spill] sm:$0xff] }
 0x663   : > { %6418 = vmatmul.msk.bf16.gmra.mxu1 %vm933_vm2, %v11149_v45  ;;  %v11158_v45 = vld [vmem:[#allocation61_spill] sm:$0xff] }
 0x664   : > { %v5403_v44 = vadd.f32 %v9762_v17, %v11158_v45  ;;  %v5406_v17 = vadd.f32 %v9826_v28, %v9764_v62  ;;  %v5409_v62 = vadd.f32 %v9852_v48, %v9782_v61  ;;  %v5412_v61 = vadd.f32 %v9876_v31, %v9798_v15  ;;  %v9994_v15 = vpop.f32.mrf.mxu0 }
 0x668   : > { %v5463_v32 = vpop.f32.mrf.mxu1 }
 0x669   : > { %v9916_v39 = vadd.f32 %v5463_v32, %v5399_v24 }
 0x670   : > { %v5466_v12 = vpop.f32.mrf.mxu1 }
 0x671   : > { %v9920_v38 = vadd.f32 %v5466_v12, %v5400_v63 }
 0x673   : > { %6419 = vmatmul.msk.bf16.gmra.mxu1 %vm933_vm2, %v11154_v47 }
 0x678   : > { %v5468_v2 = vpop.f32.mrf.mxu1 }
 0x679   : > { %v9926_v13 = vadd.f32 %v5468_v2, %v5401_v56  ;;  %v11160_v56 = vld [vmem:[#allocation6_spill] sm:$0xff] }
 0x680   : > { %v5471_v27 = vpop.f32.mrf.mxu1 }
 0x681   : > { %v9930_v4 = vadd.f32 %v5471_v27, %v5402_v58 }
 0x683   : > { %6420 = vmatmul.msk.bf16.gmra.mxu1 %vm933_vm2, %v11157_v43  ;;  %v11161_v43 = vld [vmem:[#allocation51_spill] sm:$0xff] }
 0x688   : > { %v5473_v50 = vpop.f32.mrf.mxu1 }
 0x689   : > { %v9936_v24 = vadd.f32 %v5473_v50, %v5403_v44  ;;  %v9986_v50 = vpop.f32.mrf.mxu2 }
 0x690   : > { %v5476_v32 = vpop.f32.mrf.mxu1 }
 0x691   : > { %v9940_v19 = vadd.f32 %v5476_v32, %v5404_v46  ;;  %v9988_v46 = vpop.f32.mrf.mxu3  ;;  %v9996_v31 = vpop.f32.mrf.mxu2 }
 0x693   : > { %6421 = vmatmul.msk.bf16.gmra.mxu1 %vm933_vm2, %v11159_v0 }
 0x698   : > { %v5478_v63 = vpop.f32.mrf.mxu1 }
 0x699   : > { %v9946_v12 = vadd.f32 %v5478_v63, %v5405_v42  ;;  %v10000_v59 = vpop.f32.mrf.mxu3  ;;  %v10004_v63 = vpop.f32.mrf.mxu0 }
 0x6a0   : > { %v5481_v47 = vpop.f32.mrf.mxu1 }
 0x6a1   : > { %v9950_v18 = vadd.f32 %v5481_v47, %v5406_v17  ;;  %v10006_v17 = vpop.f32.mrf.mxu2  ;;  %v10015_v47 = vadd.f32 %v10011_v25, %v9904_v35  ;;  %v10020_v3 = vpop.f32.mrf.mxu3  ;;  %v10034_v35 = vadd.f32 %v10011_v25, %v9916_v39 }
 0x6a3   : > { %6422 = vmatmul.msk.bf16.gmra.mxu1 %vm933_vm2, %v11160_v56  ;;  %v10024_v56 = vadd.f32 %v10011_v25, %v9896_v29  ;;  %v5605_v29 = vsel %vm933_vm2, %v10015_v47, 0.0 }
 0x6a5   : > { %v5604_v39 = vsel %vm933_vm2, %v10024_v56, 0.0 }
 0x6a8   : > { %v5483_v34 = vpop.f32.mrf.mxu1 }
 0x6a9   : > { %v9956_v2 = vadd.f32 %v5483_v34, %v5407_v37  ;;  %v10028_v37 = vadd.f32 %v10011_v25, %v9908_v57  ;;  %v5675_v34 = vmul.f32 %v10015_v47, %v10015_v47  ;;  %v10046_v57 = vadd.f32 %v10011_v25, %v9920_v38 }
 0x6b0   : > { %v5486_v40 = vpop.f32.mrf.mxu1 }
 0x6b1   : > { %v9960_v14 = vadd.f32 %v5486_v40, %v5408_v52  ;;  %v10036_v52 = vpop.f32.mrf.mxu0  ;;  %v5676_v40 = vmul.f32 %v10028_v37, %v10028_v37 }
 0x6b3   : > { %6423 = vmatmul.msk.bf16.gmra.mxu1 %vm933_vm2, %v9743_v54 }
 0x6b8   : > { %v5488_v28 = vpop.f32.mrf.mxu1 }
 0x6b9   : > { %v9966_v58 = vadd.f32 %v5488_v28, %v5409_v62  ;;  %v10048_v62 = vpop.f32.mrf.mxu2 }
 0x6c0   : > { %v5491_v60 = vpop.f32.mrf.mxu1 }
 0x6c1   : > { %v9970_v27 = vadd.f32 %v5491_v60, %v5410_v55  ;;  %v5707_v55 = vsel %vm933_vm2, %v5675_v34, 0.0  ;;  %v5607_v60 = vsel %vm933_vm2, %v10028_v37, 0.0  ;;  %v10082_v34 = vadd.f32 %v10011_v25, %v9936_v24 }
 0x6c3   : > { %6424 = vmatmul.msk.bf16.gmra.mxu1 %vm933_vm2, %v11161_v43  ;;  %v5677_v43 = vmul.f32 %v10034_v35, %v10034_v35  ;;  %11163 = vst [vmem:[#allocation75_spill] sm:$0xff] %v10082_v34 }
 0x6c8   : > { %v5493_v7 = vpop.f32.mrf.mxu1 }
 0x6c9   : > { %v9976_v54 = vadd.f32 %v5493_v7, %v5411_v16  ;;  %v10061_v16 = vadd.f32 %v10011_v25, %v9926_v13  ;;  %v5606_v7 = vadd.f32 %v5605_v29, %v5604_v39 }
 0x6cb   : > { %v5608_v13 = vadd.f32 %v5607_v60, %v5606_v7  ;;  %v10093_v60 = vpop.f32.mrf.mxu0 }
 0x6d0   : > { %v5496_v48 = vpop.f32.mrf.mxu1 }
 0x6d1   : > { %v9980_v45 = vadd.f32 %v5496_v48, %v5412_v61  ;;  %v5709_v61 = vsel %vm933_vm2, %v5676_v40, 0.0  ;;  %v5609_v48 = vsel %vm933_vm2, %v10034_v35, 0.0  ;;  %v5613_v40 = vsel %vm933_vm2, %v10061_v16, 0.0 }
 0x6d2   : > { %v5610_v29 = vadd.f32 %v5609_v48, %v5608_v13  ;;  %v5681_v48 = vmul.f32 %v10082_v34, %v10082_v34 }
 0x6d8   : > { %v5498_v23 = vpop.f32.mrf.mxu1 }
 0x6d9   : > { %v9984_v44 = vadd.f32 %v5498_v23, %v5413_v10  ;;  %v5678_v10 = vmul.f32 %v10046_v57, %v10046_v57  ;;  %v10071_v23 = vadd.f32 %v10011_v25, %v9930_v4 }
 0x6db   : > { %11162 = vst [vmem:[#allocation42_spill] sm:$0xff] %v10071_v23  ;;  %v5713_v4 = vsel %vm933_vm2, %v5678_v10, 0.0  ;;  %v5680_v39 = vmul.f32 %v10071_v23, %v10071_v23  ;;  %v10104_v10 = vadd.f32 %v10011_v25, %v9946_v12 }
 0x6e0   : > { %v5501_v26 = vpop.f32.mrf.mxu1 }
 0x6e1   : > { %v9992_v32 = vadd.f32 %v5501_v26, %v5414_v30  ;;  %v10073_v30 = vpop.f32.mrf.mxu3 }
 0x6e8   : > { %v5503_v0 = vpop.f32.mrf.mxu1 }
 0x6e9   : > { %v10002_v42 = vadd.f32 %v5503_v0, %v5415_v20  ;;  %v5711_v20 = vsel %vm933_vm2, %v5677_v43, 0.0  ;;  %v5611_v0 = vsel %vm933_vm2, %v10046_v57, 0.0 }
 0x6f0   : > { %v5506_v36 = vpop.f32.mrf.mxu1 }
 0x6f1   : > { %v10018_v51 = vadd.f32 %v5506_v36, %v9910_v41  ;;  %v5674_v41 = vmul.f32 %v10024_v56, %v10024_v56  ;;  %v5679_v36 = vmul.f32 %v10061_v16, %v10061_v16 }
 0x6f3   : > { %v5706_v38 = vsel %vm933_vm2, %v5674_v41, 0.0  ;;  %v5715_v7 = vsel %vm933_vm2, %v5679_v36, 0.0 }
 0x6f4   : > { %v5708_v26 = vadd.f32 %v5707_v55, %v5706_v38  ;;  %v10091_v55 = vadd.f32 %v10011_v25, %v9940_v19  ;;  %v5612_v38 = vadd.f32 %v5611_v0, %v5610_v29  ;;  %v5088_v19 = vpop.f32.mrf.mxu2  ;;  %v5617_v0 = vsel %vm933_vm2, %v10082_v34, 0.0 }
 0x6f5   : > { %v5127_v29 = vadd.f32 %v9986_v50, %v9824_v1 }
 0x6f6   : > { %v5710_v41 = vadd.f32 %v5709_v61, %v5708_v26  ;;  %v5615_v61 = vsel %vm933_vm2, %v10071_v23, 0.0  ;;  %v5614_v13 = vadd.f32 %v5613_v40, %v5612_v38  ;;  %v5682_v36 = vmul.f32 %v10091_v55, %v10091_v55  ;;  %v5222_v38 = vpop.f32.mrf.mxu3 }
 0x6f7   : > { %v5619_v40 = vsel %vm933_vm2, %v10091_v55, 0.0 }
 0x6f8   : > { %v10052_v28 = vpop.f32.mrf.mxu1  ;;  %v5712_v43 = vadd.f32 %v5711_v20, %v5710_v41  ;;  %v5717_v20 = vsel %vm933_vm2, %v5680_v39, 0.0  ;;  %v10113_v41 = vadd.f32 %v10011_v25, %v9950_v18  ;;  %v5616_v23 = vadd.f32 %v5615_v61, %v5614_v13 }
 0x6f9   : > { %v5683_v39 = vmul.f32 %v10104_v10, %v10104_v10  ;;  %v5128_v18 = vadd.f32 %v9996_v31, %v9830_v11  ;;  %v5721_v50 = vsel %vm933_vm2, %v5682_v36, 0.0  ;;  %v10150_v36 = vpop.f32.mrf.mxu0 }
 0x6fa   : > { %v5714_v26 = vadd.f32 %v5713_v4, %v5712_v43  ;;  %v5719_v4 = vsel %vm933_vm2, %v5681_v48, 0.0  ;;  %v10124_v43 = vadd.f32 %v10011_v25, %v9956_v2  ;;  %v5618_v1 = vadd.f32 %v5617_v0, %v5616_v23 }
 0x6fb   : > { %v5684_v61 = vmul.f32 %v10113_v41, %v10113_v41  ;;  %v10135_v48 = vadd.f32 %v10011_v25, %v9960_v14  ;;  %v5261_v2 = vadd.f32 %v9988_v46, %v5127_v29  ;;  %v5723_v31 = vsel %vm933_vm2, %v5683_v39, 0.0 }
 0x6fc   : > { %v5716_v12 = vadd.f32 %v5715_v7, %v5714_v26  ;;  %v5621_v7 = vsel %vm933_vm2, %v10104_v10, 0.0  ;;  %v5620_v13 = vadd.f32 %v5619_v40, %v5618_v1  ;;  %v5623_v23 = vsel %vm933_vm2, %v10113_v41, 0.0 }
 0x6fd   : > { %v10147_v0 = vadd.f32 %v10011_v25, %v9966_v58  ;;  %v5262_v14 = vadd.f32 %v10000_v59, %v5128_v18  ;;  %v5129_v46 = vadd.f32 %v10006_v17, %v9838_v53  ;;  %v5686_v40 = vmul.f32 %v10135_v48, %v10135_v48  ;;  %v5091_v53 = vpop.f32.mrf.mxu2 }
 0x6fe   : > { %v5718_v34 = vadd.f32 %v5717_v20, %v5716_v12  ;;  %v5685_v20 = vmul.f32 %v10124_v43, %v10124_v43  ;;  %v5622_v29 = vadd.f32 %v5621_v7, %v5620_v13  ;;  %v5725_v12 = vsel %vm933_vm2, %v5684_v61, 0.0 }
 0x6ff   : > { %v10161_v58 = vadd.f32 %v10011_v25, %v9970_v27  ;;  %v5130_v59 = vadd.f32 %v10048_v62, %v9844_v6  ;;  %v5131_v39 = vadd.f32 %v5088_v19, %v9850_v9  ;;  %v5687_v7 = vmul.f32 %v10147_v0, %v10147_v0 }
 0x700   : > { %v10095_v24 = vpop.f32.mrf.mxu1  ;;  %v5720_v26 = vadd.f32 %v5719_v4, %v5718_v34  ;;  %v5625_v4 = vsel %vm933_vm2, %v10124_v43, 0.0  ;;  %v5624_v18 = vadd.f32 %v5623_v23, %v5622_v29  ;;  %v5727_v1 = vsel %vm933_vm2, %v5685_v20, 0.0 }
 0x701   : > { %v10173_v27 = vadd.f32 %v10011_v25, %v9976_v54  ;;  %v5263_v61 = vadd.f32 %v10020_v3, %v5129_v46  ;;  %v5132_v6 = vadd.f32 %v5091_v53, %v9856_v49  ;;  %v5729_v19 = vsel %vm933_vm2, %v5686_v40, 0.0  ;;  %v5225_v3 = vpop.f32.mrf.mxu3 }
 0x702   : > { %v5722_v34 = vadd.f32 %v5721_v50, %v5720_v26  ;;  %v5627_v50 = vsel %vm933_vm2, %v10135_v48, 0.0  ;;  %v5626_v62 = vadd.f32 %v5625_v4, %v5624_v18  ;;  %v5629_v26 = vsel %vm933_vm2, %v10147_v0, 0.0  ;;  %v5381_v18 = vpop.f32.mrf.mxu0 }
 0x703   : > { %v5688_v13 = vmul.f32 %v10161_v58, %v10161_v58  ;;  %v5264_v54 = vadd.f32 %v10073_v30, %v5130_v59  ;;  %v5265_v23 = vadd.f32 %v5222_v38, %v5131_v39  ;;  %v5631_v29 = vsel %vm933_vm2, %v10161_v58, 0.0 }
 0x704   : > { %v5724_v17 = vadd.f32 %v5723_v31, %v5722_v34  ;;  %v10184_v31 = vadd.f32 %v10011_v25, %v9980_v45  ;;  %v5628_v49 = vadd.f32 %v5627_v50, %v5626_v62  ;;  %v5731_v34 = vsel %vm933_vm2, %v5687_v7, 0.0 }
 0x705   : > { %v10194_v4 = vadd.f32 %v10011_v25, %v9984_v44  ;;  %v10198_v30 = vadd.f32 %v10011_v25, %v9992_v32  ;;  %v5417_v38 = vadd.f32 %v9994_v15, %v5261_v2  ;;  %v5266_v59 = vadd.f32 %v5225_v3, %v5132_v6 }
 0x706   : > { %v5726_v9 = vadd.f32 %v5725_v12, %v5724_v17  ;;  %v5689_v12 = vmul.f32 %v10173_v27, %v10173_v27  ;;  %v5630_v40 = vadd.f32 %v5629_v26, %v5628_v49  ;;  %v5733_v39 = vsel %vm933_vm2, %v5688_v13, 0.0 }
 0x707   : > { %v5633_v53 = vsel %vm933_vm2, %v10173_v27, 0.0  ;;  %v5690_v17 = vmul.f32 %v10184_v31, %v10184_v31  ;;  %v5557_v50 = vadd.f32 %v10052_v28, %v5417_v38  ;;  %v5418_v7 = vadd.f32 %v10004_v63, %v5262_v14 }
 0x708   : > { %v10138_v11 = vpop.f32.mrf.mxu1  ;;  %v5728_v20 = vadd.f32 %v5727_v1, %v5726_v9  ;;  %v5632_v1 = vadd.f32 %v5631_v29, %v5630_v40  ;;  %v5735_v32 = vsel %vm933_vm2, %v5689_v12, 0.0  ;;  %v5635_v15 = vsel %vm933_vm2, %v10184_v31, 0.0  ;;  %v5093_v9 = vpop.f32.mrf.mxu2 }
 0x709   : > { %v5691_v2 = vmul.f32 %v10194_v4, %v10194_v4  ;;  %v10215_v6 = vadd.f32 %v10011_v25, %v10002_v42  ;;  %v5692_v28 = vmul.f32 %v10198_v30, %v10198_v30  ;;  %v5419_v63 = vadd.f32 %v10036_v52, %v5263_v61 }
 0x70a   : > { %v5730_v45 = vadd.f32 %v5729_v19, %v5728_v20  ;;  %v5634_v19 = vadd.f32 %v5633_v53, %v5632_v1  ;;  %v5737_v14 = vsel %vm933_vm2, %v5690_v17, 0.0  ;;  %v5637_v26 = vsel %vm933_vm2, %v10194_v4, 0.0 }
 0x70b   : > { %v10225_v13 = vadd.f32 %v10011_v25, %v10018_v51  ;;  %v5558_v42 = vadd.f32 %v10095_v24, %v5418_v7  ;;  %v10229_v49 = vadd.f32 %v10011_v25, %v5557_v50  ;;  %v5739_v52 = vsel %vm933_vm2, %v5691_v2, 0.0 }
 0x70c   : > { %v5732_v44 = vadd.f32 %v5731_v34, %v5730_v45  ;;  %v5636_v20 = vadd.f32 %v5635_v15, %v5634_v19  ;;  %v5420_v34 = vadd.f32 %v10093_v60, %v5264_v54  ;;  %v5639_v61 = vsel %vm933_vm2, %v10198_v30, 0.0  ;;  %v5227_v45 = vpop.f32.mrf.mxu3 }
 0x70d   : > { %v5693_v12 = vmul.f32 %v10215_v6, %v10215_v6  ;;  %v5559_v51 = vadd.f32 %v10138_v11, %v5419_v63  ;;  %v5741_v38 = vsel %vm933_vm2, %v5692_v28, 0.0  ;;  %v5641_v60 = vsel %vm933_vm2, %v10215_v6, 0.0 }
 0x70e   : > { %v5734_v62 = vadd.f32 %v5733_v39, %v5732_v44  ;;  %v5638_v40 = vadd.f32 %v5637_v26, %v5636_v20  ;;  %v5421_v39 = vadd.f32 %v10150_v36, %v5265_v23  ;;  %v5694_v54 = vmul.f32 %v10225_v13, %v10225_v13 }
 0x70f   : > { %v10245_v53 = vadd.f32 %v10011_v25, %v5558_v42  ;;  %v5695_v11 = vmul.f32 %v10229_v49, %v10229_v49  ;;  %v5743_v50 = vsel %vm933_vm2, %v5693_v12, 0.0  ;;  %v5643_v36 = vsel %vm933_vm2, %v10225_v13, 0.0 }
 0x710   : > { %v5516_v46 = vpop.f32.mrf.mxu1  ;;  %v5736_v3 = vadd.f32 %v5735_v32, %v5734_v62  ;;  %v5640_v1 = vadd.f32 %v5639_v61, %v5638_v40  ;;  %v10253_v23 = vadd.f32 %v10011_v25, %v5559_v51  ;;  %v5383_v32 = vpop.f32.mrf.mxu0  ;;  %v5133_v15 = vadd.f32 %v5093_v9, %v9864_v22 }
 0x711   : > { %v5560_v17 = vadd.f32 %v5516_v46, %v5420_v34  ;;  %v5422_v46 = vadd.f32 %v5381_v18, %v5266_v59  ;;  %v5745_v19 = vsel %vm933_vm2, %v5694_v54, 0.0  ;;  %v5645_v28 = vsel %vm933_vm2, %v10229_v49, 0.0  ;;  %v5096_v26 = vpop.f32.mrf.mxu2 }
 0x712   : > { %v5738_v24 = vadd.f32 %v5737_v14, %v5736_v3  ;;  %v5642_v62 = vadd.f32 %v5641_v60, %v5640_v1  ;;  %v5696_v63 = vmul.f32 %v10245_v53, %v10245_v53  ;;  %v5747_v20 = vsel %vm933_vm2, %v5695_v11, 0.0 }
 0x713   : > { %v10262_v14 = vadd.f32 %v10011_v25, %v5560_v17  ;;  %v5647_v59 = vsel %vm933_vm2, %v10245_v53, 0.0  ;;  %v5697_v18 = vmul.f32 %v10253_v23, %v10253_v23  ;;  %v5649_v51 = vsel %vm933_vm2, %v10253_v23, 0.0 }
 0x714   : > { %v5740_v44 = vadd.f32 %v5739_v52, %v5738_v24  ;;  %v5644_v3 = vadd.f32 %v5643_v36, %v5642_v62  ;;  %v5749_v12 = vsel %vm933_vm2, %v5696_v63, 0.0 }
 0x715   : > { %v5698_v24 = vmul.f32 %v10262_v14, %v10262_v14  ;;  %v5751_v54 = vsel %vm933_vm2, %v5697_v18, 0.0 }
 0x716   : > { %v5742_v2 = vadd.f32 %v5741_v38, %v5740_v44  ;;  %v5646_v61 = vadd.f32 %v5645_v28, %v5644_v3  ;;  %v5230_v38 = vpop.f32.mrf.mxu3  ;;  %v5134_v44 = vadd.f32 %v5096_v26, %v9870_v8 }
 0x718   : > { %v5518_v29 = vpop.f32.mrf.mxu1  ;;  %v5744_v42 = vadd.f32 %v5743_v50, %v5742_v2  ;;  %v5648_v60 = vadd.f32 %v5647_v59, %v5646_v61  ;;  %v5753_v50 = vsel %vm933_vm2, %v5698_v24, 0.0  ;;  %v5386_v2 = vpop.f32.mrf.mxu0 }
 0x719   : > { %v5561_v7 = vadd.f32 %v5518_v29, %v5421_v39  ;;  %v5267_v29 = vadd.f32 %v5227_v45, %v5133_v15  ;;  %v5651_v45 = vsel %vm933_vm2, %v10262_v14, 0.0  ;;  %v5098_v26 = vpop.f32.mrf.mxu2 }
 0x71a   : > { %v5746_v52 = vadd.f32 %v5745_v19, %v5744_v42  ;;  %v5650_v11 = vadd.f32 %v5649_v51, %v5648_v60  ;;  %v5135_v51 = vadd.f32 %v5098_v26, %v9878_v33 }
 0x71b   : > { %v10270_v9 = vadd.f32 %v10011_v25, %v5561_v7  ;;  %v5423_v15 = vadd.f32 %v5383_v32, %v5267_v29 }
 0x71c   : > { %v5748_v39 = vadd.f32 %v5747_v20, %v5746_v52  ;;  %v5268_v20 = vadd.f32 %v5230_v38, %v5134_v44 }
 0x71d   : > { %v5699_v17 = vmul.f32 %v10270_v9, %v10270_v9  ;;  %v5653_v36 = vsel %vm933_vm2, %v10270_v9, 0.0 }
 0x71e   : > { %v5750_v1 = vadd.f32 %v5749_v12, %v5748_v39  ;;  %v5232_v52 = vpop.f32.mrf.mxu3  ;;  %v5424_v38 = vadd.f32 %v5386_v2, %v5268_v20 }
 0x71f   : > { %v5755_v28 = vsel %vm933_vm2, %v5699_v17, 0.0  ;;  %v5269_v17 = vadd.f32 %v5232_v52, %v5135_v51 }
 0x720   : > { %v5521_v22 = vpop.f32.mrf.mxu1  ;;  %v5752_v62 = vadd.f32 %v5751_v54, %v5750_v1 }
 0x721   : > { %v5562_v34 = vadd.f32 %v5521_v22, %v5422_v46  ;;  %v5652_v46 = vadd.f32 %v5651_v45, %v5650_v11  ;;  %v5388_v45 = vpop.f32.mrf.mxu0  ;;  %v5101_v1 = vpop.f32.mrf.mxu2 }
 0x722   : > { %v5754_v42 = vadd.f32 %v5753_v50, %v5752_v62  ;;  %v5136_v33 = vadd.f32 %v5101_v1, %v9882_v5 }
 0x723   : > { %v10278_v40 = vadd.f32 %v10011_v25, %v5562_v34  ;;  %v5654_v3 = vadd.f32 %v5653_v36, %v5652_v46 }
 0x724   : > { %v5756_v32 = vadd.f32 %v5755_v28, %v5754_v42 }
 0x725   : > { %v5700_v7 = vmul.f32 %v10278_v40, %v10278_v40  ;;  %v5655_v8 = vsel %vm933_vm2, %v10278_v40, 0.0 }
 0x726   : > { %v5656_v18 = vadd.f32 %v5655_v8, %v5654_v3  ;;  %v5235_v2 = vpop.f32.mrf.mxu3 }
 0x727   : > { %v5757_v22 = vsel %vm933_vm2, %v5700_v7, 0.0  ;;  %v5270_v28 = vadd.f32 %v5235_v2, %v5136_v33 }
 0x728   : > { %v5523_v19 = vpop.f32.mrf.mxu1  ;;  %v5758_v61 = vadd.f32 %v5757_v22, %v5756_v32 }
 0x729   : > { %v5563_v63 = vadd.f32 %v5523_v19, %v5423_v15  ;;  %v5425_v15 = vadd.f32 %v5388_v45, %v5269_v17  ;;  %v5103_v3 = vpop.f32.mrf.mxu2 }
 0x72a   : > { %v5137_v20 = vadd.f32 %v5103_v3, %v9890_v21 }
 0x72b   : > { %v10296_v59 = vadd.f32 %v10011_v25, %v5563_v63  ;;  %v5391_v63 = vpop.f32.mrf.mxu0 }
 0x72c   : > { %v5426_v32 = vadd.f32 %v5391_v63, %v5270_v28 }
 0x72d   : > { %v5657_v34 = vsel %vm933_vm2, %v10296_v59, 0.0  ;;  %v5701_v29 = vmul.f32 %v10296_v59, %v10296_v59 }
 0x72e   : > { %v5658_v12 = vadd.f32 %v5657_v34, %v5656_v18  ;;  %v5237_v52 = vpop.f32.mrf.mxu3 }
 0x72f   : > { %v5759_v24 = vsel %vm933_vm2, %v5701_v29, 0.0 }
 0x730   : > { %v5760_v39 = vadd.f32 %v5759_v24, %v5758_v61  ;;  %v5526_v60 = vpop.f32.mrf.mxu1  ;;  %v5271_v61 = vadd.f32 %v5237_v52, %v5137_v20 }
 0x731   : > { %v5564_v54 = vadd.f32 %v5526_v60, %v5424_v38 }
 0x733   : > { %v10305_v44 = vadd.f32 %v10011_v25, %v5564_v54  ;;  %v5393_v38 = vpop.f32.mrf.mxu0 }
 0x734   : > { %v5427_v60 = vadd.f32 %v5393_v38, %v5271_v61 }
 0x735   : > { %v5659_v11 = vsel %vm933_vm2, %v10305_v44, 0.0  ;;  %v5702_v50 = vmul.f32 %v10305_v44, %v10305_v44 }
 0x736   : > { %v5660_v36 = vadd.f32 %v5659_v11, %v5658_v12 }
 0x737   : > { %v5761_v7 = vsel %vm933_vm2, %v5702_v50, 0.0 }
 0x738   : > { %v5762_v62 = vadd.f32 %v5761_v7, %v5760_v39  ;;  %v5528_v46 = vpop.f32.mrf.mxu1 }
 0x739   : > { %v5565_v19 = vadd.f32 %v5528_v46, %v5425_v15 }
 0x73b   : > { %v10314_v8 = vadd.f32 %v10011_v25, %v5565_v19 }
 0x73d   : > { %v5661_v26 = vsel %vm933_vm2, %v10314_v8, 0.0  ;;  %v5703_v42 = vmul.f32 %v10314_v8, %v10314_v8 }
 0x73e   : > { %v5662_v5 = vadd.f32 %v5661_v26, %v5660_v36 }
 0x73f   : > { %v5763_v22 = vsel %vm933_vm2, %v5703_v42, 0.0 }
 0x740   : > { %v5764_v18 = vadd.f32 %v5763_v22, %v5762_v62  ;;  %v5531_v34 = vpop.f32.mrf.mxu1 }
 0x741   : > { %v5566_v29 = vadd.f32 %v5531_v34, %v5426_v32 }
 0x743   : > { %v10323_v12 = vadd.f32 %v10011_v25, %v5566_v29 }
 0x745   : > { %v5663_v51 = vsel %vm933_vm2, %v10323_v12, 0.0  ;;  %v5704_v24 = vmul.f32 %v10323_v12, %v10323_v12 }
 0x746   : > { %v5664_v39 = vadd.f32 %v5663_v51, %v5662_v5 }
 0x747   : > { %v5765_v21 = vsel %vm933_vm2, %v5704_v24, 0.0 }
 0x748   : > { %v5766_v54 = vadd.f32 %v5765_v21, %v5764_v18  ;;  %v5533_v45 = vpop.f32.mrf.mxu1  ;;  %v6474_v21 = vld [vmem:[%s6549_s8 + $0x180] sm:$0xff] }
 0x749   : > { %v5567_v17 = vadd.f32 %v5533_v45, %v5427_v60  ;;  %v404_v60 = vrot.slane %v6474_v21, 1 }
 0x74b   : > { %v10331_v1 = vadd.f32 %v10011_v25, %v5567_v17 }
 0x74d   : > { %v5665_v11 = vsel %vm933_vm2, %v10331_v1, 0.0  ;;  %v5705_v50 = vmul.f32 %v10331_v1, %v10331_v1 }
 0x74e   : > { %v5666_v36 = vadd.f32 %v5665_v11, %v5664_v39 }
 0x74f   : > { %v5767_v33 = vsel %vm933_vm2, %v5705_v50, 0.0 }
 0x750   : > { %v5667_v7 = vrot.slane %v5666_v36, 4  ;;  %v5768_v15 = vadd.f32 %v5767_v33, %v5766_v54  ;;  %v10356_v54 = vld [vmem:[%s6549_s8 + $0x188] sm:$0xff] }
 0x751   : > { %v405_v45 = vrot.slane %v10356_v54, 1 }
 0x752   : > { %v5668_v2 = vadd.f32 %v5667_v7, %v5666_v36  ;;  %v5769_v62 = vrot.slane %v5768_v15, 4 }
 0x753   : > { %v10362_v50 = vsel %vm328_vm1, %v404_v60, %v405_v45 }
 0x754   : > { %v5669_v46 = vrot.slane %v5668_v2, 2  ;;  %v5770_v19 = vadd.f32 %v5769_v62, %v5768_v15 }
 0x756   : > { %v5670_v28 = vadd.f32 %v5669_v46, %v5668_v2  ;;  %v5771_v63 = vrot.slane %v5770_v19, 2 }
 0x758   : > { %v5671_v26 = vrot.slane %v5670_v28, 1  ;;  %v5772_v25 = vadd.f32 %v5771_v63, %v5770_v19  ;;  %v11164_v19 = vld [vmem:[#allocation42_spill] sm:$0xff] }
 0x75a   : > { %v5672_v42 = vadd.f32 %v5671_v26, %v5670_v28  ;;  %v5773_v3 = vrot.slane %v5772_v25, 1 }
 0x75c   : > { %v10338_v5 = vmul.f32 0.00390625, %v5672_v42  ;;  %v5774_v20 = vadd.f32 %v5773_v3, %v5772_v25 }
 0x75e   : > { %v5775_v22 = vmul.f32 0.00390625, %v5774_v20  ;;  %v5776_v32 = vmul.f32 %v10338_v5, %v10338_v5  ;;  %v5805_v29 = vsub.f32 %v10278_v40, %v10338_v5  ;;  %v5806_v52 = vsub.f32 %v10296_v59, %v10338_v5 }
 0x75f   : > { %v5807_v61 = vsub.f32 %v10305_v44, %v10338_v5  ;;  %v5808_v51 = vsub.f32 %v10314_v8, %v10338_v5  ;;  %v5809_v24 = vsub.f32 %v10323_v12, %v10338_v5  ;;  %v5810_v38 = vsub.f32 %v10331_v1, %v10338_v5  ;;  %v11170_v8 = vld [vmem:[#allocation31_spill] sm:$0xff]  ;;  %v11174_v1 = vld [vmem:[#allocation49_spill] sm:$0xff] }
 0x760   : > { %v5777_v18 = vsub.f32 %v5775_v22, %v5776_v32  ;;  %v5779_v33 = vsub.f32 %v10024_v56, %v10338_v5  ;;  %v5780_v7 = vsub.f32 %v10015_v47, %v10338_v5  ;;  %v5781_v15 = vsub.f32 %v10028_v37, %v10338_v5  ;;  %v11165_v56 = vld [vmem:[#allocation75_spill] sm:$0xff] }
 0x761   : > { %v5782_v2 = vsub.f32 %v10034_v35, %v10338_v5  ;;  %v5783_v62 = vsub.f32 %v10046_v57, %v10338_v5  ;;  %v5784_v46 = vsub.f32 %v10061_v16, %v10338_v5  ;;  %v5785_v28 = vsub.f32 %v11164_v19, %v10338_v5 }
 0x762   : > { %v5778_v34 = vmax.f32 %v5777_v18, 0.0  ;;  %v5786_v26 = vsub.f32 %v11165_v56, %v10338_v5  ;;  %v5787_v47 = vsub.f32 %v10091_v55, %v10338_v5  ;;  %v5788_v37 = vsub.f32 %v10104_v10, %v10338_v5 }
 0x763   : > { %v5789_v35 = vsub.f32 %v10113_v41, %v10338_v5  ;;  %v5790_v57 = vsub.f32 %v10124_v43, %v10338_v5  ;;  %v5791_v16 = vsub.f32 %v10135_v48, %v10338_v5  ;;  %v5792_v42 = vsub.f32 %v10147_v0, %v10338_v5 }
 0x764   : > { %v5811_v39 = vadd.f32 1e-05, %v5778_v34  ;;  %v5793_v55 = vsub.f32 %v10161_v58, %v10338_v5  ;;  %v5794_v10 = vsub.f32 %v10173_v27, %v10338_v5  ;;  %v5795_v41 = vsub.f32 %v10184_v31, %v10338_v5 }
 0x765   : > { %v5796_v43 = vsub.f32 %v10194_v4, %v10338_v5  ;;  %v5797_v48 = vsub.f32 %v10198_v30, %v10338_v5  ;;  %v5798_v0 = vsub.f32 %v10215_v6, %v10338_v5  ;;  %v5799_v58 = vsub.f32 %v10225_v13, %v10338_v5 }
 0x766   : > { %6461 = vrsqrt.f32 %v5811_v39  ;;  %vm5818_vm5 = vweird.f32 %v5811_v39  ;;  %v5800_v27 = vsub.f32 %v10229_v49, %v10338_v5  ;;  %v5801_v31 = vsub.f32 %v10245_v53, %v10338_v5 }
 0x767   : > { %v5802_v4 = vsub.f32 %v10253_v23, %v10338_v5  ;;  %v5803_v30 = vsub.f32 %v10262_v14, %v10338_v5  ;;  %v5804_v20 = vsub.f32 %v10270_v9, %v10338_v5 }
 0x76c   : > { %v6462_v17 = vpop.eup %6461 }
 0x76d   : > { %v5813_v11 = vmul.f32 %v6462_v17, %v5811_v39  ;;  %vm5819_vm0 = vweird.f32 %v6462_v17 }
 0x76e   : > { %vm5820_vm8 = vmor %vm5818_vm5, %vm5819_vm0 }
 0x76f   : > { %v5814_v36 = vmul.f32 %v6462_v17, %v5813_v11 }
 0x771   : > { %v5815_v63 = vmul.f32 0.5, %v5814_v36 }
 0x773   : > { %v5816_v25 = vsub.f32 1.5, %v5815_v63 }
 0x775   : > { %v5817_v3 = vmul.f32 %v6462_v17, %v5816_v25  ;;  %v11168_v25 = vld [vmem:[#allocation22_spill] sm:$0xff] }
 0x777   : > { %v5821_v6 = vsel %vm5820_vm8, %v6462_v17, %v5817_v3  ;;  %v11176_v3 = vld [vmem:[#allocation58_spill] sm:$0xff] }
 0x778   : > { %v5822_v22 = vmul.f32 %v5821_v6, %v5779_v33  ;;  %v5823_v13 = vmul.f32 %v5821_v6, %v5780_v7  ;;  %v5824_v32 = vmul.f32 %v5821_v6, %v5781_v15  ;;  %v5825_v18 = vmul.f32 %v5821_v6, %v5782_v2 }
 0x779   : > { %v5826_v49 = vmul.f32 %v5821_v6, %v5783_v62  ;;  %v5827_v34 = vmul.f32 %v5821_v6, %v5784_v46  ;;  %v5828_v39 = vmul.f32 %v5821_v6, %v5785_v28  ;;  %v5829_v53 = vmul.f32 %v5821_v6, %v5786_v26 }
 0x77a   : > { %v5830_v21 = vmul.f32 %v5821_v6, %v5787_v47  ;;  %v5831_v60 = vmul.f32 %v5821_v6, %v5788_v37  ;;  %v5832_v11 = vmul.f32 %v5821_v6, %v5789_v35  ;;  %v5833_v23 = vmul.f32 %v5821_v6, %v5790_v57  ;;  %v11167_v57 = vld [vmem:[#allocation14_spill] sm:$0xff] }
 0x77b   : > { %v5834_v36 = vmul.f32 %v5821_v6, %v5791_v16  ;;  %v5835_v19 = vmul.f32 %v5821_v6, %v5792_v42  ;;  %v5836_v14 = vmul.f32 %v5821_v6, %v5793_v55  ;;  %v5837_v63 = vmul.f32 %v5821_v6, %v5794_v10 }
 0x77c   : > { %v5838_v9 = vmul.f32 %v5821_v6, %v5795_v41  ;;  %v5839_v17 = vmul.f32 %v5821_v6, %v5796_v43  ;;  %v5840_v33 = vmul.f32 %v5821_v6, %v5797_v48  ;;  %v5841_v56 = vmul.f32 %v5821_v6, %v5798_v0  ;;  %v11172_v41 = vld [vmem:[#allocation40_spill] sm:$0xff] }
 0x77d   : > { %v5842_v7 = vmul.f32 %v5821_v6, %v5799_v58  ;;  %v5843_v15 = vmul.f32 %v5821_v6, %v5800_v27  ;;  %v5844_v2 = vmul.f32 %v5821_v6, %v5801_v31  ;;  %v5845_v62 = vmul.f32 %v5821_v6, %v5802_v4  ;;  %v11177_v58 = vld [vmem:[#allocation59_spill] sm:$0xff]  ;;  %v11178_v31 = vld [vmem:[#allocation68_spill] sm:$0xff] }
 0x77e   : > { %v5846_v46 = vmul.f32 %v5821_v6, %v5803_v30  ;;  %v5847_v28 = vmul.f32 %v5821_v6, %v5804_v20  ;;  %v5848_v26 = vmul.f32 %v5821_v6, %v5805_v29  ;;  %v5849_v47 = vmul.f32 %v5821_v6, %v5806_v52  ;;  %v11166_v29 = vld [vmem:[#allocation13_spill] sm:$0xff] }
 0x77f   : > { %v5850_v37 = vmul.f32 %v5821_v6, %v5807_v61  ;;  %v5851_v35 = vmul.f32 %v5821_v6, %v5808_v51  ;;  %v5852_v40 = vmul.f32 %v5821_v6, %v5809_v24  ;;  %v5853_v59 = vmul.f32 %v5821_v6, %v5810_v38  ;;  %v11169_v61 = vld [vmem:[#allocation23_spill] sm:$0xff]  ;;  %v11171_v51 = vld [vmem:[#allocation32_spill] sm:$0xff]  ;;  %v11173_v24 = vld [vmem:[#allocation41_spill] sm:$0xff] }
 0x780   : > { %v5854_v52 = vadd.f32 %v5822_v22, %v11166_v29  ;;  %v5855_v16 = vadd.f32 %v5823_v13, %v11167_v57  ;;  %v5856_v44 = vadd.f32 %v5824_v32, %v11168_v25  ;;  %v5857_v42 = vadd.f32 %v5825_v18, %v11169_v61  ;;  %v11175_v38 = vld [vmem:[#allocation50_spill] sm:$0xff]  ;;  %v11179_v30 = vld [vmem:[#allocation69_spill] sm:$0xff]  ;;  %v11180_v6 = vld [vmem:[#allocation3_spill] sm:$0xff] }
 0x781   : > { %v5858_v55 = vadd.f32 %v5826_v49, %v11170_v8  ;;  %v5859_v10 = vadd.f32 %v5827_v34, %v11171_v51  ;;  %v5860_v12 = vadd.f32 %v5828_v39, %v11172_v41  ;;  %v5861_v43 = vadd.f32 %v5829_v53, %v11173_v24  ;;  %v11181_v13 = vld [vmem:[#allocation4_spill] sm:$0xff]  ;;  %v11183_v34 = vld [vmem:[#allocation11_spill] sm:$0xff]  ;;  %v11184_v53 = vld [vmem:[#allocation18_spill] sm:$0xff] }
 0x782   : > { %v5862_v5 = vadd.f32 %v5830_v21, %v11174_v1  ;;  %v5863_v48 = vadd.f32 %v5831_v60, %v11175_v38  ;;  %v5864_v0 = vadd.f32 %v5832_v11, %v11176_v3  ;;  %v5865_v27 = vadd.f32 %v5833_v23, %v11177_v58  ;;  %5886 = vst.msk [vmem:[%s10426_s21] sm:$0xff] %vm933_vm2, %v5854_v52  ;;  %v11182_v18 = vld [vmem:[#allocation8_spill] sm:$0xff]  ;;  %v11186_v23 = vld [vmem:[#allocation27_spill] sm:$0xff] }
 0x783   : > { %v5866_v4 = vadd.f32 %v5834_v36, %v11178_v31  ;;  %v5867_v20 = vadd.f32 %v5835_v19, %v11179_v30  ;;  %v5868_v22 = vadd.f32 %v5836_v14, %v11180_v6  ;;  %v5869_v32 = vadd.f32 %v5837_v63, %v11181_v13  ;;  %5887 = vst.msk [vmem:[%s10426_s21 + $0x8] sm:$0xff] %vm933_vm2, %v5855_v16  ;;  %v11185_v60 = vld [vmem:[#allocation20_spill] sm:$0xff]  ;;  %v11187_v19 = vld [vmem:[#allocation29_spill] sm:$0xff]  ;;  %v11191_v52 = vld [vmem:[#allocation47_spill] sm:$0xff] }
 0x784   : > { %v5870_v49 = vadd.f32 %v5838_v9, %v11182_v18  ;;  %v5871_v39 = vadd.f32 %v5839_v17, %v11183_v34  ;;  %v5872_v21 = vadd.f32 %v5840_v33, %v11184_v53  ;;  %v5873_v11 = vadd.f32 %v5841_v56, %v11185_v60  ;;  %5888 = vst.msk [vmem:[%s10426_s21 + $0x10] sm:$0xff] %vm933_vm2, %v5856_v44  ;;  %v11188_v63 = vld [vmem:[#allocation36_spill] sm:$0xff]  ;;  %v11189_v9 = vld [vmem:[#allocation38_spill] sm:$0xff]  ;;  %v11190_v33 = vld [vmem:[#allocation45_spill] sm:$0xff] }
 0x785   : > { %v5874_v36 = vadd.f32 %v5842_v7, %v11186_v23  ;;  %v5875_v14 = vadd.f32 %v5843_v15, %v11187_v19  ;;  %v5876_v29 = vadd.f32 %v5844_v2, %v11188_v63  ;;  %v5877_v17 = vadd.f32 %v5845_v62, %v11189_v9  ;;  %5889 = vst.msk [vmem:[%s10426_s21 + $0x18] sm:$0xff] %vm933_vm2, %v5857_v42  ;;  %v11192_v16 = vld [vmem:[#allocation54_spill] sm:$0xff]  ;;  %v11193_v25 = vld [vmem:[#allocation56_spill] sm:$0xff] }
 0x786   : > { %v5878_v56 = vadd.f32 %v5846_v46, %v11190_v33  ;;  %v5879_v57 = vadd.f32 %v5847_v28, %v11191_v52  ;;  %v5880_v7 = vadd.f32 %v5848_v26, %v11192_v16  ;;  %v5881_v15 = vadd.f32 %v5849_v47, %v11193_v25  ;;  %5890 = vst.msk [vmem:[%s10426_s21 + $0x20] sm:$0xff] %vm933_vm2, %v5858_v55  ;;  %v11194_v2 = vld [vmem:[#allocation62_spill] sm:$0xff] }
 0x787   : > { %v5882_v62 = vadd.f32 %v5850_v37, %v11194_v2  ;;  %v11195_v44 = vld [vmem:[#allocation66_spill] sm:$0xff]  ;;  %v5884_v46 = vadd.f32 %v5852_v40, %v10362_v50  ;;  %5891 = vst.msk [vmem:[%s10426_s21 + $0x28] sm:$0xff] %vm933_vm2, %v5859_v10 }
 0x788   : > { %v5883_v61 = vadd.f32 %v5851_v35, %v11195_v44  ;;  %5892 = vst.msk [vmem:[%s10426_s21 + $0x30] sm:$0xff] %vm933_vm2, %v5860_v12  ;;  %v6476_v50 = vld [vmem:[%s6549_s8 + $0x190] sm:$0x3] }
 0x789   : > { %5893 = vst.msk [vmem:[%s10426_s21 + $0x38] sm:$0xff] %vm933_vm2, %v5861_v43  ;;  %v407_v28 = vrot.slane %v6476_v50, 1 }
 0x78a   : > { %5894 = vst.msk [vmem:[%s10426_s21 + $0x40] sm:$0xff] %vm933_vm2, %v5862_v5 }
 0x78b   : > { %5895 = vst.msk [vmem:[%s10426_s21 + $0x48] sm:$0xff] %vm933_vm2, %v5863_v48  ;;  %v408_v26 = vsel %vm328_vm1, %v405_v45, %v407_v28 }
 0x78c   : > { %5896 = vst.msk [vmem:[%s10426_s21 + $0x50] sm:$0xff] %vm933_vm2, %v5864_v0  ;;  %v5885_v47 = vadd.f32 %v5853_v59, %v408_v26 }
 0x78d   : > { %5897 = vst.msk [vmem:[%s10426_s21 + $0x58] sm:$0xff] %vm933_vm2, %v5865_v27 }
 0x78e   : > { %5898 = vst.msk [vmem:[%s10426_s21 + $0x60] sm:$0xff] %vm933_vm2, %v5866_v4 }
 0x78f   : > { %5899 = vst.msk [vmem:[%s10426_s21 + $0x68] sm:$0xff] %vm933_vm2, %v5867_v20 }
 0x790   : > { %5900 = vst.msk [vmem:[%s10426_s21 + $0x70] sm:$0xff] %vm933_vm2, %v5868_v22 }
 0x791   : > { %5901 = vst.msk [vmem:[%s10426_s21 + $0x78] sm:$0xff] %vm933_vm2, %v5869_v32 }
 0x792   : > { %5902 = vst.msk [vmem:[%s10426_s21 + $0x80] sm:$0xff] %vm933_vm2, %v5870_v49 }
 0x793   : > { %5903 = vst.msk [vmem:[%s10426_s21 + $0x88] sm:$0xff] %vm933_vm2, %v5871_v39 }
 0x794   : > { %5904 = vst.msk [vmem:[%s10426_s21 + $0x90] sm:$0xff] %vm933_vm2, %v5872_v21 }
 0x795   : > { %5905 = vst.msk [vmem:[%s10426_s21 + $0x98] sm:$0xff] %vm933_vm2, %v5873_v11 }
 0x796   : > { %5906 = vst.msk [vmem:[%s10426_s21 + $0xa0] sm:$0xff] %vm933_vm2, %v5874_v36 }
 0x797   : > { %5907 = vst.msk [vmem:[%s10426_s21 + $0xa8] sm:$0xff] %vm933_vm2, %v5875_v14 }
 0x798   : > { %5908 = vst.msk [vmem:[%s10426_s21 + $0xb0] sm:$0xff] %vm933_vm2, %v5876_v29 }
 0x799   : > { %5909 = vst.msk [vmem:[%s10426_s21 + $0xb8] sm:$0xff] %vm933_vm2, %v5877_v17 }
 0x79a   : > { %5910 = vst.msk [vmem:[%s10426_s21 + $0xc0] sm:$0xff] %vm933_vm2, %v5878_v56 }
 0x79b   : > { %5911 = vst.msk [vmem:[%s10426_s21 + $0xc8] sm:$0xff] %vm933_vm2, %v5879_v57 }
 0x79c   : > { %5912 = vst.msk [vmem:[%s10426_s21 + $0xd0] sm:$0xff] %vm933_vm2, %v5880_v7 }
 0x79d   : > { %5913 = vst.msk [vmem:[%s10426_s21 + $0xd8] sm:$0xff] %vm933_vm2, %v5881_v15 }
 0x79e   : > { %5914 = vst.msk [vmem:[%s10426_s21 + $0xe0] sm:$0xff] %vm933_vm2, %v5882_v62 }
 0x79f   : > { %5915 = vst.msk [vmem:[%s10426_s21 + $0xe8] sm:$0xff] %vm933_vm2, %v5883_v61 }
 0x7a0   : > { %5916 = vst.msk [vmem:[%s10426_s21 + $0xf0] sm:$0xff] %vm933_vm2, %v5884_v46 }
 0x7a1   : > { %5917 = vst.msk [vmem:[%s10426_s21 + $0xf8] sm:$0xff] %vm933_vm2, %v5885_v47 }
 0x7a2 PF: > { %s15_s18 = sadd.s32 1, %s6483_s18  }
 0x7a3   : > { %p12_p4 = scmp.ge.s32.totalorder %s15_s18, 4  }
 0x7a5   :  { %14 = sbr.rel (!%p12_p4) target bundleno = 1 (0x1), region = 90 }

</bundles_post_ra>
